<compile_context>
chip_gen: v7x
topology: tpu7x:2x2x1
jax: 0.10.0
libtpu: 0.0.40
codegen_flags: <defaults>
</compile_context>

<pallas_src>
import numpy as np
import jax
import jax.numpy as jnp
from jax.experimental import pallas as pl
from jax.experimental.pallas import tpu as pltpu

# ---- model config (consistent with YOLOv1's head) ---------------------------
S = 4                   # grid cells per side
B = 2                   # boxes per cell
NC = 20                 # classes -> head channels = B*5 + NC = 30
CONV1_CH = 64           # conv_block_channels[0]
BACKBONE_FEATURES = 32
# TODO(synk): CustomConvBlock source not given; slope 0.1 (YOLO paper) assumed,
# nn.LeakyReLU's default would be 0.01.
LEAKY_SLOPE = 0.1

CPAD = 128              # every channel dim zero-padded to one lane tile
C1P = 8                 # padded input channels of the first conv (3 -> 8)

# ---- flattened-spatial geometry (32x32 input) -------------------------------
# backbone conv1 (3x3/s2): wrapper phase-splits the padded 34x34 input into six
# (16,17,C) planes, plane k = 2*dy + dx%2; tap (dy,dx) is then a unit-stride
# slice at flat-row offset dx//2.
PH_W, PH_ROWS = 17, 16 * 17      # 272
L1 = 15 * PH_W + 16              # 271 rows of the bb1 accumulator
# bb1 output (16x16) zero-padded to 18x18, flattened
W2G, X2_ROWS = 18, 18 * 18       # 324
L2 = 15 * W2G + 16               # 286 rows of the bb2 full-resolution accumulator
# bb2 output (8x8) zero-padded to 10x10, flattened
W3G, X3_ROWS = 10, 10 * 10       # 100
L3 = 7 * W3G + 8                 # 78
# pooled output (4x4) zero-padded to 6x6, flattened
W4G, X4_ROWS = 6, 6 * 6          # 36
L4 = 3 * W4G + 4                 # 22


# -----------------------------------------------------------------------------
# selection matrices (built once, host-side): discard invalid flat rows,
# apply the stride-2 subsample / 2x2 avg-pool, and scatter into the next
# layer's zero-padded flat layout — all as a single lane-dense MXU matmul.
# -----------------------------------------------------------------------------
def _build_sel1():
    sel = np.zeros((X2_ROWS, L1), np.float32)
    for i in range(16):
        for j in range(16):
            sel[(i + 1) * W2G + (j + 1), i * PH_W + j] = 1.0
    return sel


def _build_sel2():
    sel = np.zeros((X3_ROWS, L2), np.float32)
    for i in range(8):
        for j in range(8):
            sel[(i + 1) * W3G + (j + 1), (2 * i) * W2G + (2 * j)] = 1.0
    return sel


def _build_sel3():
    sel = np.zeros((X4_ROWS, L3), np.float32)
    for i in range(4):
        for j in range(4):
            for py in range(2):
                for px in range(2):
                    sel[(i + 1) * W4G + (j + 1),
                        (2 * i + py) * W3G + (2 * j + px)] = 0.25
    return sel


# -----------------------------------------------------------------------------
# fused forward kernel (one grid step == one image)
# -----------------------------------------------------------------------------
def _yolo_kernel(x_ref, w1_ref, b1_ref, s1_ref, w2_ref, b2_ref, s2_ref,
                 w3_ref, b3_ref, s3_ref, w4_ref, b4_ref, o_ref,
                 x2_ref, x3_ref, x4_ref):
    f32 = jnp.float32
    bf16 = jnp.bfloat16

    # ---- backbone conv 1: 3x3 / stride 2 / pad 1, 3 -> 16(->128), ReLU ------
    acc = jnp.zeros((L1, CPAD), f32)
    for dy in range(3):
        for dx in range(3):
            k = 2 * dy + (dx % 2)          # phase plane
            ddx = dx // 2                  # flat-row offset inside the plane
            lhs = x_ref[0, k, ddx:ddx + L1, :].astype(bf16)
            acc = acc + jnp.dot(lhs, w1_ref[3 * dy + dx],
                                preferred_element_type=f32)
    act = jnp.maximum(acc + b1_ref[...], 0.0)
    # scatter valid rows into the zero-padded 18x18 flat layout
    x2_ref[...] = jnp.dot(s1_ref[...], act.astype(bf16),
                          preferred_element_type=f32)

    # ---- backbone conv 2: 3x3 / stride 2 / pad 1, 16 -> 32(->128), ReLU -----
    acc = jnp.zeros((L2, CPAD), f32)
    for dy in range(3):
        for dx in range(3):
            off = dy * W2G + dx
            lhs = x2_ref[off:off + L2, :].astype(bf16)
            acc = acc + jnp.dot(lhs, w2_ref[3 * dy + dx],
                                preferred_element_type=f32)
    act = jnp.maximum(acc + b2_ref[...], 0.0)
    # stride-2 subsample + scatter into the zero-padded 10x10 flat layout
    x3_ref[...] = jnp.dot(s2_ref[...], act.astype(bf16),
                          preferred_element_type=f32)

    # ---- conv_block_1: 3x3 / stride 1 / pad 1, 32 -> 64(->128), LeakyReLU ---
    acc = jnp.zeros((L3, CPAD), f32)
    for dy in range(3):
        for dx in range(3):
            off = dy * W3G + dx
            lhs = x3_ref[off:off + L3, :].astype(bf16)
            acc = acc + jnp.dot(lhs, w3_ref[3 * dy + dx],
                                preferred_element_type=f32)
    a = acc + b3_ref[...]
    act = jnp.where(a > 0.0, a, LEAKY_SLOPE * a)
    # 2x2 average pool + scatter into the zero-padded 6x6 flat layout
    x4_ref[...] = jnp.dot(s3_ref[...], act.astype(bf16),
                          preferred_element_type=f32)

    # ---- conv_block_end: 3x3 / stride 1 / pad 1, 64 -> 30(->128), Sigmoid ---
    acc = jnp.zeros((L4, CPAD), f32)
    for dy in range(3):
        for dx in range(3):
            off = dy * W4G + dx
            lhs = x4_ref[off:off + L4, :].astype(bf16)
            acc = acc + jnp.dot(lhs, w4_ref[3 * dy + dx],
                                preferred_element_type=f32)
    y = jax.nn.sigmoid(acc + b4_ref[...])
    for i in range(S):
        o_ref[0, i, :, :] = y[W4G * i:W4G * i + S, :]


# -----------------------------------------------------------------------------
# parameters: inference BatchNorm folded into conv weights, channels padded,
# weights cast to bf16, selection matrices attached.
# -----------------------------------------------------------------------------
def init_params(key):
    def conv_bn(k, cin, cout):
        kw_, kg, kb = jax.random.split(k, 3)
        w = 0.05 * jax.random.normal(kw_, (3, 3, cin, cout), jnp.float32)
        gamma = 1.0 + 0.1 * jax.random.normal(kg, (cout,), jnp.float32)
        beta = 0.1 * jax.random.normal(kb, (cout,), jnp.float32)
        mean = jnp.zeros((cout,), jnp.float32)
        var = jnp.ones((cout,), jnp.float32)
        scale = gamma / jnp.sqrt(var + 1e-5)
        return w * scale[None, None, None, :], beta - scale * mean

    ks = jax.random.split(key, 4)
    raw = {}
    # TODO(synk): BackboneFactory/timm backbone is external; a 2-layer strided
    # conv+BN+ReLU stem with num_features=32 (frozen, inference BN) stands in.
    raw["w1"], raw["b1"] = conv_bn(ks[0], 3, 16)
    raw["w2"], raw["b2"] = conv_bn(ks[1], 16, BACKBONE_FEATURES)
    raw["w3"], raw["b3"] = conv_bn(ks[2], BACKBONE_FEATURES, CONV1_CH)
    # TODO(synk): BasicConvBlock source not given; conv3x3 + BN + Sigmoid assumed.
    raw["w4"], raw["b4"] = conv_bn(ks[3], CONV1_CH, B * 5 + NC)
    return raw


def pack_params(raw):
    def pack(w, b, cin_pad):
        kh, kw, cin, cout = w.shape
        wp = jnp.zeros((kh * kw, cin_pad, CPAD), jnp.float32)
        wp = wp.at[:, :cin, :cout].set(w.reshape(kh * kw, cin, cout))
        bp = jnp.zeros((1, CPAD), jnp.float32).at[0, :cout].set(b)
        return wp.astype(jnp.bfloat16), bp

    p = {}
    p["w1"], p["b1"] = pack(raw["w1"], raw["b1"], C1P)
    p["w2"], p["b2"] = pack(raw["w2"], raw["b2"], CPAD)
    p["w3"], p["b3"] = pack(raw["w3"], raw["b3"], CPAD)
    p["w4"], p["b4"] = pack(raw["w4"], raw["b4"], CPAD)
    p["s1"] = jnp.asarray(_build_sel1(), jnp.bfloat16)
    p["s2"] = jnp.asarray(_build_sel2(), jnp.bfloat16)
    p["s3"] = jnp.asarray(_build_sel3(), jnp.bfloat16)
    return p


# -----------------------------------------------------------------------------
# forward: NCHW in, (N, S, S, B*5+NC) out (== PyTorch's final .permute(0,2,3,1))
# -----------------------------------------------------------------------------
def yolov1_forward(x_nchw, p):
    n = x_nchw.shape[0]
    x = jnp.transpose(x_nchw, (0, 2, 3, 1))                 # NCHW -> NHWC
    xp = jnp.pad(x, ((0, 0), (1, 1), (1, 1), (0, 0)))       # 34x34 conv-1 halo
    # phase split for the stride-2 first conv: plane k = 2*dy + px
    phases = [xp[:, dy:dy + 32:2, px::2, :] for dy in range(3) for px in range(2)]
    x6 = jnp.stack(phases, axis=1).reshape(n, 6, PH_ROWS, 3)
    x6 = jnp.pad(x6, ((0, 0), (0, 0), (0, 0), (0, C1P - 3)))  # 3 -> 8 channels

    out = pl.pallas_call(
        _yolo_kernel,
        out_shape=jax.ShapeDtypeStruct((n, S, S, CPAD), jnp.float32),
        grid=(n,),
        in_specs=[
            pl.BlockSpec((1, 6, PH_ROWS, C1P), lambda b: (b, 0, 0, 0)),
            pl.BlockSpec((9, C1P, CPAD), lambda b: (0, 0, 0)),
            pl.BlockSpec((1, CPAD), lambda b: (0, 0)),
            pl.BlockSpec((X2_ROWS, L1), lambda b: (0, 0)),
            pl.BlockSpec((9, CPAD, CPAD), lambda b: (0, 0, 0)),
            pl.BlockSpec((1, CPAD), lambda b: (0, 0)),
            pl.BlockSpec((X3_ROWS, L2), lambda b: (0, 0)),
            pl.BlockSpec((9, CPAD, CPAD), lambda b: (0, 0, 0)),
            pl.BlockSpec((1, CPAD), lambda b: (0, 0)),
            pl.BlockSpec((X4_ROWS, L3), lambda b: (0, 0)),
            pl.BlockSpec((9, CPAD, CPAD), lambda b: (0, 0, 0)),
            pl.BlockSpec((1, CPAD), lambda b: (0, 0)),
        ],
        out_specs=pl.BlockSpec((1, S, S, CPAD), lambda b: (b, 0, 0, 0)),
        scratch_shapes=[
            pltpu.VMEM((X2_ROWS, CPAD), jnp.float32),
            pltpu.VMEM((X3_ROWS, CPAD), jnp.float32),
            pltpu.VMEM((X4_ROWS, CPAD), jnp.float32),
        ],
        compiler_params=pltpu.CompilerParams(dimension_semantics=("parallel",)),
    )(x6, p["w1"], p["b1"], p["s1"], p["w2"], p["b2"], p["s2"],
      p["w3"], p["b3"], p["s3"], p["w4"], p["b4"])
    return out[..., :B * 5 + NC]


# -----------------------------------------------------------------------------
# plain-JAX reference (f32) for numerical validation
# -----------------------------------------------------------------------------
def reference_forward(x_nchw, raw):
    x = jnp.transpose(x_nchw, (0, 2, 3, 1))

    def conv(x, w, b, stride):
        y = jax.lax.conv_general_dilated(
            x, w, (stride, stride), ((1, 1), (1, 1)),
            dimension_numbers=("NHWC", "HWIO", "NHWC"))
        return y + b

    x = jnp.maximum(conv(x, raw["w1"], raw["b1"], 2), 0.0)
    x = jnp.maximum(conv(x, raw["w2"], raw["b2"], 2), 0.0)
    x = conv(x, raw["w3"], raw["b3"], 1)
    x = jnp.where(x > 0.0, x, LEAKY_SLOPE * x)
    n, h, w, c = x.shape
    x = x.reshape(n, S, h // S, S, w // S, c).mean(axis=(2, 4))
    return jax.nn.sigmoid(conv(x, raw["w4"], raw["b4"], 1))


if __name__ == "__main__":
    key = jax.random.PRNGKey(0)
    pkey, xkey = jax.random.split(key)
    raw = init_params(pkey)
    packed = pack_params(raw)
    x = jax.random.normal(xkey, (2, 3, 32, 32), jnp.float32)   # NCHW, like PyTorch

    out = jax.block_until_ready(jax.jit(yolov1_forward)(x, packed))
    assert out.shape == (2, S, S, B * 5 + NC), out.shape
    assert bool(jnp.all(jnp.isfinite(out)))

    ref = jax.block_until_ready(jax.jit(reference_forward)(x, raw))
    err = float(jnp.max(jnp.abs(out - ref)))
    assert err < 2e-2, f"max |kernel - reference| = {err}"

    print("KERNEL_OK")
</pallas_src>

<mosaic_0001>
module attributes {stable_mosaic.version = 11 : i64} {
  func.func @_yolo_kernel(%arg0: i32, %arg1: memref<1x6x272x8xf32, #tpu.memory_space<vmem>>, %arg2: memref<9x8x128xbf16, #tpu.memory_space<vmem>>, %arg3: memref<1x128xf32, #tpu.memory_space<vmem>>, %arg4: memref<324x271xbf16, #tpu.memory_space<vmem>>, %arg5: memref<9x128x128xbf16, #tpu.memory_space<vmem>>, %arg6: memref<1x128xf32, #tpu.memory_space<vmem>>, %arg7: memref<100x286xbf16, #tpu.memory_space<vmem>>, %arg8: memref<9x128x128xbf16, #tpu.memory_space<vmem>>, %arg9: memref<1x128xf32, #tpu.memory_space<vmem>>, %arg10: memref<36x78xbf16, #tpu.memory_space<vmem>>, %arg11: memref<9x128x128xbf16, #tpu.memory_space<vmem>>, %arg12: memref<1x128xf32, #tpu.memory_space<vmem>>, %arg13: memref<1x4x4x128xf32, #tpu.memory_space<vmem>>, %arg14: memref<324x128xf32, #tpu.memory_space<vmem>>, %arg15: memref<100x128xf32, #tpu.memory_space<vmem>>, %arg16: memref<36x128xf32, #tpu.memory_space<vmem>>) attributes {dimension_semantics = [#tpu.dimension_semantics<parallel>], iteration_bounds = array<i64: 2>, scalar_prefetch = 0 : i64, scratch_operands = 3 : i64, tpu.core_type = #tpu.core_type<tc>, window_params = [{transform_indices = @transform_0, window_bounds = array<i64: 1, 6, 272, 8>}, {pipeline_mode = #tpu.pipeline_mode<synchronous>, transform_indices = @transform_1, window_bounds = array<i64: 9, 8, 128>}, {pipeline_mode = #tpu.pipeline_mode<synchronous>, transform_indices = @transform_2, window_bounds = array<i64: 1, 128>}, {pipeline_mode = #tpu.pipeline_mode<synchronous>, transform_indices = @transform_3, window_bounds = array<i64: 324, 271>}, {pipeline_mode = #tpu.pipeline_mode<synchronous>, transform_indices = @transform_4, window_bounds = array<i64: 9, 128, 128>}, {pipeline_mode = #tpu.pipeline_mode<synchronous>, transform_indices = @transform_5, window_bounds = array<i64: 1, 128>}, {pipeline_mode = #tpu.pipeline_mode<synchronous>, transform_indices = @transform_6, window_bounds = array<i64: 100, 286>}, {pipeline_mode = #tpu.pipeline_mode<synchronous>, transform_indices = @transform_7, window_bounds = array<i64: 9, 128, 128>}, {pipeline_mode = #tpu.pipeline_mode<synchronous>, transform_indices = @transform_8, window_bounds = array<i64: 1, 128>}, {pipeline_mode = #tpu.pipeline_mode<synchronous>, transform_indices = @transform_9, window_bounds = array<i64: 36, 78>}, {pipeline_mode = #tpu.pipeline_mode<synchronous>, transform_indices = @transform_10, window_bounds = array<i64: 9, 128, 128>}, {pipeline_mode = #tpu.pipeline_mode<synchronous>, transform_indices = @transform_11, window_bounds = array<i64: 1, 128>}, {transform_indices = @transform_12, window_bounds = array<i64: 1, 4, 4, 128>}]} {
    %cst = arith.constant 0.000000e+00 : f32
    %0 = vector.broadcast %cst : f32 to vector<271x128xf32>
    %c0 = arith.constant 0 : index
    %c0_0 = arith.constant 0 : index
    %c0_1 = arith.constant 0 : index
    %c0_2 = arith.constant 0 : index
    %1 = vector.load %arg1[%c0, %c0_0, %c0_1, %c0_2] : memref<1x6x272x8xf32, #tpu.memory_space<vmem>>, vector<1x1x271x8xf32>
    %2 = vector.shape_cast %1 : vector<1x1x271x8xf32> to vector<271x8xf32>
    %3 = arith.truncf %2 : vector<271x8xf32> to vector<271x8xbf16>
    %c0_3 = arith.constant 0 : index
    %c0_4 = arith.constant 0 : index
    %c0_5 = arith.constant 0 : index
    %4 = vector.load %arg2[%c0_3, %c0_4, %c0_5] : memref<9x8x128xbf16, #tpu.memory_space<vmem>>, vector<1x8x128xbf16>
    %5 = vector.shape_cast %4 : vector<1x8x128xbf16> to vector<8x128xbf16>
    %cst_6 = arith.constant dense<0.000000e+00> : vector<271x128xf32>
    %6 = tpu.matmul %3, %5, %cst_6 {dimension_numbers = #tpu.dot_dimension_numbers<[1], [0], [0], [1], [0, 0, 1, 1], [], []>} : vector<271x8xbf16>, vector<8x128xbf16>, vector<271x128xf32> -> vector<271x128xf32>
    %7 = arith.addf %0, %6 : vector<271x128xf32>
    %c0_7 = arith.constant 0 : index
    %c1 = arith.constant 1 : index
    %c0_8 = arith.constant 0 : index
    %c0_9 = arith.constant 0 : index
    %8 = vector.load %arg1[%c0_7, %c1, %c0_8, %c0_9] : memref<1x6x272x8xf32, #tpu.memory_space<vmem>>, vector<1x1x271x8xf32>
    %9 = vector.shape_cast %8 : vector<1x1x271x8xf32> to vector<271x8xf32>
    %10 = arith.truncf %9 : vector<271x8xf32> to vector<271x8xbf16>
    %c1_10 = arith.constant 1 : index
    %c0_11 = arith.constant 0 : index
    %c0_12 = arith.constant 0 : index
    %11 = vector.load %arg2[%c1_10, %c0_11, %c0_12] : memref<9x8x128xbf16, #tpu.memory_space<vmem>>, vector<1x8x128xbf16>
    %12 = vector.shape_cast %11 : vector<1x8x128xbf16> to vector<8x128xbf16>
    %cst_13 = arith.constant dense<0.000000e+00> : vector<271x128xf32>
    %13 = tpu.matmul %10, %12, %cst_13 {dimension_numbers = #tpu.dot_dimension_numbers<[1], [0], [0], [1], [0, 0, 1, 1], [], []>} : vector<271x8xbf16>, vector<8x128xbf16>, vector<271x128xf32> -> vector<271x128xf32>
    %14 = arith.addf %7, %13 : vector<271x128xf32>
    %c0_14 = arith.constant 0 : index
    %c0_15 = arith.constant 0 : index
    %c1_16 = arith.constant 1 : index
    %c0_17 = arith.constant 0 : index
    %15 = vector.load %arg1[%c0_14, %c0_15, %c1_16, %c0_17] : memref<1x6x272x8xf32, #tpu.memory_space<vmem>>, vector<1x1x271x8xf32>
    %16 = vector.shape_cast %15 : vector<1x1x271x8xf32> to vector<271x8xf32>
    %17 = arith.truncf %16 : vector<271x8xf32> to vector<271x8xbf16>
    %c2 = arith.constant 2 : index
    %c0_18 = arith.constant 0 : index
    %c0_19 = arith.constant 0 : index
    %18 = vector.load %arg2[%c2, %c0_18, %c0_19] : memref<9x8x128xbf16, #tpu.memory_space<vmem>>, vector<1x8x128xbf16>
    %19 = vector.shape_cast %18 : vector<1x8x128xbf16> to vector<8x128xbf16>
    %cst_20 = arith.constant dense<0.000000e+00> : vector<271x128xf32>
    %20 = tpu.matmul %17, %19, %cst_20 {dimension_numbers = #tpu.dot_dimension_numbers<[1], [0], [0], [1], [0, 0, 1, 1], [], []>} : vector<271x8xbf16>, vector<8x128xbf16>, vector<271x128xf32> -> vector<271x128xf32>
    %21 = arith.addf %14, %20 : vector<271x128xf32>
    %c0_21 = arith.constant 0 : index
    %c2_22 = arith.constant 2 : index
    %c0_23 = arith.constant 0 : index
    %c0_24 = arith.constant 0 : index
    %22 = vector.load %arg1[%c0_21, %c2_22, %c0_23, %c0_24] : memref<1x6x272x8xf32, #tpu.memory_space<vmem>>, vector<1x1x271x8xf32>
    %23 = vector.shape_cast %22 : vector<1x1x271x8xf32> to vector<271x8xf32>
    %24 = arith.truncf %23 : vector<271x8xf32> to vector<271x8xbf16>
    %c3 = arith.constant 3 : index
    %c0_25 = arith.constant 0 : index
    %c0_26 = arith.constant 0 : index
    %25 = vector.load %arg2[%c3, %c0_25, %c0_26] : memref<9x8x128xbf16, #tpu.memory_space<vmem>>, vector<1x8x128xbf16>
    %26 = vector.shape_cast %25 : vector<1x8x128xbf16> to vector<8x128xbf16>
    %cst_27 = arith.constant dense<0.000000e+00> : vector<271x128xf32>
    %27 = tpu.matmul %24, %26, %cst_27 {dimension_numbers = #tpu.dot_dimension_numbers<[1], [0], [0], [1], [0, 0, 1, 1], [], []>} : vector<271x8xbf16>, vector<8x128xbf16>, vector<271x128xf32> -> vector<271x128xf32>
    %28 = arith.addf %21, %27 : vector<271x128xf32>
    %c0_28 = arith.constant 0 : index
    %c3_29 = arith.constant 3 : index
    %c0_30 = arith.constant 0 : index
    %c0_31 = arith.constant 0 : index
    %29 = vector.load %arg1[%c0_28, %c3_29, %c0_30, %c0_31] : memref<1x6x272x8xf32, #tpu.memory_space<vmem>>, vector<1x1x271x8xf32>
    %30 = vector.shape_cast %29 : vector<1x1x271x8xf32> to vector<271x8xf32>
    %31 = arith.truncf %30 : vector<271x8xf32> to vector<271x8xbf16>
    %c4 = arith.constant 4 : index
    %c0_32 = arith.constant 0 : index
    %c0_33 = arith.constant 0 : index
    %32 = vector.load %arg2[%c4, %c0_32, %c0_33] : memref<9x8x128xbf16, #tpu.memory_space<vmem>>, vector<1x8x128xbf16>
    %33 = vector.shape_cast %32 : vector<1x8x128xbf16> to vector<8x128xbf16>
    %cst_34 = arith.constant dense<0.000000e+00> : vector<271x128xf32>
    %34 = tpu.matmul %31, %33, %cst_34 {dimension_numbers = #tpu.dot_dimension_numbers<[1], [0], [0], [1], [0, 0, 1, 1], [], []>} : vector<271x8xbf16>, vector<8x128xbf16>, vector<271x128xf32> -> vector<271x128xf32>
    %35 = arith.addf %28, %34 : vector<271x128xf32>
    %c0_35 = arith.constant 0 : index
    %c2_36 = arith.constant 2 : index
    %c1_37 = arith.constant 1 : index
    %c0_38 = arith.constant 0 : index
    %36 = vector.load %arg1[%c0_35, %c2_36, %c1_37, %c0_38] : memref<1x6x272x8xf32, #tpu.memory_space<vmem>>, vector<1x1x271x8xf32>
    %37 = vector.shape_cast %36 : vector<1x1x271x8xf32> to vector<271x8xf32>
    %38 = arith.truncf %37 : vector<271x8xf32> to vector<271x8xbf16>
    %c5 = arith.constant 5 : index
    %c0_39 = arith.constant 0 : index
    %c0_40 = arith.constant 0 : index
    %39 = vector.load %arg2[%c5, %c0_39, %c0_40] : memref<9x8x128xbf16, #tpu.memory_space<vmem>>, vector<1x8x128xbf16>
    %40 = vector.shape_cast %39 : vector<1x8x128xbf16> to vector<8x128xbf16>
    %cst_41 = arith.constant dense<0.000000e+00> : vector<271x128xf32>
    %41 = tpu.matmul %38, %40, %cst_41 {dimension_numbers = #tpu.dot_dimension_numbers<[1], [0], [0], [1], [0, 0, 1, 1], [], []>} : vector<271x8xbf16>, vector<8x128xbf16>, vector<271x128xf32> -> vector<271x128xf32>
    %42 = arith.addf %35, %41 : vector<271x128xf32>
    %c0_42 = arith.constant 0 : index
    %c4_43 = arith.constant 4 : index
    %c0_44 = arith.constant 0 : index
    %c0_45 = arith.constant 0 : index
    %43 = vector.load %arg1[%c0_42, %c4_43, %c0_44, %c0_45] : memref<1x6x272x8xf32, #tpu.memory_space<vmem>>, vector<1x1x271x8xf32>
    %44 = vector.shape_cast %43 : vector<1x1x271x8xf32> to vector<271x8xf32>
    %45 = arith.truncf %44 : vector<271x8xf32> to vector<271x8xbf16>
    %c6 = arith.constant 6 : index
    %c0_46 = arith.constant 0 : index
    %c0_47 = arith.constant 0 : index
    %46 = vector.load %arg2[%c6, %c0_46, %c0_47] : memref<9x8x128xbf16, #tpu.memory_space<vmem>>, vector<1x8x128xbf16>
    %47 = vector.shape_cast %46 : vector<1x8x128xbf16> to vector<8x128xbf16>
    %cst_48 = arith.constant dense<0.000000e+00> : vector<271x128xf32>
    %48 = tpu.matmul %45, %47, %cst_48 {dimension_numbers = #tpu.dot_dimension_numbers<[1], [0], [0], [1], [0, 0, 1, 1], [], []>} : vector<271x8xbf16>, vector<8x128xbf16>, vector<271x128xf32> -> vector<271x128xf32>
    %49 = arith.addf %42, %48 : vector<271x128xf32>
    %c0_49 = arith.constant 0 : index
    %c5_50 = arith.constant 5 : index
    %c0_51 = arith.constant 0 : index
    %c0_52 = arith.constant 0 : index
    %50 = vector.load %arg1[%c0_49, %c5_50, %c0_51, %c0_52] : memref<1x6x272x8xf32, #tpu.memory_space<vmem>>, vector<1x1x271x8xf32>
    %51 = vector.shape_cast %50 : vector<1x1x271x8xf32> to vector<271x8xf32>
    %52 = arith.truncf %51 : vector<271x8xf32> to vector<271x8xbf16>
    %c7 = arith.constant 7 : index
    %c0_53 = arith.constant 0 : index
    %c0_54 = arith.constant 0 : index
    %53 = vector.load %arg2[%c7, %c0_53, %c0_54] : memref<9x8x128xbf16, #tpu.memory_space<vmem>>, vector<1x8x128xbf16>
    %54 = vector.shape_cast %53 : vector<1x8x128xbf16> to vector<8x128xbf16>
    %cst_55 = arith.constant dense<0.000000e+00> : vector<271x128xf32>
    %55 = tpu.matmul %52, %54, %cst_55 {dimension_numbers = #tpu.dot_dimension_numbers<[1], [0], [0], [1], [0, 0, 1, 1], [], []>} : vector<271x8xbf16>, vector<8x128xbf16>, vector<271x128xf32> -> vector<271x128xf32>
    %56 = arith.addf %49, %55 : vector<271x128xf32>
    %c0_56 = arith.constant 0 : index
    %c4_57 = arith.constant 4 : index
    %c1_58 = arith.constant 1 : index
    %c0_59 = arith.constant 0 : index
    %57 = vector.load %arg1[%c0_56, %c4_57, %c1_58, %c0_59] : memref<1x6x272x8xf32, #tpu.memory_space<vmem>>, vector<1x1x271x8xf32>
    %58 = vector.shape_cast %57 : vector<1x1x271x8xf32> to vector<271x8xf32>
    %59 = arith.truncf %58 : vector<271x8xf32> to vector<271x8xbf16>
    %c8 = arith.constant 8 : index
    %c0_60 = arith.constant 0 : index
    %c0_61 = arith.constant 0 : index
    %60 = vector.load %arg2[%c8, %c0_60, %c0_61] : memref<9x8x128xbf16, #tpu.memory_space<vmem>>, vector<1x8x128xbf16>
    %61 = vector.shape_cast %60 : vector<1x8x128xbf16> to vector<8x128xbf16>
    %cst_62 = arith.constant dense<0.000000e+00> : vector<271x128xf32>
    %62 = tpu.matmul %59, %61, %cst_62 {dimension_numbers = #tpu.dot_dimension_numbers<[1], [0], [0], [1], [0, 0, 1, 1], [], []>} : vector<271x8xbf16>, vector<8x128xbf16>, vector<271x128xf32> -> vector<271x128xf32>
    %63 = arith.addf %56, %62 : vector<271x128xf32>
    %c0_63 = arith.constant 0 : index
    %c0_64 = arith.constant 0 : index
    %64 = vector.load %arg3[%c0_63, %c0_64] : memref<1x128xf32, #tpu.memory_space<vmem>>, vector<1x128xf32>
    %65 = vector.broadcast %64 : vector<1x128xf32> to vector<271x128xf32>
    %66 = arith.addf %63, %65 : vector<271x128xf32>
    %cst_65 = arith.constant 0.000000e+00 : f32
    %67 = vector.broadcast %cst_65 : f32 to vector<271x128xf32>
    %68 = arith.maximumf %66, %67 : vector<271x128xf32>
    %c0_66 = arith.constant 0 : index
    %c0_67 = arith.constant 0 : index
    %69 = vector.load %arg4[%c0_66, %c0_67] : memref<324x271xbf16, #tpu.memory_space<vmem>>, vector<324x271xbf16>
    %70 = arith.truncf %68 : vector<271x128xf32> to vector<271x128xbf16>
    %cst_68 = arith.constant dense<0.000000e+00> : vector<324x128xf32>
    %71 = tpu.matmul %69, %70, %cst_68 {dimension_numbers = #tpu.dot_dimension_numbers<[1], [0], [0], [1], [0, 0, 1, 1], [], []>} : vector<324x271xbf16>, vector<271x128xbf16>, vector<324x128xf32> -> vector<324x128xf32>
    %c0_69 = arith.constant 0 : index
    %c0_70 = arith.constant 0 : index
    %72 = vector.load %arg14[%c0_69, %c0_70] : memref<324x128xf32, #tpu.memory_space<vmem>>, vector<324x128xf32>
    tpu.vector_store %arg14[%c0_69, %c0_70], %71 {strides = array<i32>} : memref<324x128xf32, #tpu.memory_space<vmem>>, vector<324x128xf32>,
    %cst_71 = arith.constant 0.000000e+00 : f32
    %73 = vector.broadcast %cst_71 : f32 to vector<286x128xf32>
    %c0_72 = arith.constant 0 : index
    %c0_73 = arith.constant 0 : index
    %74 = vector.load %arg14[%c0_72, %c0_73] : memref<324x128xf32, #tpu.memory_space<vmem>>, vector<286x128xf32>
    %75 = arith.truncf %74 : vector<286x128xf32> to vector<286x128xbf16>
    %c0_74 = arith.constant 0 : index
    %c0_75 = arith.constant 0 : index
    %c0_76 = arith.constant 0 : index
    %76 = vector.load %arg5[%c0_74, %c0_75, %c0_76] : memref<9x128x128xbf16, #tpu.memory_space<vmem>>, vector<1x128x128xbf16>
    %77 = vector.shape_cast %76 : vector<1x128x128xbf16> to vector<128x128xbf16>
    %cst_77 = arith.constant dense<0.000000e+00> : vector<286x128xf32>
    %78 = tpu.matmul %75, %77, %cst_77 {dimension_numbers = #tpu.dot_dimension_numbers<[1], [0], [0], [1], [0, 0, 1, 1], [], []>} : vector<286x128xbf16>, vector<128x128xbf16>, vector<286x128xf32> -> vector<286x128xf32>
    %79 = arith.addf %73, %78 : vector<286x128xf32>
    %c1_78 = arith.constant 1 : index
    %c0_79 = arith.constant 0 : index
    %80 = vector.load %arg14[%c1_78, %c0_79] : memref<324x128xf32, #tpu.memory_space<vmem>>, vector<286x128xf32>
    %81 = arith.truncf %80 : vector<286x128xf32> to vector<286x128xbf16>
    %c1_80 = arith.constant 1 : index
    %c0_81 = arith.constant 0 : index
    %c0_82 = arith.constant 0 : index
    %82 = vector.load %arg5[%c1_80, %c0_81, %c0_82] : memref<9x128x128xbf16, #tpu.memory_space<vmem>>, vector<1x128x128xbf16>
    %83 = vector.shape_cast %82 : vector<1x128x128xbf16> to vector<128x128xbf16>
    %cst_83 = arith.constant dense<0.000000e+00> : vector<286x128xf32>
    %84 = tpu.matmul %81, %83, %cst_83 {dimension_numbers = #tpu.dot_dimension_numbers<[1], [0], [0], [1], [0, 0, 1, 1], [], []>} : vector<286x128xbf16>, vector<128x128xbf16>, vector<286x128xf32> -> vector<286x128xf32>
    %85 = arith.addf %79, %84 : vector<286x128xf32>
    %c2_84 = arith.constant 2 : index
    %c0_85 = arith.constant 0 : index
    %86 = vector.load %arg14[%c2_84, %c0_85] : memref<324x128xf32, #tpu.memory_space<vmem>>, vector<286x128xf32>
    %87 = arith.truncf %86 : vector<286x128xf32> to vector<286x128xbf16>
    %c2_86 = arith.constant 2 : index
    %c0_87 = arith.constant 0 : index
    %c0_88 = arith.constant 0 : index
    %88 = vector.load %arg5[%c2_86, %c0_87, %c0_88] : memref<9x128x128xbf16, #tpu.memory_space<vmem>>, vector<1x128x128xbf16>
    %89 = vector.shape_cast %88 : vector<1x128x128xbf16> to vector<128x128xbf16>
    %cst_89 = arith.constant dense<0.000000e+00> : vector<286x128xf32>
    %90 = tpu.matmul %87, %89, %cst_89 {dimension_numbers = #tpu.dot_dimension_numbers<[1], [0], [0], [1], [0, 0, 1, 1], [], []>} : vector<286x128xbf16>, vector<128x128xbf16>, vector<286x128xf32> -> vector<286x128xf32>
    %91 = arith.addf %85, %90 : vector<286x128xf32>
    %c18 = arith.constant 18 : index
    %c0_90 = arith.constant 0 : index
    %92 = vector.load %arg14[%c18, %c0_90] : memref<324x128xf32, #tpu.memory_space<vmem>>, vector<286x128xf32>
    %93 = arith.truncf %92 : vector<286x128xf32> to vector<286x128xbf16>
    %c3_91 = arith.constant 3 : index
    %c0_92 = arith.constant 0 : index
    %c0_93 = arith.constant 0 : index
    %94 = vector.load %arg5[%c3_91, %c0_92, %c0_93] : memref<9x128x128xbf16, #tpu.memory_space<vmem>>, vector<1x128x128xbf16>
    %95 = vector.shape_cast %94 : vector<1x128x128xbf16> to vector<128x128xbf16>
    %cst_94 = arith.constant dense<0.000000e+00> : vector<286x128xf32>
    %96 = tpu.matmul %93, %95, %cst_94 {dimension_numbers = #tpu.dot_dimension_numbers<[1], [0], [0], [1], [0, 0, 1, 1], [], []>} : vector<286x128xbf16>, vector<128x128xbf16>, vector<286x128xf32> -> vector<286x128xf32>
    %97 = arith.addf %91, %96 : vector<286x128xf32>
    %c19 = arith.constant 19 : index
    %c0_95 = arith.constant 0 : index
    %98 = vector.load %arg14[%c19, %c0_95] : memref<324x128xf32, #tpu.memory_space<vmem>>, vector<286x128xf32>
    %99 = arith.truncf %98 : vector<286x128xf32> to vector<286x128xbf16>
    %c4_96 = arith.constant 4 : index
    %c0_97 = arith.constant 0 : index
    %c0_98 = arith.constant 0 : index
    %100 = vector.load %arg5[%c4_96, %c0_97, %c0_98] : memref<9x128x128xbf16, #tpu.memory_space<vmem>>, vector<1x128x128xbf16>
    %101 = vector.shape_cast %100 : vector<1x128x128xbf16> to vector<128x128xbf16>
    %cst_99 = arith.constant dense<0.000000e+00> : vector<286x128xf32>
    %102 = tpu.matmul %99, %101, %cst_99 {dimension_numbers = #tpu.dot_dimension_numbers<[1], [0], [0], [1], [0, 0, 1, 1], [], []>} : vector<286x128xbf16>, vector<128x128xbf16>, vector<286x128xf32> -> vector<286x128xf32>
    %103 = arith.addf %97, %102 : vector<286x128xf32>
    %c20 = arith.constant 20 : index
    %c0_100 = arith.constant 0 : index
    %104 = vector.load %arg14[%c20, %c0_100] : memref<324x128xf32, #tpu.memory_space<vmem>>, vector<286x128xf32>
    %105 = arith.truncf %104 : vector<286x128xf32> to vector<286x128xbf16>
    %c5_101 = arith.constant 5 : index
    %c0_102 = arith.constant 0 : index
    %c0_103 = arith.constant 0 : index
    %106 = vector.load %arg5[%c5_101, %c0_102, %c0_103] : memref<9x128x128xbf16, #tpu.memory_space<vmem>>, vector<1x128x128xbf16>
    %107 = vector.shape_cast %106 : vector<1x128x128xbf16> to vector<128x128xbf16>
    %cst_104 = arith.constant dense<0.000000e+00> : vector<286x128xf32>
    %108 = tpu.matmul %105, %107, %cst_104 {dimension_numbers = #tpu.dot_dimension_numbers<[1], [0], [0], [1], [0, 0, 1, 1], [], []>} : vector<286x128xbf16>, vector<128x128xbf16>, vector<286x128xf32> -> vector<286x128xf32>
    %109 = arith.addf %103, %108 : vector<286x128xf32>
    %c36 = arith.constant 36 : index
    %c0_105 = arith.constant 0 : index
    %110 = vector.load %arg14[%c36, %c0_105] : memref<324x128xf32, #tpu.memory_space<vmem>>, vector<286x128xf32>
    %111 = arith.truncf %110 : vector<286x128xf32> to vector<286x128xbf16>
    %c6_106 = arith.constant 6 : index
    %c0_107 = arith.constant 0 : index
    %c0_108 = arith.constant 0 : index
    %112 = vector.load %arg5[%c6_106, %c0_107, %c0_108] : memref<9x128x128xbf16, #tpu.memory_space<vmem>>, vector<1x128x128xbf16>
    %113 = vector.shape_cast %112 : vector<1x128x128xbf16> to vector<128x128xbf16>
    %cst_109 = arith.constant dense<0.000000e+00> : vector<286x128xf32>
    %114 = tpu.matmul %111, %113, %cst_109 {dimension_numbers = #tpu.dot_dimension_numbers<[1], [0], [0], [1], [0, 0, 1, 1], [], []>} : vector<286x128xbf16>, vector<128x128xbf16>, vector<286x128xf32> -> vector<286x128xf32>
    %115 = arith.addf %109, %114 : vector<286x128xf32>
    %c37 = arith.constant 37 : index
    %c0_110 = arith.constant 0 : index
    %116 = vector.load %arg14[%c37, %c0_110] : memref<324x128xf32, #tpu.memory_space<vmem>>, vector<286x128xf32>
    %117 = arith.truncf %116 : vector<286x128xf32> to vector<286x128xbf16>
    %c7_111 = arith.constant 7 : index
    %c0_112 = arith.constant 0 : index
    %c0_113 = arith.constant 0 : index
    %118 = vector.load %arg5[%c7_111, %c0_112, %c0_113] : memref<9x128x128xbf16, #tpu.memory_space<vmem>>, vector<1x128x128xbf16>
    %119 = vector.shape_cast %118 : vector<1x128x128xbf16> to vector<128x128xbf16>
    %cst_114 = arith.constant dense<0.000000e+00> : vector<286x128xf32>
    %120 = tpu.matmul %117, %119, %cst_114 {dimension_numbers = #tpu.dot_dimension_numbers<[1], [0], [0], [1], [0, 0, 1, 1], [], []>} : vector<286x128xbf16>, vector<128x128xbf16>, vector<286x128xf32> -> vector<286x128xf32>
    %121 = arith.addf %115, %120 : vector<286x128xf32>
    %c38 = arith.constant 38 : index
    %c0_115 = arith.constant 0 : index
    %122 = vector.load %arg14[%c38, %c0_115] : memref<324x128xf32, #tpu.memory_space<vmem>>, vector<286x128xf32>
    %123 = arith.truncf %122 : vector<286x128xf32> to vector<286x128xbf16>
    %c8_116 = arith.constant 8 : index
    %c0_117 = arith.constant 0 : index
    %c0_118 = arith.constant 0 : index
    %124 = vector.load %arg5[%c8_116, %c0_117, %c0_118] : memref<9x128x128xbf16, #tpu.memory_space<vmem>>, vector<1x128x128xbf16>
    %125 = vector.shape_cast %124 : vector<1x128x128xbf16> to vector<128x128xbf16>
    %cst_119 = arith.constant dense<0.000000e+00> : vector<286x128xf32>
    %126 = tpu.matmul %123, %125, %cst_119 {dimension_numbers = #tpu.dot_dimension_numbers<[1], [0], [0], [1], [0, 0, 1, 1], [], []>} : vector<286x128xbf16>, vector<128x128xbf16>, vector<286x128xf32> -> vector<286x128xf32>
    %127 = arith.addf %121, %126 : vector<286x128xf32>
    %c0_120 = arith.constant 0 : index
    %c0_121 = arith.constant 0 : index
    %128 = vector.load %arg6[%c0_120, %c0_121] : memref<1x128xf32, #tpu.memory_space<vmem>>, vector<1x128xf32>
    %129 = vector.broadcast %128 : vector<1x128xf32> to vector<286x128xf32>
    %130 = arith.addf %127, %129 : vector<286x128xf32>
    %cst_122 = arith.constant 0.000000e+00 : f32
    %131 = vector.broadcast %cst_122 : f32 to vector<286x128xf32>
    %132 = arith.maximumf %130, %131 : vector<286x128xf32>
    %c0_123 = arith.constant 0 : index
    %c0_124 = arith.constant 0 : index
    %133 = vector.load %arg7[%c0_123, %c0_124] : memref<100x286xbf16, #tpu.memory_space<vmem>>, vector<100x286xbf16>
    %134 = arith.truncf %132 : vector<286x128xf32> to vector<286x128xbf16>
    %cst_125 = arith.constant dense<0.000000e+00> : vector<100x128xf32>
    %135 = tpu.matmul %133, %134, %cst_125 {dimension_numbers = #tpu.dot_dimension_numbers<[1], [0], [0], [1], [0, 0, 1, 1], [], []>} : vector<100x286xbf16>, vector<286x128xbf16>, vector<100x128xf32> -> vector<100x128xf32>
    %c0_126 = arith.constant 0 : index
    %c0_127 = arith.constant 0 : index
    %136 = vector.load %arg15[%c0_126, %c0_127] : memref<100x128xf32, #tpu.memory_space<vmem>>, vector<100x128xf32>
    tpu.vector_store %arg15[%c0_126, %c0_127], %135 {strides = array<i32>} : memref<100x128xf32, #tpu.memory_space<vmem>>, vector<100x128xf32>,
    %cst_128 = arith.constant 0.000000e+00 : f32
    %137 = vector.broadcast %cst_128 : f32 to vector<78x128xf32>
    %c0_129 = arith.constant 0 : index
    %c0_130 = arith.constant 0 : index
    %138 = vector.load %arg15[%c0_129, %c0_130] : memref<100x128xf32, #tpu.memory_space<vmem>>, vector<78x128xf32>
    %139 = arith.truncf %138 : vector<78x128xf32> to vector<78x128xbf16>
    %c0_131 = arith.constant 0 : index
    %c0_132 = arith.constant 0 : index
    %c0_133 = arith.constant 0 : index
    %140 = vector.load %arg8[%c0_131, %c0_132, %c0_133] : memref<9x128x128xbf16, #tpu.memory_space<vmem>>, vector<1x128x128xbf16>
    %141 = vector.shape_cast %140 : vector<1x128x128xbf16> to vector<128x128xbf16>
    %cst_134 = arith.constant dense<0.000000e+00> : vector<78x128xf32>
    %142 = tpu.matmul %139, %141, %cst_134 {dimension_numbers = #tpu.dot_dimension_numbers<[1], [0], [0], [1], [0, 0, 1, 1], [], []>} : vector<78x128xbf16>, vector<128x128xbf16>, vector<78x128xf32> -> vector<78x128xf32>
    %143 = arith.addf %137, %142 : vector<78x128xf32>
    %c1_135 = arith.constant 1 : index
    %c0_136 = arith.constant 0 : index
    %144 = vector.load %arg15[%c1_135, %c0_136] : memref<100x128xf32, #tpu.memory_space<vmem>>, vector<78x128xf32>
    %145 = arith.truncf %144 : vector<78x128xf32> to vector<78x128xbf16>
    %c1_137 = arith.constant 1 : index
    %c0_138 = arith.constant 0 : index
    %c0_139 = arith.constant 0 : index
    %146 = vector.load %arg8[%c1_137, %c0_138, %c0_139] : memref<9x128x128xbf16, #tpu.memory_space<vmem>>, vector<1x128x128xbf16>
    %147 = vector.shape_cast %146 : vector<1x128x128xbf16> to vector<128x128xbf16>
    %cst_140 = arith.constant dense<0.000000e+00> : vector<78x128xf32>
    %148 = tpu.matmul %145, %147, %cst_140 {dimension_numbers = #tpu.dot_dimension_numbers<[1], [0], [0], [1], [0, 0, 1, 1], [], []>} : vector<78x128xbf16>, vector<128x128xbf16>, vector<78x128xf32> -> vector<78x128xf32>
    %149 = arith.addf %143, %148 : vector<78x128xf32>
    %c2_141 = arith.constant 2 : index
    %c0_142 = arith.constant 0 : index
    %150 = vector.load %arg15[%c2_141, %c0_142] : memref<100x128xf32, #tpu.memory_space<vmem>>, vector<78x128xf32>
    %151 = arith.truncf %150 : vector<78x128xf32> to vector<78x128xbf16>
    %c2_143 = arith.constant 2 : index
    %c0_144 = arith.constant 0 : index
    %c0_145 = arith.constant 0 : index
    %152 = vector.load %arg8[%c2_143, %c0_144, %c0_145] : memref<9x128x128xbf16, #tpu.memory_space<vmem>>, vector<1x128x128xbf16>
    %153 = vector.shape_cast %152 : vector<1x128x128xbf16> to vector<128x128xbf16>
    %cst_146 = arith.constant dense<0.000000e+00> : vector<78x128xf32>
    %154 = tpu.matmul %151, %153, %cst_146 {dimension_numbers = #tpu.dot_dimension_numbers<[1], [0], [0], [1], [0, 0, 1, 1], [], []>} : vector<78x128xbf16>, vector<128x128xbf16>, vector<78x128xf32> -> vector<78x128xf32>
    %155 = arith.addf %149, %154 : vector<78x128xf32>
    %c10 = arith.constant 10 : index
    %c0_147 = arith.constant 0 : index
    %156 = vector.load %arg15[%c10, %c0_147] : memref<100x128xf32, #tpu.memory_space<vmem>>, vector<78x128xf32>
    %157 = arith.truncf %156 : vector<78x128xf32> to vector<78x128xbf16>
    %c3_148 = arith.constant 3 : index
    %c0_149 = arith.constant 0 : index
    %c0_150 = arith.constant 0 : index
    %158 = vector.load %arg8[%c3_148, %c0_149, %c0_150] : memref<9x128x128xbf16, #tpu.memory_space<vmem>>, vector<1x128x128xbf16>
    %159 = vector.shape_cast %158 : vector<1x128x128xbf16> to vector<128x128xbf16>
    %cst_151 = arith.constant dense<0.000000e+00> : vector<78x128xf32>
    %160 = tpu.matmul %157, %159, %cst_151 {dimension_numbers = #tpu.dot_dimension_numbers<[1], [0], [0], [1], [0, 0, 1, 1], [], []>} : vector<78x128xbf16>, vector<128x128xbf16>, vector<78x128xf32> -> vector<78x128xf32>
    %161 = arith.addf %155, %160 : vector<78x128xf32>
    %c11 = arith.constant 11 : index
    %c0_152 = arith.constant 0 : index
    %162 = vector.load %arg15[%c11, %c0_152] : memref<100x128xf32, #tpu.memory_space<vmem>>, vector<78x128xf32>
    %163 = arith.truncf %162 : vector<78x128xf32> to vector<78x128xbf16>
    %c4_153 = arith.constant 4 : index
    %c0_154 = arith.constant 0 : index
    %c0_155 = arith.constant 0 : index
    %164 = vector.load %arg8[%c4_153, %c0_154, %c0_155] : memref<9x128x128xbf16, #tpu.memory_space<vmem>>, vector<1x128x128xbf16>
    %165 = vector.shape_cast %164 : vector<1x128x128xbf16> to vector<128x128xbf16>
    %cst_156 = arith.constant dense<0.000000e+00> : vector<78x128xf32>
    %166 = tpu.matmul %163, %165, %cst_156 {dimension_numbers = #tpu.dot_dimension_numbers<[1], [0], [0], [1], [0, 0, 1, 1], [], []>} : vector<78x128xbf16>, vector<128x128xbf16>, vector<78x128xf32> -> vector<78x128xf32>
    %167 = arith.addf %161, %166 : vector<78x128xf32>
    %c12 = arith.constant 12 : index
    %c0_157 = arith.constant 0 : index
    %168 = vector.load %arg15[%c12, %c0_157] : memref<100x128xf32, #tpu.memory_space<vmem>>, vector<78x128xf32>
    %169 = arith.truncf %168 : vector<78x128xf32> to vector<78x128xbf16>
    %c5_158 = arith.constant 5 : index
    %c0_159 = arith.constant 0 : index
    %c0_160 = arith.constant 0 : index
    %170 = vector.load %arg8[%c5_158, %c0_159, %c0_160] : memref<9x128x128xbf16, #tpu.memory_space<vmem>>, vector<1x128x128xbf16>
    %171 = vector.shape_cast %170 : vector<1x128x128xbf16> to vector<128x128xbf16>
    %cst_161 = arith.constant dense<0.000000e+00> : vector<78x128xf32>
    %172 = tpu.matmul %169, %171, %cst_161 {dimension_numbers = #tpu.dot_dimension_numbers<[1], [0], [0], [1], [0, 0, 1, 1], [], []>} : vector<78x128xbf16>, vector<128x128xbf16>, vector<78x128xf32> -> vector<78x128xf32>
    %173 = arith.addf %167, %172 : vector<78x128xf32>
    %c20_162 = arith.constant 20 : index
    %c0_163 = arith.constant 0 : index
    %174 = vector.load %arg15[%c20_162, %c0_163] : memref<100x128xf32, #tpu.memory_space<vmem>>, vector<78x128xf32>
    %175 = arith.truncf %174 : vector<78x128xf32> to vector<78x128xbf16>
    %c6_164 = arith.constant 6 : index
    %c0_165 = arith.constant 0 : index
    %c0_166 = arith.constant 0 : index
    %176 = vector.load %arg8[%c6_164, %c0_165, %c0_166] : memref<9x128x128xbf16, #tpu.memory_space<vmem>>, vector<1x128x128xbf16>
    %177 = vector.shape_cast %176 : vector<1x128x128xbf16> to vector<128x128xbf16>
    %cst_167 = arith.constant dense<0.000000e+00> : vector<78x128xf32>
    %178 = tpu.matmul %175, %177, %cst_167 {dimension_numbers = #tpu.dot_dimension_numbers<[1], [0], [0], [1], [0, 0, 1, 1], [], []>} : vector<78x128xbf16>, vector<128x128xbf16>, vector<78x128xf32> -> vector<78x128xf32>
    %179 = arith.addf %173, %178 : vector<78x128xf32>
    %c21 = arith.constant 21 : index
    %c0_168 = arith.constant 0 : index
    %180 = vector.load %arg15[%c21, %c0_168] : memref<100x128xf32, #tpu.memory_space<vmem>>, vector<78x128xf32>
    %181 = arith.truncf %180 : vector<78x128xf32> to vector<78x128xbf16>
    %c7_169 = arith.constant 7 : index
    %c0_170 = arith.constant 0 : index
    %c0_171 = arith.constant 0 : index
    %182 = vector.load %arg8[%c7_169, %c0_170, %c0_171] : memref<9x128x128xbf16, #tpu.memory_space<vmem>>, vector<1x128x128xbf16>
    %183 = vector.shape_cast %182 : vector<1x128x128xbf16> to vector<128x128xbf16>
    %cst_172 = arith.constant dense<0.000000e+00> : vector<78x128xf32>
    %184 = tpu.matmul %181, %183, %cst_172 {dimension_numbers = #tpu.dot_dimension_numbers<[1], [0], [0], [1], [0, 0, 1, 1], [], []>} : vector<78x128xbf16>, vector<128x128xbf16>, vector<78x128xf32> -> vector<78x128xf32>
    %185 = arith.addf %179, %184 : vector<78x128xf32>
    %c22 = arith.constant 22 : index
    %c0_173 = arith.constant 0 : index
    %186 = vector.load %arg15[%c22, %c0_173] : memref<100x128xf32, #tpu.memory_space<vmem>>, vector<78x128xf32>
    %187 = arith.truncf %186 : vector<78x128xf32> to vector<78x128xbf16>
    %c8_174 = arith.constant 8 : index
    %c0_175 = arith.constant 0 : index
    %c0_176 = arith.constant 0 : index
    %188 = vector.load %arg8[%c8_174, %c0_175, %c0_176] : memref<9x128x128xbf16, #tpu.memory_space<vmem>>, vector<1x128x128xbf16>
    %189 = vector.shape_cast %188 : vector<1x128x128xbf16> to vector<128x128xbf16>
    %cst_177 = arith.constant dense<0.000000e+00> : vector<78x128xf32>
    %190 = tpu.matmul %187, %189, %cst_177 {dimension_numbers = #tpu.dot_dimension_numbers<[1], [0], [0], [1], [0, 0, 1, 1], [], []>} : vector<78x128xbf16>, vector<128x128xbf16>, vector<78x128xf32> -> vector<78x128xf32>
    %191 = arith.addf %185, %190 : vector<78x128xf32>
    %c0_178 = arith.constant 0 : index
    %c0_179 = arith.constant 0 : index
    %192 = vector.load %arg9[%c0_178, %c0_179] : memref<1x128xf32, #tpu.memory_space<vmem>>, vector<1x128xf32>
    %193 = vector.broadcast %192 : vector<1x128xf32> to vector<78x128xf32>
    %194 = arith.addf %191, %193 : vector<78x128xf32>
    %cst_180 = arith.constant 0.000000e+00 : f32
    %195 = vector.broadcast %cst_180 : f32 to vector<78x128xf32>
    %196 = arith.cmpf ogt, %194, %195 : vector<78x128xf32>
    %cst_181 = arith.constant 1.000000e-01 : f32
    %197 = vector.broadcast %cst_181 : f32 to vector<78x128xf32>
    %198 = arith.mulf %197, %194 : vector<78x128xf32>
    %199 = arith.select %196, %194, %198 : vector<78x128xi1>, vector<78x128xf32>
    %c0_182 = arith.constant 0 : index
    %c0_183 = arith.constant 0 : index
    %200 = vector.load %arg10[%c0_182, %c0_183] : memref<36x78xbf16, #tpu.memory_space<vmem>>, vector<36x78xbf16>
    %201 = arith.truncf %199 : vector<78x128xf32> to vector<78x128xbf16>
    %cst_184 = arith.constant dense<0.000000e+00> : vector<36x128xf32>
    %202 = tpu.matmul %200, %201, %cst_184 {dimension_numbers = #tpu.dot_dimension_numbers<[1], [0], [0], [1], [0, 0, 1, 1], [], []>} : vector<36x78xbf16>, vector<78x128xbf16>, vector<36x128xf32> -> vector<36x128xf32>
    %c0_185 = arith.constant 0 : index
    %c0_186 = arith.constant 0 : index
    %203 = vector.load %arg16[%c0_185, %c0_186] : memref<36x128xf32, #tpu.memory_space<vmem>>, vector<36x128xf32>
    tpu.vector_store %arg16[%c0_185, %c0_186], %202 {strides = array<i32>} : memref<36x128xf32, #tpu.memory_space<vmem>>, vector<36x128xf32>,
    %cst_187 = arith.constant 0.000000e+00 : f32
    %204 = vector.broadcast %cst_187 : f32 to vector<22x128xf32>
    %c0_188 = arith.constant 0 : index
    %c0_189 = arith.constant 0 : index
    %205 = vector.load %arg16[%c0_188, %c0_189] : memref<36x128xf32, #tpu.memory_space<vmem>>, vector<22x128xf32>
    %206 = arith.truncf %205 : vector<22x128xf32> to vector<22x128xbf16>
    %c0_190 = arith.constant 0 : index
    %c0_191 = arith.constant 0 : index
    %c0_192 = arith.constant 0 : index
    %207 = vector.load %arg11[%c0_190, %c0_191, %c0_192] : memref<9x128x128xbf16, #tpu.memory_space<vmem>>, vector<1x128x128xbf16>
    %208 = vector.shape_cast %207 : vector<1x128x128xbf16> to vector<128x128xbf16>
    %cst_193 = arith.constant dense<0.000000e+00> : vector<22x128xf32>
    %209 = tpu.matmul %206, %208, %cst_193 {dimension_numbers = #tpu.dot_dimension_numbers<[1], [0], [0], [1], [0, 0, 1, 1], [], []>} : vector<22x128xbf16>, vector<128x128xbf16>, vector<22x128xf32> -> vector<22x128xf32>
    %210 = arith.addf %204, %209 : vector<22x128xf32>
    %c1_194 = arith.constant 1 : index
    %c0_195 = arith.constant 0 : index
    %211 = vector.load %arg16[%c1_194, %c0_195] : memref<36x128xf32, #tpu.memory_space<vmem>>, vector<22x128xf32>
    %212 = arith.truncf %211 : vector<22x128xf32> to vector<22x128xbf16>
    %c1_196 = arith.constant 1 : index
    %c0_197 = arith.constant 0 : index
    %c0_198 = arith.constant 0 : index
    %213 = vector.load %arg11[%c1_196, %c0_197, %c0_198] : memref<9x128x128xbf16, #tpu.memory_space<vmem>>, vector<1x128x128xbf16>
    %214 = vector.shape_cast %213 : vector<1x128x128xbf16> to vector<128x128xbf16>
    %cst_199 = arith.constant dense<0.000000e+00> : vector<22x128xf32>
    %215 = tpu.matmul %212, %214, %cst_199 {dimension_numbers = #tpu.dot_dimension_numbers<[1], [0], [0], [1], [0, 0, 1, 1], [], []>} : vector<22x128xbf16>, vector<128x128xbf16>, vector<22x128xf32> -> vector<22x128xf32>
    %216 = arith.addf %210, %215 : vector<22x128xf32>
    %c2_200 = arith.constant 2 : index
    %c0_201 = arith.constant 0 : index
    %217 = vector.load %arg16[%c2_200, %c0_201] : memref<36x128xf32, #tpu.memory_space<vmem>>, vector<22x128xf32>
    %218 = arith.truncf %217 : vector<22x128xf32> to vector<22x128xbf16>
    %c2_202 = arith.constant 2 : index
    %c0_203 = arith.constant 0 : index
    %c0_204 = arith.constant 0 : index
    %219 = vector.load %arg11[%c2_202, %c0_203, %c0_204] : memref<9x128x128xbf16, #tpu.memory_space<vmem>>, vector<1x128x128xbf16>
    %220 = vector.shape_cast %219 : vector<1x128x128xbf16> to vector<128x128xbf16>
    %cst_205 = arith.constant dense<0.000000e+00> : vector<22x128xf32>
    %221 = tpu.matmul %218, %220, %cst_205 {dimension_numbers = #tpu.dot_dimension_numbers<[1], [0], [0], [1], [0, 0, 1, 1], [], []>} : vector<22x128xbf16>, vector<128x128xbf16>, vector<22x128xf32> -> vector<22x128xf32>
    %222 = arith.addf %216, %221 : vector<22x128xf32>
    %c6_206 = arith.constant 6 : index
    %c0_207 = arith.constant 0 : index
    %223 = vector.load %arg16[%c6_206, %c0_207] : memref<36x128xf32, #tpu.memory_space<vmem>>, vector<22x128xf32>
    %224 = arith.truncf %223 : vector<22x128xf32> to vector<22x128xbf16>
    %c3_208 = arith.constant 3 : index
    %c0_209 = arith.constant 0 : index
    %c0_210 = arith.constant 0 : index
    %225 = vector.load %arg11[%c3_208, %c0_209, %c0_210] : memref<9x128x128xbf16, #tpu.memory_space<vmem>>, vector<1x128x128xbf16>
    %226 = vector.shape_cast %225 : vector<1x128x128xbf16> to vector<128x128xbf16>
    %cst_211 = arith.constant dense<0.000000e+00> : vector<22x128xf32>
    %227 = tpu.matmul %224, %226, %cst_211 {dimension_numbers = #tpu.dot_dimension_numbers<[1], [0], [0], [1], [0, 0, 1, 1], [], []>} : vector<22x128xbf16>, vector<128x128xbf16>, vector<22x128xf32> -> vector<22x128xf32>
    %228 = arith.addf %222, %227 : vector<22x128xf32>
    %c7_212 = arith.constant 7 : index
    %c0_213 = arith.constant 0 : index
    %229 = vector.load %arg16[%c7_212, %c0_213] : memref<36x128xf32, #tpu.memory_space<vmem>>, vector<22x128xf32>
    %230 = arith.truncf %229 : vector<22x128xf32> to vector<22x128xbf16>
    %c4_214 = arith.constant 4 : index
    %c0_215 = arith.constant 0 : index
    %c0_216 = arith.constant 0 : index
    %231 = vector.load %arg11[%c4_214, %c0_215, %c0_216] : memref<9x128x128xbf16, #tpu.memory_space<vmem>>, vector<1x128x128xbf16>
    %232 = vector.shape_cast %231 : vector<1x128x128xbf16> to vector<128x128xbf16>
    %cst_217 = arith.constant dense<0.000000e+00> : vector<22x128xf32>
    %233 = tpu.matmul %230, %232, %cst_217 {dimension_numbers = #tpu.dot_dimension_numbers<[1], [0], [0], [1], [0, 0, 1, 1], [], []>} : vector<22x128xbf16>, vector<128x128xbf16>, vector<22x128xf32> -> vector<22x128xf32>
    %234 = arith.addf %228, %233 : vector<22x128xf32>
    %c8_218 = arith.constant 8 : index
    %c0_219 = arith.constant 0 : index
    %235 = vector.load %arg16[%c8_218, %c0_219] : memref<36x128xf32, #tpu.memory_space<vmem>>, vector<22x128xf32>
    %236 = arith.truncf %235 : vector<22x128xf32> to vector<22x128xbf16>
    %c5_220 = arith.constant 5 : index
    %c0_221 = arith.constant 0 : index
    %c0_222 = arith.constant 0 : index
    %237 = vector.load %arg11[%c5_220, %c0_221, %c0_222] : memref<9x128x128xbf16, #tpu.memory_space<vmem>>, vector<1x128x128xbf16>
    %238 = vector.shape_cast %237 : vector<1x128x128xbf16> to vector<128x128xbf16>
    %cst_223 = arith.constant dense<0.000000e+00> : vector<22x128xf32>
    %239 = tpu.matmul %236, %238, %cst_223 {dimension_numbers = #tpu.dot_dimension_numbers<[1], [0], [0], [1], [0, 0, 1, 1], [], []>} : vector<22x128xbf16>, vector<128x128xbf16>, vector<22x128xf32> -> vector<22x128xf32>
    %240 = arith.addf %234, %239 : vector<22x128xf32>
    %c12_224 = arith.constant 12 : index
    %c0_225 = arith.constant 0 : index
    %241 = vector.load %arg16[%c12_224, %c0_225] : memref<36x128xf32, #tpu.memory_space<vmem>>, vector<22x128xf32>
    %242 = arith.truncf %241 : vector<22x128xf32> to vector<22x128xbf16>
    %c6_226 = arith.constant 6 : index
    %c0_227 = arith.constant 0 : index
    %c0_228 = arith.constant 0 : index
    %243 = vector.load %arg11[%c6_226, %c0_227, %c0_228] : memref<9x128x128xbf16, #tpu.memory_space<vmem>>, vector<1x128x128xbf16>
    %244 = vector.shape_cast %243 : vector<1x128x128xbf16> to vector<128x128xbf16>
    %cst_229 = arith.constant dense<0.000000e+00> : vector<22x128xf32>
    %245 = tpu.matmul %242, %244, %cst_229 {dimension_numbers = #tpu.dot_dimension_numbers<[1], [0], [0], [1], [0, 0, 1, 1], [], []>} : vector<22x128xbf16>, vector<128x128xbf16>, vector<22x128xf32> -> vector<22x128xf32>
    %246 = arith.addf %240, %245 : vector<22x128xf32>
    %c13 = arith.constant 13 : index
    %c0_230 = arith.constant 0 : index
    %247 = vector.load %arg16[%c13, %c0_230] : memref<36x128xf32, #tpu.memory_space<vmem>>, vector<22x128xf32>
    %248 = arith.truncf %247 : vector<22x128xf32> to vector<22x128xbf16>
    %c7_231 = arith.constant 7 : index
    %c0_232 = arith.constant 0 : index
    %c0_233 = arith.constant 0 : index
    %249 = vector.load %arg11[%c7_231, %c0_232, %c0_233] : memref<9x128x128xbf16, #tpu.memory_space<vmem>>, vector<1x128x128xbf16>
    %250 = vector.shape_cast %249 : vector<1x128x128xbf16> to vector<128x128xbf16>
    %cst_234 = arith.constant dense<0.000000e+00> : vector<22x128xf32>
    %251 = tpu.matmul %248, %250, %cst_234 {dimension_numbers = #tpu.dot_dimension_numbers<[1], [0], [0], [1], [0, 0, 1, 1], [], []>} : vector<22x128xbf16>, vector<128x128xbf16>, vector<22x128xf32> -> vector<22x128xf32>
    %252 = arith.addf %246, %251 : vector<22x128xf32>
    %c14 = arith.constant 14 : index
    %c0_235 = arith.constant 0 : index
    %253 = vector.load %arg16[%c14, %c0_235] : memref<36x128xf32, #tpu.memory_space<vmem>>, vector<22x128xf32>
    %254 = arith.truncf %253 : vector<22x128xf32> to vector<22x128xbf16>
    %c8_236 = arith.constant 8 : index
    %c0_237 = arith.constant 0 : index
    %c0_238 = arith.constant 0 : index
    %255 = vector.load %arg11[%c8_236, %c0_237, %c0_238] : memref<9x128x128xbf16, #tpu.memory_space<vmem>>, vector<1x128x128xbf16>
    %256 = vector.shape_cast %255 : vector<1x128x128xbf16> to vector<128x128xbf16>
    %cst_239 = arith.constant dense<0.000000e+00> : vector<22x128xf32>
    %257 = tpu.matmul %254, %256, %cst_239 {dimension_numbers = #tpu.dot_dimension_numbers<[1], [0], [0], [1], [0, 0, 1, 1], [], []>} : vector<22x128xbf16>, vector<128x128xbf16>, vector<22x128xf32> -> vector<22x128xf32>
    %258 = arith.addf %252, %257 : vector<22x128xf32>
    %c0_240 = arith.constant 0 : index
    %c0_241 = arith.constant 0 : index
    %259 = vector.load %arg12[%c0_240, %c0_241] : memref<1x128xf32, #tpu.memory_space<vmem>>, vector<1x128xf32>
    %260 = vector.broadcast %259 : vector<1x128xf32> to vector<22x128xf32>
    %261 = arith.addf %258, %260 : vector<22x128xf32>
    %262 = arith.negf %261 : vector<22x128xf32>
    %263 = math.exp %262 : vector<22x128xf32>
    %cst_242 = arith.constant 1.000000e+00 : f32
    %264 = vector.broadcast %cst_242 : f32 to vector<22x128xf32>
    %265 = arith.addf %264, %263 : vector<22x128xf32>
    %266 = arith.divf %264, %265 : vector<22x128xf32>
    %267 = vector.extract_strided_slice %266 {offsets = [0, 0], sizes = [4, 128], strides = [1, 1]} : vector<22x128xf32> to vector<4x128xf32>
    %c0_243 = arith.constant 0 : index
    %c0_244 = arith.constant 0 : index
    %c0_245 = arith.constant 0 : index
    %c0_246 = arith.constant 0 : index
    %268 = vector.load %arg13[%c0_243, %c0_244, %c0_245, %c0_246] : memref<1x4x4x128xf32, #tpu.memory_space<vmem>>, vector<1x1x4x128xf32>
    %269 = vector.shape_cast %268 : vector<1x1x4x128xf32> to vector<4x128xf32>
    %270 = vector.shape_cast %267 : vector<4x128xf32> to vector<1x1x4x128xf32>
    tpu.vector_store %arg13[%c0_243, %c0_244, %c0_245, %c0_246], %270 {strides = array<i32>} : memref<1x4x4x128xf32, #tpu.memory_space<vmem>>, vector<1x1x4x128xf32>,
    %271 = vector.extract_strided_slice %266 {offsets = [6, 0], sizes = [4, 128], strides = [1, 1]} : vector<22x128xf32> to vector<4x128xf32>
    %c0_247 = arith.constant 0 : index
    %c1_248 = arith.constant 1 : index
    %c0_249 = arith.constant 0 : index
    %c0_250 = arith.constant 0 : index
    %272 = vector.load %arg13[%c0_247, %c1_248, %c0_249, %c0_250] : memref<1x4x4x128xf32, #tpu.memory_space<vmem>>, vector<1x1x4x128xf32>
    %273 = vector.shape_cast %272 : vector<1x1x4x128xf32> to vector<4x128xf32>
    %274 = vector.shape_cast %271 : vector<4x128xf32> to vector<1x1x4x128xf32>
    tpu.vector_store %arg13[%c0_247, %c1_248, %c0_249, %c0_250], %274 {strides = array<i32>} : memref<1x4x4x128xf32, #tpu.memory_space<vmem>>, vector<1x1x4x128xf32>,
    %275 = vector.extract_strided_slice %266 {offsets = [12, 0], sizes = [4, 128], strides = [1, 1]} : vector<22x128xf32> to vector<4x128xf32>
    %c0_251 = arith.constant 0 : index
    %c2_252 = arith.constant 2 : index
    %c0_253 = arith.constant 0 : index
    %c0_254 = arith.constant 0 : index
    %276 = vector.load %arg13[%c0_251, %c2_252, %c0_253, %c0_254] : memref<1x4x4x128xf32, #tpu.memory_space<vmem>>, vector<1x1x4x128xf32>
    %277 = vector.shape_cast %276 : vector<1x1x4x128xf32> to vector<4x128xf32>
    %278 = vector.shape_cast %275 : vector<4x128xf32> to vector<1x1x4x128xf32>
    tpu.vector_store %arg13[%c0_251, %c2_252, %c0_253, %c0_254], %278 {strides = array<i32>} : memref<1x4x4x128xf32, #tpu.memory_space<vmem>>, vector<1x1x4x128xf32>,
    %279 = vector.extract_strided_slice %266 {offsets = [18, 0], sizes = [4, 128], strides = [1, 1]} : vector<22x128xf32> to vector<4x128xf32>
    %c0_255 = arith.constant 0 : index
    %c3_256 = arith.constant 3 : index
    %c0_257 = arith.constant 0 : index
    %c0_258 = arith.constant 0 : index
    %280 = vector.load %arg13[%c0_255, %c3_256, %c0_257, %c0_258] : memref<1x4x4x128xf32, #tpu.memory_space<vmem>>, vector<1x1x4x128xf32>
    %281 = vector.shape_cast %280 : vector<1x1x4x128xf32> to vector<4x128xf32>
    %282 = vector.shape_cast %279 : vector<4x128xf32> to vector<1x1x4x128xf32>
    tpu.vector_store %arg13[%c0_255, %c3_256, %c0_257, %c0_258], %282 {strides = array<i32>} : memref<1x4x4x128xf32, #tpu.memory_space<vmem>>, vector<1x1x4x128xf32>,
    return
  }
  func.func @transform_0(%arg0: i32) -> (i32, i32, i32, i32) {
    %c0_i32 = arith.constant 0 : i32
    %c0_i32_0 = arith.constant 0 : i32
    %c0_i32_1 = arith.constant 0 : i32
    %c0_i32_2 = arith.constant 0 : i32
    return %arg0, %c0_i32, %c0_i32_0, %c0_i32_1 : i32, i32, i32, i32
  }
  func.func @transform_1(%arg0: i32) -> (i32, i32, i32) {
    %c0_i32 = arith.constant 0 : i32
    %c0_i32_0 = arith.constant 0 : i32
    %c0_i32_1 = arith.constant 0 : i32
    %c0_i32_2 = arith.constant 0 : i32
    return %c0_i32, %c0_i32_0, %c0_i32_1 : i32, i32, i32
  }
  func.func @transform_2(%arg0: i32) -> (i32, i32) {
    %c0_i32 = arith.constant 0 : i32
    %c0_i32_0 = arith.constant 0 : i32
    %c0_i32_1 = arith.constant 0 : i32
    return %c0_i32, %c0_i32_0 : i32, i32
  }
  func.func @transform_3(%arg0: i32) -> (i32, i32) {
    %c0_i32 = arith.constant 0 : i32
    %c0_i32_0 = arith.constant 0 : i32
    %c0_i32_1 = arith.constant 0 : i32
    return %c0_i32, %c0_i32_0 : i32, i32
  }
  func.func @transform_4(%arg0: i32) -> (i32, i32, i32) {
    %c0_i32 = arith.constant 0 : i32
    %c0_i32_0 = arith.constant 0 : i32
    %c0_i32_1 = arith.constant 0 : i32
    %c0_i32_2 = arith.constant 0 : i32
    return %c0_i32, %c0_i32_0, %c0_i32_1 : i32, i32, i32
  }
  func.func @transform_5(%arg0: i32) -> (i32, i32) {
    %c0_i32 = arith.constant 0 : i32
    %c0_i32_0 = arith.constant 0 : i32
    %c0_i32_1 = arith.constant 0 : i32
    return %c0_i32, %c0_i32_0 : i32, i32
  }
  func.func @transform_6(%arg0: i32) -> (i32, i32) {
    %c0_i32 = arith.constant 0 : i32
    %c0_i32_0 = arith.constant 0 : i32
    %c0_i32_1 = arith.constant 0 : i32
    return %c0_i32, %c0_i32_0 : i32, i32
  }
  func.func @transform_7(%arg0: i32) -> (i32, i32, i32) {
    %c0_i32 = arith.constant 0 : i32
    %c0_i32_0 = arith.constant 0 : i32
    %c0_i32_1 = arith.constant 0 : i32
    %c0_i32_2 = arith.constant 0 : i32
    return %c0_i32, %c0_i32_0, %c0_i32_1 : i32, i32, i32
  }
  func.func @transform_8(%arg0: i32) -> (i32, i32) {
    %c0_i32 = arith.constant 0 : i32
    %c0_i32_0 = arith.constant 0 : i32
    %c0_i32_1 = arith.constant 0 : i32
    return %c0_i32, %c0_i32_0 : i32, i32
  }
  func.func @transform_9(%arg0: i32) -> (i32, i32) {
    %c0_i32 = arith.constant 0 : i32
    %c0_i32_0 = arith.constant 0 : i32
    %c0_i32_1 = arith.constant 0 : i32
    return %c0_i32, %c0_i32_0 : i32, i32
  }
  func.func @transform_10(%arg0: i32) -> (i32, i32, i32) {
    %c0_i32 = arith.constant 0 : i32
    %c0_i32_0 = arith.constant 0 : i32
    %c0_i32_1 = arith.constant 0 : i32
    %c0_i32_2 = arith.constant 0 : i32
    return %c0_i32, %c0_i32_0, %c0_i32_1 : i32, i32, i32
  }
  func.func @transform_11(%arg0: i32) -> (i32, i32) {
    %c0_i32 = arith.constant 0 : i32
    %c0_i32_0 = arith.constant 0 : i32
    %c0_i32_1 = arith.constant 0 : i32
    return %c0_i32, %c0_i32_0 : i32, i32
  }
  func.func @transform_12(%arg0: i32) -> (i32, i32, i32, i32) {
    %c0_i32 = arith.constant 0 : i32
    %c0_i32_0 = arith.constant 0 : i32
    %c0_i32_1 = arith.constant 0 : i32
    %c0_i32_2 = arith.constant 0 : i32
    return %arg0, %c0_i32, %c0_i32_0, %c0_i32_1 : i32, i32, i32, i32
  }
}

</mosaic_0001>

<bundles_post_ra>
// kernel: yolov1_forward.1
= control target key start
LH: loop header
LB: loop body
LE: loop exit
PB: predicated region body
PF: predicated region fallthrough
CT: control target
= control target key end

     0   :  { %s17821_s0 = inlined_call_operand.vmem [shape: f32[2,6,272,8], index: 0, kind: input, shape index: {}]   ;;  %s17822_s1 = inlined_call_operand.vmem [shape: bf16[9,8,128], index: 1, kind: input, shape index: {}]   ;;  %s17823_s2 = inlined_call_operand.vmem [shape: f32[1,128], index: 2, kind: input, shape index: {}]   ;;  %s17824_s3 = inlined_call_operand.vmem [shape: bf16[324,271], index: 3, kind: input, shape index: {}]   ;;  %s17825_s4 = inlined_call_operand.vmem [shape: bf16[9,128,128], index: 4, kind: input, shape index: {}]   ;;  %s17826_s5 = inlined_call_operand.vmem [shape: f32[1,128], index: 5, kind: input, shape index: {}]   ;;  %s17827_s6 = inlined_call_operand.vmem [shape: bf16[100,286], index: 6, kind: input, shape index: {}]   ;;  %s17828_s7 = inlined_call_operand.vmem [shape: bf16[9,128,128], index: 7, kind: input, shape index: {}]   ;;  %s17829_s8 = inlined_call_operand.vmem [shape: f32[1,128], index: 8, kind: input, shape index: {}]   ;;  %s17830_s9 = inlined_call_operand.vmem [shape: bf16[36,78], index: 9, kind: input, shape index: {}]   ;;  %s17831_s10 = inlined_call_operand.vmem [shape: bf16[9,128,128], index: 10, kind: input, shape index: {}]   ;;  %s17832_s11 = inlined_call_operand.vmem [shape: f32[1,128], index: 11, kind: input, shape index: {}]   ;;  %s17833_s12 = inlined_call_operand.hbm [shape: f32[2,4,4,128], index: 12, kind: output, shape index: {}]  }
   0x1   :  { %17836 = sst [smem:[#allocation8_spill]] %s17821_s0 }
   0x2   :  { %17 = vsyncpa [#allocation6], 0 }
   0x3   :  { %19 = vsyncpa [#allocation6 + $0x1], 0  ;;  %s14752_s21 = smov 0   ;;  %s14754_s22 = smov 0  }
   0x4   :  { %s14756_s23 = smov 0   ;;  %s14758_s24 = smov 0  }
   0x5 LB: > { %s14773_s25 = sadd.s32 4294967295, %s14678_s24   ;;  %s10273_s26 = sadd.s32 4294967294, %s14678_s24   ;;  %s14678_s24 = sphi %s14758_s24, %s17849_s24   ;;  %s14674_s23 = sphi %s14756_s23, %s17848_s23   ;;  %s14670_s22 = sphi %s14754_s22, %s17847_s22   ;;  %s14666_s21 = sphi %s14752_s21, %s17846_s21  }
   0x6   : > { %s14777_s27 = sadd.s32 1, %s14678_s24   ;;  %s289_s28 = sadd.s32 1, %s14674_s23 }
   0x7   : > { %s286_s29 = ssub.s32 %s14678_s24, %s14777_s27  ;;  %p299_p0 = scmp.ne.s32.totalorder %s14674_s23, %s14670_s22 }
   0x8   : > { %p287_p1 = scmp.eq.s32.totalorder %s286_s29, 0  ;;  %p300_p2 = scmp.eq.s32.totalorder %s14773_s25, 1 }
   0x9   : > { %p305_p3 = scmp.ne.s32.totalorder %s14670_s22, %s14666_s21  ;;  %p306_p4 = scmp.eq.s32.totalorder %s10273_s26, 1 }
   0xa   : > { %s14788_s30 = scalar_select %p287_p1, %s14674_s23, %s289_s28  }
   0xb   : > { %p14790_p5 = por %p300_p2, %p299_p0  ;;  %p14794_p6 = por %p306_p4, %p305_p3 }
   0xc   : > { %p10276_p7 = scmp.ge.s32.totalorder %s14678_s24, 1  ;;  %p365_p8 = scmp.lt.s32.totalorder %s14678_s24, 3 }
   0xe   : > { %p366_p9 = pnand %p10276_p7, %p365_p8 }
   0xf   : > { %v10313_v0 = vld [vmem:[%s17822_s1 + $0x4] sm:$0xf] (!%p366_p9)  ;;  %vm571_vm0 = vcmask (!%p366_p9), 1043456   ;;  %p407_p10 = scmp.lt.s32.totalorder (!%p366_p9), %s14773_s25, 1  ;;  %v17834_v1 = vmov (!%p366_p9), 0.0   ;;  %vm14681_vm1 = vmmov (!%p366_p9), 0  }
  0x10   : > { %369 = sbr.rel (%p366_p9) target bundleno = 3740 (0xe9c), region = 68  ;;  %12113 = vmatprep.subr.bf16.mxu0 (!%p366_p9), %v17834_v1  ;;  %v573_v2 = vsel (!%p366_p9), %vm571_vm0, %v10313_v0, 0  ;;  %12115 = vmatprep.mubr.msk.bf16.mxu0 (!%p366_p9), %vm14681_vm1, %v17834_v1  ;;  %v464_v3 = vld [vmem:[%s17822_s1] sm:$0xf] (!%p366_p9)  ;;  %s17839_s0 = sld [smem:[#allocation8_spill]] (!%p366_p9)  ;;  %vm519_vm2 = vcmask (!%p366_p9), 64512  }
  0x11   : > { %12114 = vmatpush3.bf16.msra.mxu0 (!%p366_p9), %v573_v2  ;;  %13855 = vmatprep.subr.bf16.mxu1 (!%p366_p9), %v17834_v1  ;;  %v796_v4 = vsel (!%p366_p9), %vm571_vm0, %v464_v3, 0  ;;  %v10400_v28 = vld [vmem:[%s17822_s1 + $0xc] sm:$0xf] (!%p366_p9)  ;;  %vm3689_vm3 = vcmask (!%p366_p9), 1046528   ;;  %vm3690_vm4 = vcmask (!%p366_p9), 1047552   ;;  %vm3625_vm5 = vcmask (!%p366_p9), 121856  }
  0x12   : > { %13856 = vmatpush3.bf16.msra.mxu1 (!%p366_p9), %v796_v4  ;;  %12189 = vmatprep.mubr.msk.bf16.mxu1 (!%p366_p9), %vm14681_vm1, %v17834_v1  ;;  %v1383_v30 = vsel (!%p366_p9), %vm571_vm0, %v10400_v28, 0  ;;  %vm7275_vm6 = vcmask (!%p366_p9), 244736   ;;  %s11412_s15 = sshll.u32 (!%p366_p9), %s14773_s25, 8  ;;  %s14684_s26 = smov (!%p366_p9), [#allocation5]  }
  0x13   : > { %12183 = vmatprep.subr.bf16.mxu0 (!%p366_p9), %v17834_v1  ;;  %12323 = vmatprep.subr.bf16.mxu1 (!%p366_p9), %v17834_v1 }
  0x17   : > { %s408_s19 = scalar_select %p407_p10, %s14773_s25, 1 }
  0x19   : > { %s14229_s20 = smul.u32 1632, %s408_s19 }
  0x1b   : > { %s14821_s29 = scalar_lea.vmem %s17839_s0, %s14229_s20  ;;  %s404_s0 = sand.u32 1, %s14670_s22  }
  0x1c   : > { %v10279_v5 = vld [vmem:[%s14821_s29 + $0x110] sm:$0xff]  ;;  %v10280_v6 = vld [vmem:[%s14821_s29 + $0x118] sm:$0xff]  ;;  %v10281_v11 = vld [vmem:[%s14821_s29 + $0x120] sm:$0xff]  ;;  %s10277_s28 = sshll.u32 %s404_s0, 4  ;;  %s17776_s20 = scalar_lea.hbm %s17833_s12, %s11412_s15 }
  0x1d   : > { %v500_v7 = vpack.c.bf16 %v10280_v6, %v10279_v5  ;;  %v415_v8 = vld [vmem:[%s14821_s29 + $0x10] sm:$0xff]  ;;  %v416_v9 = vld [vmem:[%s14821_s29 + $0x18] sm:$0xff]  ;;  %v10282_v12 = vld [vmem:[%s14821_s29 + $0x128] sm:$0xff]  ;;  %s406_s16 = scalar_lea.vmem [#allocation5], %s10277_s28  ;;  %s17780_s25 = scalar_lea.sflag [#allocation6], %s404_s0 }
  0x1e   : > { %v448_v10 = vpack.c.bf16 %v416_v9, %v415_v8  ;;  %v417_v13 = vld [vmem:[%s14821_s29 + $0x20] sm:$0xff]  ;;  %v418_v14 = vld [vmem:[%s14821_s29 + $0x28] sm:$0xff]  ;;  %v501_v15 = vpack.c.bf16 %v10282_v12, %v10281_v11  ;;  %v10283_v17 = vld [vmem:[%s14821_s29 + $0x130] sm:$0xff]  ;;  %s10211_s17 = sshll.u32 %s406_s16, 4  ;;  %s14620_s28 = sshll.u32 %s14684_s26, 4  ;;  %s17778_s17 = int_to_ptr.vmem [resolvable:$true] %s10211_s17  ;;  %s14621_s28 = int_to_ptr.vmem [resolvable:$false] %s14620_s28 }
  0x1f   : > { %12116 = vmatmul.mubr.msk.bf16.vlgmr.msra.gmra.mrb[0].mxu0 %vm519_vm2, %v500_v7  ;;  %v449_v16 = vpack.c.bf16 %v418_v14, %v417_v13  ;;  %v10284_v18 = vld [vmem:[%s14821_s29 + $0x138] sm:$0xff]  ;;  %v419_v19 = vld [vmem:[%s14821_s29 + $0x30] sm:$0xff]  ;;  %v10285_v23 = vld [vmem:[%s14821_s29 + $0x140] sm:$0xff]  ;;  %s14622_s15 = scalar_lea.vmem %s14621_s28, 512  ;;  %p14623_p0 = scmp.lt.s32.totalorder %s17778_s17, %s14621_s28 }
  0x20   : > { %12119 = vmatprep.mubr.msk.bf16.mxu0 %vm14681_vm1, %v17834_v1  ;;  %12190 = vmatmul.mubr.msk.bf16.vlgmr.msra.gmra.mrb[0].mxu1 %vm519_vm2, %v448_v10  ;;  %v420_v20 = vld [vmem:[%s14821_s29 + $0x38] sm:$0xff]  ;;  %v502_v21 = vpack.c.bf16 %v10284_v18, %v10283_v17  ;;  %v10286_v24 = vld [vmem:[%s14821_s29 + $0x148] sm:$0xff]  ;;  %v421_v25 = vld [vmem:[%s14821_s29 + $0x40] sm:$0xff] }
  0x21   : > { %12193 = vmatprep.mubr.msk.bf16.mxu1 %vm14681_vm1, %v17834_v1  ;;  %12184 = vmatpush3.bf16.msra.mxu0 %v796_v4  ;;  %v450_v22 = vpack.c.bf16 %v420_v20, %v419_v19  ;;  %v422_v26 = vld [vmem:[%s14821_s29 + $0x48] sm:$0xff]  ;;  %v503_v27 = vpack.c.bf16 %v10286_v24, %v10285_v23  ;;  %v10287_v31 = vld [vmem:[%s14821_s29 + $0x150] sm:$0xff]  ;;  %v10288_v32 = vld [vmem:[%s14821_s29 + $0x158] sm:$0xff] }
  0x22   : > { %12253 = vmatprep.subr.bf16.mxu0 %v17834_v1  ;;  %v451_v29 = vpack.c.bf16 %v422_v26, %v421_v25  ;;  %12324 = vmatpush3.bf16.msra.mxu1 %v1383_v30  ;;  %v423_v33 = vld [vmem:[%s14821_s29 + $0x50] sm:$0xff]  ;;  %v424_v34 = vld [vmem:[%s14821_s29 + $0x58] sm:$0xff]  ;;  %v504_v35 = vpack.c.bf16 %v10288_v32, %v10287_v31  ;;  %v10289_v37 = vld [vmem:[%s14821_s29 + $0x160] sm:$0xff] }
  0x23   : > { %12463 = vmatprep.subr.bf16.mxu1 %v17834_v1  ;;  %v452_v36 = vpack.c.bf16 %v424_v34, %v423_v33  ;;  %v10290_v38 = vld [vmem:[%s14821_s29 + $0x168] sm:$0xff]  ;;  %v425_v39 = vld [vmem:[%s14821_s29 + $0x60] sm:$0xff]  ;;  %v10291_v43 = vld [vmem:[%s14821_s29 + $0x170] sm:$0xff] }
  0x24   : > { %v426_v40 = vld [vmem:[%s14821_s29 + $0x68] sm:$0xff]  ;;  %v505_v41 = vpack.c.bf16 %v10290_v38, %v10289_v37  ;;  %v10292_v44 = vld [vmem:[%s14821_s29 + $0x178] sm:$0xff]  ;;  %v427_v45 = vld [vmem:[%s14821_s29 + $0x70] sm:$0xff] }
  0x25   : > { %v453_v42 = vpack.c.bf16 %v426_v40, %v425_v39  ;;  %v428_v46 = vld [vmem:[%s14821_s29 + $0x78] sm:$0xff]  ;;  %v506_v47 = vpack.c.bf16 %v10292_v44, %v10291_v43  ;;  %v10293_v49 = vld [vmem:[%s14821_s29 + $0x180] sm:$0xff]  ;;  %v10294_v50 = vld [vmem:[%s14821_s29 + $0x188] sm:$0xff] }
  0x26   : > { %v454_v48 = vpack.c.bf16 %v428_v46, %v427_v45  ;;  %v429_v51 = vld [vmem:[%s14821_s29 + $0x80] sm:$0xff]  ;;  %v430_v52 = vld [vmem:[%s14821_s29 + $0x88] sm:$0xff]  ;;  %v507_v53 = vpack.c.bf16 %v10294_v50, %v10293_v49  ;;  %v10295_v55 = vld [vmem:[%s14821_s29 + $0x190] sm:$0xff] }
  0x27   : > { %12120 = vmatmul.mubr.msk.bf16.gmra.mrb[4].mxu0 %vm519_vm2, %v501_v15  ;;  %v455_v54 = vpack.c.bf16 %v430_v52, %v429_v51  ;;  %v10296_v56 = vld [vmem:[%s14821_s29 + $0x198] sm:$0xff]  ;;  %v431_v57 = vld [vmem:[%s14821_s29 + $0x90] sm:$0xff]  ;;  %v10297_v61 = vld [vmem:[%s14821_s29 + $0x1a0] sm:$0xff] }
  0x28   : > { %12123 = vmatprep.mubr.msk.bf16.mxu0 %vm14681_vm1, %v17834_v1  ;;  %12194 = vmatmul.mubr.msk.bf16.gmra.mrb[4].mxu1 %vm519_vm2, %v449_v16  ;;  %v432_v58 = vld [vmem:[%s14821_s29 + $0x98] sm:$0xff]  ;;  %v508_v59 = vpack.c.bf16 %v10296_v56, %v10295_v55  ;;  %v10298_v62 = vld [vmem:[%s14821_s29 + $0x1a8] sm:$0xff]  ;;  %v433_v63 = vld [vmem:[%s14821_s29 + $0xa0] sm:$0xff] }
  0x29   : > { %12197 = vmatprep.mubr.msk.bf16.mxu1 %vm14681_vm1, %v17834_v1  ;;  %v456_v60 = vpack.c.bf16 %v432_v58, %v431_v57  ;;  %v434_v0 = vld [vmem:[%s14821_s29 + $0xa8] sm:$0xff]  ;;  %v509_v2 = vpack.c.bf16 %v10298_v62, %v10297_v61  ;;  %v10299_v4 = vld [vmem:[%s14821_s29 + $0x1b0] sm:$0xff]  ;;  %v10300_v5 = vld [vmem:[%s14821_s29 + $0x1b8] sm:$0xff] }
  0x2a   : > { %v457_v3 = vpack.c.bf16 %v434_v0, %v433_v63  ;;  %v435_v6 = vld [vmem:[%s14821_s29 + $0xb0] sm:$0xff]  ;;  %v436_v7 = vld [vmem:[%s14821_s29 + $0xb8] sm:$0xff]  ;;  %v510_v8 = vpack.c.bf16 %v10300_v5, %v10299_v4  ;;  %v10301_v10 = vld [vmem:[%s14821_s29 + $0x1c0] sm:$0xff] }
  0x2b   : > { %v458_v9 = vpack.c.bf16 %v436_v7, %v435_v6  ;;  %v10302_v11 = vld [vmem:[%s14821_s29 + $0x1c8] sm:$0xff]  ;;  %v437_v12 = vld [vmem:[%s14821_s29 + $0xc0] sm:$0xff]  ;;  %v10303_v16 = vld [vmem:[%s14821_s29 + $0x1d0] sm:$0xff] }
  0x2c   : > { %v438_v13 = vld [vmem:[%s14821_s29 + $0xc8] sm:$0xff]  ;;  %v511_v14 = vpack.c.bf16 %v10302_v11, %v10301_v10  ;;  %v10304_v17 = vld [vmem:[%s14821_s29 + $0x1d8] sm:$0xff]  ;;  %v439_v18 = vld [vmem:[%s14821_s29 + $0xd0] sm:$0xff] }
  0x2d   : > { %v459_v15 = vpack.c.bf16 %v438_v13, %v437_v12  ;;  %v440_v19 = vld [vmem:[%s14821_s29 + $0xd8] sm:$0xff]  ;;  %v512_v20 = vpack.c.bf16 %v10304_v17, %v10303_v16  ;;  %v10306_v23 = vld [vmem:[%s14821_s29 + $0x1e8] sm:$0xff]  ;;  %v441_v24 = vld [vmem:[%s14821_s29 + $0xe0] sm:$0xff] }
  0x2e   : > { %v442_v25 = vld [vmem:[%s14821_s29 + $0xe8] sm:$0xff]  ;;  %v10307_v28 = vld [vmem:[%s14821_s29 + $0x1f0] sm:$0xff]  ;;  %v444_v31 = vld [vmem:[%s14821_s29 + $0xf8] sm:$0xff] }
  0x2f   : > { %12124 = vmatmul.mubr.msk.bf16.gmra.mrb[8].mxu0 %vm519_vm2, %v502_v21  ;;  %v460_v21 = vpack.c.bf16 %v440_v19, %v439_v18  ;;  %v443_v30 = vld [vmem:[%s14821_s29 + $0xf0] sm:$0xff]  ;;  %v10309_v34 = vld [vmem:[%s14821_s29 + $0x200] sm:$0xff]  ;;  %v446_v37 = vld [vmem:[%s14821_s29 + $0x108] sm:$0x7f] }
  0x30   : > { %12127 = vmatprep.mubr.msk.bf16.mxu0 %vm14681_vm1, %v17834_v1  ;;  %12198 = vmatmul.mubr.msk.bf16.gmra.mrb[8].mxu1 %vm519_vm2, %v450_v22  ;;  %v10305_v22 = vld [vmem:[%s14821_s29 + $0x1e0] sm:$0xff]  ;;  %v462_v33 = vpack.c.bf16 %v444_v31, %v443_v30  ;;  %v10311_v40 = vld [vmem:[%s14821_s29 + $0x210] sm:$0xff]  ;;  %v10367_v43 = vld [vmem:[%s14821_s29 + $0x228] sm:$0xff] }
  0x31   : > { %12201 = vmatprep.mubr.msk.bf16.mxu1 %vm14681_vm1, %v17834_v1  ;;  %v513_v26 = vpack.c.bf16 %v10306_v23, %v10305_v22  ;;  %v413_v46 = vld [vmem:[%s14821_s29] sm:$0xff]  ;;  %v10368_v49 = vld [vmem:[%s14821_s29 + $0x230] sm:$0xff]  ;;  %v10369_v50 = vld [vmem:[%s14821_s29 + $0x238] sm:$0xff] }
  0x32   : > { %v968_v55 = vld [vmem:[%s14821_s29 + $0x9] sm:$0xff]  ;;  %v10370_v56 = vld [vmem:[%s14821_s29 + $0x240] sm:$0xff]  ;;  %v10373_v63 = vld [vmem:[%s14821_s29 + $0x258] sm:$0xff] }
  0x33   : > { %v10371_v57 = vld [vmem:[%s14821_s29 + $0x248] sm:$0xff]  ;;  %v970_v61 = vld [vmem:[%s14821_s29 + $0x19] sm:$0xff]  ;;  %v10372_v62 = vld [vmem:[%s14821_s29 + $0x250] sm:$0xff] }
  0x34   : > { %v10452_v0 = vld [vmem:[%s17822_s1 + $0x10] sm:$0xf]  ;;  %v10504_v4 = vld [vmem:[%s17822_s1 + $0x14] sm:$0xf]  ;;  %v1315_v5 = vpack.c.bf16 %v10373_v63, %v10372_v62  ;;  %v971_v7 = vld [vmem:[%s14821_s29 + $0x21] sm:$0xff] }
  0x35   : > { %v2004_v6 = vsel %vm571_vm0, %v10504_v4, 0  ;;  %v10375_v10 = vld [vmem:[%s14821_s29 + $0x268] sm:$0xff]  ;;  %v973_v13 = vld [vmem:[%s14821_s29 + $0x31] sm:$0xff] }
  0x36   : > { %v10377_v16 = vld [vmem:[%s14821_s29 + $0x278] sm:$0xff]  ;;  %v975_v19 = vld [vmem:[%s14821_s29 + $0x41] sm:$0xff]  ;;  %v988_v63 = vld [vmem:[%s14821_s29 + $0xa9] sm:$0xff] }
  0x37   : > { %12128 = vmatmul.mubr.msk.bf16.gmra.mrb[12].mxu0 %vm519_vm2, %v503_v27  ;;  %v461_v27 = vpack.c.bf16 %v442_v25, %v441_v24  ;;  %v10379_v22 = vld [vmem:[%s14821_s29 + $0x288] sm:$0xff]  ;;  %v977_v25 = vld [vmem:[%s14821_s29 + $0x51] sm:$0xff] }
  0x38   : > { %12131 = vmatprep.mubr.msk.bf16.mxu0 %vm14681_vm1, %v17834_v1  ;;  %12202 = vmatmul.mubr.msk.bf16.gmra.mrb[12].mxu1 %vm519_vm2, %v451_v29  ;;  %v10308_v29 = vld [vmem:[%s14821_s29 + $0x1f8] sm:$0xff]  ;;  %v979_v31 = vld [vmem:[%s14821_s29 + $0x61] sm:$0xff] }
  0x39   : > { %12205 = vmatprep.mubr.msk.bf16.mxu1 %vm14681_vm1, %v17834_v1  ;;  %v514_v32 = vpack.c.bf16 %v10308_v29, %v10307_v28  ;;  %v10381_v28 = vld [vmem:[%s14821_s29 + $0x298] sm:$0xff]  ;;  %v987_v62 = vld [vmem:[%s14821_s29 + $0xa1] sm:$0xff] }
  0x3a   : > { %v10391_v4 = vld [vmem:[%s14821_s29 + $0x2e8] sm:$0xff] }
  0x3f   : > { %12132 = vmatmul.mubr.msk.bf16.gmra.mrb[16].mxu0 %vm519_vm2, %v504_v35  ;;  %v10310_v35 = vld [vmem:[%s14821_s29 + $0x208] sm:$0xff] }
  0x40   : > { %12135 = vmatprep.mubr.msk.bf16.mxu0 %vm14681_vm1, %v17834_v1  ;;  %12206 = vmatmul.mubr.msk.bf16.gmra.mrb[16].mxu1 %vm519_vm2, %v452_v36  ;;  %v445_v36 = vld [vmem:[%s14821_s29 + $0x100] sm:$0xff]  ;;  %v515_v38 = vpack.c.bf16 %v10310_v35, %v10309_v34  ;;  %v10383_v34 = vld [vmem:[%s14821_s29 + $0x2a8] sm:$0xff] }
  0x41   : > { %12209 = vmatprep.mubr.msk.bf16.mxu1 %vm14681_vm1, %v17834_v1  ;;  %v463_v39 = vpack.c.bf16 %v446_v37, %v445_v36  ;;  %v981_v37 = vld [vmem:[%s14821_s29 + $0x71] sm:$0xff] }
  0x47   : > { %12136 = vmatmul.mubr.msk.bf16.gmra.mrb[20].mxu0 %vm519_vm2, %v505_v41  ;;  %v10312_v41 = vld [vmem:[%s14821_s29 + $0x218] sm:$0x7f] }
  0x48   : > { %12139 = vmatprep.mubr.msk.bf16.mxu0 %vm14681_vm1, %v17834_v1  ;;  %12210 = vmatmul.mubr.msk.bf16.gmra.mrb[20].mxu1 %vm519_vm2, %v453_v42  ;;  %v10366_v42 = vld [vmem:[%s14821_s29 + $0x220] sm:$0xff]  ;;  %v516_v44 = vpack.c.bf16 %v10312_v41, %v10311_v40  ;;  %v10385_v40 = vld [vmem:[%s14821_s29 + $0x2b8] sm:$0xff] }
  0x49   : > { %12213 = vmatprep.mubr.msk.bf16.mxu1 %vm14681_vm1, %v17834_v1  ;;  %v1312_v45 = vpack.c.bf16 %v10367_v43, %v10366_v42  ;;  %v983_v43 = vld [vmem:[%s14821_s29 + $0x81] sm:$0xff] }
  0x4f   : > { %12140 = vmatmul.mubr.msk.bf16.gmra.mrb[24].mxu0 %vm519_vm2, %v506_v47  ;;  %v414_v47 = vld [vmem:[%s14821_s29 + $0x8] sm:$0xff] }
  0x50   : > { %12143 = vmatprep.mubr.msk.bf16.mxu0 %vm14681_vm1, %v17834_v1  ;;  %12214 = vmatmul.mubr.msk.bf16.gmra.mrb[24].mxu1 %vm519_vm2, %v454_v48  ;;  %v10348_v48 = vld [vmem:[%s17822_s1 + $0x8] sm:$0xf]  ;;  %v447_v51 = vpack.c.bf16 %v414_v47, %v413_v46 }
  0x51   : > { %12217 = vmatprep.mubr.msk.bf16.mxu1 %vm14681_vm1, %v17834_v1  ;;  %v1072_v52 = vsel %vm571_vm0, %v10348_v48, 0  ;;  %v10387_v46 = vld [vmem:[%s14821_s29 + $0x2c8] sm:$0xff] }
  0x57   : > { %12144 = vmatmul.mubr.msk.bf16.gmra.mrb[28].mxu0 %vm519_vm2, %v507_v53  ;;  %v1313_v53 = vpack.c.bf16 %v10369_v50, %v10368_v49  ;;  %v985_v49 = vld [vmem:[%s14821_s29 + $0x91] sm:$0xff]  ;;  %v986_v50 = vld [vmem:[%s14821_s29 + $0x99] sm:$0xff] }
  0x58   : > { %12147 = vmatprep.mubr.msk.bf16.mxu0 %vm14681_vm1, %v17834_v1  ;;  %12218 = vmatmul.mubr.msk.bf16.gmra.mrb[28].mxu1 %vm519_vm2, %v455_v54  ;;  %v967_v54 = vld [vmem:[%s14821_s29 + $0x1] sm:$0xff] }
  0x59   : > { %12221 = vmatprep.mubr.msk.bf16.mxu1 %vm14681_vm1, %v17834_v1  ;;  %v1001_v58 = vpack.c.bf16 %v968_v55, %v967_v54  ;;  %v1010_v55 = vpack.c.bf16 %v986_v50, %v985_v49  ;;  %v994_v49 = vld [vmem:[%s14821_s29 + $0xd9] sm:$0xff] }
  0x5f   : > { %12148 = vmatmul.mubr.msk.bf16.gmra.mrb[32].mxu0 %vm519_vm2, %v508_v59  ;;  %v1314_v59 = vpack.c.bf16 %v10371_v57, %v10370_v56 }
  0x60   : > { %12151 = vmatprep.mubr.msk.bf16.mxu0 %vm14681_vm1, %v17834_v1  ;;  %12222 = vmatmul.mubr.msk.bf16.gmra.mrb[32].mxu1 %vm519_vm2, %v456_v60  ;;  %v969_v60 = vld [vmem:[%s14821_s29 + $0x11] sm:$0xff] }
  0x61   : > { %12225 = vmatprep.mubr.msk.bf16.mxu1 %vm14681_vm1, %v17834_v1 }
  0x67   : > { %12152 = vmatmul.mubr.msk.bf16.gmra.mrb[36].mxu0 %vm519_vm2, %v509_v2  ;;  %v1002_v2 = vpack.c.bf16 %v970_v61, %v969_v60 }
  0x68   : > { %12155 = vmatprep.mubr.msk.bf16.mxu0 %vm14681_vm1, %v17834_v1  ;;  %12226 = vmatmul.mubr.msk.bf16.gmra.mrb[36].mxu1 %vm519_vm2, %v457_v3  ;;  %v1694_v3 = vsel %vm571_vm0, %v10452_v0, 0 }
  0x69   : > { %12229 = vmatprep.mubr.msk.bf16.mxu1 %vm14681_vm1, %v17834_v1 }
  0x6f   : > { %12156 = vmatmul.mubr.msk.bf16.gmra.mrb[40].mxu0 %vm519_vm2, %v510_v8  ;;  %v972_v8 = vld [vmem:[%s14821_s29 + $0x29] sm:$0xff] }
  0x70   : > { %12159 = vmatprep.mubr.msk.bf16.mxu0 %vm14681_vm1, %v17834_v1  ;;  %12230 = vmatmul.mubr.msk.bf16.gmra.mrb[40].mxu1 %vm519_vm2, %v458_v9  ;;  %v10374_v9 = vld [vmem:[%s14821_s29 + $0x260] sm:$0xff]  ;;  %v1003_v11 = vpack.c.bf16 %v972_v8, %v971_v7  ;;  %v1011_v7 = vpack.c.bf16 %v988_v63, %v987_v62 }
  0x71   : > { %12233 = vmatprep.mubr.msk.bf16.mxu1 %vm14681_vm1, %v17834_v1  ;;  %v1316_v12 = vpack.c.bf16 %v10375_v10, %v10374_v9 }
  0x77   : > { %12160 = vmatmul.mubr.msk.bf16.gmra.mrb[44].mxu0 %vm519_vm2, %v511_v14  ;;  %v974_v14 = vld [vmem:[%s14821_s29 + $0x39] sm:$0xff] }
  0x78   : > { %12163 = vmatprep.mubr.msk.bf16.mxu0 %vm14681_vm1, %v17834_v1  ;;  %12234 = vmatmul.mubr.msk.bf16.gmra.mrb[44].mxu1 %vm519_vm2, %v459_v15  ;;  %v10376_v15 = vld [vmem:[%s14821_s29 + $0x270] sm:$0xff]  ;;  %v1004_v17 = vpack.c.bf16 %v974_v14, %v973_v13 }
  0x79   : > { %12237 = vmatprep.mubr.msk.bf16.mxu1 %vm14681_vm1, %v17834_v1  ;;  %v1317_v18 = vpack.c.bf16 %v10377_v16, %v10376_v15  ;;  %v989_v15 = vld [vmem:[%s14821_s29 + $0xb1] sm:$0xff]  ;;  %v990_v16 = vld [vmem:[%s14821_s29 + $0xb9] sm:$0xff] }
  0x7f   : > { %12164 = vmatmul.mubr.msk.bf16.gmra.mrb[48].mxu0 %vm519_vm2, %v512_v20  ;;  %v976_v20 = vld [vmem:[%s14821_s29 + $0x49] sm:$0xff] }
  0x80   : > { %12167 = vmatprep.mubr.msk.bf16.mxu0 %vm14681_vm1, %v17834_v1  ;;  %12238 = vmatmul.mubr.msk.bf16.gmra.mrb[48].mxu1 %vm519_vm2, %v460_v21  ;;  %v10378_v21 = vld [vmem:[%s14821_s29 + $0x280] sm:$0xff]  ;;  %v1005_v23 = vpack.c.bf16 %v976_v20, %v975_v19  ;;  %v10393_v20 = vld [vmem:[%s14821_s29 + $0x2f8] sm:$0xff] }
  0x81   : > { %12241 = vmatprep.mubr.msk.bf16.mxu1 %vm14681_vm1, %v17834_v1  ;;  %v1318_v24 = vpack.c.bf16 %v10379_v22, %v10378_v21 }
  0x87   : > { %12168 = vmatmul.mubr.msk.bf16.gmra.mrb[52].mxu0 %vm519_vm2, %v513_v26  ;;  %v978_v26 = vld [vmem:[%s14821_s29 + $0x59] sm:$0xff] }
  0x88   : > { %12171 = vmatprep.mubr.msk.bf16.mxu0 %vm14681_vm1, %v17834_v1  ;;  %12242 = vmatmul.mubr.msk.bf16.gmra.mrb[52].mxu1 %vm519_vm2, %v461_v27  ;;  %v10380_v27 = vld [vmem:[%s14821_s29 + $0x290] sm:$0xff]  ;;  %v1006_v29 = vpack.c.bf16 %v978_v26, %v977_v25 }
  0x89   : > { %12245 = vmatprep.mubr.msk.bf16.mxu1 %vm14681_vm1, %v17834_v1  ;;  %v1319_v30 = vpack.c.bf16 %v10381_v28, %v10380_v27 }
  0x8f   : > { %12172 = vmatmul.mubr.msk.bf16.gmra.mrb[56].mxu0 %vm519_vm2, %v514_v32  ;;  %v980_v32 = vld [vmem:[%s14821_s29 + $0x69] sm:$0xff] }
  0x90   : > { %12175 = vmatprep.mubr.msk.bf16.mxu0 %vm14681_vm1, %v17834_v1  ;;  %12246 = vmatmul.mubr.msk.bf16.gmra.mrb[56].mxu1 %vm519_vm2, %v462_v33  ;;  %v10382_v33 = vld [vmem:[%s14821_s29 + $0x2a0] sm:$0xff]  ;;  %v1007_v35 = vpack.c.bf16 %v980_v32, %v979_v31  ;;  %v992_v32 = vld [vmem:[%s14821_s29 + $0xc9] sm:$0xff] }
  0x91   : > { %12249 = vmatprep.mubr.msk.bf16.mxu1 %vm14681_vm1, %v17834_v1  ;;  %v1320_v36 = vpack.c.bf16 %v10383_v34, %v10382_v33  ;;  %v991_v31 = vld [vmem:[%s14821_s29 + $0xc1] sm:$0xff] }
  0x92   : > { %v10394_v34 = vld [vmem:[%s14821_s29 + $0x300] sm:$0xff] }
  0x97   : > { %12176 = vmatmul.mubr.msk.bf16.gmra.mrb[60].mxu0 %vm519_vm2, %v515_v38  ;;  %v982_v38 = vld [vmem:[%s14821_s29 + $0x79] sm:$0xff] }
  0x98   : > { %12179 = vmatprep.mubr.msk.bf16.mxu0 %vm14681_vm1, %v17834_v1  ;;  %12250 = vmatmul.mubr.msk.bf16.gmra.mrb[60].mxu1 %vm519_vm2, %v463_v39  ;;  %v10384_v39 = vld [vmem:[%s14821_s29 + $0x2b0] sm:$0xff]  ;;  %v1008_v41 = vpack.c.bf16 %v982_v38, %v981_v37 }
  0x99   : > { %12325 = vmatprep.mubr.msk.bf16.mxu1 %vm14681_vm1, %v17834_v1  ;;  %v1321_v42 = vpack.c.bf16 %v10385_v40, %v10384_v39  ;;  %v1013_v39 = vpack.c.bf16 %v992_v32, %v991_v31 }
  0x9f   : > { %12180 = vmatmul.mubr.msk.bf16.gmra.mrb[64].mxu0 %vm519_vm2, %v516_v44  ;;  %v984_v44 = vld [vmem:[%s14821_s29 + $0x89] sm:$0xff] }
  0xa0   : > { %12185 = vmatprep.mubr.msk.bf16.mxu0 %vm14681_vm1, %v17834_v1  ;;  %12326 = vmatmul.mubr.msk.bf16.vlgmr.msra.gmra.mrb[64].mxu1 %vm519_vm2, %v1312_v45  ;;  %v10386_v45 = vld [vmem:[%s14821_s29 + $0x2c0] sm:$0xff]  ;;  %v1009_v47 = vpack.c.bf16 %v984_v44, %v983_v43 }
  0xa1   : > { %12329 = vmatprep.mubr.msk.bf16.mxu1 %vm14681_vm1, %v17834_v1  ;;  %12464 = vmatpush3.bf16.msra.mxu1 %v2004_v6  ;;  %v1322_v48 = vpack.c.bf16 %v10387_v46, %v10386_v45 }
  0xa2   : > { %12603 = vmatprep.subr.bf16.mxu1 %v17834_v1 }
  0xa7   : > { %12186 = vmatmul.mubr.msk.bf16.vlgmr.msra.gmra.mrb[68].mxu0 %vm519_vm2, %v447_v51  ;;  %v10388_v51 = vld [vmem:[%s14821_s29 + $0x2d0] sm:$0xff] }
  0xa8   : > { %12254 = vmatpush3.bf16.msra.mxu0 %v1072_v52  ;;  %12255 = vmatprep.mubr.msk.bf16.mxu0 %vm14681_vm1, %v17834_v1 }
  0xa9   : > { %12330 = vmatmul.mubr.msk.bf16.gmra.mrb[68].mxu1 %vm519_vm2, %v1313_v53  ;;  %12393 = vmatprep.subr.bf16.mxu0 %v17834_v1  ;;  %v10389_v53 = vld [vmem:[%s14821_s29 + $0x2d8] sm:$0xff] }
  0xaa   : > { %12333 = vmatprep.mubr.msk.bf16.mxu1 %vm14681_vm1, %v17834_v1  ;;  %v1323_v61 = vpack.c.bf16 %v10389_v53, %v10388_v51  ;;  %v10396_v51 = vld [vmem:[%s14821_s29 + $0x310] sm:$0xff]  ;;  %v10397_v53 = vld [vmem:[%s14821_s29 + $0x318] sm:$0xff] }
  0xaf   : > { %12256 = vmatmul.mubr.msk.bf16.vlgmr.msra.gmra.mrb[72].mxu0 %vm519_vm2, %v1001_v58 }
  0xb0   : > { %12259 = vmatprep.mubr.msk.bf16.mxu0 %vm14681_vm1, %v17834_v1  ;;  %12394 = vmatpush3.bf16.msra.mxu0 %v1694_v3 }
  0xb1   : > { %12334 = vmatmul.mubr.msk.bf16.gmra.mrb[72].mxu1 %vm519_vm2, %v1314_v59  ;;  %12533 = vmatprep.subr.bf16.mxu0 %v17834_v1 }
  0xb2   : > { %12337 = vmatprep.mubr.msk.bf16.mxu1 %vm14681_vm1, %v17834_v1 }
  0xb7   : > { %12260 = vmatmul.mubr.msk.bf16.gmra.mrb[76].mxu0 %vm519_vm2, %v1002_v2  ;;  %v10390_v2 = vld [vmem:[%s14821_s29 + $0x2e0] sm:$0xff] }
  0xb8   : > { %12263 = vmatprep.mubr.msk.bf16.mxu0 %vm14681_vm1, %v17834_v1  ;;  %v1324_v14 = vpack.c.bf16 %v10391_v4, %v10390_v2  ;;  %v996_v4 = vld [vmem:[%s14821_s29 + $0xe9] sm:$0xff] }
  0xb9   : > { %12338 = vmatmul.mubr.msk.bf16.gmra.mrb[76].mxu1 %vm519_vm2, %v1315_v5 }
  0xba   : > { %12341 = vmatprep.mubr.msk.bf16.mxu1 %vm14681_vm1, %v17834_v1 }
  0xbf   : > { %12264 = vmatmul.mubr.msk.bf16.gmra.mrb[80].mxu0 %vm519_vm2, %v1003_v11 }
  0xc0   : > { %12267 = vmatprep.mubr.msk.bf16.mxu0 %vm14681_vm1, %v17834_v1 }
  0xc1   : > { %12342 = vmatmul.mubr.msk.bf16.gmra.mrb[80].mxu1 %vm519_vm2, %v1316_v12 }
  0xc2   : > { %12345 = vmatprep.mubr.msk.bf16.mxu1 %vm14681_vm1, %v17834_v1 }
  0xc7   : > { %12268 = vmatmul.mubr.msk.bf16.gmra.mrb[84].mxu0 %vm519_vm2, %v1004_v17 }
  0xc8   : > { %12271 = vmatprep.mubr.msk.bf16.mxu0 %vm14681_vm1, %v17834_v1 }
  0xc9   : > { %12346 = vmatmul.mubr.msk.bf16.gmra.mrb[84].mxu1 %vm519_vm2, %v1317_v18  ;;  %v10392_v18 = vld [vmem:[%s14821_s29 + $0x2f0] sm:$0xff] }
  0xca   : > { %12349 = vmatprep.mubr.msk.bf16.mxu1 %vm14681_vm1, %v17834_v1 }
  0xcf   : > { %12272 = vmatmul.mubr.msk.bf16.gmra.mrb[88].mxu0 %vm519_vm2, %v1005_v23  ;;  %v1012_v23 = vpack.c.bf16 %v990_v16, %v989_v15 }
  0xd0   : > { %12275 = vmatprep.mubr.msk.bf16.mxu0 %vm14681_vm1, %v17834_v1 }
  0xd1   : > { %12350 = vmatmul.mubr.msk.bf16.gmra.mrb[88].mxu1 %vm519_vm2, %v1318_v24 }
  0xd2   : > { %12353 = vmatprep.mubr.msk.bf16.mxu1 %vm14681_vm1, %v17834_v1 }
  0xd7   : > { %12276 = vmatmul.mubr.msk.bf16.gmra.mrb[92].mxu0 %vm519_vm2, %v1006_v29 }
  0xd8   : > { %12279 = vmatprep.mubr.msk.bf16.mxu0 %vm14681_vm1, %v17834_v1 }
  0xd9   : > { %12354 = vmatmul.mubr.msk.bf16.gmra.mrb[92].mxu1 %vm519_vm2, %v1319_v30  ;;  %v1325_v30 = vpack.c.bf16 %v10393_v20, %v10392_v18 }
  0xda   : > { %12357 = vmatprep.mubr.msk.bf16.mxu1 %vm14681_vm1, %v17834_v1 }
  0xdf   : > { %12280 = vmatmul.mubr.msk.bf16.gmra.mrb[96].mxu0 %vm519_vm2, %v1007_v35 }
  0xe0   : > { %12283 = vmatprep.mubr.msk.bf16.mxu0 %vm14681_vm1, %v17834_v1 }
  0xe1   : > { %12358 = vmatmul.mubr.msk.bf16.gmra.mrb[96].mxu1 %vm519_vm2, %v1320_v36  ;;  %v10395_v36 = vld [vmem:[%s14821_s29 + $0x308] sm:$0xff] }
  0xe2   : > { %12361 = vmatprep.mubr.msk.bf16.mxu1 %vm14681_vm1, %v17834_v1  ;;  %v1326_v46 = vpack.c.bf16 %v10395_v36, %v10394_v34 }
  0xe7   : > { %12284 = vmatmul.mubr.msk.bf16.gmra.mrb[100].mxu0 %vm519_vm2, %v1008_v41 }
  0xe8   : > { %12287 = vmatprep.mubr.msk.bf16.mxu0 %vm14681_vm1, %v17834_v1 }
  0xe9   : > { %12362 = vmatmul.mubr.msk.bf16.gmra.mrb[100].mxu1 %vm519_vm2, %v1321_v42 }
  0xea   : > { %12365 = vmatprep.mubr.msk.bf16.mxu1 %vm14681_vm1, %v17834_v1 }
  0xef   : > { %12288 = vmatmul.mubr.msk.bf16.gmra.mrb[104].mxu0 %vm519_vm2, %v1009_v47 }
  0xf0   : > { %12291 = vmatprep.mubr.msk.bf16.mxu0 %vm14681_vm1, %v17834_v1 }
  0xf1   : > { %12366 = vmatmul.mubr.msk.bf16.gmra.mrb[104].mxu1 %vm519_vm2, %v1322_v48  ;;  %v993_v48 = vld [vmem:[%s14821_s29 + $0xd1] sm:$0xff] }
  0xf2   : > { %v15115_v52 = vpop.f32.mrb[0].mxu0  ;;  %12369 = vmatprep.mubr.msk.bf16.mxu1 %vm14681_vm1, %v17834_v1 }
  0xf3   : > { %v12117_v54 = vpop.f32.mrb[1].mxu0  ;;  %v840_v56 = vpop.f32.mrb[0].mxu1 }
  0xf4   : > { %v15120_v57 = vpop.f32.mrb[2].mxu0  ;;  %v12191_v58 = vpop.f32.mrb[1].mxu1 }
  0xf5   : > { %v12118_v59 = vpop.f32.mrb[3].mxu0  ;;  %v843_v60 = vpop.f32.mrb[2].mxu1 }
  0xf6   : > { %v12192_v0 = vpop.f32.mrb[3].mxu1 }
  0xf7   : > { %12292 = vmatmul.mubr.msk.bf16.gmra.mrb[108].mxu0 %vm519_vm2, %v1010_v55  ;;  %v1327_v0 = vpack.c.bf16 %v10397_v53, %v10396_v51 }
  0xf8   : > { %12295 = vmatprep.mubr.msk.bf16.mxu0 %vm14681_vm1, %v17834_v1 }
  0xf9   : > { %12370 = vmatmul.mubr.msk.bf16.gmra.mrb[108].mxu1 %vm519_vm2, %v1323_v61 }
  0xfa   : > { %v617_v3 = vpop.f32.mrb[4].mxu0  ;;  %12373 = vmatprep.mubr.msk.bf16.mxu1 %vm14681_vm1, %v17834_v1 }
  0xfb   : > { %v15132_v5 = vadd.f32 %v840_v56, %v617_v3  ;;  %v12121_v6 = vpop.f32.mrb[5].mxu0  ;;  %v848_v8 = vpop.f32.mrb[4].mxu1  ;;  %v1014_v56 = vpack.c.bf16 %v994_v49, %v993_v48  ;;  %v995_v3 = vld [vmem:[%s14821_s29 + $0xe1] sm:$0xff] }
  0xfc   : > { %v620_v9 = vpop.f32.mrb[6].mxu0  ;;  %v12195_v10 = vpop.f32.mrb[5].mxu1 }
  0xfd   : > { %v15134_v11 = vadd.f32 %v843_v60, %v620_v9  ;;  %v12122_v12 = vpop.f32.mrb[7].mxu0  ;;  %v851_v13 = vpop.f32.mrb[6].mxu1 }
  0xfe   : > { %v12196_v17 = vpop.f32.mrb[7].mxu1  ;;  %v1015_v12 = vpack.c.bf16 %v996_v4, %v995_v3 }
  0xff   : > { %12296 = vmatmul.mubr.msk.bf16.gmra.mrb[112].mxu0 %vm519_vm2, %v1011_v7  ;;  %v10398_v7 = vld [vmem:[%s14821_s29 + $0x320] sm:$0xff] }
 0x100   : > { %12299 = vmatprep.mubr.msk.bf16.mxu0 %vm14681_vm1, %v17834_v1 }
 0x101   : > { %12374 = vmatmul.mubr.msk.bf16.gmra.mrb[112].mxu1 %vm519_vm2, %v1324_v14 }
 0x102   : > { %v625_v19 = vpop.f32.mrb[8].mxu0  ;;  %12377 = vmatprep.mubr.msk.bf16.mxu1 %vm14681_vm1, %v17834_v1 }
 0x103   : > { %v15146_v21 = vadd.f32 %v848_v8, %v625_v19  ;;  %v12125_v22 = vpop.f32.mrb[9].mxu0  ;;  %v856_v24 = vpop.f32.mrb[8].mxu1  ;;  %v10399_v8 = vld [vmem:[%s14821_s29 + $0x328] sm:$0x7f] }
 0x104   : > { %v628_v25 = vpop.f32.mrb[10].mxu0  ;;  %v12199_v26 = vpop.f32.mrb[9].mxu1  ;;  %v1328_v19 = vpack.c.bf16 %v10399_v8, %v10398_v7  ;;  %v997_v22 = vld [vmem:[%s14821_s29 + $0xf1] sm:$0xff] }
 0x105   : > { %v15148_v27 = vadd.f32 %v851_v13, %v628_v25  ;;  %v12126_v28 = vpop.f32.mrb[11].mxu0  ;;  %v859_v29 = vpop.f32.mrb[10].mxu1  ;;  %v10470_v25 = vld [vmem:[%s14821_s29 + $0x221] sm:$0xff]  ;;  %v10471_v26 = vld [vmem:[%s14821_s29 + $0x229] sm:$0xff] }
 0x106   : > { %v12200_v33 = vpop.f32.mrb[11].mxu1 }
 0x107   : > { %12300 = vmatmul.mubr.msk.bf16.gmra.mrb[116].mxu0 %vm519_vm2, %v1012_v23  ;;  %v998_v23 = vld [vmem:[%s14821_s29 + $0xf9] sm:$0xff] }
 0x108   : > { %12303 = vmatprep.mubr.msk.bf16.mxu0 %vm14681_vm1, %v17834_v1 }
 0x109   : > { %12378 = vmatmul.mubr.msk.bf16.gmra.mrb[116].mxu1 %vm519_vm2, %v1325_v30  ;;  %v1016_v30 = vpack.c.bf16 %v998_v23, %v997_v22  ;;  %v10476_v22 = vld [vmem:[%s14821_s29 + $0x251] sm:$0xff]  ;;  %v10477_v23 = vld [vmem:[%s14821_s29 + $0x259] sm:$0xff] }
 0x10a   : > { %v633_v35 = vpop.f32.mrb[12].mxu0  ;;  %12381 = vmatprep.mubr.msk.bf16.mxu1 %vm14681_vm1, %v17834_v1 }
 0x10b   : > { %v15160_v37 = vadd.f32 %v856_v24, %v633_v35  ;;  %v12129_v38 = vpop.f32.mrb[13].mxu0  ;;  %v864_v40 = vpop.f32.mrb[12].mxu1 }
 0x10c   : > { %v636_v41 = vpop.f32.mrb[14].mxu0  ;;  %v12203_v42 = vpop.f32.mrb[13].mxu1  ;;  %v1933_v38 = vpack.c.bf16 %v10471_v26, %v10470_v25 }
 0x10d   : > { %v15162_v43 = vadd.f32 %v859_v29, %v636_v41  ;;  %v12130_v44 = vpop.f32.mrb[15].mxu0  ;;  %v867_v45 = vpop.f32.mrb[14].mxu1  ;;  %v1000_v41 = vld [vmem:[%s14821_s29 + $0x109] sm:$0x7f] }
 0x10e   : > { %v12204_v47 = vpop.f32.mrb[15].mxu1  ;;  %v10472_v44 = vld [vmem:[%s14821_s29 + $0x231] sm:$0xff] }
 0x10f   : > { %12304 = vmatmul.mubr.msk.bf16.gmra.mrb[120].mxu0 %vm519_vm2, %v1013_v39 }
 0x110   : > { %12307 = vmatprep.mubr.msk.bf16.mxu0 %vm14681_vm1, %v17834_v1 }
 0x111   : > { %12382 = vmatmul.mubr.msk.bf16.gmra.mrb[120].mxu1 %vm519_vm2, %v1326_v46 }
 0x112   : > { %v641_v50 = vpop.f32.mrb[16].mxu0  ;;  %12385 = vmatprep.mubr.msk.bf16.mxu1 %vm14681_vm1, %v17834_v1 }
 0x113   : > { %v15174_v54 = vadd.f32 %v864_v40, %v641_v50  ;;  %v12133_v55 = vpop.f32.mrb[17].mxu0  ;;  %v872_v58 = vpop.f32.mrb[16].mxu1  ;;  %v999_v40 = vld [vmem:[%s14821_s29 + $0x101] sm:$0xff] }
 0x114   : > { %v644_v59 = vpop.f32.mrb[18].mxu0  ;;  %v12207_v60 = vpop.f32.mrb[17].mxu1  ;;  %v1017_v48 = vpack.c.bf16 %v1000_v41, %v999_v40  ;;  %v1936_v40 = vpack.c.bf16 %v10477_v23, %v10476_v22 }
 0x115   : > { %v15176_v61 = vadd.f32 %v867_v45, %v644_v59  ;;  %v12134_v62 = vpop.f32.mrb[19].mxu0  ;;  %v875_v63 = vpop.f32.mrb[18].mxu1  ;;  %v10473_v45 = vld [vmem:[%s14821_s29 + $0x239] sm:$0xff]  ;;  %v10418_v60 = vld [vmem:[%s14821_s29 + $0x330] sm:$0xff] }
 0x116   : > { %v12208_v2 = vpop.f32.mrb[19].mxu1  ;;  %v10419_v62 = vld [vmem:[%s14821_s29 + $0x338] sm:$0xff] }
 0x117   : > { %12308 = vmatmul.mubr.msk.bf16.gmra.mrb[124].mxu0 %vm519_vm2, %v1014_v56  ;;  %v10475_v2 = vld [vmem:[%s14821_s29 + $0x249] sm:$0xff] }
 0x118   : > { %12311 = vmatprep.mubr.msk.bf16.mxu0 %vm14681_vm1, %v17834_v1 }
 0x119   : > { %12386 = vmatmul.mubr.msk.bf16.gmra.mrb[124].mxu1 %vm519_vm2, %v1327_v0  ;;  %v10474_v0 = vld [vmem:[%s14821_s29 + $0x241] sm:$0xff] }
 0x11a   : > { %v649_v6 = vpop.f32.mrb[20].mxu0  ;;  %12389 = vmatprep.mubr.msk.bf16.mxu1 %vm14681_vm1, %v17834_v1 }
 0x11b   : > { %v15188_v9 = vadd.f32 %v872_v58, %v649_v6  ;;  %v12137_v10 = vpop.f32.mrb[21].mxu0  ;;  %v880_v13 = vpop.f32.mrb[20].mxu1  ;;  %v1934_v58 = vpack.c.bf16 %v10473_v45, %v10472_v44  ;;  %v1623_v6 = vpack.c.bf16 %v10419_v62, %v10418_v60  ;;  %v10422_v44 = vld [vmem:[%s14821_s29 + $0x350] sm:$0xff]  ;;  %v10423_v45 = vld [vmem:[%s14821_s29 + $0x358] sm:$0xff] }
 0x11c   : > { %v652_v14 = vpop.f32.mrb[22].mxu0  ;;  %v12211_v15 = vpop.f32.mrb[21].mxu1 }
 0x11d   : > { %v15190_v16 = vadd.f32 %v875_v63, %v652_v14  ;;  %v12138_v17 = vpop.f32.mrb[23].mxu0  ;;  %v883_v18 = vpop.f32.mrb[22].mxu1  ;;  %v1935_v15 = vpack.c.bf16 %v10475_v2, %v10474_v0 }
 0x11e   : > { %v12212_v20 = vpop.f32.mrb[23].mxu1 }
 0x11f   : > { %12312 = vmatmul.mubr.msk.bf16.gmra.mrb[128].mxu0 %vm519_vm2, %v1015_v12 }
 0x120   : > { %12315 = vmatprep.mubr.msk.bf16.mxu0 %vm14681_vm1, %v17834_v1 }
 0x121   : > { %12390 = vmatmul.mubr.msk.bf16.gmra.mrb[128].mxu1 %vm519_vm2, %v1328_v19  ;;  %v10421_v19 = vld [vmem:[%s14821_s29 + $0x348] sm:$0xff] }
 0x122   : > { %v657_v24 = vpop.f32.mrb[24].mxu0  ;;  %12465 = vmatprep.mubr.msk.bf16.mxu1 %vm14681_vm1, %v17834_v1 }
 0x123   : > { %v15202_v28 = vadd.f32 %v880_v13, %v657_v24  ;;  %v12141_v29 = vpop.f32.mrb[25].mxu0  ;;  %v888_v31 = vpop.f32.mrb[24].mxu1  ;;  %v10556_v24 = vld [vmem:[%s17822_s1 + $0x18] sm:$0xf] }
 0x124   : > { %v660_v32 = vpop.f32.mrb[26].mxu0  ;;  %v12215_v33 = vpop.f32.mrb[25].mxu1 }
 0x125   : > { %v15204_v34 = vadd.f32 %v883_v18, %v660_v32  ;;  %v12142_v35 = vpop.f32.mrb[27].mxu0  ;;  %v891_v36 = vpop.f32.mrb[26].mxu1  ;;  %v10420_v18 = vld [vmem:[%s14821_s29 + $0x340] sm:$0xff] }
 0x126   : > { %v12216_v39 = vpop.f32.mrb[27].mxu1  ;;  %v1624_v29 = vpack.c.bf16 %v10421_v19, %v10420_v18  ;;  %v10608_v35 = vld [vmem:[%s17822_s1 + $0x1c] sm:$0xf] }
 0x127   : > { %12316 = vmatmul.mubr.msk.bf16.gmra.mrb[132].mxu0 %vm519_vm2, %v1016_v30  ;;  %v2626_v41 = vsel %vm571_vm0, %v10608_v35, 0 }
 0x128   : > { %12319 = vmatprep.mubr.msk.bf16.mxu0 %vm14681_vm1, %v17834_v1 }
 0x129   : > { %12466 = vmatmul.mubr.msk.bf16.vlgmr.msra.gmra.mrb[132].mxu1 %vm519_vm2, %v1933_v38 }
 0x12a   : > { %v665_v42 = vpop.f32.mrb[28].mxu0  ;;  %12469 = vmatprep.mubr.msk.bf16.mxu1 %vm14681_vm1, %v17834_v1  ;;  %12604 = vmatpush3.bf16.msra.mxu1 %v2626_v41 }
 0x12b   : > { %v15216_v46 = vadd.f32 %v888_v31, %v665_v42  ;;  %v12145_v47 = vpop.f32.mrb[29].mxu0  ;;  %v896_v49 = vpop.f32.mrb[28].mxu1  ;;  %v2315_v31 = vsel %vm571_vm0, %v10556_v24, 0 }
 0x12c   : > { %v668_v50 = vpop.f32.mrb[30].mxu0  ;;  %v12219_v51 = vpop.f32.mrb[29].mxu1 }
 0x12d   : > { %v15218_v53 = vadd.f32 %v891_v36, %v668_v50  ;;  %v12146_v55 = vpop.f32.mrb[31].mxu0  ;;  %v899_v56 = vpop.f32.mrb[30].mxu1 }
 0x12e   : > { %v12220_v59 = vpop.f32.mrb[31].mxu1  ;;  %v1625_v55 = vpack.c.bf16 %v10423_v45, %v10422_v44 }
 0x12f   : > { %12320 = vmatmul.mubr.msk.bf16.gmra.mrb[136].mxu0 %vm519_vm2, %v1017_v48  ;;  %v10478_v48 = vld [vmem:[%s14821_s29 + $0x261] sm:$0xff] }
 0x130   : > { %12395 = vmatprep.mubr.msk.bf16.mxu0 %vm14681_vm1, %v17834_v1 }
 0x131   : > { %12470 = vmatmul.mubr.msk.bf16.gmra.mrb[136].mxu1 %vm519_vm2, %v1934_v58 }
 0x132   : > { %v673_v63 = vpop.f32.mrb[32].mxu0  ;;  %12473 = vmatprep.mubr.msk.bf16.mxu1 %vm14681_vm1, %v17834_v1 }
 0x133   : > { %v15230_v3 = vadd.f32 %v896_v49, %v673_v63  ;;  %v12149_v4 = vpop.f32.mrb[33].mxu0  ;;  %v904_v7 = vpop.f32.mrb[32].mxu1  ;;  %v10479_v49 = vld [vmem:[%s14821_s29 + $0x269] sm:$0xff] }
 0x134   : > { %v676_v8 = vpop.f32.mrb[34].mxu0  ;;  %v12223_v10 = vpop.f32.mrb[33].mxu1  ;;  %v1937_v0 = vpack.c.bf16 %v10479_v49, %v10478_v48  ;;  %v10424_v4 = vld [vmem:[%s14821_s29 + $0x360] sm:$0xff] }
 0x135   : > { %v15232_v12 = vadd.f32 %v899_v56, %v676_v8  ;;  %v12150_v13 = vpop.f32.mrb[35].mxu0  ;;  %v907_v14 = vpop.f32.mrb[34].mxu1  ;;  %v10480_v8 = vld [vmem:[%s14821_s29 + $0x271] sm:$0xff]  ;;  %v10481_v10 = vld [vmem:[%s14821_s29 + $0x279] sm:$0xff] }
 0x136   : > { %v12224_v17 = vpop.f32.mrb[35].mxu1  ;;  %v1938_v24 = vpack.c.bf16 %v10481_v10, %v10480_v8 }
 0x137   : > { %12396 = vmatmul.mubr.msk.bf16.vlgmr.msra.gmra.mrb[140].mxu0 %vm519_vm2, %v1623_v6  ;;  %v10425_v6 = vld [vmem:[%s14821_s29 + $0x368] sm:$0xff] }
 0x138   : > { %12399 = vmatprep.mubr.msk.bf16.mxu0 %vm14681_vm1, %v17834_v1  ;;  %12534 = vmatpush3.bf16.msra.mxu0 %v2315_v31 }
 0x139   : > { %12474 = vmatmul.mubr.msk.bf16.gmra.mrb[140].mxu1 %vm519_vm2, %v1935_v15  ;;  %12673 = vmatprep.subr.bf16.mxu0 %v17834_v1  ;;  %v1626_v15 = vpack.c.bf16 %v10425_v6, %v10424_v4 }
 0x13a   : > { %v681_v20 = vpop.f32.mrb[36].mxu0  ;;  %12477 = vmatprep.mubr.msk.bf16.mxu1 %vm14681_vm1, %v17834_v1 }
 0x13b   : > { %v15247_v25 = vadd.f32 %v904_v7, %v681_v20  ;;  %v12153_v26 = vpop.f32.mrb[37].mxu0  ;;  %v912_v30 = vpop.f32.mrb[36].mxu1 }
 0x13c   : > { %v684_v32 = vpop.f32.mrb[38].mxu0  ;;  %v12227_v33 = vpop.f32.mrb[37].mxu1 }
 0x13d   : > { %v15253_v36 = vadd.f32 %v907_v14, %v684_v32  ;;  %v12154_v38 = vpop.f32.mrb[39].mxu0  ;;  %v915_v39 = vpop.f32.mrb[38].mxu1  ;;  %v10482_v32 = vld [vmem:[%s14821_s29 + $0x281] sm:$0xff]  ;;  %v10483_v33 = vld [vmem:[%s14821_s29 + $0x289] sm:$0xff] }
 0x13e   : > { %v12228_v42 = vpop.f32.mrb[39].mxu1  ;;  %v1939_v48 = vpack.c.bf16 %v10483_v33, %v10482_v32 }
 0x13f   : > { %12400 = vmatmul.mubr.msk.bf16.gmra.mrb[144].mxu0 %vm519_vm2, %v1624_v29  ;;  %v10426_v29 = vld [vmem:[%s14821_s29 + $0x370] sm:$0xff] }
 0x140   : > { %12403 = vmatprep.mubr.msk.bf16.mxu0 %vm14681_vm1, %v17834_v1 }
 0x141   : > { %12478 = vmatmul.mubr.msk.bf16.gmra.mrb[144].mxu1 %vm519_vm2, %v1936_v40 }
 0x142   : > { %v689_v47 = vpop.f32.mrb[40].mxu0  ;;  %12481 = vmatprep.mubr.msk.bf16.mxu1 %vm14681_vm1, %v17834_v1 }
 0x143   : > { %v15267_v50 = vadd.f32 %v912_v30, %v689_v47  ;;  %v12157_v51 = vpop.f32.mrb[41].mxu0  ;;  %v920_v56 = vpop.f32.mrb[40].mxu1  ;;  %v10427_v30 = vld [vmem:[%s14821_s29 + $0x378] sm:$0xff] }
 0x144   : > { %v692_v58 = vpop.f32.mrb[42].mxu0  ;;  %v12231_v59 = vpop.f32.mrb[41].mxu1  ;;  %v10428_v51 = vld [vmem:[%s14821_s29 + $0x380] sm:$0xff] }
 0x145   : > { %v15269_v60 = vadd.f32 %v915_v39, %v692_v58  ;;  %v12158_v62 = vpop.f32.mrb[43].mxu0  ;;  %v923_v63 = vpop.f32.mrb[42].mxu1  ;;  %v1627_v39 = vpack.c.bf16 %v10427_v30, %v10426_v29  ;;  %v10484_v58 = vld [vmem:[%s14821_s29 + $0x291] sm:$0xff]  ;;  %v10485_v59 = vld [vmem:[%s14821_s29 + $0x299] sm:$0xff] }
 0x146   : > { %v12232_v2 = vpop.f32.mrb[43].mxu1  ;;  %v1940_v10 = vpack.c.bf16 %v10485_v59, %v10484_v58 }
 0x147   : > { %12404 = vmatmul.mubr.msk.bf16.gmra.mrb[148].mxu0 %vm519_vm2, %v1625_v55  ;;  %v10429_v55 = vld [vmem:[%s14821_s29 + $0x388] sm:$0xff] }
 0x148   : > { %12407 = vmatprep.mubr.msk.bf16.mxu0 %vm14681_vm1, %v17834_v1 }
 0x149   : > { %12482 = vmatmul.mubr.msk.bf16.gmra.mrb[148].mxu1 %vm519_vm2, %v1937_v0 }
 0x14a   : > { %v697_v7 = vpop.f32.mrb[44].mxu0  ;;  %12485 = vmatprep.mubr.msk.bf16.mxu1 %vm14681_vm1, %v17834_v1 }
 0x14b   : > { %v15281_v13 = vadd.f32 %v920_v56, %v697_v7  ;;  %v12161_v14 = vpop.f32.mrb[45].mxu0  ;;  %v928_v17 = vpop.f32.mrb[44].mxu1 }
 0x14c   : > { %v700_v18 = vpop.f32.mrb[46].mxu0  ;;  %v12235_v19 = vpop.f32.mrb[45].mxu1 }
 0x14d   : > { %v15283_v20 = vadd.f32 %v923_v63, %v700_v18  ;;  %v12162_v22 = vpop.f32.mrb[47].mxu0  ;;  %v931_v23 = vpop.f32.mrb[46].mxu1  ;;  %v1628_v63 = vpack.c.bf16 %v10429_v55, %v10428_v51  ;;  %v10431_v18 = vld [vmem:[%s14821_s29 + $0x398] sm:$0xff] }
 0x14e   : > { %v12236_v26 = vpop.f32.mrb[47].mxu1  ;;  %v10486_v22 = vld [vmem:[%s14821_s29 + $0x2a1] sm:$0xff] }
 0x14f   : > { %12408 = vmatmul.mubr.msk.bf16.gmra.mrb[152].mxu0 %vm519_vm2, %v1626_v15 }
 0x150   : > { %12411 = vmatprep.mubr.msk.bf16.mxu0 %vm14681_vm1, %v17834_v1 }
 0x151   : > { %12486 = vmatmul.mubr.msk.bf16.gmra.mrb[152].mxu1 %vm519_vm2, %v1938_v24 }
 0x152   : > { %v705_v31 = vpop.f32.mrb[48].mxu0  ;;  %12489 = vmatprep.mubr.msk.bf16.mxu1 %vm14681_vm1, %v17834_v1 }
 0x153   : > { %v15295_v35 = vadd.f32 %v928_v17, %v705_v31  ;;  %v12165_v38 = vpop.f32.mrb[49].mxu0  ;;  %v936_v40 = vpop.f32.mrb[48].mxu1  ;;  %v10430_v17 = vld [vmem:[%s14821_s29 + $0x390] sm:$0xff] }
 0x154   : > { %v708_v41 = vpop.f32.mrb[50].mxu0  ;;  %v12239_v42 = vpop.f32.mrb[49].mxu1  ;;  %v1629_v26 = vpack.c.bf16 %v10431_v18, %v10430_v17  ;;  %v10490_v17 = vld [vmem:[%s14821_s29 + $0x2c1] sm:$0xff]  ;;  %v10491_v18 = vld [vmem:[%s14821_s29 + $0x2c9] sm:$0xff] }
 0x155   : > { %v15297_v44 = vadd.f32 %v931_v23, %v708_v41  ;;  %v12166_v45 = vpop.f32.mrb[51].mxu0  ;;  %v939_v47 = vpop.f32.mrb[50].mxu1  ;;  %v10487_v23 = vld [vmem:[%s14821_s29 + $0x2a9] sm:$0xff]  ;;  %v10432_v42 = vld [vmem:[%s14821_s29 + $0x3a0] sm:$0xff] }
 0x156   : > { %v12240_v49 = vpop.f32.mrb[51].mxu1  ;;  %v10433_v45 = vld [vmem:[%s14821_s29 + $0x3a8] sm:$0xff] }
 0x157   : > { %12412 = vmatmul.mubr.msk.bf16.gmra.mrb[156].mxu0 %vm519_vm2, %v1627_v39  ;;  %v1941_v39 = vpack.c.bf16 %v10487_v23, %v10486_v22  ;;  %v10489_v49 = vld [vmem:[%s14821_s29 + $0x2b9] sm:$0xff]  ;;  %v1630_v55 = vpack.c.bf16 %v10433_v45, %v10432_v42  ;;  %v10437_v42 = vld [vmem:[%s14821_s29 + $0x3c8] sm:$0xff] }
 0x158   : > { %12415 = vmatprep.mubr.msk.bf16.mxu0 %vm14681_vm1, %v17834_v1 }
 0x159   : > { %12490 = vmatmul.mubr.msk.bf16.gmra.mrb[156].mxu1 %vm519_vm2, %v1939_v48  ;;  %v10488_v48 = vld [vmem:[%s14821_s29 + $0x2b1] sm:$0xff] }
 0x15a   : > { %v713_v56 = vpop.f32.mrb[52].mxu0  ;;  %12493 = vmatprep.mubr.msk.bf16.mxu1 %vm14681_vm1, %v17834_v1 }
 0x15b   : > { %v12169_v62 = vpop.f32.mrb[53].mxu0  ;;  %v944_v0 = vpop.f32.mrb[52].mxu1  ;;  %v15309_v2 = vadd.f32 %v936_v40, %v713_v56 }
 0x15c   : > { %v716_v4 = vpop.f32.mrb[54].mxu0  ;;  %v12243_v6 = vpop.f32.mrb[53].mxu1 }
 0x15d   : > { %v12170_v7 = vpop.f32.mrb[55].mxu0  ;;  %v947_v8 = vpop.f32.mrb[54].mxu1  ;;  %v15311_v14 = vadd.f32 %v939_v47, %v716_v4  ;;  %v1942_v4 = vpack.c.bf16 %v10489_v49, %v10488_v48  ;;  %v10493_v48 = vld [vmem:[%s14821_s29 + $0x2d9] sm:$0xff] }
 0x15e   : > { %v12244_v15 = vpop.f32.mrb[55].mxu1 }
 0x15f   : > { %12416 = vmatmul.mubr.msk.bf16.gmra.mrb[160].mxu0 %vm519_vm2, %v1628_v63 }
 0x160   : > { %12419 = vmatprep.mubr.msk.bf16.mxu0 %vm14681_vm1, %v17834_v1 }
 0x161   : > { %12494 = vmatmul.mubr.msk.bf16.gmra.mrb[160].mxu1 %vm519_vm2, %v1940_v10  ;;  %v10435_v10 = vld [vmem:[%s14821_s29 + $0x3b8] sm:$0xff] }
 0x162   : > { %v721_v19 = vpop.f32.mrb[56].mxu0  ;;  %12497 = vmatprep.mubr.msk.bf16.mxu1 %vm14681_vm1, %v17834_v1 }
 0x163   : > { %v12173_v24 = vpop.f32.mrb[57].mxu0  ;;  %v952_v29 = vpop.f32.mrb[56].mxu1  ;;  %v15323_v30 = vadd.f32 %v944_v0, %v721_v19 }
 0x164   : > { %v724_v31 = vpop.f32.mrb[58].mxu0  ;;  %v12247_v32 = vpop.f32.mrb[57].mxu1 }
 0x165   : > { %v12174_v33 = vpop.f32.mrb[59].mxu0  ;;  %v955_v38 = vpop.f32.mrb[58].mxu1  ;;  %v15325_v40 = vadd.f32 %v947_v8, %v724_v31  ;;  %v10434_v8 = vld [vmem:[%s14821_s29 + $0x3b0] sm:$0xff] }
 0x166   : > { %v12248_v41 = vpop.f32.mrb[59].mxu1  ;;  %v1631_v22 = vpack.c.bf16 %v10435_v10, %v10434_v8  ;;  %v1943_v33 = vpack.c.bf16 %v10491_v18, %v10490_v17  ;;  %v10438_v10 = vld [vmem:[%s14821_s29 + $0x3d0] sm:$0xff]  ;;  %v10494_v17 = vld [vmem:[%s14821_s29 + $0x2e1] sm:$0xff] }
 0x167   : > { %12420 = vmatmul.mubr.msk.bf16.gmra.mrb[164].mxu0 %vm519_vm2, %v1629_v26  ;;  %v10436_v41 = vld [vmem:[%s14821_s29 + $0x3c0] sm:$0xff] }
 0x168   : > { %12423 = vmatprep.mubr.msk.bf16.mxu0 %vm14681_vm1, %v17834_v1 }
 0x169   : > { %12498 = vmatmul.mubr.msk.bf16.gmra.mrb[164].mxu1 %vm519_vm2, %v1941_v39 }
 0x16a   : > { %v729_v47 = vpop.f32.mrb[60].mxu0  ;;  %12501 = vmatprep.mubr.msk.bf16.mxu1 %vm14681_vm1, %v17834_v1 }
 0x16b   : > { %v12177_v51 = vpop.f32.mrb[61].mxu0  ;;  %v960_v56 = vpop.f32.mrb[60].mxu1  ;;  %v15337_v58 = vadd.f32 %v952_v29, %v729_v47  ;;  %v10492_v47 = vld [vmem:[%s14821_s29 + $0x2d1] sm:$0xff] }
 0x16c   : > { %v732_v59 = vpop.f32.mrb[62].mxu0  ;;  %v12251_v62 = vpop.f32.mrb[61].mxu1 }
 0x16d   : > { %v12178_v63 = vpop.f32.mrb[63].mxu0  ;;  %v963_v0 = vpop.f32.mrb[62].mxu1  ;;  %v15339_v6 = vadd.f32 %v955_v38, %v732_v59 }
 0x16e   : > { %v12252_v7 = vpop.f32.mrb[63].mxu1 }
 0x16f   : > { %12424 = vmatmul.mubr.msk.bf16.gmra.mrb[168].mxu0 %vm519_vm2, %v1630_v55  ;;  %v1632_v55 = vpack.c.bf16 %v10437_v42, %v10436_v41 }
 0x170   : > { %12427 = vmatprep.mubr.msk.bf16.mxu0 %vm14681_vm1, %v17834_v1 }
 0x171   : > { %12502 = vmatmul.mubr.msk.bf16.gmra.mrb[168].mxu1 %vm519_vm2, %v1942_v4  ;;  %v1944_v4 = vpack.c.bf16 %v10493_v48, %v10492_v47 }
 0x172   : > { %v737_v15 = vpop.f32.mrb[64].mxu0  ;;  %12505 = vmatprep.mubr.msk.bf16.mxu1 %vm14681_vm1, %v17834_v1 }
 0x173   : > { %v12181_v19 = vpop.f32.mrb[65].mxu0  ;;  %v1419_v23 = vpop.f32.mrb[64].mxu1  ;;  %v15351_v24 = vadd.f32 %v960_v56, %v737_v15 }
 0x174   : > { %v740_v26 = vpop.f32.mrb[66].mxu0  ;;  %v12327_v29 = vpop.f32.mrb[65].mxu1 }
 0x175   : > { %v12182_v31 = vpop.f32.mrb[67].mxu0  ;;  %v1422_v32 = vpop.f32.mrb[66].mxu1  ;;  %v15353_v38 = vadd.f32 %v963_v0, %v740_v26 }
 0x176   : > { %v12328_v39 = vpop.f32.mrb[67].mxu1 }
 0x177   : > { %12428 = vmatmul.mubr.msk.bf16.gmra.mrb[172].mxu0 %vm519_vm2, %v1631_v22 }
 0x178   : > { %12431 = vmatprep.mubr.msk.bf16.mxu0 %vm14681_vm1, %v17834_v1 }
 0x179   : > { %12506 = vmatmul.mubr.msk.bf16.gmra.mrb[172].mxu1 %vm519_vm2, %v1943_v33 }
 0x17a   : > { %v832_v45 = vpop.f32.mrb[68].mxu0  ;;  %12509 = vmatprep.mubr.msk.bf16.mxu1 %vm14681_vm1, %v17834_v1 }
 0x17b   : > { %v833_v49 = vadd.f32 %v832_v45, %v15115_v52  ;;  %v12187_v51 = vpop.f32.mrb[69].mxu0  ;;  %v10439_v52 = vld [vmem:[%s14821_s29 + $0x3d8] sm:$0xff] }
 0x17c   : > { %v835_v56 = vpop.f32.mrb[70].mxu0  ;;  %v1427_v59 = vpop.f32.mrb[68].mxu1  ;;  %v1633_v22 = vpack.c.bf16 %v10439_v52, %v10438_v10  ;;  %v10441_v51 = vld [vmem:[%s14821_s29 + $0x3e8] sm:$0xff] }
 0x17d   : > { %v836_v62 = vadd.f32 %v835_v56, %v15120_v57  ;;  %v12188_v63 = vpop.f32.mrb[71].mxu0  ;;  %v12331_v0 = vpop.f32.mrb[69].mxu1  ;;  %v10495_v57 = vld [vmem:[%s14821_s29 + $0x2e9] sm:$0xff]  ;;  %v10496_v56 = vld [vmem:[%s14821_s29 + $0x2f1] sm:$0xff] }
 0x17e   : > { %v1430_v7 = vpop.f32.mrb[70].mxu1  ;;  %v1945_v41 = vpack.c.bf16 %v10495_v57, %v10494_v17 }
 0x17f   : > { %12432 = vmatmul.mubr.msk.bf16.gmra.mrb[176].mxu0 %vm519_vm2, %v1632_v55  ;;  %v12332_v8 = vpop.f32.mrb[71].mxu1 }
 0x180   : > { %12435 = vmatprep.mubr.msk.bf16.mxu0 %vm14681_vm1, %v17834_v1 }
 0x181   : > { %12510 = vmatmul.mubr.msk.bf16.gmra.mrb[176].mxu1 %vm519_vm2, %v1944_v4 }
 0x182   : > { %v1108_v15 = vpop.f32.mrb[72].mxu0  ;;  %12513 = vmatprep.mubr.msk.bf16.mxu1 %vm14681_vm1, %v17834_v1 }
 0x183   : > { %v1243_v18 = vadd.f32 %v1108_v15, %v833_v49  ;;  %v12257_v19 = vpop.f32.mrb[73].mxu0  ;;  %v10440_v49 = vld [vmem:[%s14821_s29 + $0x3e0] sm:$0xff] }
 0x184   : > { %v1111_v26 = vpop.f32.mrb[74].mxu0  ;;  %v1435_v29 = vpop.f32.mrb[72].mxu1 }
 0x185   : > { %v1244_v31 = vadd.f32 %v1111_v26, %v836_v62  ;;  %v12258_v33 = vpop.f32.mrb[75].mxu0  ;;  %v12335_v39 = vpop.f32.mrb[73].mxu1  ;;  %v15377_v42 = vadd.f32 %v1419_v23, %v1243_v18  ;;  %v10497_v23 = vld [vmem:[%s14821_s29 + $0x2f9] sm:$0xff]  ;;  %v10498_v26 = vld [vmem:[%s14821_s29 + $0x301] sm:$0xff] }
 0x186   : > { %v1438_v45 = vpop.f32.mrb[74].mxu1  ;;  %v1946_v15 = vpack.c.bf16 %v10497_v23, %v10496_v56 }
 0x187   : > { %12436 = vmatmul.mubr.msk.bf16.gmra.mrb[180].mxu0 %vm519_vm2, %v1633_v22  ;;  %v12336_v47 = vpop.f32.mrb[75].mxu1  ;;  %v15380_v48 = vadd.f32 %v1422_v32, %v1244_v31  ;;  %v1634_v32 = vpack.c.bf16 %v10441_v51, %v10440_v49  ;;  %v10443_v22 = vld [vmem:[%s14821_s29 + $0x3f8] sm:$0xff] }
 0x188   : > { %12439 = vmatprep.mubr.msk.bf16.mxu0 %vm14681_vm1, %v17834_v1 }
 0x189   : > { %12514 = vmatmul.mubr.msk.bf16.gmra.mrb[180].mxu1 %vm519_vm2, %v1945_v41 }
 0x18a   : > { %v1116_v55 = vpop.f32.mrb[76].mxu0  ;;  %12517 = vmatprep.mubr.msk.bf16.mxu1 %vm14681_vm1, %v17834_v1 }
 0x18b   : > { %v1245_v62 = vadd.f32 %v1116_v55, %v15132_v5  ;;  %v12261_v63 = vpop.f32.mrb[77].mxu0  ;;  %v10442_v5 = vld [vmem:[%s14821_s29 + $0x3f0] sm:$0xff] }
 0x18c   : > { %v1119_v0 = vpop.f32.mrb[78].mxu0  ;;  %v1443_v4 = vpop.f32.mrb[76].mxu1 }
 0x18d   : > { %v1246_v8 = vadd.f32 %v1119_v0, %v15134_v11  ;;  %v12262_v10 = vpop.f32.mrb[79].mxu0  ;;  %v12339_v52 = vpop.f32.mrb[77].mxu1  ;;  %v15393_v17 = vadd.f32 %v1427_v59, %v1245_v62  ;;  %v10499_v59 = vld [vmem:[%s14821_s29 + $0x309] sm:$0xff]  ;;  %v10500_v0 = vld [vmem:[%s14821_s29 + $0x311] sm:$0xff] }
 0x18e   : > { %v1446_v57 = vpop.f32.mrb[78].mxu1  ;;  %v1947_v55 = vpack.c.bf16 %v10499_v59, %v10498_v26 }
 0x18f   : > { %12440 = vmatmul.mubr.msk.bf16.gmra.mrb[184].mxu0 %vm519_vm2, %v1634_v32  ;;  %v12340_v18 = vpop.f32.mrb[79].mxu1  ;;  %v15396_v19 = vadd.f32 %v1430_v7, %v1246_v8  ;;  %v1635_v7 = vpack.c.bf16 %v10443_v22, %v10442_v5  ;;  %v10445_v32 = vld [vmem:[%s14821_s29 + $0x408] sm:$0xff] }
 0x190   : > { %12443 = vmatprep.mubr.msk.bf16.mxu0 %vm14681_vm1, %v17834_v1 }
 0x191   : > { %12518 = vmatmul.mubr.msk.bf16.gmra.mrb[184].mxu1 %vm519_vm2, %v1946_v15 }
 0x192   : > { %v1124_v11 = vpop.f32.mrb[80].mxu0  ;;  %12521 = vmatprep.mubr.msk.bf16.mxu1 %vm14681_vm1, %v17834_v1 }
 0x193   : > { %v1247_v31 = vadd.f32 %v1124_v11, %v15146_v21  ;;  %v12265_v33 = vpop.f32.mrb[81].mxu0  ;;  %v10444_v21 = vld [vmem:[%s14821_s29 + $0x400] sm:$0xff] }
 0x194   : > { %v1127_v39 = vpop.f32.mrb[82].mxu0  ;;  %v1451_v41 = vpop.f32.mrb[80].mxu1 }
 0x195   : > { %v1248_v47 = vadd.f32 %v1127_v39, %v15148_v27  ;;  %v12266_v49 = vpop.f32.mrb[83].mxu0  ;;  %v12343_v51 = vpop.f32.mrb[81].mxu1  ;;  %v15409_v56 = vadd.f32 %v1435_v29, %v1247_v31  ;;  %v10501_v29 = vld [vmem:[%s14821_s29 + $0x319] sm:$0xff]  ;;  %v10502_v39 = vld [vmem:[%s14821_s29 + $0x321] sm:$0xff] }
 0x196   : > { %v1454_v23 = vpop.f32.mrb[82].mxu1  ;;  %v1948_v11 = vpack.c.bf16 %v10501_v29, %v10500_v0 }
 0x197   : > { %12444 = vmatmul.mubr.msk.bf16.gmra.mrb[188].mxu0 %vm519_vm2, %v1635_v7  ;;  %v12344_v62 = vpop.f32.mrb[83].mxu1  ;;  %v15412_v63 = vadd.f32 %v1438_v45, %v1248_v47  ;;  %v1636_v45 = vpack.c.bf16 %v10445_v32, %v10444_v21  ;;  %v10447_v7 = vld [vmem:[%s14821_s29 + $0x418] sm:$0xff] }
 0x198   : > { %12447 = vmatprep.mubr.msk.bf16.mxu0 %vm14681_vm1, %v17834_v1 }
 0x199   : > { %12522 = vmatmul.mubr.msk.bf16.gmra.mrb[188].mxu1 %vm519_vm2, %v1947_v55 }
 0x19a   : > { %v1132_v27 = vpop.f32.mrb[84].mxu0  ;;  %12525 = vmatprep.mubr.msk.bf16.mxu1 %vm14681_vm1, %v17834_v1 }
 0x19b   : > { %v1249_v8 = vadd.f32 %v1132_v27, %v15160_v37  ;;  %v12269_v10 = vpop.f32.mrb[85].mxu0  ;;  %v10446_v37 = vld [vmem:[%s14821_s29 + $0x410] sm:$0xff] }
 0x19c   : > { %v1135_v52 = vpop.f32.mrb[86].mxu0  ;;  %v1459_v15 = vpop.f32.mrb[84].mxu1  ;;  %v1637_v49 = vpack.c.bf16 %v10447_v7, %v10446_v37 }
 0x19d   : > { %v1250_v18 = vadd.f32 %v1135_v52, %v15162_v43  ;;  %v12270_v5 = vpop.f32.mrb[87].mxu0  ;;  %v12347_v22 = vpop.f32.mrb[85].mxu1  ;;  %v15425_v26 = vadd.f32 %v1443_v4, %v1249_v8  ;;  %v10503_v4 = vld [vmem:[%s14821_s29 + $0x329] sm:$0x7f] }
 0x19e   : > { %v1462_v59 = vpop.f32.mrb[86].mxu1  ;;  %v1949_v32 = vpack.c.bf16 %v10503_v4, %v10502_v39 }
 0x19f   : > { %12448 = vmatmul.mubr.msk.bf16.gmra.mrb[192].mxu0 %vm519_vm2, %v1636_v45  ;;  %v12348_v31 = vpop.f32.mrb[87].mxu1  ;;  %v15428_v33 = vadd.f32 %v1446_v57, %v1250_v18  ;;  %v10449_v45 = vld [vmem:[%s14821_s29 + $0x428] sm:$0xff]  ;;  %v10575_v18 = vld [vmem:[%s14821_s29 + $0x558] sm:$0xff] }
 0x1a0   : > { %12451 = vmatprep.mubr.msk.bf16.mxu0 %vm14681_vm1, %v17834_v1 }
 0x1a1   : > { %12526 = vmatmul.mubr.msk.bf16.gmra.mrb[192].mxu1 %vm519_vm2, %v1948_v11 }
 0x1a2   : > { %v1140_v43 = vpop.f32.mrb[88].mxu0  ;;  %12529 = vmatprep.mubr.msk.bf16.mxu1 %vm14681_vm1, %v17834_v1 }
 0x1a3   : > { %v12273_v47 = vpop.f32.mrb[89].mxu0  ;;  %v1251_v57 = vadd.f32 %v1140_v43, %v15174_v54  ;;  %v10448_v54 = vld [vmem:[%s14821_s29 + $0x420] sm:$0xff] }
 0x1a4   : > { %v1143_v51 = vpop.f32.mrb[90].mxu0  ;;  %v1467_v55 = vpop.f32.mrb[88].mxu1  ;;  %v1638_v5 = vpack.c.bf16 %v10449_v45, %v10448_v54 }
 0x1a5   : > { %v12274_v62 = vpop.f32.mrb[91].mxu0  ;;  %v12351_v21 = vpop.f32.mrb[89].mxu1  ;;  %v15440_v27 = vadd.f32 %v1451_v41, %v1251_v57  ;;  %v1252_v0 = vadd.f32 %v1143_v51, %v15176_v61  ;;  %v10574_v41 = vld [vmem:[%s14821_s29 + $0x550] sm:$0xff]  ;;  %v10451_v57 = vld [vmem:[%s14821_s29 + $0x438] sm:$0x7f] }
 0x1a6   : > { %v1470_v29 = vpop.f32.mrb[90].mxu1  ;;  %v2555_v7 = vpack.c.bf16 %v10575_v18, %v10574_v41  ;;  %v10577_v62 = vld [vmem:[%s14821_s29 + $0x568] sm:$0xff] }
 0x1a7   : > { %12452 = vmatmul.mubr.msk.bf16.gmra.mrb[196].mxu0 %vm519_vm2, %v1637_v49  ;;  %v12352_v8 = vpop.f32.mrb[91].mxu1  ;;  %v15444_v10 = vadd.f32 %v1454_v23, %v1252_v0 }
 0x1a8   : > { %12455 = vmatprep.mubr.msk.bf16.mxu0 %vm14681_vm1, %v17834_v1 }
 0x1a9   : > { %12530 = vmatmul.mubr.msk.bf16.gmra.mrb[196].mxu1 %vm519_vm2, %v1949_v32 }
 0x1aa   : > { %v1148_v52 = vpop.f32.mrb[92].mxu0  ;;  %12605 = vmatprep.mubr.msk.bf16.mxu1 %vm14681_vm1, %v17834_v1 }
 0x1ab   : > { %v12277_v61 = vpop.f32.mrb[93].mxu0  ;;  %v1253_v23 = vadd.f32 %v1148_v52, %v15188_v9  ;;  %v10450_v9 = vld [vmem:[%s14821_s29 + $0x430] sm:$0xff] }
 0x1ac   : > { %v1151_v22 = vpop.f32.mrb[94].mxu0  ;;  %v1475_v11 = vpop.f32.mrb[92].mxu1  ;;  %v1639_v21 = vpack.c.bf16 %v10451_v57, %v10450_v9 }
 0x1ad   : > { %v12278_v31 = vpop.f32.mrb[95].mxu0  ;;  %v12355_v37 = vpop.f32.mrb[93].mxu1  ;;  %v15456_v43 = vadd.f32 %v1459_v15, %v1253_v23  ;;  %v1254_v39 = vadd.f32 %v1151_v22, %v15190_v16  ;;  %v10576_v15 = vld [vmem:[%s14821_s29 + $0x560] sm:$0xff]  ;;  %v10523_v23 = vld [vmem:[%s14821_s29 + $0x448] sm:$0xff] }
 0x1ae   : > { %v1478_v4 = vpop.f32.mrb[94].mxu1  ;;  %v2556_v45 = vpack.c.bf16 %v10577_v62, %v10576_v15  ;;  %v10579_v31 = vld [vmem:[%s14821_s29 + $0x578] sm:$0xff] }
 0x1af   : > { %12456 = vmatmul.mubr.msk.bf16.gmra.mrb[200].mxu0 %vm519_vm2, %v1638_v5  ;;  %v12356_v47 = vpop.f32.mrb[95].mxu1  ;;  %v15460_v49 = vadd.f32 %v1462_v59, %v1254_v39 }
 0x1b0   : > { %12459 = vmatprep.mubr.msk.bf16.mxu0 %vm14681_vm1, %v17834_v1 }
 0x1b1   : > { %12606 = vmatmul.mubr.msk.bf16.vlgmr.msra.gmra.mrb[200].mxu1 %vm519_vm2, %v2555_v7 }
 0x1b2   : > { %v1156_v51 = vpop.f32.mrb[96].mxu0  ;;  %12609 = vmatprep.mubr.msk.bf16.mxu1 %vm14681_vm1, %v17834_v1 }
 0x1b3   : > { %v12281_v16 = vpop.f32.mrb[97].mxu0  ;;  %v1255_v59 = vadd.f32 %v1156_v51, %v15202_v28  ;;  %v10522_v28 = vld [vmem:[%s14821_s29 + $0x440] sm:$0xff] }
 0x1b4   : > { %v1159_v32 = vpop.f32.mrb[98].mxu0  ;;  %v1483_v0 = vpop.f32.mrb[96].mxu1  ;;  %v2244_v37 = vpack.c.bf16 %v10523_v23, %v10522_v28 }
 0x1b5   : > { %v12282_v8 = vpop.f32.mrb[99].mxu0  ;;  %v12359_v54 = vpop.f32.mrb[97].mxu1  ;;  %v15472_v52 = vadd.f32 %v1467_v55, %v1255_v59  ;;  %v1256_v41 = vadd.f32 %v1159_v32, %v15204_v34  ;;  %v10578_v55 = vld [vmem:[%s14821_s29 + $0x570] sm:$0xff]  ;;  %v10525_v59 = vld [vmem:[%s14821_s29 + $0x458] sm:$0xff] }
 0x1b6   : > { %v1486_v18 = vpop.f32.mrb[98].mxu1  ;;  %v2557_v57 = vpack.c.bf16 %v10579_v31, %v10578_v55  ;;  %v10581_v8 = vld [vmem:[%s14821_s29 + $0x588] sm:$0xff] }
 0x1b7   : > { %12460 = vmatmul.mubr.msk.bf16.gmra.mrb[204].mxu0 %vm519_vm2, %v1639_v21  ;;  %v12360_v61 = vpop.f32.mrb[99].mxu1  ;;  %v15476_v5 = vadd.f32 %v1470_v29, %v1256_v41 }
 0x1b8   : > { %12535 = vmatprep.mubr.msk.bf16.mxu0 %vm14681_vm1, %v17834_v1 }
 0x1b9   : > { %12610 = vmatmul.mubr.msk.bf16.gmra.mrb[204].mxu1 %vm519_vm2, %v2556_v45 }
 0x1ba   : > { %v1164_v22 = vpop.f32.mrb[100].mxu0  ;;  %12613 = vmatprep.mubr.msk.bf16.mxu1 %vm14681_vm1, %v17834_v1 }
 0x1bb   : > { %v12285_v34 = vpop.f32.mrb[101].mxu0  ;;  %v1257_v29 = vadd.f32 %v1164_v22, %v15216_v46  ;;  %v10524_v46 = vld [vmem:[%s14821_s29 + $0x450] sm:$0xff] }
 0x1bc   : > { %v1167_v7 = vpop.f32.mrb[102].mxu0  ;;  %v1491_v39 = vpop.f32.mrb[100].mxu1 }
 0x1bd   : > { %v12286_v47 = vpop.f32.mrb[103].mxu0  ;;  %v12363_v9 = vpop.f32.mrb[101].mxu1  ;;  %v15488_v51 = vadd.f32 %v1475_v11, %v1257_v29  ;;  %v1258_v15 = vadd.f32 %v1167_v7, %v15218_v53  ;;  %v10580_v11 = vld [vmem:[%s14821_s29 + $0x580] sm:$0xff] }
 0x1be   : > { %v1494_v62 = vpop.f32.mrb[102].mxu1  ;;  %v10660_v53 = vld [vmem:[%s17822_s1 + $0x20] sm:$0xf]  ;;  %v2558_v55 = vpack.c.bf16 %v10581_v8, %v10580_v11  ;;  %v10527_v47 = vld [vmem:[%s14821_s29 + $0x468] sm:$0xff] }
 0x1bf   : > { %12536 = vmatmul.mubr.msk.bf16.vlgmr.msra.gmra.mrb[208].mxu0 %vm519_vm2, %v2244_v37  ;;  %v12364_v16 = vpop.f32.mrb[103].mxu1  ;;  %v15492_v21 = vadd.f32 %v1478_v4, %v1258_v15  ;;  %v2245_v4 = vpack.c.bf16 %v10525_v59, %v10524_v46  ;;  %v2936_v45 = vsel %vm571_vm0, %v10660_v53, 0 }
 0x1c0   : > { %12539 = vmatprep.mubr.msk.bf16.mxu0 %vm14681_vm1, %v17834_v1  ;;  %12674 = vmatpush3.bf16.msra.mxu0 %v2936_v45 }
 0x1c1   : > { %12614 = vmatmul.mubr.msk.bf16.gmra.mrb[208].mxu1 %vm519_vm2, %v2557_v57  ;;  %v10583_v57 = vld [vmem:[%s14821_s29 + $0x598] sm:$0xff] }
 0x1c2   : > { %v1172_v32 = vpop.f32.mrb[104].mxu0  ;;  %12617 = vmatprep.mubr.msk.bf16.mxu1 %vm14681_vm1, %v17834_v1 }
 0x1c3   : > { %v12289_v54 = vpop.f32.mrb[105].mxu0  ;;  %v1259_v41 = vadd.f32 %v1172_v32, %v15230_v3  ;;  %v10526_v3 = vld [vmem:[%s14821_s29 + $0x460] sm:$0xff] }
 0x1c4   : > { %v1175_v61 = vpop.f32.mrb[106].mxu0  ;;  %v1499_v28 = vpop.f32.mrb[104].mxu1  ;;  %v2246_v15 = vpack.c.bf16 %v10527_v47, %v10526_v3 }
 0x1c5   : > { %v12290_v23 = vpop.f32.mrb[107].mxu0  ;;  %v12367_v22 = vpop.f32.mrb[105].mxu1  ;;  %v15508_v31 = vadd.f32 %v1483_v0, %v1259_v41  ;;  %v1260_v34 = vadd.f32 %v1175_v61, %v15232_v12  ;;  %v10582_v0 = vld [vmem:[%s14821_s29 + $0x590] sm:$0xff]  ;;  %v10529_v41 = vld [vmem:[%s14821_s29 + $0x478] sm:$0xff] }
 0x1c6   : > { %v1502_v37 = vpop.f32.mrb[106].mxu1  ;;  %v2559_v11 = vpack.c.bf16 %v10583_v57, %v10582_v0  ;;  %v10585_v23 = vld [vmem:[%s14821_s29 + $0x5a8] sm:$0xff] }
 0x1c7   : > { %12540 = vmatmul.mubr.msk.bf16.gmra.mrb[212].mxu0 %vm519_vm2, %v2245_v4  ;;  %v12368_v29 = vpop.f32.mrb[107].mxu1  ;;  %v15512_v7 = vadd.f32 %v1486_v18, %v1260_v34 }
 0x1c8   : > { %12543 = vmatprep.mubr.msk.bf16.mxu0 %vm14681_vm1, %v17834_v1 }
 0x1c9   : > { %12618 = vmatmul.mubr.msk.bf16.gmra.mrb[212].mxu1 %vm519_vm2, %v2558_v55 }
 0x1ca   : > { %v1180_v9 = vpop.f32.mrb[108].mxu0  ;;  %12621 = vmatprep.mubr.msk.bf16.mxu1 %vm14681_vm1, %v17834_v1 }
 0x1cb   : > { %v12293_v12 = vpop.f32.mrb[109].mxu0  ;;  %v1261_v18 = vadd.f32 %v1180_v9, %v15247_v25  ;;  %v10528_v25 = vld [vmem:[%s14821_s29 + $0x470] sm:$0xff] }
 0x1cc   : > { %v1183_v16 = vpop.f32.mrb[110].mxu0  ;;  %v1507_v46 = vpop.f32.mrb[108].mxu1  ;;  %v2247_v22 = vpack.c.bf16 %v10529_v41, %v10528_v25 }
 0x1cd   : > { %v12294_v59 = vpop.f32.mrb[111].mxu0  ;;  %v12371_v32 = vpop.f32.mrb[109].mxu1  ;;  %v15524_v8 = vadd.f32 %v1491_v39, %v1261_v18  ;;  %v1262_v53 = vadd.f32 %v1183_v16, %v15253_v36  ;;  %v10584_v39 = vld [vmem:[%s14821_s29 + $0x5a0] sm:$0xff]  ;;  %v10531_v18 = vld [vmem:[%s14821_s29 + $0x488] sm:$0xff] }
 0x1ce   : > { %v1510_v54 = vpop.f32.mrb[110].mxu1  ;;  %v2560_v47 = vpack.c.bf16 %v10585_v23, %v10584_v39  ;;  %v10587_v59 = vld [vmem:[%s14821_s29 + $0x5b8] sm:$0xff] }
 0x1cf   : > { %12544 = vmatmul.mubr.msk.bf16.gmra.mrb[216].mxu0 %vm519_vm2, %v2246_v15  ;;  %v12372_v4 = vpop.f32.mrb[111].mxu1  ;;  %v15528_v45 = vadd.f32 %v1494_v62, %v1262_v53 }
 0x1d0   : > { %12547 = vmatprep.mubr.msk.bf16.mxu0 %vm14681_vm1, %v17834_v1 }
 0x1d1   : > { %12622 = vmatmul.mubr.msk.bf16.gmra.mrb[216].mxu1 %vm519_vm2, %v2559_v11 }
 0x1d2   : > { %v1188_v61 = vpop.f32.mrb[112].mxu0  ;;  %12625 = vmatprep.mubr.msk.bf16.mxu1 %vm14681_vm1, %v17834_v1 }
 0x1d3   : > { %v12297_v36 = vpop.f32.mrb[113].mxu0  ;;  %v1263_v62 = vadd.f32 %v1188_v61, %v15267_v50  ;;  %v10530_v50 = vld [vmem:[%s14821_s29 + $0x480] sm:$0xff] }
 0x1d4   : > { %v1191_v55 = vpop.f32.mrb[114].mxu0  ;;  %v1515_v34 = vpop.f32.mrb[112].mxu1  ;;  %v2248_v32 = vpack.c.bf16 %v10531_v18, %v10530_v50 }
 0x1d5   : > { %v12298_v29 = vpop.f32.mrb[115].mxu0  ;;  %v12375_v3 = vpop.f32.mrb[113].mxu1  ;;  %v15540_v9 = vadd.f32 %v1499_v28, %v1263_v62  ;;  %v1264_v0 = vadd.f32 %v1191_v55, %v15269_v60  ;;  %v10586_v28 = vld [vmem:[%s14821_s29 + $0x5b0] sm:$0xff]  ;;  %v10533_v62 = vld [vmem:[%s14821_s29 + $0x498] sm:$0xff] }
 0x1d6   : > { %v1518_v57 = vpop.f32.mrb[114].mxu1  ;;  %v2561_v41 = vpack.c.bf16 %v10587_v59, %v10586_v28  ;;  %v10589_v29 = vld [vmem:[%s14821_s29 + $0x5c8] sm:$0xff] }
 0x1d7   : > { %12548 = vmatmul.mubr.msk.bf16.gmra.mrb[220].mxu0 %vm519_vm2, %v2247_v22  ;;  %v12376_v12 = vpop.f32.mrb[115].mxu1  ;;  %v15544_v15 = vadd.f32 %v1502_v37, %v1264_v0 }
 0x1d8   : > { %12551 = vmatprep.mubr.msk.bf16.mxu0 %vm14681_vm1, %v17834_v1 }
 0x1d9   : > { %12626 = vmatmul.mubr.msk.bf16.gmra.mrb[220].mxu1 %vm519_vm2, %v2560_v47 }
 0x1da   : > { %v1196_v16 = vpop.f32.mrb[116].mxu0  ;;  %12629 = vmatprep.mubr.msk.bf16.mxu1 %vm14681_vm1, %v17834_v1 }
 0x1db   : > { %v12301_v60 = vpop.f32.mrb[117].mxu0  ;;  %v1265_v37 = vadd.f32 %v1196_v16, %v15281_v13  ;;  %v10532_v13 = vld [vmem:[%s14821_s29 + $0x490] sm:$0xff] }
 0x1dc   : > { %v1199_v11 = vpop.f32.mrb[118].mxu0  ;;  %v1523_v53 = vpop.f32.mrb[116].mxu1  ;;  %v2249_v3 = vpack.c.bf16 %v10533_v62, %v10532_v13 }
 0x1dd   : > { %v12302_v4 = vpop.f32.mrb[119].mxu0  ;;  %v12379_v25 = vpop.f32.mrb[117].mxu1  ;;  %v15556_v61 = vadd.f32 %v1507_v46, %v1265_v37  ;;  %v1266_v39 = vadd.f32 %v1199_v11, %v15283_v20  ;;  %v10588_v46 = vld [vmem:[%s14821_s29 + $0x5c0] sm:$0xff]  ;;  %v10535_v37 = vld [vmem:[%s14821_s29 + $0x4a8] sm:$0xff] }
 0x1de   : > { %v1526_v23 = vpop.f32.mrb[118].mxu1  ;;  %v2562_v18 = vpack.c.bf16 %v10589_v29, %v10588_v46  ;;  %v10591_v4 = vld [vmem:[%s14821_s29 + $0x5d8] sm:$0xff] }
 0x1df   : > { %12552 = vmatmul.mubr.msk.bf16.gmra.mrb[224].mxu0 %vm519_vm2, %v2248_v32  ;;  %v12380_v36 = vpop.f32.mrb[119].mxu1  ;;  %v15560_v22 = vadd.f32 %v1510_v54, %v1266_v39 }
 0x1e0   : > { %12555 = vmatprep.mubr.msk.bf16.mxu0 %vm14681_vm1, %v17834_v1 }
 0x1e1   : > { %12630 = vmatmul.mubr.msk.bf16.gmra.mrb[224].mxu1 %vm519_vm2, %v2561_v41 }
 0x1e2   : > { %v1204_v55 = vpop.f32.mrb[120].mxu0  ;;  %12633 = vmatprep.mubr.msk.bf16.mxu1 %vm14681_vm1, %v17834_v1 }
 0x1e3   : > { %v12305_v20 = vpop.f32.mrb[121].mxu0  ;;  %v1267_v54 = vadd.f32 %v1204_v55, %v15295_v35  ;;  %v10534_v35 = vld [vmem:[%s14821_s29 + $0x4a0] sm:$0xff] }
 0x1e4   : > { %v1207_v47 = vpop.f32.mrb[122].mxu0  ;;  %v1531_v0 = vpop.f32.mrb[120].mxu1 }
 0x1e5   : > { %v12306_v12 = vpop.f32.mrb[123].mxu0  ;;  %v12383_v50 = vpop.f32.mrb[121].mxu1  ;;  %v15572_v16 = vadd.f32 %v1515_v34, %v1267_v54  ;;  %v1268_v28 = vadd.f32 %v1207_v47, %v15297_v44  ;;  %v10590_v34 = vld [vmem:[%s14821_s29 + $0x5d0] sm:$0xff]  ;;  %v10537_v54 = vld [vmem:[%s14821_s29 + $0x4b8] sm:$0xff]  ;;  %v10592_v47 = vld [vmem:[%s14821_s29 + $0x5e0] sm:$0xff] }
 0x1e6   : > { %v1534_v59 = vpop.f32.mrb[122].mxu1  ;;  %v2563_v55 = vpack.c.bf16 %v10591_v4, %v10590_v34 }
 0x1e7   : > { %12556 = vmatmul.mubr.msk.bf16.gmra.mrb[228].mxu0 %vm519_vm2, %v2249_v3  ;;  %v12384_v60 = vpop.f32.mrb[123].mxu1  ;;  %v15576_v32 = vadd.f32 %v1518_v57, %v1268_v28  ;;  %v2250_v57 = vpack.c.bf16 %v10535_v37, %v10534_v35 }
 0x1e8   : > { %12559 = vmatprep.mubr.msk.bf16.mxu0 %vm14681_vm1, %v17834_v1 }
 0x1e9   : > { %12634 = vmatmul.mubr.msk.bf16.gmra.mrb[228].mxu1 %vm519_vm2, %v2562_v18 }
 0x1ea   : > { %v1212_v11 = vpop.f32.mrb[124].mxu0  ;;  %12637 = vmatprep.mubr.msk.bf16.mxu1 %vm14681_vm1, %v17834_v1 }
 0x1eb   : > { %v1269_v44 = vadd.f32 %v1212_v11, %v15309_v2  ;;  %v12309_v25 = vpop.f32.mrb[125].mxu0  ;;  %v10536_v2 = vld [vmem:[%s14821_s29 + $0x4b0] sm:$0xff] }
 0x1ec   : > { %v1215_v41 = vpop.f32.mrb[126].mxu0  ;;  %v1539_v39 = vpop.f32.mrb[124].mxu1 }
 0x1ed   : > { %v1270_v36 = vadd.f32 %v1215_v41, %v15311_v14  ;;  %v12310_v13 = vpop.f32.mrb[127].mxu0  ;;  %v12387_v62 = vpop.f32.mrb[125].mxu1  ;;  %v15589_v46 = vadd.f32 %v1523_v53, %v1269_v44  ;;  %v10593_v53 = vld [vmem:[%s14821_s29 + $0x5e8] sm:$0xff]  ;;  %v10594_v41 = vld [vmem:[%s14821_s29 + $0x5f0] sm:$0xff] }
 0x1ee   : > { %v1542_v29 = vpop.f32.mrb[126].mxu1  ;;  %v2564_v11 = vpack.c.bf16 %v10593_v53, %v10592_v47 }
 0x1ef   : > { %12560 = vmatmul.mubr.msk.bf16.gmra.mrb[232].mxu0 %vm519_vm2, %v2250_v57  ;;  %v12388_v20 = vpop.f32.mrb[127].mxu1  ;;  %v15592_v3 = vadd.f32 %v1526_v23, %v1270_v36  ;;  %v2251_v23 = vpack.c.bf16 %v10537_v54, %v10536_v2  ;;  %v10539_v57 = vld [vmem:[%s14821_s29 + $0x4c8] sm:$0xff] }
 0x1f0   : > { %12563 = vmatprep.mubr.msk.bf16.mxu0 %vm14681_vm1, %v17834_v1 }
 0x1f1   : > { %12638 = vmatmul.mubr.msk.bf16.gmra.mrb[232].mxu1 %vm519_vm2, %v2563_v55 }
 0x1f2   : > { %v1220_v14 = vpop.f32.mrb[128].mxu0  ;;  %12641 = vmatprep.mubr.msk.bf16.mxu1 %vm14681_vm1, %v17834_v1 }
 0x1f3   : > { %v1271_v12 = vadd.f32 %v1220_v14, %v15323_v30  ;;  %v12313_v50 = vpop.f32.mrb[129].mxu0  ;;  %v10538_v30 = vld [vmem:[%s14821_s29 + $0x4c0] sm:$0xff] }
 0x1f4   : > { %v1223_v18 = vpop.f32.mrb[130].mxu0  ;;  %v1547_v28 = vpop.f32.mrb[128].mxu1 }
 0x1f5   : > { %v1272_v60 = vadd.f32 %v1223_v18, %v15325_v40  ;;  %v12314_v35 = vpop.f32.mrb[131].mxu0  ;;  %v12391_v37 = vpop.f32.mrb[129].mxu1  ;;  %v15605_v34 = vadd.f32 %v1531_v0, %v1271_v12  ;;  %v10595_v0 = vld [vmem:[%s14821_s29 + $0x5f8] sm:$0xff]  ;;  %v10596_v18 = vld [vmem:[%s14821_s29 + $0x600] sm:$0xff] }
 0x1f6   : > { %v1550_v4 = vpop.f32.mrb[130].mxu1  ;;  %v2565_v14 = vpack.c.bf16 %v10595_v0, %v10594_v41 }
 0x1f7   : > { %12564 = vmatmul.mubr.msk.bf16.gmra.mrb[236].mxu0 %vm519_vm2, %v2251_v23  ;;  %v12392_v44 = vpop.f32.mrb[131].mxu1  ;;  %v15608_v25 = vadd.f32 %v1534_v59, %v1272_v60  ;;  %v2252_v59 = vpack.c.bf16 %v10539_v57, %v10538_v30  ;;  %v10541_v23 = vld [vmem:[%s14821_s29 + $0x4d8] sm:$0xff] }
 0x1f8   : > { %12567 = vmatprep.mubr.msk.bf16.mxu0 %vm14681_vm1, %v17834_v1 }
 0x1f9   : > { %12642 = vmatmul.mubr.msk.bf16.gmra.mrb[236].mxu1 %vm519_vm2, %v2564_v11 }
 0x1fa   : > { %v1228_v40 = vpop.f32.mrb[132].mxu0  ;;  %12645 = vmatprep.mubr.msk.bf16.mxu1 %vm14681_vm1, %v17834_v1 }
 0x1fb   : > { %v1273_v36 = vadd.f32 %v1228_v40, %v15337_v58  ;;  %v12317_v13 = vpop.f32.mrb[133].mxu0  ;;  %v10540_v58 = vld [vmem:[%s14821_s29 + $0x4d0] sm:$0xff] }
 0x1fc   : > { %v1231_v62 = vpop.f32.mrb[134].mxu0  ;;  %v2040_v55 = vpop.f32.mrb[132].mxu1 }
 0x1fd   : > { %v1274_v20 = vadd.f32 %v1231_v62, %v15339_v6  ;;  %v12318_v2 = vpop.f32.mrb[135].mxu0  ;;  %v12467_v54 = vpop.f32.mrb[133].mxu1  ;;  %v15621_v47 = vadd.f32 %v1539_v39, %v1273_v36  ;;  %v10597_v39 = vld [vmem:[%s14821_s29 + $0x608] sm:$0xff]  ;;  %v10598_v62 = vld [vmem:[%s14821_s29 + $0x610] sm:$0xff] }
 0x1fe   : > { %v2043_v53 = vpop.f32.mrb[134].mxu1  ;;  %v2566_v40 = vpack.c.bf16 %v10597_v39, %v10596_v18 }
 0x1ff   : > { %12568 = vmatmul.mubr.msk.bf16.gmra.mrb[240].mxu0 %vm519_vm2, %v2252_v59  ;;  %v12468_v12 = vpop.f32.mrb[135].mxu1  ;;  %v15624_v50 = vadd.f32 %v1542_v29, %v1274_v20  ;;  %v2253_v29 = vpack.c.bf16 %v10541_v23, %v10540_v58  ;;  %v10543_v59 = vld [vmem:[%s14821_s29 + $0x4e8] sm:$0xff] }
 0x200   : > { %12571 = vmatprep.mubr.msk.bf16.mxu0 %vm14681_vm1, %v17834_v1 }
 0x201   : > { %12646 = vmatmul.mubr.msk.bf16.gmra.mrb[240].mxu1 %vm519_vm2, %v2565_v14 }
 0x202   : > { %v1236_v6 = vpop.f32.mrb[136].mxu0  ;;  %12649 = vmatprep.mubr.msk.bf16.mxu1 %vm14681_vm1, %v17834_v1 }
 0x203   : > { %v1275_v60 = vadd.f32 %v1236_v6, %v15351_v24  ;;  %v12321_v35 = vpop.f32.mrb[137].mxu0  ;;  %v10542_v24 = vld [vmem:[%s14821_s29 + $0x4e0] sm:$0xff] }
 0x204   : > { %v1239_v37 = vpop.f32.mrb[138].mxu0  ;;  %v2048_v11 = vpop.f32.mrb[136].mxu1 }
 0x205   : > { %v1276_v44 = vadd.f32 %v1239_v37, %v15353_v38  ;;  %v12322_v30 = vpop.f32.mrb[139].mxu0  ;;  %v12471_v57 = vpop.f32.mrb[137].mxu1  ;;  %v15637_v41 = vadd.f32 %v1547_v28, %v1275_v60  ;;  %v10599_v28 = vld [vmem:[%s14821_s29 + $0x618] sm:$0xff]  ;;  %v10600_v37 = vld [vmem:[%s14821_s29 + $0x620] sm:$0xff] }
 0x206   : > { %v2051_v0 = vpop.f32.mrb[138].mxu1  ;;  %v2567_v6 = vpack.c.bf16 %v10599_v28, %v10598_v62 }
 0x207   : > { %12572 = vmatmul.mubr.msk.bf16.gmra.mrb[244].mxu0 %vm519_vm2, %v2253_v29  ;;  %v12472_v36 = vpop.f32.mrb[139].mxu1  ;;  %v15640_v13 = vadd.f32 %v1550_v4, %v1276_v44  ;;  %v2254_v4 = vpack.c.bf16 %v10543_v59, %v10542_v24  ;;  %v10545_v29 = vld [vmem:[%s14821_s29 + $0x4f8] sm:$0xff] }
 0x208   : > { %12575 = vmatprep.mubr.msk.bf16.mxu0 %vm14681_vm1, %v17834_v1 }
 0x209   : > { %12650 = vmatmul.mubr.msk.bf16.gmra.mrb[244].mxu1 %vm519_vm2, %v2566_v40 }
 0x20a   : > { %v1730_v38 = vpop.f32.mrb[140].mxu0  ;;  %12653 = vmatprep.mubr.msk.bf16.mxu1 %vm14681_vm1, %v17834_v1 }
 0x20b   : > { %v1865_v20 = vadd.f32 %v1730_v38, %v15377_v42  ;;  %v12397_v2 = vpop.f32.mrb[141].mxu0  ;;  %v10544_v42 = vld [vmem:[%s14821_s29 + $0x4f0] sm:$0xff] }
 0x20c   : > { %v1733_v54 = vpop.f32.mrb[142].mxu0  ;;  %v2056_v14 = vpop.f32.mrb[140].mxu1 }
 0x20d   : > { %v1866_v12 = vadd.f32 %v1733_v54, %v15380_v48  ;;  %v12398_v58 = vpop.f32.mrb[143].mxu0  ;;  %v12475_v23 = vpop.f32.mrb[141].mxu1  ;;  %v15653_v18 = vadd.f32 %v2040_v55, %v1865_v20  ;;  %v10601_v55 = vld [vmem:[%s14821_s29 + $0x628] sm:$0xff]  ;;  %v10602_v54 = vld [vmem:[%s14821_s29 + $0x630] sm:$0xff] }
 0x20e   : > { %v2059_v39 = vpop.f32.mrb[142].mxu1  ;;  %v2568_v38 = vpack.c.bf16 %v10601_v55, %v10600_v37 }
 0x20f   : > { %12576 = vmatmul.mubr.msk.bf16.gmra.mrb[248].mxu0 %vm519_vm2, %v2254_v4  ;;  %v12476_v60 = vpop.f32.mrb[143].mxu1  ;;  %v15656_v35 = vadd.f32 %v2043_v53, %v1866_v12  ;;  %v2255_v53 = vpack.c.bf16 %v10545_v29, %v10544_v42  ;;  %v10547_v4 = vld [vmem:[%s14821_s29 + $0x508] sm:$0xff] }
 0x210   : > { %12579 = vmatprep.mubr.msk.bf16.mxu0 %vm14681_vm1, %v17834_v1 }
 0x211   : > { %12654 = vmatmul.mubr.msk.bf16.gmra.mrb[248].mxu1 %vm519_vm2, %v2567_v6 }
 0x212   : > { %v1738_v48 = vpop.f32.mrb[144].mxu0  ;;  %12657 = vmatprep.mubr.msk.bf16.mxu1 %vm14681_vm1, %v17834_v1 }
 0x213   : > { %v1867_v44 = vadd.f32 %v1738_v48, %v15393_v17  ;;  %v12401_v30 = vpop.f32.mrb[145].mxu0  ;;  %v10546_v17 = vld [vmem:[%s14821_s29 + $0x500] sm:$0xff] }
 0x214   : > { %v1741_v57 = vpop.f32.mrb[146].mxu0  ;;  %v2064_v40 = vpop.f32.mrb[144].mxu1 }
 0x215   : > { %v1868_v36 = vadd.f32 %v1741_v57, %v15396_v19  ;;  %v12402_v24 = vpop.f32.mrb[147].mxu0  ;;  %v12479_v59 = vpop.f32.mrb[145].mxu1  ;;  %v15669_v62 = vadd.f32 %v2048_v11, %v1867_v44  ;;  %v10603_v11 = vld [vmem:[%s14821_s29 + $0x638] sm:$0xff]  ;;  %v10604_v57 = vld [vmem:[%s14821_s29 + $0x640] sm:$0xff] }
 0x216   : > { %v2067_v28 = vpop.f32.mrb[146].mxu1  ;;  %v2569_v48 = vpack.c.bf16 %v10603_v11, %v10602_v54 }
 0x217   : > { %12580 = vmatmul.mubr.msk.bf16.gmra.mrb[252].mxu0 %vm519_vm2, %v2255_v53  ;;  %v12480_v20 = vpop.f32.mrb[147].mxu1  ;;  %v15672_v2 = vadd.f32 %v2051_v0, %v1868_v36  ;;  %v2256_v0 = vpack.c.bf16 %v10547_v4, %v10546_v17  ;;  %v10549_v53 = vld [vmem:[%s14821_s29 + $0x518] sm:$0xff] }
 0x218   : > { %12583 = vmatprep.mubr.msk.bf16.mxu0 %vm14681_vm1, %v17834_v1 }
 0x219   : > { %12658 = vmatmul.mubr.msk.bf16.gmra.mrb[252].mxu1 %vm519_vm2, %v2568_v38 }
 0x21a   : > { %v1746_v19 = vpop.f32.mrb[148].mxu0  ;;  %12661 = vmatprep.mubr.msk.bf16.mxu1 %vm14681_vm1, %v17834_v1 }
 0x21b   : > { %v1869_v12 = vadd.f32 %v1746_v19, %v15409_v56  ;;  %v12405_v58 = vpop.f32.mrb[149].mxu0  ;;  %v10548_v56 = vld [vmem:[%s14821_s29 + $0x510] sm:$0xff] }
 0x21c   : > { %v1749_v23 = vpop.f32.mrb[150].mxu0  ;;  %v2072_v6 = vpop.f32.mrb[148].mxu1 }
 0x21d   : > { %v1870_v60 = vadd.f32 %v1749_v23, %v15412_v63  ;;  %v12406_v42 = vpop.f32.mrb[151].mxu0  ;;  %v12483_v29 = vpop.f32.mrb[149].mxu1  ;;  %v15685_v37 = vadd.f32 %v2056_v14, %v1869_v12  ;;  %v10605_v14 = vld [vmem:[%s14821_s29 + $0x648] sm:$0xff]  ;;  %v10606_v23 = vld [vmem:[%s14821_s29 + $0x650] sm:$0xff] }
 0x21e   : > { %v2075_v55 = vpop.f32.mrb[150].mxu1  ;;  %v2570_v19 = vpack.c.bf16 %v10605_v14, %v10604_v57 }
 0x21f   : > { %12584 = vmatmul.mubr.msk.bf16.gmra.mrb[0].mxu0 %vm519_vm2, %v2256_v0  ;;  %v12484_v44 = vpop.f32.mrb[151].mxu1  ;;  %v15688_v30 = vadd.f32 %v2059_v39, %v1870_v60  ;;  %v2257_v39 = vpack.c.bf16 %v10549_v53, %v10548_v56  ;;  %v10551_v0 = vld [vmem:[%s14821_s29 + $0x528] sm:$0xff] }
 0x220   : > { %12587 = vmatprep.mubr.msk.bf16.mxu0 %vm14681_vm1, %v17834_v1 }
 0x221   : > { %12662 = vmatmul.mubr.msk.bf16.gmra.mrb[0].mxu1 %vm519_vm2, %v2569_v48 }
 0x222   : > { %v1754_v63 = vpop.f32.mrb[152].mxu0  ;;  %12665 = vmatprep.mubr.msk.bf16.mxu1 %vm14681_vm1, %v17834_v1 }
 0x223   : > { %v1871_v36 = vadd.f32 %v1754_v63, %v15425_v26  ;;  %v12409_v24 = vpop.f32.mrb[153].mxu0  ;;  %v10550_v26 = vld [vmem:[%s14821_s29 + $0x520] sm:$0xff] }
 0x224   : > { %v1757_v59 = vpop.f32.mrb[154].mxu0  ;;  %v2080_v38 = vpop.f32.mrb[152].mxu1 }
 0x225   : > { %v1872_v20 = vadd.f32 %v1757_v59, %v15428_v33  ;;  %v12410_v17 = vpop.f32.mrb[155].mxu0  ;;  %v12487_v4 = vpop.f32.mrb[153].mxu1  ;;  %v15701_v54 = vadd.f32 %v2064_v40, %v1871_v36  ;;  %v10607_v40 = vld [vmem:[%s14821_s29 + $0x658] sm:$0x7f] }
 0x226   : > { %v2083_v11 = vpop.f32.mrb[154].mxu1  ;;  %v2571_v63 = vpack.c.bf16 %v10607_v40, %v10606_v23  ;;  %v10555_v40 = vld [vmem:[%s14821_s29 + $0x548] sm:$0x7f] }
 0x227   : > { %12588 = vmatmul.mubr.msk.bf16.gmra.mrb[4].mxu0 %vm519_vm2, %v2257_v39  ;;  %v12488_v12 = vpop.f32.mrb[155].mxu1  ;;  %v15704_v58 = vadd.f32 %v2067_v28, %v1872_v20  ;;  %v2258_v28 = vpack.c.bf16 %v10551_v0, %v10550_v26  ;;  %v10553_v39 = vld [vmem:[%s14821_s29 + $0x538] sm:$0xff] }
 0x228   : > { %12591 = vmatprep.mubr.msk.bf16.mxu0 %vm14681_vm1, %v17834_v1 }
 0x229   : > { %12666 = vmatmul.mubr.msk.bf16.gmra.mrb[4].mxu1 %vm519_vm2, %v2570_v19 }
 0x22a   : > { %v1762_v33 = vpop.f32.mrb[156].mxu0  ;;  %12669 = vmatprep.mubr.msk.bf16.mxu1 %vm14681_vm1, %v17834_v1 }
 0x22b   : > { %v1873_v60 = vadd.f32 %v1762_v33, %v15440_v27  ;;  %v12413_v42 = vpop.f32.mrb[157].mxu0  ;;  %v10552_v27 = vld [vmem:[%s14821_s29 + $0x530] sm:$0xff] }
 0x22c   : > { %v1765_v29 = vpop.f32.mrb[158].mxu0  ;;  %v2088_v48 = vpop.f32.mrb[156].mxu1  ;;  %v2259_v20 = vpack.c.bf16 %v10553_v39, %v10552_v27  ;;  %v10627_v39 = vld [vmem:[%s14821_s29 + $0x449] sm:$0xff] }
 0x22d   : > { %v1874_v44 = vadd.f32 %v1765_v29, %v15444_v10  ;;  %v12414_v56 = vpop.f32.mrb[159].mxu0  ;;  %v12491_v53 = vpop.f32.mrb[157].mxu1  ;;  %v15717_v57 = vadd.f32 %v2072_v6, %v1873_v60 }
 0x22e   : > { %v2091_v14 = vpop.f32.mrb[158].mxu1 }
 0x22f   : > { %12592 = vmatmul.mubr.msk.bf16.gmra.mrb[8].mxu0 %vm519_vm2, %v2258_v28  ;;  %v12492_v36 = vpop.f32.mrb[159].mxu1  ;;  %v15720_v24 = vadd.f32 %v2075_v55, %v1874_v44 }
 0x230   : > { %12595 = vmatprep.mubr.msk.bf16.mxu0 %vm14681_vm1, %v17834_v1 }
 0x231   : > { %12670 = vmatmul.mubr.msk.bf16.gmra.mrb[8].mxu1 %vm519_vm2, %v2571_v63 }
 0x232   : > { %v1770_v10 = vpop.f32.mrb[160].mxu0 }
 0x233   : > { %v1875_v59 = vadd.f32 %v1770_v10, %v15456_v43  ;;  %v12417_v6 = vpop.f32.mrb[161].mxu0  ;;  %v10554_v43 = vld [vmem:[%s14821_s29 + $0x540] sm:$0xff] }
 0x234   : > { %v1773_v17 = vpop.f32.mrb[162].mxu0  ;;  %v2096_v4 = vpop.f32.mrb[160].mxu1  ;;  %v2260_v28 = vpack.c.bf16 %v10555_v40, %v10554_v43  ;;  %v10629_v40 = vld [vmem:[%s14821_s29 + $0x459] sm:$0xff] }
 0x235   : > { %v1876_v19 = vadd.f32 %v1773_v17, %v15460_v49  ;;  %v12418_v55 = vpop.f32.mrb[163].mxu0  ;;  %v12495_v12 = vpop.f32.mrb[161].mxu1  ;;  %v15729_v26 = vadd.f32 %v2080_v38, %v1875_v59 }
 0x236   : > { %v2099_v0 = vpop.f32.mrb[162].mxu1 }
 0x237   : > { %12596 = vmatmul.mubr.msk.bf16.gmra.mrb[12].mxu0 %vm519_vm2, %v2259_v20  ;;  %v12496_v33 = vpop.f32.mrb[163].mxu1  ;;  %v15732_v23 = vadd.f32 %v2083_v11, %v1876_v19 }
 0x238   : > { %12599 = vmatprep.mubr.msk.bf16.mxu0 %vm14681_vm1, %v17834_v1 }
 0x23a   : > { %v1778_v60 = vpop.f32.mrb[164].mxu0 }
 0x23b   : > { %v1877_v49 = vadd.f32 %v1778_v60, %v15472_v52  ;;  %v12421_v42 = vpop.f32.mrb[165].mxu0  ;;  %v10626_v52 = vld [vmem:[%s14821_s29 + $0x441] sm:$0xff] }
 0x23c   : > { %v1781_v38 = vpop.f32.mrb[166].mxu0  ;;  %v2104_v29 = vpop.f32.mrb[164].mxu1  ;;  %v2865_v6 = vpack.c.bf16 %v10627_v39, %v10626_v52  ;;  %v10631_v39 = vld [vmem:[%s14821_s29 + $0x469] sm:$0xff] }
 0x23d   : > { %v1878_v44 = vadd.f32 %v1781_v38, %v15476_v5  ;;  %v12422_v56 = vpop.f32.mrb[167].mxu0  ;;  %v12499_v53 = vpop.f32.mrb[165].mxu1  ;;  %v15740_v11 = vadd.f32 %v2088_v48, %v1877_v49 }
 0x23e   : > { %v2107_v63 = vpop.f32.mrb[166].mxu1 }
 0x23f   : > { %12600 = vmatmul.mubr.msk.bf16.gmra.mrb[16].mxu0 %vm519_vm2, %v2260_v28  ;;  %v12500_v36 = vpop.f32.mrb[167].mxu1  ;;  %v15743_v27 = vadd.f32 %v2091_v14, %v1878_v44 }
 0x240   : > { %12675 = vmatprep.mubr.msk.bf16.mxu0 %vm14681_vm1, %v17834_v1 }
 0x242   : > { %v1786_v10 = vpop.f32.mrb[168].mxu0 }
 0x243   : > { %v1879_v5 = vadd.f32 %v1786_v10, %v15488_v51  ;;  %v12425_v59 = vpop.f32.mrb[169].mxu0  ;;  %v10628_v51 = vld [vmem:[%s14821_s29 + $0x451] sm:$0xff] }
 0x244   : > { %v1789_v48 = vpop.f32.mrb[170].mxu0  ;;  %v2112_v20 = vpop.f32.mrb[168].mxu1  ;;  %v2866_v42 = vpack.c.bf16 %v10629_v40, %v10628_v51  ;;  %v10633_v40 = vld [vmem:[%s14821_s29 + $0x479] sm:$0xff] }
 0x245   : > { %v1880_v17 = vadd.f32 %v1789_v48, %v15492_v21  ;;  %v12426_v19 = vpop.f32.mrb[171].mxu0  ;;  %v12503_v55 = vpop.f32.mrb[169].mxu1  ;;  %v15751_v14 = vadd.f32 %v2096_v4, %v1879_v5 }
 0x246   : > { %v2115_v12 = vpop.f32.mrb[170].mxu1 }
 0x247   : > { %12676 = vmatmul.mubr.msk.bf16.vlgmr.msra.gmra.mrb[20].mxu0 %vm519_vm2, %v2865_v6  ;;  %v12504_v33 = vpop.f32.mrb[171].mxu1  ;;  %v15754_v43 = vadd.f32 %v2099_v0, %v1880_v17 }
 0x248   : > { %12679 = vmatprep.mubr.msk.bf16.mxu0 %vm14681_vm1, %v17834_v1 }
 0x24a   : > { %v1794_v60 = vpop.f32.mrb[172].mxu0 }
 0x24b   : > { %v1881_v21 = vadd.f32 %v1794_v60, %v15508_v31  ;;  %v12429_v49 = vpop.f32.mrb[173].mxu0  ;;  %v10630_v31 = vld [vmem:[%s14821_s29 + $0x461] sm:$0xff] }
 0x24c   : > { %v1797_v4 = vpop.f32.mrb[174].mxu0  ;;  %v2120_v28 = vpop.f32.mrb[172].mxu1  ;;  %v2867_v59 = vpack.c.bf16 %v10631_v39, %v10630_v31  ;;  %v10635_v39 = vld [vmem:[%s14821_s29 + $0x489] sm:$0xff] }
 0x24d   : > { %v1882_v38 = vadd.f32 %v1797_v4, %v15512_v7  ;;  %v12430_v44 = vpop.f32.mrb[175].mxu0  ;;  %v12507_v56 = vpop.f32.mrb[173].mxu1  ;;  %v15762_v0 = vadd.f32 %v2104_v29, %v1881_v21 }
 0x24e   : > { %v2123_v53 = vpop.f32.mrb[174].mxu1 }
 0x24f   : > { %12680 = vmatmul.mubr.msk.bf16.gmra.mrb[24].mxu0 %vm519_vm2, %v2866_v42  ;;  %v12508_v36 = vpop.f32.mrb[175].mxu1  ;;  %v15765_v52 = vadd.f32 %v2107_v63, %v1882_v38 }
 0x250   : > { %12683 = vmatprep.mubr.msk.bf16.mxu0 %vm14681_vm1, %v17834_v1 }
 0x252   : > { %v1802_v10 = vpop.f32.mrb[176].mxu0 }
 0x253   : > { %v1883_v7 = vadd.f32 %v1802_v10, %v15524_v8  ;;  %v12433_v5 = vpop.f32.mrb[177].mxu0  ;;  %v10632_v8 = vld [vmem:[%s14821_s29 + $0x471] sm:$0xff] }
 0x254   : > { %v1805_v29 = vpop.f32.mrb[178].mxu0  ;;  %v2128_v6 = vpop.f32.mrb[176].mxu1  ;;  %v2868_v49 = vpack.c.bf16 %v10633_v40, %v10632_v8  ;;  %v10637_v40 = vld [vmem:[%s14821_s29 + $0x499] sm:$0xff] }
 0x255   : > { %v1884_v48 = vadd.f32 %v1805_v29, %v15528_v45  ;;  %v12434_v17 = vpop.f32.mrb[179].mxu0  ;;  %v12511_v19 = vpop.f32.mrb[177].mxu1  ;;  %v15773_v63 = vadd.f32 %v2112_v20, %v1883_v7 }
 0x256   : > { %v2131_v55 = vpop.f32.mrb[178].mxu1 }
 0x257   : > { %12684 = vmatmul.mubr.msk.bf16.gmra.mrb[28].mxu0 %vm519_vm2, %v2867_v59  ;;  %v12512_v33 = vpop.f32.mrb[179].mxu1  ;;  %v15776_v51 = vadd.f32 %v2115_v12, %v1884_v48 }
 0x258   : > { %12687 = vmatprep.mubr.msk.bf16.mxu0 %vm14681_vm1, %v17834_v1 }
 0x25a   : > { %v1810_v60 = vpop.f32.mrb[180].mxu0 }
 0x25b   : > { %v1885_v45 = vadd.f32 %v1810_v60, %v15540_v9  ;;  %v12437_v21 = vpop.f32.mrb[181].mxu0  ;;  %v10634_v9 = vld [vmem:[%s14821_s29 + $0x481] sm:$0xff] }
 0x25c   : > { %v1813_v20 = vpop.f32.mrb[182].mxu0  ;;  %v2136_v42 = vpop.f32.mrb[180].mxu1  ;;  %v2869_v5 = vpack.c.bf16 %v10635_v39, %v10634_v9  ;;  %v10639_v39 = vld [vmem:[%s14821_s29 + $0x4a9] sm:$0xff] }
 0x25d   : > { %v1886_v4 = vadd.f32 %v1813_v20, %v15544_v15  ;;  %v12438_v38 = vpop.f32.mrb[183].mxu0  ;;  %v12515_v44 = vpop.f32.mrb[181].mxu1  ;;  %v15784_v12 = vadd.f32 %v2120_v28, %v1885_v45 }
 0x25e   : > { %v2139_v56 = vpop.f32.mrb[182].mxu1 }
 0x25f   : > { %12688 = vmatmul.mubr.msk.bf16.gmra.mrb[32].mxu0 %vm519_vm2, %v2868_v49  ;;  %v12516_v36 = vpop.f32.mrb[183].mxu1  ;;  %v15787_v31 = vadd.f32 %v2123_v53, %v1886_v4 }
 0x260   : > { %12691 = vmatprep.mubr.msk.bf16.mxu0 %vm14681_vm1, %v17834_v1 }
 0x262   : > { %v1818_v10 = vpop.f32.mrb[184].mxu0 }
 0x263   : > { %v1887_v15 = vadd.f32 %v1818_v10, %v15556_v61  ;;  %v12441_v7 = vpop.f32.mrb[185].mxu0  ;;  %v10636_v61 = vld [vmem:[%s14821_s29 + $0x491] sm:$0xff] }
 0x264   : > { %v1821_v28 = vpop.f32.mrb[186].mxu0  ;;  %v2144_v59 = vpop.f32.mrb[184].mxu1  ;;  %v2870_v21 = vpack.c.bf16 %v10637_v40, %v10636_v61  ;;  %v10641_v40 = vld [vmem:[%s14821_s29 + $0x4b9] sm:$0xff] }
 0x265   : > { %v1888_v29 = vadd.f32 %v1821_v28, %v15560_v22  ;;  %v12442_v48 = vpop.f32.mrb[187].mxu0  ;;  %v12519_v17 = vpop.f32.mrb[185].mxu1  ;;  %v15795_v53 = vadd.f32 %v2128_v6, %v1887_v15 }
 0x266   : > { %v2147_v19 = vpop.f32.mrb[186].mxu1 }
 0x267   : > { %12692 = vmatmul.mubr.msk.bf16.gmra.mrb[36].mxu0 %vm519_vm2, %v2869_v5  ;;  %v12520_v33 = vpop.f32.mrb[187].mxu1  ;;  %v15798_v8 = vadd.f32 %v2131_v55, %v1888_v29 }
 0x268   : > { %12695 = vmatprep.mubr.msk.bf16.mxu0 %vm14681_vm1, %v17834_v1 }
 0x26a   : > { %v1826_v60 = vpop.f32.mrb[188].mxu0 }
 0x26b   : > { %v1889_v22 = vadd.f32 %v1826_v60, %v15572_v16  ;;  %v12445_v45 = vpop.f32.mrb[189].mxu0  ;;  %v10638_v16 = vld [vmem:[%s14821_s29 + $0x4a1] sm:$0xff] }
 0x26c   : > { %v1829_v6 = vpop.f32.mrb[190].mxu0  ;;  %v2152_v49 = vpop.f32.mrb[188].mxu1  ;;  %v2871_v7 = vpack.c.bf16 %v10639_v39, %v10638_v16  ;;  %v10643_v39 = vld [vmem:[%s14821_s29 + $0x4c9] sm:$0xff] }
 0x26d   : > { %v1890_v20 = vadd.f32 %v1829_v6, %v15576_v32  ;;  %v12446_v4 = vpop.f32.mrb[191].mxu0  ;;  %v12523_v38 = vpop.f32.mrb[189].mxu1  ;;  %v15806_v55 = vadd.f32 %v2136_v42, %v1889_v22 }
 0x26e   : > { %v2155_v44 = vpop.f32.mrb[190].mxu1 }
 0x26f   : > { %12696 = vmatmul.mubr.msk.bf16.gmra.mrb[40].mxu0 %vm519_vm2, %v2870_v21  ;;  %v12524_v36 = vpop.f32.mrb[191].mxu1  ;;  %v15809_v9 = vadd.f32 %v2139_v56, %v1890_v20 }
 0x270   : > { %12699 = vmatprep.mubr.msk.bf16.mxu0 %vm14681_vm1, %v17834_v1 }
 0x272   : > { %v1834_v10 = vpop.f32.mrb[192].mxu0 }
 0x273   : > { %v1891_v32 = vadd.f32 %v1834_v10, %v15589_v46  ;;  %v12449_v15 = vpop.f32.mrb[193].mxu0  ;;  %v10640_v46 = vld [vmem:[%s14821_s29 + $0x4b1] sm:$0xff] }
 0x274   : > { %v1837_v42 = vpop.f32.mrb[194].mxu0  ;;  %v2160_v5 = vpop.f32.mrb[192].mxu1  ;;  %v2872_v45 = vpack.c.bf16 %v10641_v40, %v10640_v46  ;;  %v10645_v40 = vld [vmem:[%s14821_s29 + $0x4d9] sm:$0xff] }
 0x275   : > { %v1892_v28 = vadd.f32 %v1837_v42, %v15592_v3  ;;  %v12450_v29 = vpop.f32.mrb[195].mxu0  ;;  %v12527_v48 = vpop.f32.mrb[193].mxu1  ;;  %v15817_v56 = vadd.f32 %v2144_v59, %v1891_v32 }
 0x276   : > { %v2163_v17 = vpop.f32.mrb[194].mxu1 }
 0x277   : > { %12700 = vmatmul.mubr.msk.bf16.gmra.mrb[44].mxu0 %vm519_vm2, %v2871_v7  ;;  %v12528_v33 = vpop.f32.mrb[195].mxu1  ;;  %v15820_v61 = vadd.f32 %v2147_v19, %v1892_v28 }
 0x278   : > { %12703 = vmatprep.mubr.msk.bf16.mxu0 %vm14681_vm1, %v17834_v1 }
 0x27a   : > { %v1842_v60 = vpop.f32.mrb[196].mxu0 }
 0x27b   : > { %v1893_v3 = vadd.f32 %v1842_v60, %v15605_v34  ;;  %v12453_v22 = vpop.f32.mrb[197].mxu0  ;;  %v10642_v34 = vld [vmem:[%s14821_s29 + $0x4c1] sm:$0xff] }
 0x27c   : > { %v1845_v59 = vpop.f32.mrb[198].mxu0  ;;  %v2168_v21 = vpop.f32.mrb[196].mxu1  ;;  %v2873_v15 = vpack.c.bf16 %v10643_v39, %v10642_v34  ;;  %v10647_v39 = vld [vmem:[%s14821_s29 + $0x4e9] sm:$0xff] }
 0x27d   : > { %v1894_v6 = vadd.f32 %v1845_v59, %v15608_v25  ;;  %v12454_v20 = vpop.f32.mrb[199].mxu0  ;;  %v12531_v4 = vpop.f32.mrb[197].mxu1  ;;  %v15828_v19 = vadd.f32 %v2152_v49, %v1893_v3 }
 0x27e   : > { %v2171_v38 = vpop.f32.mrb[198].mxu1 }
 0x27f   : > { %12704 = vmatmul.mubr.msk.bf16.gmra.mrb[48].mxu0 %vm519_vm2, %v2872_v45  ;;  %v12532_v36 = vpop.f32.mrb[199].mxu1  ;;  %v15831_v16 = vadd.f32 %v2155_v44, %v1894_v6 }
 0x280   : > { %12707 = vmatprep.mubr.msk.bf16.mxu0 %vm14681_vm1, %v17834_v1 }
 0x282   : > { %v1850_v10 = vpop.f32.mrb[200].mxu0 }
 0x283   : > { %v1895_v25 = vadd.f32 %v1850_v10, %v15621_v47  ;;  %v12457_v32 = vpop.f32.mrb[201].mxu0  ;;  %v10644_v47 = vld [vmem:[%s14821_s29 + $0x4d1] sm:$0xff] }
 0x284   : > { %v1853_v49 = vpop.f32.mrb[202].mxu0  ;;  %v2662_v7 = vpop.f32.mrb[200].mxu1  ;;  %v2874_v22 = vpack.c.bf16 %v10645_v40, %v10644_v47  ;;  %v10649_v40 = vld [vmem:[%s14821_s29 + $0x4f9] sm:$0xff] }
 0x285   : > { %v1896_v42 = vadd.f32 %v1853_v49, %v15624_v50  ;;  %v12458_v28 = vpop.f32.mrb[203].mxu0  ;;  %v12607_v29 = vpop.f32.mrb[201].mxu1  ;;  %v15839_v44 = vadd.f32 %v2160_v5, %v1895_v25 }
 0x286   : > { %v2665_v48 = vpop.f32.mrb[202].mxu1 }
 0x287   : > { %12708 = vmatmul.mubr.msk.bf16.gmra.mrb[52].mxu0 %vm519_vm2, %v2873_v15  ;;  %v12608_v33 = vpop.f32.mrb[203].mxu1  ;;  %v15842_v46 = vadd.f32 %v2163_v17, %v1896_v42 }
 0x288   : > { %12711 = vmatprep.mubr.msk.bf16.mxu0 %vm14681_vm1, %v17834_v1 }
 0x28a   : > { %v1858_v60 = vpop.f32.mrb[204].mxu0 }
 0x28b   : > { %v1897_v50 = vadd.f32 %v1858_v60, %v15637_v41  ;;  %v12461_v3 = vpop.f32.mrb[205].mxu0  ;;  %v10646_v41 = vld [vmem:[%s14821_s29 + $0x4e1] sm:$0xff] }
 0x28c   : > { %v1861_v5 = vpop.f32.mrb[206].mxu0  ;;  %v2670_v45 = vpop.f32.mrb[204].mxu1  ;;  %v2875_v32 = vpack.c.bf16 %v10647_v39, %v10646_v41  ;;  %v10651_v39 = vld [vmem:[%s14821_s29 + $0x509] sm:$0xff] }
 0x28d   : > { %v1898_v59 = vadd.f32 %v1861_v5, %v15640_v13  ;;  %v12462_v6 = vpop.f32.mrb[207].mxu0  ;;  %v12611_v20 = vpop.f32.mrb[205].mxu1  ;;  %v15850_v17 = vadd.f32 %v2168_v21, %v1897_v50 }
 0x28e   : > { %v2673_v4 = vpop.f32.mrb[206].mxu1 }
 0x28f   : > { %12712 = vmatmul.mubr.msk.bf16.gmra.mrb[56].mxu0 %vm519_vm2, %v2874_v22  ;;  %v12612_v36 = vpop.f32.mrb[207].mxu1  ;;  %v15853_v34 = vadd.f32 %v2171_v38, %v1898_v59 }
 0x290   : > { %12715 = vmatprep.mubr.msk.bf16.mxu0 %vm14681_vm1, %v17834_v1 }
 0x292   : > { %v2351_v10 = vpop.f32.mrb[208].mxu0 }
 0x293   : > { %v2486_v13 = vadd.f32 %v2351_v10, %v15653_v18  ;;  %v12537_v25 = vpop.f32.mrb[209].mxu0  ;;  %v10648_v18 = vld [vmem:[%s14821_s29 + $0x4f1] sm:$0xff] }
 0x294   : > { %v2354_v21 = vpop.f32.mrb[210].mxu0  ;;  %v2678_v15 = vpop.f32.mrb[208].mxu1  ;;  %v2876_v3 = vpack.c.bf16 %v10649_v40, %v10648_v18  ;;  %v10652_v40 = vld [vmem:[%s14821_s29 + $0x511] sm:$0xff] }
 0x295   : > { %v2487_v49 = vadd.f32 %v2354_v21, %v15656_v35  ;;  %v12538_v42 = vpop.f32.mrb[211].mxu0  ;;  %v12615_v28 = vpop.f32.mrb[209].mxu1  ;;  %v15861_v38 = vadd.f32 %v2662_v7, %v2486_v13  ;;  %v14682_v21 = vmov 0  }
 0x296   : > { %v2681_v29 = vpop.f32.mrb[210].mxu1  ;;  %3696 = vmatprep.subr.bf16.mxu1 %v14682_v21 }
 0x297   : > { %12716 = vmatmul.mubr.msk.bf16.gmra.mrb[60].mxu0 %vm519_vm2, %v2875_v32  ;;  %v12616_v33 = vpop.f32.mrb[211].mxu1  ;;  %v15864_v47 = vadd.f32 %v2665_v48, %v2487_v49 }
 0x298   : > { %12719 = vmatprep.mubr.msk.bf16.mxu0 %vm14681_vm1, %v17834_v1 }
 0x29a   : > { %v2359_v60 = vpop.f32.mrb[212].mxu0 }
 0x29b   : > { %v2488_v35 = vadd.f32 %v2359_v60, %v15669_v62  ;;  %v12541_v50 = vpop.f32.mrb[213].mxu0  ;;  %v10650_v62 = vld [vmem:[%s14821_s29 + $0x501] sm:$0xff]  ;;  %v10653_v60 = vld [vmem:[%s14821_s29 + $0x519] sm:$0xff] }
 0x29c   : > { %v2362_v7 = vpop.f32.mrb[214].mxu0  ;;  %v2686_v22 = vpop.f32.mrb[212].mxu1  ;;  %v2877_v25 = vpack.c.bf16 %v10651_v39, %v10650_v62 }
 0x29d   : > { %v2489_v5 = vadd.f32 %v2362_v7, %v15672_v2  ;;  %v12542_v59 = vpop.f32.mrb[215].mxu0  ;;  %v12619_v6 = vpop.f32.mrb[213].mxu1  ;;  %v15872_v48 = vadd.f32 %v2670_v45, %v2488_v35 }
 0x29e   : > { %v2689_v20 = vpop.f32.mrb[214].mxu1 }
 0x29f   : > { %12720 = vmatmul.mubr.msk.bf16.gmra.mrb[64].mxu0 %vm519_vm2, %v2876_v3  ;;  %v12620_v36 = vpop.f32.mrb[215].mxu1  ;;  %v15875_v41 = vadd.f32 %v2673_v4, %v2489_v5  ;;  %v2878_v3 = vpack.c.bf16 %v10653_v60, %v10652_v40 }
 0x2a0   : > { %12723 = vmatprep.mubr.msk.bf16.mxu0 %vm14681_vm1, %v17834_v1 }
 0x2a2   : > { %v2367_v10 = vpop.f32.mrb[216].mxu0 }
 0x2a3   : > { %v2490_v13 = vadd.f32 %v2367_v10, %v15685_v37  ;;  %v12545_v2 = vpop.f32.mrb[217].mxu0  ;;  %v10655_v10 = vld [vmem:[%s14821_s29 + $0x529] sm:$0xff] }
 0x2a4   : > { %v2370_v45 = vpop.f32.mrb[218].mxu0  ;;  %v2694_v32 = vpop.f32.mrb[216].mxu1 }
 0x2a5   : > { %v2491_v4 = vadd.f32 %v2370_v45, %v15688_v30  ;;  %v12546_v49 = vpop.f32.mrb[219].mxu0  ;;  %v12623_v42 = vpop.f32.mrb[217].mxu1  ;;  %v15884_v28 = vadd.f32 %v2678_v15, %v2490_v13 }
 0x2a6   : > { %v2697_v33 = vpop.f32.mrb[218].mxu1 }
 0x2a7   : > { %12724 = vmatmul.mubr.msk.bf16.gmra.mrb[68].mxu0 %vm519_vm2, %v2877_v25  ;;  %v12624_v18 = vpop.f32.mrb[219].mxu1  ;;  %v15887_v37 = vadd.f32 %v2681_v29, %v2491_v4 }
 0x2a8   : > { %12727 = vmatprep.mubr.msk.bf16.mxu0 %vm14681_vm1, %v17834_v1 }
 0x2aa   : > { %v2375_v35 = vpop.f32.mrb[220].mxu0 }
 0x2ab   : > { %v2492_v30 = vadd.f32 %v2375_v35, %v15701_v54  ;;  %v12549_v50 = vpop.f32.mrb[221].mxu0  ;;  %v10654_v54 = vld [vmem:[%s14821_s29 + $0x521] sm:$0xff]  ;;  %v10657_v35 = vld [vmem:[%s14821_s29 + $0x539] sm:$0xff] }
 0x2ac   : > { %v2378_v15 = vpop.f32.mrb[222].mxu0  ;;  %v2702_v7 = vpop.f32.mrb[220].mxu1  ;;  %v2879_v25 = vpack.c.bf16 %v10655_v10, %v10654_v54 }
 0x2ad   : > { %v2493_v5 = vadd.f32 %v2378_v15, %v15704_v58  ;;  %v12550_v59 = vpop.f32.mrb[223].mxu0  ;;  %v12627_v6 = vpop.f32.mrb[221].mxu1  ;;  %v15895_v29 = vadd.f32 %v2686_v22, %v2492_v30 }
 0x2ae   : > { %v2705_v36 = vpop.f32.mrb[222].mxu1 }
 0x2af   : > { %12728 = vmatmul.mubr.msk.bf16.gmra.mrb[72].mxu0 %vm519_vm2, %v2878_v3  ;;  %v12628_v62 = vpop.f32.mrb[223].mxu1  ;;  %v15898_v39 = vadd.f32 %v2689_v20, %v2493_v5 }
 0x2b0   : > { %12731 = vmatprep.mubr.msk.bf16.mxu0 %vm14681_vm1, %v17834_v1 }
 0x2b2   : > { %v2383_v13 = vpop.f32.mrb[224].mxu0 }
 0x2b3   : > { %v2494_v58 = vadd.f32 %v2383_v13, %v15717_v57  ;;  %v12553_v2 = vpop.f32.mrb[225].mxu0  ;;  %v10656_v57 = vld [vmem:[%s14821_s29 + $0x531] sm:$0xff]  ;;  %v10659_v13 = vld [vmem:[%s14821_s29 + $0x549] sm:$0x7f] }
 0x2b4   : > { %v2386_v22 = vpop.f32.mrb[226].mxu0  ;;  %v2710_v45 = vpop.f32.mrb[224].mxu1  ;;  %v2880_v3 = vpack.c.bf16 %v10657_v35, %v10656_v57 }
 0x2b5   : > { %v2495_v4 = vadd.f32 %v2386_v22, %v15720_v24  ;;  %v12554_v49 = vpop.f32.mrb[227].mxu0  ;;  %v12631_v42 = vpop.f32.mrb[225].mxu1  ;;  %v15906_v20 = vadd.f32 %v2694_v32, %v2494_v58 }
 0x2b6   : > { %v2713_v18 = vpop.f32.mrb[226].mxu1 }
 0x2b7   : > { %12732 = vmatmul.mubr.msk.bf16.gmra.mrb[76].mxu0 %vm519_vm2, %v2879_v25  ;;  %v12632_v40 = vpop.f32.mrb[227].mxu1  ;;  %v15909_v60 = vadd.f32 %v2697_v33, %v2495_v4 }
 0x2b8   : > { %12735 = vmatprep.mubr.msk.bf16.mxu0 %vm14681_vm1, %v17834_v1 }
 0x2ba   : > { %v2391_v30 = vpop.f32.mrb[228].mxu0 }
 0x2bb   : > { %v2496_v24 = vadd.f32 %v2391_v30, %v15729_v26  ;;  %v12557_v50 = vpop.f32.mrb[229].mxu0  ;;  %v10658_v26 = vld [vmem:[%s14821_s29 + $0x541] sm:$0xff]  ;;  %s14616_s29 = scalar_lea.vmem %s17778_s17, 256 }
 0x2bc   : > { %v2394_v32 = vpop.f32.mrb[230].mxu0  ;;  %v2718_v15 = vpop.f32.mrb[228].mxu1  ;;  %p14617_p11 = scmp.ne.s32.totalorder %s17778_s17, %s14616_s29  ;;  %p14624_p1 = scmp.lt.s32.totalorder %s14622_s15, %s14616_s29 }
 0x2bd   : > { %v2497_v5 = vadd.f32 %v2394_v32, %v15732_v23  ;;  %v12558_v59 = vpop.f32.mrb[231].mxu0  ;;  %v12635_v6 = vpop.f32.mrb[229].mxu1  ;;  %v15917_v33 = vadd.f32 %v2702_v7, %v2496_v24  ;;  %v2881_v23 = vpack.c.bf16 %v10659_v13, %v10658_v26 }
 0x2be   : > { %v2721_v62 = vpop.f32.mrb[230].mxu1  ;;  %p14618_p12 = pnand %p14617_p11, %p14790_p5  ;;  %p14625_p2 = por %p14624_p1, %p14623_p0 }
 0x2bf   : > { %12736 = vmatmul.mubr.msk.bf16.gmra.mrb[80].mxu0 %vm519_vm2, %v2880_v3  ;;  %v12636_v54 = vpop.f32.mrb[231].mxu1  ;;  %v15920_v10 = vadd.f32 %v2705_v36, %v2497_v5 }
 0x2c0   : > { %12739 = vmatprep.mubr.msk.bf16.mxu0 %vm14681_vm1, %v17834_v1  ;;  %p14619_p13 = pneg %p14618_p12 }
 0x2c2   : > { %v2399_v58 = vpop.f32.mrb[232].mxu0  ;;  %p14626_p3 = pnand %p14625_p2, %p14619_p13 }
 0x2c3   : > { %v2498_v2 = vadd.f32 %v2399_v58, %v15740_v11  ;;  %v12561_v25 = vpop.f32.mrb[233].mxu0 }
 0x2c4   : > { %v2402_v22 = vpop.f32.mrb[234].mxu0  ;;  %v2726_v4 = vpop.f32.mrb[232].mxu1 }
 0x2c5   : > { %v2499_v7 = vadd.f32 %v2402_v22, %v15743_v27  ;;  %v12562_v49 = vpop.f32.mrb[235].mxu0  ;;  %v12639_v42 = vpop.f32.mrb[233].mxu1  ;;  %v15928_v40 = vadd.f32 %v2710_v45, %v2498_v2 }
 0x2c6   : > { %v2729_v36 = vpop.f32.mrb[234].mxu1 }
 0x2c7   : > { %12740 = vmatmul.mubr.msk.bf16.gmra.mrb[84].mxu0 %vm519_vm2, %v2881_v23  ;;  %v12640_v57 = vpop.f32.mrb[235].mxu1  ;;  %v15931_v35 = vadd.f32 %v2713_v18, %v2499_v7  ;;  %vm9005_vm2 = vcmask 637952  }
 0x2ca   : > { %v2407_v30 = vpop.f32.mrb[236].mxu0 }
 0x2cb   : > { %v2500_v24 = vadd.f32 %v2407_v30, %v15751_v14  ;;  %v12565_v11 = vpop.f32.mrb[237].mxu0 }
 0x2cc   : > { %v2410_v50 = vpop.f32.mrb[238].mxu0  ;;  %v2734_v3 = vpop.f32.mrb[236].mxu1 }
 0x2cd   : > { %v2501_v32 = vadd.f32 %v2410_v50, %v15754_v43  ;;  %v12566_v5 = vpop.f32.mrb[239].mxu0  ;;  %v12643_v27 = vpop.f32.mrb[237].mxu1  ;;  %v15935_v59 = vadd.f32 %v2718_v15, %v2500_v24 }
 0x2ce   : > { %v2737_v45 = vpop.f32.mrb[238].mxu1 }
 0x2cf   : > { %v12644_v6 = vpop.f32.mrb[239].mxu1  ;;  %v15937_v54 = vadd.f32 %v2721_v62, %v2501_v32 }
 0x2d2   : > { %v2415_v26 = vpop.f32.mrb[240].mxu0 }
 0x2d3   : > { %v2502_v18 = vadd.f32 %v2415_v26, %v15762_v0  ;;  %v12569_v13 = vpop.f32.mrb[241].mxu0 }
 0x2d4   : > { %v2418_v58 = vpop.f32.mrb[242].mxu0  ;;  %v2742_v2 = vpop.f32.mrb[240].mxu1 }
 0x2d5   : > { %v2503_v14 = vadd.f32 %v2418_v58, %v15765_v52  ;;  %v12570_v25 = vpop.f32.mrb[243].mxu0  ;;  %v12647_v23 = vpop.f32.mrb[241].mxu1  ;;  %v15941_v22 = vadd.f32 %v2726_v4, %v2502_v18 }
 0x2d6   : > { %v2745_v43 = vpop.f32.mrb[242].mxu1 }
 0x2d7   : > { %v12648_v7 = vpop.f32.mrb[243].mxu1  ;;  %v15943_v15 = vadd.f32 %v2729_v36, %v2503_v14 }
 0x2da   : > { %v2423_v49 = vpop.f32.mrb[244].mxu0 }
 0x2db   : > { %v2504_v62 = vadd.f32 %v2423_v49, %v15773_v63  ;;  %v12573_v42 = vpop.f32.mrb[245].mxu0 }
 0x2dc   : > { %v2426_v57 = vpop.f32.mrb[246].mxu0  ;;  %v2750_v30 = vpop.f32.mrb[244].mxu1 }
 0x2dd   : > { %v2505_v0 = vadd.f32 %v2426_v57, %v15776_v51  ;;  %v12574_v24 = vpop.f32.mrb[247].mxu0  ;;  %v12651_v11 = vpop.f32.mrb[245].mxu1  ;;  %v15947_v50 = vadd.f32 %v2734_v3, %v2504_v62 }
 0x2de   : > { %v2753_v52 = vpop.f32.mrb[246].mxu1 }
 0x2df   : > { %v12652_v32 = vpop.f32.mrb[247].mxu1  ;;  %v15949_v4 = vadd.f32 %v2737_v45, %v2505_v0 }
 0x2e2   : > { %v2431_v5 = vpop.f32.mrb[248].mxu0 }
 0x2e3   : > { %v2506_v36 = vadd.f32 %v2431_v5, %v15784_v12  ;;  %v12577_v27 = vpop.f32.mrb[249].mxu0 }
 0x2e4   : > { %v2434_v6 = vpop.f32.mrb[250].mxu0  ;;  %v2758_v26 = vpop.f32.mrb[248].mxu1 }
 0x2e5   : > { %v2507_v63 = vadd.f32 %v2434_v6, %v15787_v31  ;;  %v12578_v18 = vpop.f32.mrb[251].mxu0  ;;  %v12655_v13 = vpop.f32.mrb[249].mxu1  ;;  %v15953_v58 = vadd.f32 %v2742_v2, %v2506_v36 }
 0x2e6   : > { %v2761_v51 = vpop.f32.mrb[250].mxu1 }
 0x2e7   : > { %v12656_v14 = vpop.f32.mrb[251].mxu1  ;;  %v15955_v3 = vadd.f32 %v2745_v43, %v2507_v63 }
 0x2ea   : > { %v2439_v25 = vpop.f32.mrb[252].mxu0 }
 0x2eb   : > { %v2508_v45 = vadd.f32 %v2439_v25, %v15795_v53  ;;  %v12581_v23 = vpop.f32.mrb[253].mxu0 }
 0x2ec   : > { %v2442_v7 = vpop.f32.mrb[254].mxu0  ;;  %v2766_v49 = vpop.f32.mrb[252].mxu1 }
 0x2ed   : > { %v2509_v12 = vadd.f32 %v2442_v7, %v15798_v8  ;;  %v12582_v62 = vpop.f32.mrb[255].mxu0  ;;  %v12659_v42 = vpop.f32.mrb[253].mxu1  ;;  %v15959_v57 = vadd.f32 %v2750_v30, %v2508_v45 }
 0x2ee   : > { %v2769_v31 = vpop.f32.mrb[254].mxu1 }
 0x2ef   : > { %v12660_v0 = vpop.f32.mrb[255].mxu1  ;;  %v15961_v2 = vadd.f32 %v2753_v52, %v2509_v12 }
 0x2f2   : > { %v2447_v24 = vpop.f32.mrb[0].mxu0 }
 0x2f3   : > { %v2510_v43 = vadd.f32 %v2447_v24, %v15806_v55  ;;  %v12585_v11 = vpop.f32.mrb[1].mxu0 }
 0x2f4   : > { %v2450_v32 = vpop.f32.mrb[2].mxu0  ;;  %v2774_v5 = vpop.f32.mrb[0].mxu1 }
 0x2f5   : > { %v2511_v53 = vadd.f32 %v2450_v32, %v15809_v9  ;;  %v12586_v36 = vpop.f32.mrb[3].mxu0  ;;  %v12663_v27 = vpop.f32.mrb[1].mxu1  ;;  %v15965_v6 = vadd.f32 %v2758_v26, %v2510_v43 }
 0x2f6   : > { %v2777_v8 = vpop.f32.mrb[2].mxu1 }
 0x2f7   : > { %v12664_v63 = vpop.f32.mrb[3].mxu1  ;;  %v15967_v30 = vadd.f32 %v2761_v51, %v2511_v53 }
 0x2fa   : > { %v2455_v18 = vpop.f32.mrb[4].mxu0 }
 0x2fb   : > { %v2512_v52 = vadd.f32 %v2455_v18, %v15817_v56  ;;  %v12589_v13 = vpop.f32.mrb[5].mxu0 }
 0x2fc   : > { %v2458_v14 = vpop.f32.mrb[6].mxu0  ;;  %v2782_v25 = vpop.f32.mrb[4].mxu1 }
 0x2fd   : > { %v2513_v55 = vadd.f32 %v2458_v14, %v15820_v61  ;;  %v12590_v45 = vpop.f32.mrb[7].mxu0  ;;  %v12667_v23 = vpop.f32.mrb[5].mxu1  ;;  %v15971_v7 = vadd.f32 %v2766_v49, %v2512_v52 }
 0x2fe   : > { %v2785_v9 = vpop.f32.mrb[6].mxu1 }
 0x2ff   : > { %v12668_v12 = vpop.f32.mrb[7].mxu1  ;;  %v15973_v26 = vadd.f32 %v2769_v31, %v2513_v55 }
 0x302   : > { %v2463_v62 = vpop.f32.mrb[8].mxu0 }
 0x303   : > { %v2514_v51 = vadd.f32 %v2463_v62, %v15828_v19  ;;  %v12593_v42 = vpop.f32.mrb[9].mxu0 }
 0x304   : > { %v2466_v0 = vpop.f32.mrb[10].mxu0  ;;  %v2790_v24 = vpop.f32.mrb[8].mxu1  ;;  %v14277_v42 = vld [vmem:[%s17824_s3 + $0x4] ss:$12 sps:$4 sm:$0xff]  }
 0x305   : > { %v2515_v56 = vadd.f32 %v2466_v0, %v15831_v16  ;;  %v12594_v43 = vpop.f32.mrb[11].mxu0  ;;  %v12671_v11 = vpop.f32.mrb[9].mxu1  ;;  %v15977_v32 = vadd.f32 %v2774_v5, %v2514_v51  ;;  %3728 = vmatprep.mubr.bf16.mxu1 %v14277_v42 }
 0x306   : > { %v2793_v61 = vpop.f32.mrb[10].mxu1 }
 0x307   : > { %v15979_v53 = vadd.f32 %v2777_v8, %v2515_v56  ;;  %v12672_v49 = vpop.f32.mrb[11].mxu1 }
 0x30a   : > { %v2471_v36 = vpop.f32.mrb[12].mxu0 }
 0x30b   : > { %v2516_v31 = vadd.f32 %v2471_v36, %v15839_v44  ;;  %v12597_v27 = vpop.f32.mrb[13].mxu0 }
 0x30c   : > { %v2474_v63 = vpop.f32.mrb[14].mxu0 }
 0x30d   : > { %v2517_v19 = vadd.f32 %v2474_v63, %v15842_v46  ;;  %v12598_v18 = vpop.f32.mrb[15].mxu0  ;;  %v15983_v52 = vadd.f32 %v2782_v25, %v2516_v31  ;;  %v15996_v46 = vld [vmem:[%s17823_s2] ss:$0 sm:$0xff] }
 0x30f   : > { %v15985_v13 = vadd.f32 %v2785_v9, %v2517_v19 }
 0x312   : > { %v2479_v16 = vpop.f32.mrb[16].mxu0 }
 0x313   : > { %v2518_v5 = vadd.f32 %v2479_v16, %v15850_v17  ;;  %v12601_v14 = vpop.f32.mrb[17].mxu0 }
 0x314   : > { %v2482_v55 = vpop.f32.mrb[18].mxu0 }
 0x315   : > { %v2519_v8 = vadd.f32 %v2482_v55, %v15853_v34  ;;  %v12602_v45 = vpop.f32.mrb[19].mxu0  ;;  %v15989_v23 = vadd.f32 %v2790_v24, %v2518_v5 }
 0x317   : > { %v15991_v44 = vadd.f32 %v2793_v61, %v2519_v8 }
 0x31a   : > { %v2972_v12 = vpop.f32.mrb[20].mxu0 }
 0x31b   : > { %v3107_v25 = vadd.f32 %v2972_v12, %v15861_v38  ;;  %v12677_v9 = vpop.f32.mrb[21].mxu0 }
 0x31c   : > { %v2975_v62 = vpop.f32.mrb[22].mxu0 }
 0x31d   : > { %v3148_v17 = vadd.f32 %v15996_v46, %v3107_v25  ;;  %v3108_v51 = vadd.f32 %v2975_v62, %v15864_v47  ;;  %v12678_v34 = vpop.f32.mrb[23].mxu0 }
 0x31f   : > { %v3149_v0 = vadd.f32 %v15996_v46, %v3108_v51  ;;  %v3182_v24 = vmax.f32 %v3148_v17, 0.0 }
 0x321   : > { %v3183_v56 = vmax.f32 %v3149_v0, 0.0 }
 0x322   : > { %v2980_v43 = vpop.f32.mrb[24].mxu0 }
 0x323   : > { %v3298_v11 = vpack.c.bf16 %v3183_v56, %v3182_v24  ;;  %v3109_v38 = vadd.f32 %v2980_v43, %v15872_v48  ;;  %v12681_v61 = vpop.f32.mrb[25].mxu0 }
 0x324   : > { %v2983_v49 = vpop.f32.mrb[26].mxu0 }
 0x325   : > { %v3150_v36 = vadd.f32 %v15996_v46, %v3109_v38  ;;  %v3110_v47 = vadd.f32 %v2983_v49, %v15875_v41  ;;  %v12682_v31 = vpop.f32.mrb[27].mxu0  ;;  %3697 = vmatpush1.bf16.msra.mxu1 %v3298_v11 }
 0x326   : > { %3698 = vmatprep.subr.bf16.mxu1 %v14682_v21 }
 0x327   : > { %v3151_v27 = vadd.f32 %v15996_v46, %v3110_v47  ;;  %v3184_v63 = vmax.f32 %v3150_v36, 0.0 }
 0x329   : > { %v3185_v19 = vmax.f32 %v3151_v27, 0.0 }
 0x32a   : > { %v2988_v18 = vpop.f32.mrb[28].mxu0 }
 0x32b   : > { %v3299_v16 = vpack.c.bf16 %v3185_v19, %v3184_v63  ;;  %v3111_v5 = vadd.f32 %v2988_v18, %v15884_v28  ;;  %v12685_v14 = vpop.f32.mrb[29].mxu0 }
 0x32c   : > { %v2991_v48 = vpop.f32.mrb[30].mxu0 }
 0x32d   : > { %v3152_v55 = vadd.f32 %v15996_v46, %v3111_v5  ;;  %v3112_v8 = vadd.f32 %v2991_v48, %v15887_v37  ;;  %v12686_v45 = vpop.f32.mrb[31].mxu0  ;;  %3699 = vmatpush1.bf16.msra.mxu1 %v3299_v16 }
 0x32e   : > { %3700 = vmatprep.subr.bf16.mxu1 %v14682_v21 }
 0x32f   : > { %v3153_v41 = vadd.f32 %v15996_v46, %v3112_v8  ;;  %v3186_v12 = vmax.f32 %v3152_v55, 0.0 }
 0x331   : > { %v3187_v25 = vmax.f32 %v3153_v41, 0.0 }
 0x332   : > { %v2996_v9 = vpop.f32.mrb[32].mxu0 }
 0x333   : > { %v3300_v62 = vpack.c.bf16 %v3187_v25, %v3186_v12  ;;  %v3113_v17 = vadd.f32 %v2996_v9, %v15895_v29  ;;  %v12689_v51 = vpop.f32.mrb[33].mxu0 }
 0x334   : > { %v2999_v28 = vpop.f32.mrb[34].mxu0 }
 0x335   : > { %v3154_v34 = vadd.f32 %v15996_v46, %v3113_v17  ;;  %v3114_v42 = vadd.f32 %v2999_v28, %v15898_v39  ;;  %v12690_v0 = vpop.f32.mrb[35].mxu0  ;;  %3701 = vmatpush1.bf16.msra.mxu1 %v3300_v62 }
 0x336   : > { %3702 = vmatprep.subr.bf16.mxu1 %v14682_v21 }
 0x337   : > { %v3155_v37 = vadd.f32 %v15996_v46, %v3114_v42  ;;  %v3188_v24 = vmax.f32 %v3154_v34, 0.0 }
 0x339   : > { %v3189_v56 = vmax.f32 %v3155_v37, 0.0 }
 0x33a   : > { %v3004_v43 = vpop.f32.mrb[36].mxu0 }
 0x33b   : > { %v3301_v11 = vpack.c.bf16 %v3189_v56, %v3188_v24  ;;  %v3115_v38 = vadd.f32 %v3004_v43, %v15906_v20  ;;  %v12693_v61 = vpop.f32.mrb[37].mxu0 }
 0x33c   : > { %v3007_v29 = vpop.f32.mrb[38].mxu0 }
 0x33d   : > { %v3156_v49 = vadd.f32 %v15996_v46, %v3115_v38  ;;  %v3116_v36 = vadd.f32 %v3007_v29, %v15909_v60  ;;  %v12694_v47 = vpop.f32.mrb[39].mxu0  ;;  %3703 = vmatpush1.bf16.msra.mxu1 %v3301_v11 }
 0x33e   : > { %3704 = vmatprep.subr.bf16.mxu1 %v14682_v21 }
 0x33f   : > { %v3157_v39 = vadd.f32 %v15996_v46, %v3116_v36  ;;  %v3190_v31 = vmax.f32 %v3156_v49, 0.0 }
 0x341   : > { %v3191_v27 = vmax.f32 %v3157_v39, 0.0 }
 0x342   : > { %v3012_v63 = vpop.f32.mrb[40].mxu0 }
 0x343   : > { %v3302_v19 = vpack.c.bf16 %v3191_v27, %v3190_v31  ;;  %v3117_v18 = vadd.f32 %v3012_v63, %v15917_v33  ;;  %v12697_v16 = vpop.f32.mrb[41].mxu0 }
 0x344   : > { %v3015_v20 = vpop.f32.mrb[42].mxu0 }
 0x345   : > { %v3158_v5 = vadd.f32 %v15996_v46, %v3117_v18  ;;  %v3118_v14 = vadd.f32 %v3015_v20, %v15920_v10  ;;  %v12698_v48 = vpop.f32.mrb[43].mxu0  ;;  %3705 = vmatpush1.bf16.msra.mxu1 %v3302_v19 }
 0x346   : > { %3706 = vmatprep.subr.bf16.mxu1 %v14682_v21 }
 0x347   : > { %v3159_v60 = vadd.f32 %v15996_v46, %v3118_v14  ;;  %v3192_v55 = vmax.f32 %v3158_v5, 0.0 }
 0x349   : > { %v3193_v8 = vmax.f32 %v3159_v60, 0.0 }
 0x34a   : > { %v3020_v45 = vpop.f32.mrb[44].mxu0 }
 0x34b   : > { %v3303_v41 = vpack.c.bf16 %v3193_v8, %v3192_v55  ;;  %v3119_v12 = vadd.f32 %v3020_v45, %v15928_v40  ;;  %v12701_v25 = vpop.f32.mrb[45].mxu0 }
 0x34c   : > { %v3023_v33 = vpop.f32.mrb[46].mxu0 }
 0x34d   : > { %v3160_v9 = vadd.f32 %v15996_v46, %v3119_v12  ;;  %v3120_v62 = vadd.f32 %v3023_v33, %v15931_v35  ;;  %v12702_v17 = vpop.f32.mrb[47].mxu0  ;;  %3707 = vmatpush1.bf16.msra.mxu1 %v3303_v41 }
 0x34e   : > { %3708 = vmatprep.subr.bf16.mxu1 %v14682_v21 }
 0x34f   : > { %v3161_v10 = vadd.f32 %v15996_v46, %v3120_v62  ;;  %v3194_v51 = vmax.f32 %v3160_v9, 0.0 }
 0x351   : > { %v3195_v28 = vmax.f32 %v3161_v10, 0.0 }
 0x352   : > { %v3028_v34 = vpop.f32.mrb[48].mxu0 }
 0x353   : > { %v3304_v42 = vpack.c.bf16 %v3195_v28, %v3194_v51  ;;  %v3121_v0 = vadd.f32 %v3028_v34, %v15935_v59  ;;  %v12705_v37 = vpop.f32.mrb[49].mxu0 }
 0x354   : > { %v3031_v40 = vpop.f32.mrb[50].mxu0 }
 0x355   : > { %v3162_v24 = vadd.f32 %v15996_v46, %v3121_v0  ;;  %v3122_v56 = vadd.f32 %v3031_v40, %v15937_v54  ;;  %v12706_v43 = vpop.f32.mrb[51].mxu0  ;;  %3709 = vmatpush1.bf16.msra.mxu1 %v3304_v42 }
 0x356   : > { %3710 = vmatprep.subr.bf16.mxu1 %v14682_v21 }
 0x357   : > { %v3163_v35 = vadd.f32 %v15996_v46, %v3122_v56  ;;  %v3196_v11 = vmax.f32 %v3162_v24, 0.0 }
 0x359   : > { %v3197_v38 = vmax.f32 %v3163_v35, 0.0 }
 0x35a   : > { %v3036_v61 = vpop.f32.mrb[52].mxu0 }
 0x35b   : > { %v3305_v29 = vpack.c.bf16 %v3197_v38, %v3196_v11  ;;  %v3123_v49 = vadd.f32 %v3036_v61, %v15941_v22  ;;  %v12709_v36 = vpop.f32.mrb[53].mxu0 }
 0x35c   : > { %v3039_v59 = vpop.f32.mrb[54].mxu0 }
 0x35d   : > { %v3164_v47 = vadd.f32 %v15996_v46, %v3123_v49  ;;  %v3124_v39 = vadd.f32 %v3039_v59, %v15943_v15  ;;  %v12710_v31 = vpop.f32.mrb[55].mxu0  ;;  %3711 = vmatpush1.bf16.msra.mxu1 %v3305_v29 }
 0x35e   : > { %3712 = vmatprep.subr.bf16.mxu1 %v14682_v21 }
 0x35f   : > { %v3165_v54 = vadd.f32 %v15996_v46, %v3124_v39  ;;  %v3198_v27 = vmax.f32 %v3164_v47, 0.0 }
 0x361   : > { %v3199_v63 = vmax.f32 %v3165_v54, 0.0 }
 0x362   : > { %v3044_v19 = vpop.f32.mrb[56].mxu0 }
 0x363   : > { %v3306_v18 = vpack.c.bf16 %v3199_v63, %v3198_v27  ;;  %v3125_v16 = vadd.f32 %v3044_v19, %v15947_v50  ;;  %v12713_v20 = vpop.f32.mrb[57].mxu0 }
 0x364   : > { %v3047_v22 = vpop.f32.mrb[58].mxu0 }
 0x365   : > { %v3166_v5 = vadd.f32 %v15996_v46, %v3125_v16  ;;  %v3126_v14 = vadd.f32 %v3047_v22, %v15949_v4  ;;  %v12714_v48 = vpop.f32.mrb[59].mxu0  ;;  %3713 = vmatpush1.bf16.msra.mxu1 %v3306_v18 }
 0x366   : > { %3714 = vmatprep.subr.bf16.mxu1 %v14682_v21 }
 0x367   : > { %v3167_v15 = vadd.f32 %v15996_v46, %v3126_v14  ;;  %v3200_v60 = vmax.f32 %v3166_v5, 0.0 }
 0x369   : > { %v3201_v55 = vmax.f32 %v3167_v15, 0.0 }
 0x36a   : > { %v3052_v8 = vpop.f32.mrb[60].mxu0 }
 0x36b   : > { %v3307_v45 = vpack.c.bf16 %v3201_v55, %v3200_v60  ;;  %v3127_v41 = vadd.f32 %v3052_v8, %v15953_v58  ;;  %v12717_v12 = vpop.f32.mrb[61].mxu0 }
 0x36c   : > { %v3055_v50 = vpop.f32.mrb[62].mxu0 }
 0x36d   : > { %v3168_v25 = vadd.f32 %v15996_v46, %v3127_v41  ;;  %v3128_v33 = vadd.f32 %v3055_v50, %v15955_v3  ;;  %v12718_v9 = vpop.f32.mrb[63].mxu0  ;;  %3715 = vmatpush1.bf16.msra.mxu1 %v3307_v45 }
 0x36e   : > { %3716 = vmatprep.subr.bf16.mxu1 %v14682_v21 }
 0x36f   : > { %v3169_v4 = vadd.f32 %v15996_v46, %v3128_v33  ;;  %v3202_v62 = vmax.f32 %v3168_v25, 0.0 }
 0x371   : > { %v3203_v17 = vmax.f32 %v3169_v4, 0.0 }
 0x372   : > { %v3060_v10 = vpop.f32.mrb[64].mxu0 }
 0x373   : > { %v3308_v51 = vpack.c.bf16 %v3203_v17, %v3202_v62  ;;  %v3129_v28 = vadd.f32 %v3060_v10, %v15959_v57  ;;  %v12721_v34 = vpop.f32.mrb[65].mxu0 }
 0x374   : > { %v3063_v58 = vpop.f32.mrb[66].mxu0 }
 0x375   : > { %v3170_v42 = vadd.f32 %v15996_v46, %v3129_v28  ;;  %v3130_v0 = vadd.f32 %v3063_v58, %v15961_v2  ;;  %v12722_v37 = vpop.f32.mrb[67].mxu0  ;;  %3717 = vmatpush1.bf16.msra.mxu1 %v3308_v51  ;;  %v14275_v28 = vld [vmem:[%s17824_s3] ss:$12 sps:$4 sm:$0xff]  }
 0x376   : > { %3718 = vmatprep.subr.bf16.mxu1 %v14682_v21 }
 0x377   : > { %v3171_v3 = vadd.f32 %v15996_v46, %v3130_v0  ;;  %v3204_v40 = vmax.f32 %v3170_v42, 0.0  ;;  %v14683_v42 = vmov 65535  }
 0x378   : > { %v3691_v0 = vsel %vm3689_vm3, 4294967295, %v14683_v42  ;;  %v14349_v42 = vld [vmem:[%s17824_s3 + $0x128] ss:$12 sps:$4 sm:$0xff]  }
 0x379   : > { %v3205_v24 = vmax.f32 %v3171_v3, 0.0 }
 0x37a   : > { %v3068_v56 = vpop.f32.mrb[68].mxu0 }
 0x37b   : > { %v3309_v43 = vpack.c.bf16 %v3205_v24, %v3204_v40  ;;  %v3131_v35 = vadd.f32 %v3068_v56, %v15965_v6  ;;  %v12725_v11 = vpop.f32.mrb[69].mxu0  ;;  %v3692_v40 = vsel %vm3690_vm4, %v3691_v0, 0  ;;  %v14278_v24 = vld [vmem:[%s17824_s3 + $0x18] ss:$12 sps:$4 sm:$0xff]  }
 0x37c   : > { %v3071_v57 = vpop.f32.mrb[70].mxu0  ;;  %v14284_v11 = vld [vmem:[%s17824_s3 + $0x48] ss:$12 sps:$4 sm:$0xff]   ;;  %v14362_v0 = vld [vmem:[%s17825_s4 + $0x60] sm:$0xff]  }
 0x37d   : > { %v3172_v38 = vadd.f32 %v15996_v46, %v3131_v35  ;;  %v3132_v61 = vadd.f32 %v3071_v57, %v15967_v30  ;;  %v12726_v29 = vpop.f32.mrb[71].mxu0  ;;  %3719 = vmatpush1.bf16.msra.mxu1 %v3309_v43  ;;  %v14283_v43 = vld [vmem:[%s17824_s3 + $0x34] ss:$12 sps:$4 sm:$0xff]   ;;  %v14286_v35 = vld [vmem:[%s17824_s3 + $0x4c] ss:$12 sps:$4 sm:$0xff]  }
 0x37e   : > { %3720 = vmatprep.subr.bf16.mxu1 %v14682_v21  ;;  %v14289_v57 = vld [vmem:[%s17824_s3 + $0x64] ss:$12 sps:$4 sm:$0xff]  }
 0x37f   : > { %v3173_v2 = vadd.f32 %v15996_v46, %v3132_v61  ;;  %v3206_v49 = vmax.f32 %v3172_v38, 0.0  ;;  %v14287_v38 = vld [vmem:[%s17824_s3 + $0x60] ss:$12 sps:$4 sm:$0xff]   ;;  %v14292_v61 = vld [vmem:[%s17824_s3 + $0x7c] ss:$12 sps:$4 sm:$0xff]  }
 0x380   : > { %v14290_v29 = vld [vmem:[%s17824_s3 + $0x78] ss:$12 sps:$4 sm:$0xff]  }
 0x381   : > { %v3207_v36 = vmax.f32 %v3173_v2, 0.0  ;;  %v14295_v2 = vld [vmem:[%s17824_s3 + $0x94] ss:$12 sps:$4 sm:$0xff]  }
 0x382   : > { %v3076_v59 = vpop.f32.mrb[72].mxu0 }
 0x383   : > { %v3310_v47 = vpack.c.bf16 %v3207_v36, %v3206_v49  ;;  %v3133_v39 = vadd.f32 %v3076_v59, %v15971_v7  ;;  %v12729_v31 = vpop.f32.mrb[73].mxu0  ;;  %v14293_v49 = vld [vmem:[%s17824_s3 + $0x90] ss:$12 sps:$4 sm:$0xff]   ;;  %v14298_v36 = vld [vmem:[%s17824_s3 + $0xac] ss:$12 sps:$4 sm:$0xff]  }
 0x384   : > { %v3079_v6 = vpop.f32.mrb[74].mxu0  ;;  %v14296_v59 = vld [vmem:[%s17824_s3 + $0xa8] ss:$12 sps:$4 sm:$0xff]  }
 0x385   : > { %v3174_v54 = vadd.f32 %v15996_v46, %v3133_v39  ;;  %v3134_v27 = vadd.f32 %v3079_v6, %v15973_v26  ;;  %v12730_v63 = vpop.f32.mrb[75].mxu0  ;;  %3721 = vmatpush1.bf16.msra.mxu1 %v3310_v47  ;;  %v14301_v47 = vld [vmem:[%s17824_s3 + $0xc4] ss:$12 sps:$4 sm:$0xff]   ;;  %v14299_v39 = vld [vmem:[%s17824_s3 + $0xc0] ss:$12 sps:$4 sm:$0xff]  }
 0x386   : > { %3722 = vmatprep.subr.bf16.mxu1 %v14682_v21  ;;  %v14304_v31 = vld [vmem:[%s17824_s3 + $0xdc] ss:$12 sps:$4 sm:$0xff]   ;;  %v14302_v6 = vld [vmem:[%s17824_s3 + $0xd8] ss:$12 sps:$4 sm:$0xff]  }
 0x387   : > { %v3175_v30 = vadd.f32 %v15996_v46, %v3134_v27  ;;  %v3208_v19 = vmax.f32 %v3174_v54, 0.0  ;;  %v14307_v54 = vld [vmem:[%s17824_s3 + $0xf4] ss:$12 sps:$4 sm:$0xff]   ;;  %v14305_v27 = vld [vmem:[%s17824_s3 + $0xf0] ss:$12 sps:$4 sm:$0xff]  }
 0x388   : > { %v14310_v63 = vld [vmem:[%s17824_s3 + $0x10c] ss:$12 sps:$4 sm:$0xff]  }
 0x389   : > { %v3209_v18 = vmax.f32 %v3175_v30, 0.0  ;;  %v14308_v30 = vld [vmem:[%s17824_s3 + $0x108] ss:$12 sps:$4 sm:$0xff]  }
 0x38a   : > { %v3084_v16 = vpop.f32.mrb[76].mxu0 }
 0x38b   : > { %v3311_v20 = vpack.c.bf16 %v3209_v18, %v3208_v19  ;;  %v3135_v22 = vadd.f32 %v3084_v16, %v15977_v32  ;;  %v12733_v5 = vpop.f32.mrb[77].mxu0  ;;  %v14313_v19 = vld [vmem:[%s17824_s3 + $0x124] ss:$12 sps:$4 sm:$0xff]   ;;  %v14311_v18 = vld [vmem:[%s17824_s3 + $0x120] ss:$12 sps:$4 sm:$0xff]  }
 0x38c   : > { %v3087_v7 = vpop.f32.mrb[78].mxu0  ;;  %v14316_v16 = vld [vmem:[%s17824_s3 + $0x13c] ss:$12 sps:$4 sm:$0xff]  }
 0x38d   : > { %v3176_v14 = vadd.f32 %v15996_v46, %v3135_v22  ;;  %v3136_v48 = vadd.f32 %v3087_v7, %v15979_v53  ;;  %v12734_v15 = vpop.f32.mrb[79].mxu0  ;;  %3723 = vmatpush1.bf16.msra.mxu1 %v3311_v20  ;;  %v14314_v20 = vld [vmem:[%s17824_s3 + $0x138] ss:$12 sps:$4 sm:$0xff]   ;;  %v14319_v22 = vld [vmem:[%s17824_s3 + $0x154] ss:$12 sps:$4 sm:$0xff]  }
 0x38e   : > { %3724 = vmatprep.subr.bf16.mxu1 %v14682_v21  ;;  %v14317_v5 = vld [vmem:[%s17824_s3 + $0x150] ss:$12 sps:$4 sm:$0xff]   ;;  %v14322_v7 = vld [vmem:[%s17824_s3 + $0x16c] ss:$12 sps:$4 sm:$0xff]  }
 0x38f   : > { %v3177_v26 = vadd.f32 %v15996_v46, %v3136_v48  ;;  %v3210_v60 = vmax.f32 %v3176_v14, 0.0  ;;  %v14320_v14 = vld [vmem:[%s17824_s3 + $0x168] ss:$12 sps:$4 sm:$0xff]   ;;  %v14325_v48 = vld [vmem:[%s17824_s3 + $0x184] ss:$12 sps:$4 sm:$0xff]  }
 0x390   : > { %v14323_v15 = vld [vmem:[%s17824_s3 + $0x180] ss:$12 sps:$4 sm:$0xff]  }
 0x391   : > { %v3211_v55 = vmax.f32 %v3177_v26, 0.0  ;;  %v14328_v26 = vld [vmem:[%s17824_s3 + $0x19c] ss:$12 sps:$4 sm:$0xff]  }
 0x392   : > { %v3092_v8 = vpop.f32.mrb[80].mxu0 }
 0x393   : > { %v3312_v45 = vpack.c.bf16 %v3211_v55, %v3210_v60  ;;  %v3137_v41 = vadd.f32 %v3092_v8, %v15983_v52  ;;  %v12737_v12 = vpop.f32.mrb[81].mxu0  ;;  %v14326_v60 = vld [vmem:[%s17824_s3 + $0x198] ss:$12 sps:$4 sm:$0xff]   ;;  %v14331_v55 = vld [vmem:[%s17824_s3 + $0x1b4] ss:$12 sps:$4 sm:$0xff]  }
 0x394   : > { %v3095_v32 = vpop.f32.mrb[82].mxu0  ;;  %v14329_v8 = vld [vmem:[%s17824_s3 + $0x1b0] ss:$12 sps:$4 sm:$0xff]   ;;  %v14332_v12 = vld [vmem:[%s17824_s3 + $0x1c8] ss:$12 sps:$4 sm:$0xff]  }
 0x395   : > { %v3178_v50 = vadd.f32 %v15996_v46, %v3137_v41  ;;  %v3138_v25 = vadd.f32 %v3095_v32, %v15985_v13  ;;  %v12738_v33 = vpop.f32.mrb[83].mxu0  ;;  %3725 = vmatpush1.bf16.msra.mxu1 %v3312_v45  ;;  %v14334_v45 = vld [vmem:[%s17824_s3 + $0x1cc] ss:$12 sps:$4 sm:$0xff]   ;;  %v3296_v41 = vld [vmem:[%s17824_s3 + $0x1e0] sm:$0x33] }
 0x396   : > { %3726 = vmatprep.subr.bf16.mxu1 %v14682_v21  ;;  %v14280_v21 = vld [vmem:[%s17824_s3 + $0x1c] ss:$12 sps:$4 sm:$0xff]   ;;  %v10740_v32 = vcombine.high %v3296_v41, %v3296_v41  ;;  %v14338_v33 = vld [vmem:[%s17824_s3 + $0x20] ss:$12 sps:$4 sm:$0xff]  }
 0x397   : > { %v3179_v53 = vadd.f32 %v15996_v46, %v3138_v25  ;;  %v3212_v9 = vmax.f32 %v3178_v50, 0.0  ;;  %v10739_v50 = vcombine.low %v3296_v41, %v3296_v41  ;;  %v14337_v25 = vld [vmem:[%s17824_s3 + $0x8] ss:$12 sps:$4 sm:$0xff]  }
 0x399   : > { %v3213_v4 = vmax.f32 %v3179_v53, 0.0  ;;  %v14339_v53 = vld [vmem:[%s17824_s3 + $0x38] ss:$12 sps:$4 sm:$0xff]  }
 0x39a   : > { %v3100_v62 = vpop.f32.mrb[84].mxu0 }
 0x39b   : > { %v3313_v17 = vpack.c.bf16 %v3213_v4, %v3212_v9  ;;  %v3139_v10 = vadd.f32 %v3100_v62, %v15989_v23  ;;  %v12741_v51 = vpop.f32.mrb[85].mxu0  ;;  %v14340_v9 = vld [vmem:[%s17824_s3 + $0x50] ss:$12 sps:$4 sm:$0xff]   ;;  %v14341_v4 = vld [vmem:[%s17824_s3 + $0x68] ss:$12 sps:$4 sm:$0xff]   ;;  %v14358_v62 = vld [vmem:[%s17825_s4 + $0x40] sm:$0xff]  }
 0x39c   : > { %v3103_v52 = vpop.f32.mrb[86].mxu0  ;;  %12829 = vmatprep.subr.bf16.mxu0 %v14358_v62  ;;  %v14343_v51 = vld [vmem:[%s17824_s3 + $0x98] ss:$12 sps:$4 sm:$0xff]  }
 0x39d   : > { %v3180_v13 = vadd.f32 %v15996_v46, %v3139_v10  ;;  %v3140_v34 = vadd.f32 %v3103_v52, %v15991_v44  ;;  %3727 = vmatpush1.bf16.msra.mxu1 %v3313_v17  ;;  %v12742_v58 = vpop.f32.mrb[87].mxu0  ;;  %v14359_v17 = vld [vmem:[%s17825_s4 + $0x48] sm:$0xff]   ;;  %12830 = vmatpush3.bf16.msra.mxu0 %v14358_v62  ;;  %v14344_v52 = vld [vmem:[%s17824_s3 + $0xb0] ss:$12 sps:$4 sm:$0xff]  }
 0x39e   : > { %12743 = vmatprep.subr.bf16.mxu1 %v17834_v1  ;;  %v14342_v10 = vld [vmem:[%s17824_s3 + $0x80] ss:$12 sps:$4 sm:$0xff]   ;;  %12831 = vmatprep.subr.bf16.mxu0 %v14359_v17  ;;  %v14360_v58 = vld [vmem:[%s17825_s4 + $0x50] sm:$0xff]  }
 0x39f   : > { %v3181_v23 = vadd.f32 %v15996_v46, %v3140_v34  ;;  %v3214_v37 = vmax.f32 %v3180_v13, 0.0  ;;  %v14281_v46 = vld [vmem:[%s17824_s3 + $0x30] ss:$12 sps:$4 sm:$0xff]   ;;  %v14346_v13 = vld [vmem:[%s17824_s3 + $0xe0] ss:$12 sps:$4 sm:$0xff]  }
 0x3a0   : > { %3729 = vmatmul.mubr.bf16.vlgmr.msra.gmra.mrb[12].mxu1 %v14275_v28  ;;  %v14345_v28 = vld [vmem:[%s17824_s3 + $0xc8] ss:$12 sps:$4 sm:$0xff]   ;;  %v14347_v34 = vld [vmem:[%s17824_s3 + $0xf8] ss:$12 sps:$4 sm:$0xff]  }
 0x3a1   : > { %v3215_v3 = vmax.f32 %v3181_v23, 0.0  ;;  %3736 = vmatprep.mubr.bf16.mxu1 %v14280_v21  ;;  %12832 = vmatpush3.bf16.msra.mxu0 %v14359_v17  ;;  %v14348_v21 = vld [vmem:[%s17824_s3 + $0x110] ss:$12 sps:$4 sm:$0xff]  }
 0x3a2   : > { %12833 = vmatprep.subr.bf16.mxu0 %v14360_v58  ;;  %v14361_v23 = vld [vmem:[%s17825_s4 + $0x58] sm:$0xff]  }
 0x3a3   : > { %v3314_v44 = vpack.c.bf16 %v3215_v3, %v3214_v37  ;;  %v14363_v37 = vld [vmem:[%s17825_s4 + $0x68] sm:$0xff]  }
 0x3a4   : > { %v14350_v3 = vld [vmem:[%s17824_s3 + $0x140] ss:$12 sps:$4 sm:$0xff]  }
 0x3a5   : > { %v3694_v56 = vand.u32 %v3692_v40, %v3314_v44  ;;  %12834 = vmatpush3.bf16.msra.mxu0 %v14360_v58  ;;  %v14364_v40 = vld [vmem:[%s17825_s4 + $0x70] sm:$0xff]   ;;  %v14365_v44 = vld [vmem:[%s17825_s4 + $0x78] sm:$0xff]  }
 0x3a6   : > { %12835 = vmatprep.subr.bf16.mxu0 %v14361_v23  ;;  %v14372_v58 = vld [vmem:[%s17825_s4 + $0x30] sm:$0xff]  }
 0x3a7   : > { %12744 = vmatpush3.bf16.msra.mxu1 %v3694_v56  ;;  %v14352_v56 = vld [vmem:[%s17824_s3 + $0x170] ss:$12 sps:$4 sm:$0xff]  }
 0x3a8   : > { %3737 = vmatmul.mubr.bf16.gmra.mrb[16].mxu1 %v14278_v24  ;;  %v14351_v24 = vld [vmem:[%s17824_s3 + $0x158] ss:$12 sps:$4 sm:$0xff]  }
 0x3a9   : > { %3744 = vmatprep.mubr.bf16.mxu1 %v14283_v43  ;;  %12836 = vmatpush3.bf16.msra.mxu0 %v14361_v23  ;;  %v14353_v43 = vld [vmem:[%s17824_s3 + $0x188] ss:$12 sps:$4 sm:$0xff]  }
 0x3aa   : > { %12837 = vmatprep.subr.bf16.mxu0 %v14362_v0 }
 0x3ad   : > { %12838 = vmatpush3.bf16.msra.mxu0 %v14362_v0 }
 0x3ae   : > { %12839 = vmatprep.subr.bf16.mxu0 %v14363_v37 }
 0x3b0   : > { %3745 = vmatmul.mubr.bf16.gmra.mrb[20].mxu1 %v14281_v46  ;;  %v14354_v46 = vld [vmem:[%s17824_s3 + $0x1a0] ss:$12 sps:$4 sm:$0xff]  }
 0x3b1   : > { %3752 = vmatprep.mubr.bf16.mxu1 %v14286_v35  ;;  %12840 = vmatpush3.bf16.msra.mxu0 %v14363_v37  ;;  %v14355_v35 = vld [vmem:[%s17824_s3 + $0x1b8] ss:$12 sps:$4 sm:$0xff]  }
 0x3b2   : > { %12841 = vmatprep.subr.bf16.mxu0 %v14364_v40 }
 0x3b5   : > { %12842 = vmatpush3.bf16.msra.mxu0 %v14364_v40 }
 0x3b6   : > { %12843 = vmatprep.subr.bf16.mxu0 %v14365_v44 }
 0x3b8   : > { %3753 = vmatmul.mubr.bf16.gmra.mrb[24].mxu1 %v14284_v11  ;;  %v14356_v11 = vld [vmem:[%s17824_s3 + $0x1d0] ss:$12 sps:$4 sm:$0xff]  }
 0x3b9   : > { %3760 = vmatprep.mubr.bf16.mxu1 %v14289_v57  ;;  %12844 = vmatpush3.bf16.msra.mxu0 %v14365_v44  ;;  %v14357_v57 = vld [vmem:[%s17824_s3 + $0x1e8] ss:$0 sps:$4 sm:$0x33]   ;;  %v14373_v44 = vld [vmem:[%s17825_s4 + $0x38] sm:$0xff]  }
 0x3c0   : > { %3761 = vmatmul.mubr.bf16.gmra.mrb[28].mxu1 %v14287_v38  ;;  %v14366_v38 = vld [vmem:[%s17825_s4] sm:$0xff]  }
 0x3c1   : > { %3768 = vmatprep.mubr.bf16.mxu1 %v14292_v61  ;;  %12881 = vmatprep.subr.bf16.mxu0 %v14366_v38 }
 0x3c8   : > { %3769 = vmatmul.mubr.bf16.gmra.mrb[32].mxu1 %v14290_v29 }
 0x3c9   : > { %3776 = vmatprep.mubr.bf16.mxu1 %v14295_v2 }
 0x3d0   : > { %3777 = vmatmul.mubr.bf16.gmra.mrb[36].mxu1 %v14293_v49 }
 0x3d1   : > { %3784 = vmatprep.mubr.bf16.mxu1 %v14298_v36 }
 0x3d8   : > { %3785 = vmatmul.mubr.bf16.gmra.mrb[40].mxu1 %v14296_v59 }
 0x3d9   : > { %3792 = vmatprep.mubr.bf16.mxu1 %v14301_v47 }
 0x3e0   : > { %3793 = vmatmul.mubr.bf16.gmra.mrb[44].mxu1 %v14299_v39 }
 0x3e1   : > { %3800 = vmatprep.mubr.bf16.mxu1 %v14304_v31 }
 0x3e8   : > { %3801 = vmatmul.mubr.bf16.gmra.mrb[48].mxu1 %v14302_v6 }
 0x3e9   : > { %3808 = vmatprep.mubr.bf16.mxu1 %v14307_v54 }
 0x3f0   : > { %3809 = vmatmul.mubr.bf16.gmra.mrb[52].mxu1 %v14305_v27 }
 0x3f1   : > { %3816 = vmatprep.mubr.bf16.mxu1 %v14310_v63 }
 0x3f8   : > { %3817 = vmatmul.mubr.bf16.gmra.mrb[56].mxu1 %v14308_v30 }
 0x3f9   : > { %3824 = vmatprep.mubr.bf16.mxu1 %v14313_v19 }
 0x400   : > { %3825 = vmatmul.mubr.bf16.gmra.mrb[60].mxu1 %v14311_v18 }
 0x401   : > { %3832 = vmatprep.mubr.bf16.mxu1 %v14316_v16 }
 0x408   : > { %3833 = vmatmul.mubr.bf16.gmra.mrb[64].mxu1 %v14314_v20 }
 0x409   : > { %3840 = vmatprep.mubr.bf16.mxu1 %v14319_v22 }
 0x410   : > { %3841 = vmatmul.mubr.bf16.gmra.mrb[68].mxu1 %v14317_v5 }
 0x411   : > { %3848 = vmatprep.mubr.bf16.mxu1 %v14322_v7 }
 0x418   : > { %3849 = vmatmul.mubr.bf16.gmra.mrb[72].mxu1 %v14320_v14 }
 0x419   : > { %3856 = vmatprep.mubr.bf16.mxu1 %v14325_v48 }
 0x420   : > { %3857 = vmatmul.mubr.bf16.gmra.mrb[76].mxu1 %v14323_v15  ;;  %v14367_v15 = vld [vmem:[%s17825_s4 + $0x8] sm:$0xff]  }
 0x421   : > { %3864 = vmatprep.mubr.bf16.mxu1 %v14328_v26 }
 0x428   : > { %3865 = vmatmul.mubr.bf16.gmra.mrb[80].mxu1 %v14326_v60 }
 0x429   : > { %3872 = vmatprep.mubr.bf16.mxu1 %v14331_v55 }
 0x430   : > { %3873 = vmatmul.mubr.bf16.gmra.mrb[84].mxu1 %v14329_v8  ;;  %v14368_v8 = vld [vmem:[%s17825_s4 + $0x10] sm:$0xff]  }
 0x431   : > { %3880 = vmatprep.mubr.bf16.mxu1 %v14334_v45 }
 0x438   : > { %3881 = vmatmul.mubr.bf16.gmra.mrb[88].mxu1 %v14332_v12 }
 0x439   : > { %3888 = vmatprep.mubr.bf16.mxu1 %v10740_v32 }
 0x440   : > { %3889 = vmatmul.mubr.bf16.gmra.mrb[92].mxu1 %v10739_v50  ;;  %v14369_v50 = vld [vmem:[%s17825_s4 + $0x18] sm:$0xff]  }
 0x441   : > { %12745 = vmatprep.mubr.msk.bf16.mxu1 %vm14681_vm1, %v17834_v1 }
 0x448   : > { %12746 = vmatmul.mubr.msk.bf16.vlgmr.msra.gmra.mrb[12].mxu1 %vm3625_vm5, %v14337_v25 }
 0x449   : > { %12749 = vmatprep.mubr.msk.bf16.mxu1 %vm14681_vm1, %v17834_v1 }
 0x450   : > { %12750 = vmatmul.mubr.msk.bf16.gmra.mrb[16].mxu1 %vm3625_vm5, %v14338_v33 }
 0x451   : > { %12753 = vmatprep.mubr.msk.bf16.mxu1 %vm14681_vm1, %v17834_v1 }
 0x458   : > { %12754 = vmatmul.mubr.msk.bf16.gmra.mrb[20].mxu1 %vm3625_vm5, %v14339_v53 }
 0x459   : > { %12757 = vmatprep.mubr.msk.bf16.mxu1 %vm14681_vm1, %v17834_v1 }
 0x460   : > { %12758 = vmatmul.mubr.msk.bf16.gmra.mrb[24].mxu1 %vm3625_vm5, %v14340_v9 }
 0x461   : > { %12761 = vmatprep.mubr.msk.bf16.mxu1 %vm14681_vm1, %v17834_v1 }
 0x468   : > { %12762 = vmatmul.mubr.msk.bf16.gmra.mrb[28].mxu1 %vm3625_vm5, %v14341_v4  ;;  %v14370_v4 = vld [vmem:[%s17825_s4 + $0x20] sm:$0xff]  }
 0x469   : > { %12765 = vmatprep.mubr.msk.bf16.mxu1 %vm14681_vm1, %v17834_v1 }
 0x470   : > { %12766 = vmatmul.mubr.msk.bf16.gmra.mrb[32].mxu1 %vm3625_vm5, %v14342_v10 }
 0x471   : > { %12769 = vmatprep.mubr.msk.bf16.mxu1 %vm14681_vm1, %v17834_v1 }
 0x478   : > { %12770 = vmatmul.mubr.msk.bf16.gmra.mrb[36].mxu1 %vm3625_vm5, %v14343_v51 }
 0x479   : > { %12773 = vmatprep.mubr.msk.bf16.mxu1 %vm14681_vm1, %v17834_v1 }
 0x480   : > { %12774 = vmatmul.mubr.msk.bf16.gmra.mrb[40].mxu1 %vm3625_vm5, %v14344_v52 }
 0x481   : > { %12777 = vmatprep.mubr.msk.bf16.mxu1 %vm14681_vm1, %v17834_v1 }
 0x488   : > { %12778 = vmatmul.mubr.msk.bf16.gmra.mrb[44].mxu1 %vm3625_vm5, %v14345_v28 }
 0x489   : > { %12781 = vmatprep.mubr.msk.bf16.mxu1 %vm14681_vm1, %v17834_v1 }
 0x490   : > { %12782 = vmatmul.mubr.msk.bf16.gmra.mrb[48].mxu1 %vm3625_vm5, %v14346_v13  ;;  %v14371_v13 = vld [vmem:[%s17825_s4 + $0x28] sm:$0xff]  }
 0x491   : > { %12785 = vmatprep.mubr.msk.bf16.mxu1 %vm14681_vm1, %v17834_v1 }
 0x498   : > { %12786 = vmatmul.mubr.msk.bf16.gmra.mrb[52].mxu1 %vm3625_vm5, %v14347_v34 }
 0x499   : > { %12789 = vmatprep.mubr.msk.bf16.mxu1 %vm14681_vm1, %v17834_v1 }
 0x4a0   : > { %12790 = vmatmul.mubr.msk.bf16.gmra.mrb[56].mxu1 %vm3625_vm5, %v14348_v21 }
 0x4a1   : > { %12793 = vmatprep.mubr.msk.bf16.mxu1 %vm14681_vm1, %v17834_v1 }
 0x4a8   : > { %12794 = vmatmul.mubr.msk.bf16.gmra.mrb[60].mxu1 %vm3625_vm5, %v14349_v42 }
 0x4a9   : > { %12797 = vmatprep.mubr.msk.bf16.mxu1 %vm14681_vm1, %v17834_v1 }
 0x4b0   : > { %12798 = vmatmul.mubr.msk.bf16.gmra.mrb[64].mxu1 %vm3625_vm5, %v14350_v3 }
 0x4b1   : > { %12801 = vmatprep.mubr.msk.bf16.mxu1 %vm14681_vm1, %v17834_v1 }
 0x4b8   : > { %12802 = vmatmul.mubr.msk.bf16.gmra.mrb[68].mxu1 %vm3625_vm5, %v14351_v24 }
 0x4b9   : > { %12805 = vmatprep.mubr.msk.bf16.mxu1 %vm14681_vm1, %v17834_v1 }
 0x4c0   : > { %12806 = vmatmul.mubr.msk.bf16.gmra.mrb[72].mxu1 %vm3625_vm5, %v14352_v56 }
 0x4c1   : > { %12809 = vmatprep.mubr.msk.bf16.mxu1 %vm14681_vm1, %v17834_v1 }
 0x4c8   : > { %12810 = vmatmul.mubr.msk.bf16.gmra.mrb[76].mxu1 %vm3625_vm5, %v14353_v43 }
 0x4c9   : > { %12813 = vmatprep.mubr.msk.bf16.mxu1 %vm14681_vm1, %v17834_v1 }
 0x4d0   : > { %12814 = vmatmul.mubr.msk.bf16.gmra.mrb[80].mxu1 %vm3625_vm5, %v14354_v46 }
 0x4d1   : > { %12817 = vmatprep.mubr.msk.bf16.mxu1 %vm14681_vm1, %v17834_v1 }
 0x4d8   : > { %12818 = vmatmul.mubr.msk.bf16.gmra.mrb[84].mxu1 %vm3625_vm5, %v14355_v35 }
 0x4d9   : > { %12821 = vmatprep.mubr.msk.bf16.mxu1 %vm14681_vm1, %v17834_v1 }
 0x4e0   : > { %12822 = vmatmul.mubr.msk.bf16.gmra.mrb[88].mxu1 %vm3625_vm5, %v14356_v11 }
 0x4e1   : > { %12825 = vmatprep.mubr.msk.bf16.mxu1 %vm14681_vm1, %v17834_v1 }
 0x4e8   : > { %12826 = vmatmul.mubr.msk.bf16.gmra.mrb[92].mxu1 %vm3625_vm5, %v14357_v57 }
 0x51b   : > { %v16359_v61 = vpop.f32.mrb[12].mxu1 }
 0x51c   : > { %4096 = vst [vmem:[#allocation2] sm:$0xff] %v16359_v61  ;;  %v12747_v29 = vpop.f32.mrb[13].mxu1 }
 0x51d   : > { %v16362_v2 = vpop.f32.mrb[14].mxu1 }
 0x51e   : > { %4097 = vst [vmem:[#allocation2 + $0x8] sm:$0xff] %v16362_v2  ;;  %v12748_v49 = vpop.f32.mrb[15].mxu1  ;;  %v4173_v36 = vpack.c.bf16 %v16362_v2, %v16359_v61  ;;  %v14376_v61 = vld [vmem:[%s17825_s4 + $0x90] sm:$0xff]  }
 0x523   : > { %v16367_v59 = vpop.f32.mrb[16].mxu1 }
 0x524   : > { %4098 = vst [vmem:[#allocation2 + $0x10] sm:$0xff] %v16367_v59  ;;  %v12751_v47 = vpop.f32.mrb[17].mxu1 }
 0x525   : > { %v16370_v39 = vpop.f32.mrb[18].mxu1  ;;  %v4207_v27 = vld [vmem:[#allocation2 + $0x1] sm:$0xff] }
 0x526   : > { %4099 = vst [vmem:[#allocation2 + $0x18] sm:$0xff] %v16370_v39  ;;  %v4174_v31 = vpack.c.bf16 %v16370_v39, %v16367_v59  ;;  %v12752_v6 = vpop.f32.mrb[19].mxu1  ;;  %v14377_v59 = vld [vmem:[%s17825_s4 + $0x98] sm:$0xff]   ;;  %v14378_v39 = vld [vmem:[%s17825_s4 + $0xa0] sm:$0xff]  }
 0x52b   : > { %v16375_v54 = vpop.f32.mrb[20].mxu1  ;;  %v4208_v63 = vld [vmem:[#allocation2 + $0x9] sm:$0xff] }
 0x52c   : > { %4100 = vst [vmem:[#allocation2 + $0x20] sm:$0xff] %v16375_v54  ;;  %v12755_v30 = vpop.f32.mrb[21].mxu1  ;;  %v4243_v19 = vpack.c.bf16 %v4208_v63, %v4207_v27 }
 0x52d   : > { %v16378_v18 = vpop.f32.mrb[22].mxu1  ;;  %v4209_v22 = vld [vmem:[#allocation2 + $0x11] sm:$0xff] }
 0x52e   : > { %4101 = vst [vmem:[#allocation2 + $0x28] sm:$0xff] %v16378_v18  ;;  %v12756_v16 = vpop.f32.mrb[23].mxu1  ;;  %12845 = vmatprep.mubr.bf16.mxu0 %v4243_v19  ;;  %v4175_v20 = vpack.c.bf16 %v16378_v18, %v16375_v54  ;;  %v14380_v54 = vld [vmem:[%s17825_s4 + $0xb0] sm:$0xff]   ;;  %v14381_v18 = vld [vmem:[%s17825_s4 + $0xb8] sm:$0xff]  }
 0x533   : > { %v4210_v5 = vld [vmem:[#allocation2 + $0x19] sm:$0xff]  ;;  %v16383_v7 = vpop.f32.mrb[24].mxu1 }
 0x534   : > { %v4244_v14 = vpack.c.bf16 %v4210_v5, %v4209_v22  ;;  %4102 = vst [vmem:[#allocation2 + $0x30] sm:$0xff] %v16383_v7  ;;  %v12759_v48 = vpop.f32.mrb[25].mxu1  ;;  %v16455_v5 = vld [vmem:[%s17825_s4 + $0x80] sm:$0xff]  }
 0x535   : > { %v16389_v26 = vpop.f32.mrb[26].mxu1  ;;  %v4211_v12 = vld [vmem:[#allocation2 + $0x21] sm:$0xff] }
 0x536   : > { %4103 = vst [vmem:[#allocation2 + $0x38] sm:$0xff] %v16389_v26  ;;  %v12760_v60 = vpop.f32.mrb[27].mxu1  ;;  %12846 = vmatmul.mubr.bf16.vlgmr.msra.gmra.mrb[88].mxu0 %v4244_v14  ;;  %v4176_v55 = vpack.c.bf16 %v16389_v26, %v16383_v7 }
 0x537   : > { %12882 = vmatpush3.bf16.msra.mxu0 %v14366_v38 }
 0x538   : > { %12883 = vmatprep.subr.bf16.mxu0 %v14367_v15 }
 0x53b   : > { %v16397_v45 = vpop.f32.mrb[28].mxu1  ;;  %12884 = vmatpush3.bf16.msra.mxu0 %v14367_v15  ;;  %v4212_v32 = vld [vmem:[#allocation2 + $0x29] sm:$0xff] }
 0x53c   : > { %4104 = vst [vmem:[#allocation2 + $0x40] sm:$0xff] %v16397_v45  ;;  %v12763_v41 = vpop.f32.mrb[29].mxu1  ;;  %12885 = vmatprep.subr.bf16.mxu0 %v14368_v8  ;;  %v4245_v33 = vpack.c.bf16 %v4212_v32, %v4211_v12 }
 0x53d   : > { %v16403_v25 = vpop.f32.mrb[30].mxu1  ;;  %v4213_v10 = vld [vmem:[#allocation2 + $0x31] sm:$0xff] }
 0x53e   : > { %4105 = vst [vmem:[#allocation2 + $0x48] sm:$0xff] %v16403_v25  ;;  %v12764_v53 = vpop.f32.mrb[31].mxu1  ;;  %v4177_v9 = vpack.c.bf16 %v16403_v25, %v16397_v45  ;;  %12849 = vmatprep.mubr.bf16.mxu0 %v4245_v33 }
 0x53f   : > { %12886 = vmatpush3.bf16.msra.mxu0 %v14368_v8 }
 0x540   : > { %12887 = vmatprep.subr.bf16.mxu0 %v14369_v50 }
 0x543   : > { %v16411_v62 = vpop.f32.mrb[32].mxu1  ;;  %12888 = vmatpush3.bf16.msra.mxu0 %v14369_v50  ;;  %v4214_v51 = vld [vmem:[#allocation2 + $0x39] sm:$0xff] }
 0x544   : > { %4106 = vst [vmem:[#allocation2 + $0x50] sm:$0xff] %v16411_v62  ;;  %v12767_v17 = vpop.f32.mrb[33].mxu1  ;;  %12889 = vmatprep.subr.bf16.mxu0 %v14370_v4  ;;  %v4246_v28 = vpack.c.bf16 %v4214_v51, %v4213_v10 }
 0x545   : > { %v16414_v52 = vpop.f32.mrb[34].mxu1  ;;  %v4215_v42 = vld [vmem:[#allocation2 + $0x41] sm:$0xff] }
 0x546   : > { %4107 = vst [vmem:[#allocation2 + $0x58] sm:$0xff] %v16414_v52  ;;  %v12768_v34 = vpop.f32.mrb[35].mxu1  ;;  %v4178_v21 = vpack.c.bf16 %v16414_v52, %v16411_v62  ;;  %12850 = vmatmul.mubr.bf16.gmra.mrb[92].mxu0 %v4246_v28  ;;  %v4729_v62 = vld [vmem:[#allocation2 + $0xa] sm:$0xff] }
 0x547   : > { %12890 = vmatpush3.bf16.msra.mxu0 %v14370_v4 }
 0x548   : > { %12891 = vmatprep.subr.bf16.mxu0 %v14371_v13 }
 0x54b   : > { %v16425_v23 = vpop.f32.mrb[36].mxu1  ;;  %v4216_v0 = vld [vmem:[#allocation2 + $0x49] sm:$0xff]  ;;  %12892 = vmatpush3.bf16.msra.mxu0 %v14371_v13 }
 0x54c   : > { %4108 = vst [vmem:[#allocation2 + $0x60] sm:$0xff] %v16425_v23  ;;  %v12771_v37 = vpop.f32.mrb[37].mxu1  ;;  %v4247_v3 = vpack.c.bf16 %v4216_v0, %v4215_v42  ;;  %12893 = vmatprep.subr.bf16.mxu0 %v14372_v58 }
 0x54d   : > { %v16428_v40 = vpop.f32.mrb[38].mxu1  ;;  %v4217_v46 = vld [vmem:[#allocation2 + $0x51] sm:$0xff] }
 0x54e   : > { %4109 = vst [vmem:[#allocation2 + $0x68] sm:$0xff] %v16428_v40  ;;  %v12772_v24 = vpop.f32.mrb[39].mxu1  ;;  %12853 = vmatprep.mubr.bf16.mxu0 %v4247_v3  ;;  %v4179_v56 = vpack.c.bf16 %v16428_v40, %v16425_v23  ;;  %v4731_v40 = vld [vmem:[#allocation2 + $0x1a] sm:$0xff] }
 0x54f   : > { %12894 = vmatpush3.bf16.msra.mxu0 %v14372_v58 }
 0x550   : > { %12895 = vmatprep.subr.bf16.mxu0 %v14373_v44 }
 0x553   : > { %v16436_v43 = vpop.f32.mrb[40].mxu1  ;;  %v4218_v35 = vld [vmem:[#allocation2 + $0x59] sm:$0xff]  ;;  %12896 = vmatpush3.bf16.msra.mxu0 %v14373_v44 }
 0x554   : > { %4110 = vst [vmem:[#allocation2 + $0x70] sm:$0xff] %v16436_v43  ;;  %v12775_v11 = vpop.f32.mrb[41].mxu1  ;;  %v4248_v57 = vpack.c.bf16 %v4218_v35, %v4217_v46  ;;  %12933 = vmatprep.subr.bf16.mxu0 %v16455_v5 }
 0x555   : > { %v16439_v38 = vpop.f32.mrb[42].mxu1  ;;  %v4219_v6 = vld [vmem:[#allocation2 + $0x61] sm:$0xff] }
 0x556   : > { %4111 = vst [vmem:[#allocation2 + $0x78] sm:$0xff] %v16439_v38  ;;  %v12776_v29 = vpop.f32.mrb[43].mxu1  ;;  %12854 = vmatmul.mubr.bf16.gmra.mrb[96].mxu0 %v4248_v57  ;;  %v4180_v49 = vpack.c.bf16 %v16439_v38, %v16436_v43  ;;  %v4730_v43 = vld [vmem:[#allocation2 + $0x12] sm:$0xff] }
 0x557   : > { %v16602_v38 = vpack.c.bf16 %v4731_v40, %v4730_v43  ;;  %v14396_v40 = vld [vmem:[%s17825_s4 + $0x130] sm:$0xff]   ;;  %v14398_v43 = vld [vmem:[%s17825_s4 + $0x140] sm:$0xff]  }
 0x55b   : > { %v16444_v47 = vpop.f32.mrb[44].mxu1  ;;  %v4220_v27 = vld [vmem:[#allocation2 + $0x69] sm:$0xff] }
 0x55c   : > { %4112 = vst [vmem:[#allocation2 + $0x80] sm:$0xff] %v16444_v47  ;;  %v12779_v63 = vpop.f32.mrb[45].mxu1  ;;  %v4249_v30 = vpack.c.bf16 %v4220_v27, %v4219_v6 }
 0x55d   : > { %v16447_v19 = vpop.f32.mrb[46].mxu1  ;;  %v4221_v48 = vld [vmem:[#allocation2 + $0x71] sm:$0xff] }
 0x55e   : > { %4113 = vst [vmem:[#allocation2 + $0x88] sm:$0xff] %v16447_v19  ;;  %v12780_v16 = vpop.f32.mrb[47].mxu1  ;;  %12857 = vmatprep.mubr.bf16.mxu0 %v4249_v30  ;;  %v4181_v22 = vpack.c.bf16 %v16447_v19, %v16444_v47  ;;  %v14383_v47 = vld [vmem:[%s17825_s4 + $0xc8] sm:$0xff]  }
 0x563   : > { %v16458_v14 = vpop.f32.mrb[48].mxu1  ;;  %v4222_v15 = vld [vmem:[#allocation2 + $0x79] sm:$0xff] }
 0x564   : > { %4114 = vst [vmem:[#allocation2 + $0x90] sm:$0xff] %v16458_v14  ;;  %v12783_v60 = vpop.f32.mrb[49].mxu1  ;;  %v4250_v8 = vpack.c.bf16 %v4222_v15, %v4221_v48 }
 0x565   : > { %v16461_v41 = vpop.f32.mrb[50].mxu1  ;;  %v4223_v33 = vld [vmem:[#allocation2 + $0x81] sm:$0xff] }
 0x566   : > { %4115 = vst [vmem:[#allocation2 + $0x98] sm:$0xff] %v16461_v41  ;;  %v12784_v12 = vpop.f32.mrb[51].mxu1  ;;  %12858 = vmatmul.mubr.bf16.gmra.mrb[100].mxu0 %v4250_v8  ;;  %v4182_v32 = vpack.c.bf16 %v16461_v41, %v16458_v14  ;;  %v4737_v14 = vld [vmem:[#allocation2 + $0x4a] sm:$0xff]  ;;  %v4734_v41 = vld [vmem:[#allocation2 + $0x32] sm:$0xff] }
 0x56b   : > { %v16466_v50 = vpop.f32.mrb[52].mxu1  ;;  %v4224_v53 = vld [vmem:[#allocation2 + $0x89] sm:$0xff] }
 0x56c   : > { %4116 = vst [vmem:[#allocation2 + $0xa0] sm:$0xff] %v16466_v50  ;;  %v12787_v4 = vpop.f32.mrb[53].mxu1  ;;  %v4251_v17 = vpack.c.bf16 %v4224_v53, %v4223_v33 }
 0x56d   : > { %v16469_v10 = vpop.f32.mrb[54].mxu1  ;;  %v4225_v34 = vld [vmem:[#allocation2 + $0x91] sm:$0xff] }
 0x56e   : > { %4117 = vst [vmem:[#allocation2 + $0xa8] sm:$0xff] %v16469_v10  ;;  %v12788_v51 = vpop.f32.mrb[55].mxu1  ;;  %12861 = vmatprep.mubr.bf16.mxu0 %v4251_v17  ;;  %v4183_v28 = vpack.c.bf16 %v16469_v10, %v16466_v50  ;;  %v4736_v50 = vld [vmem:[#allocation2 + $0x42] sm:$0xff]  ;;  %v14385_v10 = vld [vmem:[%s17825_s4 + $0xd8] sm:$0xff]  }
 0x573   : > { %v16474_v13 = vpop.f32.mrb[56].mxu1  ;;  %v4226_v58 = vld [vmem:[#allocation2 + $0x99] sm:$0xff] }
 0x574   : > { %4118 = vst [vmem:[#allocation2 + $0xb0] sm:$0xff] %v16474_v13  ;;  %v12791_v42 = vpop.f32.mrb[57].mxu1  ;;  %v4252_v0 = vpack.c.bf16 %v4226_v58, %v4225_v34 }
 0x575   : > { %v16477_v37 = vpop.f32.mrb[58].mxu1  ;;  %v4227_v46 = vld [vmem:[#allocation2 + $0xa1] sm:$0xff] }
 0x576   : > { %4119 = vst [vmem:[#allocation2 + $0xb8] sm:$0xff] %v16477_v37  ;;  %v12792_v3 = vpop.f32.mrb[59].mxu1  ;;  %12862 = vmatmul.mubr.bf16.gmra.mrb[104].mxu0 %v4252_v0  ;;  %v4184_v44 = vpack.c.bf16 %v16477_v37, %v16474_v13  ;;  %v14386_v13 = vld [vmem:[%s17825_s4 + $0xe0] sm:$0xff]  }
 0x577   : > { %v4739_v37 = vld [vmem:[#allocation2 + $0x5a] sm:$0xff] }
 0x57b   : > { %v16482_v24 = vpop.f32.mrb[60].mxu1  ;;  %v4228_v35 = vld [vmem:[#allocation2 + $0xa9] sm:$0xff] }
 0x57c   : > { %4120 = vst [vmem:[#allocation2 + $0xc0] sm:$0xff] %v16482_v24  ;;  %v12795_v11 = vpop.f32.mrb[61].mxu1  ;;  %v4253_v57 = vpack.c.bf16 %v4228_v35, %v4227_v46 }
 0x57d   : > { %v16485_v29 = vpop.f32.mrb[62].mxu1  ;;  %v4229_v30 = vld [vmem:[#allocation2 + $0xb1] sm:$0xff] }
 0x57e   : > { %4121 = vst [vmem:[#allocation2 + $0xc8] sm:$0xff] %v16485_v29  ;;  %v12796_v6 = vpop.f32.mrb[63].mxu1  ;;  %12865 = vmatprep.mubr.bf16.mxu0 %v4253_v57  ;;  %v17840_v7 = vpack.c.bf16 %v16485_v29, %v16482_v24  ;;  %v4738_v24 = vld [vmem:[#allocation2 + $0x52] sm:$0xff] }
 0x57f   : > { %v16626_v29 = vpack.c.bf16 %v4739_v37, %v4738_v24  ;;  %v14399_v37 = vld [vmem:[%s17825_s4 + $0x148] sm:$0xff]   ;;  %v14400_v24 = vld [vmem:[%s17825_s4 + $0x150] sm:$0xff]  }
 0x583   : > { %v16490_v63 = vpop.f32.mrb[64].mxu1  ;;  %v4230_v16 = vld [vmem:[#allocation2 + $0xb9] sm:$0xff] }
 0x584   : > { %4122 = vst [vmem:[#allocation2 + $0xd0] sm:$0xff] %v16490_v63  ;;  %v12799_v48 = vpop.f32.mrb[65].mxu1  ;;  %v4254_v15 = vpack.c.bf16 %v4230_v16, %v4229_v30 }
 0x585   : > { %v16493_v60 = vpop.f32.mrb[66].mxu1  ;;  %v4231_v53 = vld [vmem:[#allocation2 + $0xc1] sm:$0xff] }
 0x586   : > { %4123 = vst [vmem:[#allocation2 + $0xd8] sm:$0xff] %v16493_v60  ;;  %v12800_v8 = vpop.f32.mrb[67].mxu1  ;;  %12866 = vmatmul.mubr.bf16.gmra.mrb[108].mxu0 %v4254_v15  ;;  %v17841_v26 = vpack.c.bf16 %v16493_v60, %v16490_v63  ;;  %v4740_v63 = vld [vmem:[#allocation2 + $0x62] sm:$0xff] }
 0x587   : > { %v14387_v60 = vld [vmem:[%s17825_s4 + $0xe8] sm:$0xff]  }
 0x58b   : > { %v16498_v33 = vpop.f32.mrb[68].mxu1  ;;  %v4232_v4 = vld [vmem:[#allocation2 + $0xc9] sm:$0xff] }
 0x58c   : > { %4124 = vst [vmem:[#allocation2 + $0xe0] sm:$0xff] %v16498_v33  ;;  %v12803_v17 = vpop.f32.mrb[69].mxu1  ;;  %v4255_v51 = vpack.c.bf16 %v4232_v4, %v4231_v53 }
 0x58d   : > { %v16501_v34 = vpop.f32.mrb[70].mxu1  ;;  %v4233_v3 = vld [vmem:[#allocation2 + $0xd1] sm:$0xff] }
 0x58e   : > { %4125 = vst [vmem:[#allocation2 + $0xe8] sm:$0xff] %v16501_v34  ;;  %v12804_v58 = vpop.f32.mrb[71].mxu1  ;;  %12869 = vmatprep.mubr.bf16.mxu0 %v4255_v51 }
 0x593   : > { %v16506_v0 = vpop.f32.mrb[72].mxu1  ;;  %v4234_v46 = vld [vmem:[#allocation2 + $0xd9] sm:$0xff] }
 0x594   : > { %4126 = vst [vmem:[#allocation2 + $0xf0] sm:$0xff] %v16506_v0  ;;  %v12807_v35 = vpop.f32.mrb[73].mxu1  ;;  %v4256_v11 = vpack.c.bf16 %v4234_v46, %v4233_v3 }
 0x595   : > { %v16509_v57 = vpop.f32.mrb[74].mxu1  ;;  %v4235_v48 = vld [vmem:[#allocation2 + $0xe1] sm:$0xff] }
 0x596   : > { %4127 = vst [vmem:[#allocation2 + $0xf8] sm:$0xff] %v16509_v57  ;;  %v12808_v6 = vpop.f32.mrb[75].mxu1  ;;  %12870 = vmatmul.mubr.bf16.gmra.mrb[112].mxu0 %v4256_v11  ;;  %v17843_v45 = vpack.c.bf16 %v16509_v57, %v16506_v0  ;;  %v4745_v0 = vld [vmem:[#allocation2 + $0x8a] sm:$0xff]  ;;  %v4742_v57 = vld [vmem:[#allocation2 + $0x72] sm:$0xff] }
 0x59b   : > { %v16514_v16 = vpop.f32.mrb[76].mxu1  ;;  %v4236_v15 = vld [vmem:[#allocation2 + $0xe9] sm:$0xff] }
 0x59c   : > { %4128 = vst [vmem:[#allocation2 + $0x100] sm:$0xff] %v16514_v16  ;;  %v12811_v8 = vpop.f32.mrb[77].mxu1  ;;  %v4257_v53 = vpack.c.bf16 %v4236_v15, %v4235_v48 }
 0x59d   : > { %v16517_v4 = vpop.f32.mrb[78].mxu1  ;;  %v4237_v3 = vld [vmem:[#allocation2 + $0xf1] sm:$0xff] }
 0x59e   : > { %4129 = vst [vmem:[#allocation2 + $0x108] sm:$0xff] %v16517_v4  ;;  %v12812_v17 = vpop.f32.mrb[79].mxu1  ;;  %12873 = vmatprep.mubr.bf16.mxu0 %v4257_v53  ;;  %v17844_v25 = vpack.c.bf16 %v16517_v4, %v16514_v16  ;;  %v4744_v16 = vld [vmem:[#allocation2 + $0x82] sm:$0xff]  ;;  %v14389_v4 = vld [vmem:[%s17825_s4 + $0xf8] sm:$0xff]  }
 0x5a3   : > { %v16522_v58 = vpop.f32.mrb[80].mxu1  ;;  %v4238_v46 = vld [vmem:[#allocation2 + $0xf9] sm:$0xff] }
 0x5a4   : > { %4130 = vst [vmem:[#allocation2 + $0x110] sm:$0xff] %v16522_v58  ;;  %v12815_v35 = vpop.f32.mrb[81].mxu1  ;;  %v4258_v11 = vpack.c.bf16 %v4238_v46, %v4237_v3 }
 0x5a5   : > { %v4069_v6 = vpop.f32.mrb[82].mxu1  ;;  %v4239_v8 = vld [vmem:[#allocation2 + $0x101] sm:$0xff] }
 0x5a6   : > { %4131 = vst [vmem:[#allocation2 + $0x118] sm:$0xff] %v4069_v6  ;;  %v12816_v48 = vpop.f32.mrb[83].mxu1  ;;  %12874 = vmatmul.mubr.bf16.gmra.mrb[116].mxu0 %v4258_v11  ;;  %v4747_v6 = vld [vmem:[#allocation2 + $0x9a] sm:$0xff] }
 0x5a7   : > { %v4749_v48 = vld [vmem:[#allocation2 + $0xaa] sm:$0xff] }
 0x5ab   : > { %v4074_v15 = vpop.f32.mrb[84].mxu1  ;;  %v4240_v1 = vld [vmem:[#allocation2 + $0x109] sm:$0xff] }
 0x5ac   : > { %4132 = vst [vmem:[#allocation2 + $0x120] sm:$0xff] %v4074_v15  ;;  %v12819_v53 = vpop.f32.mrb[85].mxu1  ;;  %v4259_v17 = vpack.c.bf16 %v4240_v1, %v4239_v8  ;;  %v14375_v1 = vld [vmem:[%s17825_s4 + $0x88] sm:$0xff]   ;;  %v4746_v15 = vld [vmem:[#allocation2 + $0x92] sm:$0xff] }
 0x5ad   : > { %v4077_v30 = vpop.f32.mrb[86].mxu1  ;;  %v4241_v51 = vld [vmem:[#allocation2 + $0x111] sm:$0xff]  ;;  %v4242_v42 = vld [vmem:[#allocation2 + $0x119] sm:$0x3f]  ;;  %v4773_v8 = vpack.c.bf16 %v4747_v6, %v4746_v15  ;;  %v4748_v53 = vld [vmem:[#allocation2 + $0xa2] sm:$0xff] }
 0x5ae   : > { %4133 = vst [vmem:[#allocation2 + $0x128] sm:$0xff] %v4077_v30  ;;  %v12820_v12 = vpop.f32.mrb[87].mxu1  ;;  %12877 = vmatprep.mubr.bf16.mxu0 %v4259_v17  ;;  %v4260_v27 = vpack.c.bf16 %v4242_v42, %v4241_v51  ;;  %v4743_v42 = vld [vmem:[#allocation2 + $0x7a] sm:$0xff]  ;;  %v16643_v51 = vpack.c.bf16 %v4745_v0, %v4744_v16  ;;  %v16650_v17 = vpack.c.bf16 %v4749_v48, %v4748_v53  ;;  %v14403_v6 = vld [vmem:[%s17825_s4 + $0x168] sm:$0xff]   ;;  %v14404_v15 = vld [vmem:[%s17825_s4 + $0x170] sm:$0xff]  }
 0x5af   : > { %v16638_v30 = vpack.c.bf16 %v4743_v42, %v4742_v57  ;;  %v14401_v42 = vld [vmem:[%s17825_s4 + $0x158] sm:$0xff]   ;;  %v14402_v57 = vld [vmem:[%s17825_s4 + $0x160] sm:$0xff]  }
 0x5b0   : > { %12878 = vmatmul.mubr.bf16.gmra.mrb[120].mxu0 %v4260_v27  ;;  %v5405_v16 = vld [vmem:[#allocation2 + $0x7b] sm:$0xff] }
 0x5b1   : > { %12897 = vmatprep.mubr.bf16.mxu0 %v4173_v36  ;;  %v5409_v53 = vld [vmem:[#allocation2 + $0x9b] sm:$0xff] }
 0x5b3   : > { %v4082_v3 = vpop.f32.mrb[88].mxu1 }
 0x5b4   : > { %4134 = vst [vmem:[#allocation2 + $0x130] sm:$0xff] %v4082_v3  ;;  %v12823_v46 = vpop.f32.mrb[89].mxu1  ;;  %v4751_v3 = vld [vmem:[#allocation2 + $0xba] sm:$0xff] }
 0x5b5   : > { %v4085_v35 = vpop.f32.mrb[90].mxu1  ;;  %v4753_v46 = vld [vmem:[#allocation2 + $0xca] sm:$0xff] }
 0x5b6   : > { %4135 = vst [vmem:[#allocation2 + $0x138] sm:$0xff] %v4085_v35  ;;  %v12824_v11 = vpop.f32.mrb[91].mxu1  ;;  %v4750_v35 = vld [vmem:[#allocation2 + $0xb2] sm:$0xff] }
 0x5b7   : > { %v4775_v11 = vpack.c.bf16 %v4751_v3, %v4750_v35  ;;  %v14405_v35 = vld [vmem:[%s17825_s4 + $0x178] sm:$0xff]  }
 0x5b8   : > { %12898 = vmatmul.mubr.bf16.vlgmr.msra.gmra.mrb[88].mxu0 %v4174_v31  ;;  %v14379_v31 = vld [vmem:[%s17825_s4 + $0xa8] sm:$0xff]  }
 0x5b9   : > { %12901 = vmatprep.mubr.bf16.mxu0 %v4175_v20  ;;  %12934 = vmatpush3.bf16.msra.mxu0 %v16455_v5  ;;  %v14382_v20 = vld [vmem:[%s17825_s4 + $0xc0] sm:$0xff]  }
 0x5ba   : > { %12935 = vmatprep.subr.bf16.mxu0 %v14375_v1  ;;  %v4735_v5 = vld [vmem:[#allocation2 + $0x3a] sm:$0xff] }
 0x5bb   : > { %v4090_v2 = vpop.f32.mrb[92].mxu1 }
 0x5bc   : > { %4136 = vst [vmem:[#allocation2 + $0x140] sm:$0xf] %v4090_v2  ;;  %v12827_v36 = vpop.f32.mrb[93].mxu1  ;;  %v4755_v2 = vld [vmem:[#allocation2 + $0xda] sm:$0xff] }
 0x5bd   : > { %v4093_v27 = vpop.f32.mrb[94].mxu1  ;;  %12936 = vmatpush3.bf16.msra.mxu0 %v14375_v1  ;;  %v4752_v1 = vld [vmem:[#allocation2 + $0xc2] sm:$0xff]  ;;  %v4757_v36 = vld [vmem:[#allocation2 + $0xea] sm:$0xff] }
 0x5be   : > { %v12828_v12 = vpop.f32.mrb[95].mxu1  ;;  %12937 = vmatprep.subr.bf16.mxu0 %v14376_v61  ;;  %v4754_v27 = vld [vmem:[#allocation2 + $0xd2] sm:$0xff] }
 0x5bf   : > { %v4777_v12 = vpack.c.bf16 %v4755_v2, %v4754_v27  ;;  %v5413_v2 = vld [vmem:[#allocation2 + $0xbb] sm:$0xff] }
 0x5c0   : > { %12902 = vmatmul.mubr.bf16.gmra.mrb[92].mxu0 %v4176_v55  ;;  %v17842_v55 = vpack.c.bf16 %v16501_v34, %v16498_v33  ;;  %v14388_v34 = vld [vmem:[%s17825_s4 + $0xf0] sm:$0xff]  }
 0x5c1   : > { %12905 = vmatprep.mubr.bf16.mxu0 %v4177_v9  ;;  %12938 = vmatpush3.bf16.msra.mxu0 %v14376_v61  ;;  %v4172_v9 = vld [vmem:[#allocation2 + $0x118] sm:$0x3f]  ;;  %v4776_v61 = vpack.c.bf16 %v4753_v46, %v4752_v1  ;;  %v14406_v1 = vld [vmem:[%s17825_s4 + $0x180] sm:$0xff]  }
 0x5c2   : > { %12939 = vmatprep.subr.bf16.mxu0 %v14377_v59  ;;  %v4190_v52 = vpack.c.bf16 %v4172_v9, %v16522_v58  ;;  %v14390_v58 = vld [vmem:[%s17825_s4 + $0x100] sm:$0xff]   ;;  %v14391_v9 = vld [vmem:[%s17825_s4 + $0x108] sm:$0xff]   ;;  %v5408_v46 = vld [vmem:[#allocation2 + $0x93] sm:$0xff] }
 0x5c5   : > { %12940 = vmatpush3.bf16.msra.mxu0 %v14377_v59  ;;  %v4756_v59 = vld [vmem:[#allocation2 + $0xe2] sm:$0xff] }
 0x5c6   : > { %12941 = vmatprep.subr.bf16.mxu0 %v14378_v39 }
 0x5c8   : > { %12906 = vmatmul.mubr.bf16.gmra.mrb[96].mxu0 %v4178_v21  ;;  %v4728_v21 = vld [vmem:[#allocation2 + $0x2] sm:$0xff] }
 0x5c9   : > { %12909 = vmatprep.mubr.bf16.mxu0 %v4179_v56  ;;  %12942 = vmatpush3.bf16.msra.mxu0 %v14378_v39  ;;  %v4764_v23 = vpack.c.bf16 %v4729_v62, %v4728_v21  ;;  %v5063_v56 = vld [vmem:[#allocation2 + $0x2a] sm:$0xff]  ;;  %v4778_v39 = vpack.c.bf16 %v4757_v36, %v4756_v59  ;;  %v14394_v21 = vld [vmem:[%s17825_s4 + $0x120] sm:$0xff]  }
 0x5ca   : > { %12943 = vmatprep.subr.bf16.mxu0 %v14379_v31  ;;  %v14392_v62 = vld [vmem:[%s17825_s4 + $0x110] sm:$0xff]   ;;  %v5410_v36 = vld [vmem:[#allocation2 + $0xa3] sm:$0xff] }
 0x5cd   : > { %12944 = vmatpush3.bf16.msra.mxu0 %v14379_v31  ;;  %v4759_v31 = vld [vmem:[#allocation2 + $0xfa] sm:$0xff] }
 0x5ce   : > { %12945 = vmatprep.subr.bf16.mxu0 %v14380_v54 }
 0x5d0   : > { %12910 = vmatmul.mubr.bf16.gmra.mrb[100].mxu0 %v4180_v49  ;;  %v5062_v49 = vld [vmem:[#allocation2 + $0x22] sm:$0xff] }
 0x5d1   : > { %12913 = vmatprep.mubr.bf16.mxu0 %v4181_v22  ;;  %12946 = vmatpush3.bf16.msra.mxu0 %v14380_v54  ;;  %v16607_v19 = vpack.c.bf16 %v5063_v56, %v5062_v49  ;;  %v14384_v22 = vld [vmem:[%s17825_s4 + $0xd0] sm:$0xff]   ;;  %v14397_v56 = vld [vmem:[%s17825_s4 + $0x138] sm:$0xff]  }
 0x5d2   : > { %12947 = vmatprep.subr.bf16.mxu0 %v14381_v18  ;;  %v4761_v54 = vld [vmem:[#allocation2 + $0x10a] sm:$0xff] }
 0x5d5   : > { %12948 = vmatpush3.bf16.msra.mxu0 %v14381_v18  ;;  %v4758_v18 = vld [vmem:[#allocation2 + $0xf2] sm:$0xff] }
 0x5d6   : > { %12985 = vmatprep.subr.bf16.mxu0 %v14382_v20 }
 0x5d8   : > { %12914 = vmatmul.mubr.bf16.gmra.mrb[104].mxu0 %v4182_v32  ;;  %v16614_v32 = vpack.c.bf16 %v4735_v5, %v4734_v41 }
 0x5d9   : > { %12917 = vmatprep.mubr.bf16.mxu0 %v4183_v28  ;;  %v16619_v28 = vpack.c.bf16 %v4737_v14, %v4736_v50  ;;  %v5392_v14 = vld [vmem:[#allocation2 + $0x13] sm:$0xff]  ;;  %v5397_v50 = vld [vmem:[#allocation2 + $0x3b] sm:$0xff] }
 0x5e0   : > { %12918 = vmatmul.mubr.bf16.gmra.mrb[108].mxu0 %v4184_v44  ;;  %v4741_v44 = vld [vmem:[#allocation2 + $0x6a] sm:$0xff] }
 0x5e1   : > { %12921 = vmatprep.mubr.bf16.mxu0 %v17840_v7  ;;  %v16631_v33 = vpack.c.bf16 %v4741_v44, %v4740_v63  ;;  %v4760_v7 = vld [vmem:[#allocation2 + $0x102] sm:$0xff] }
 0x5e2   : > { %v5401_v63 = vld [vmem:[#allocation2 + $0x5b] sm:$0xff] }
 0x5e8   : > { %12922 = vmatmul.mubr.bf16.gmra.mrb[112].mxu0 %v17841_v26  ;;  %v4780_v26 = vpack.c.bf16 %v4761_v54, %v4760_v7  ;;  %v5414_v54 = vld [vmem:[#allocation2 + $0xc3] sm:$0xff] }
 0x5e9   : > { %12925 = vmatprep.mubr.bf16.mxu0 %v17842_v55  ;;  %v4762_v55 = vld [vmem:[#allocation2 + $0x112] sm:$0xff] }
 0x5f0   : > { %12926 = vmatmul.mubr.bf16.gmra.mrb[116].mxu0 %v17843_v45  ;;  %v4763_v45 = vld [vmem:[#allocation2 + $0x11a] sm:$0x3f] }
 0x5f1   : > { %12929 = vmatprep.mubr.bf16.mxu0 %v17844_v25  ;;  %v4781_v25 = vpack.c.bf16 %v4763_v45, %v4762_v55  ;;  %v5418_v45 = vld [vmem:[#allocation2 + $0xe3] sm:$0xff] }
 0x5f8   : > { %12930 = vmatmul.mubr.bf16.gmra.mrb[120].mxu0 %v4190_v52  ;;  %v14393_v52 = vld [vmem:[%s17825_s4 + $0x118] sm:$0xff]  }
 0x5f9   : > { %12949 = vmatprep.mubr.bf16.mxu0 %v4764_v23  ;;  %v14395_v23 = vld [vmem:[%s17825_s4 + $0x128] sm:$0xff]  }
 0x600   : > { %12950 = vmatmul.mubr.bf16.vlgmr.msra.gmra.mrb[88].mxu0 %v16602_v38 }
 0x601   : > { %12953 = vmatprep.mubr.bf16.mxu0 %v16607_v19  ;;  %12986 = vmatpush3.bf16.msra.mxu0 %v14382_v20  ;;  %v4779_v20 = vpack.c.bf16 %v4759_v31, %v4758_v18  ;;  %v5417_v31 = vld [vmem:[#allocation2 + $0xdb] sm:$0xff] }
 0x602   : > { %12987 = vmatprep.subr.bf16.mxu0 %v14383_v47 }
 0x605   : > { %12988 = vmatpush3.bf16.msra.mxu0 %v14383_v47  ;;  %v5094_v47 = vld [vmem:[#allocation2 + $0x122] sm:$0xff] }
 0x606   : > { %12989 = vmatprep.subr.bf16.mxu0 %v14384_v22 }
 0x608   : > { %12954 = vmatmul.mubr.bf16.gmra.mrb[92].mxu0 %v16614_v32 }
 0x609   : > { %12957 = vmatprep.mubr.bf16.mxu0 %v16619_v28  ;;  %12990 = vmatpush3.bf16.msra.mxu0 %v14384_v22  ;;  %v5393_v22 = vld [vmem:[#allocation2 + $0x1b] sm:$0xff] }
 0x60a   : > { %12991 = vmatprep.subr.bf16.mxu0 %v14385_v10  ;;  %v5428_v41 = vpack.c.bf16 %v5393_v22, %v5392_v14  ;;  %v5724_v22 = vld [vmem:[#allocation2 + $0x14] sm:$0xff]  ;;  %v5727_v14 = vld [vmem:[#allocation2 + $0x2c] sm:$0xff] }
 0x60d   : > { %12992 = vmatpush3.bf16.msra.mxu0 %v14385_v10  ;;  %v5394_v10 = vld [vmem:[#allocation2 + $0x23] sm:$0xff] }
 0x60e   : > { %12993 = vmatprep.subr.bf16.mxu0 %v14386_v13 }
 0x610   : > { %12958 = vmatmul.mubr.bf16.gmra.mrb[96].mxu0 %v16626_v29 }
 0x611   : > { %12961 = vmatprep.mubr.bf16.mxu0 %v16631_v33  ;;  %12994 = vmatpush3.bf16.msra.mxu0 %v14386_v13  ;;  %v5396_v13 = vld [vmem:[#allocation2 + $0x33] sm:$0xff] }
 0x612   : > { %12995 = vmatprep.subr.bf16.mxu0 %v14387_v60  ;;  %v5430_v44 = vpack.c.bf16 %v5397_v50, %v5396_v13 }
 0x615   : > { %12996 = vmatpush3.bf16.msra.mxu0 %v14387_v60  ;;  %v5398_v60 = vld [vmem:[#allocation2 + $0x43] sm:$0xff] }
 0x616   : > { %12997 = vmatprep.subr.bf16.mxu0 %v14388_v34 }
 0x618   : > { %12962 = vmatmul.mubr.bf16.gmra.mrb[100].mxu0 %v16638_v30 }
 0x619   : > { %12965 = vmatprep.mubr.bf16.mxu0 %v16643_v51  ;;  %12998 = vmatpush3.bf16.msra.mxu0 %v14388_v34  ;;  %v5400_v34 = vld [vmem:[#allocation2 + $0x53] sm:$0xff] }
 0x61a   : > { %12999 = vmatprep.subr.bf16.mxu0 %v14389_v4  ;;  %v5432_v0 = vpack.c.bf16 %v5401_v63, %v5400_v34 }
 0x61d   : > { %13000 = vmatpush3.bf16.msra.mxu0 %v14389_v4  ;;  %v5402_v4 = vld [vmem:[#allocation2 + $0x63] sm:$0xff] }
 0x61e   : > { %13037 = vmatprep.subr.bf16.mxu0 %v14390_v58 }
 0x620   : > { %12966 = vmatmul.mubr.bf16.gmra.mrb[104].mxu0 %v4773_v8 }
 0x621   : > { %12969 = vmatprep.mubr.bf16.mxu0 %v16650_v17 }
 0x628   : > { %12970 = vmatmul.mubr.bf16.gmra.mrb[108].mxu0 %v4775_v11 }
 0x629   : > { %12973 = vmatprep.mubr.bf16.mxu0 %v4776_v61 }
 0x630   : > { %12974 = vmatmul.mubr.bf16.gmra.mrb[112].mxu0 %v4777_v12 }
 0x631   : > { %12977 = vmatprep.mubr.bf16.mxu0 %v4778_v39 }
 0x638   : > { %12978 = vmatmul.mubr.bf16.gmra.mrb[116].mxu0 %v4779_v20 }
 0x639   : > { %12981 = vmatprep.mubr.bf16.mxu0 %v4780_v26 }
 0x640   : > { %12982 = vmatmul.mubr.bf16.gmra.mrb[120].mxu0 %v4781_v25 }
 0x641   : > { %13001 = vmatprep.mubr.bf16.mxu0 %v16602_v38  ;;  %v5093_v38 = vld [vmem:[#allocation2 + $0x11a] sm:$0xff] }
 0x642   : > { %v5112_v49 = vpack.c.bf16 %v5093_v38, %v4762_v55  ;;  %v5421_v55 = vld [vmem:[#allocation2 + $0xfb] sm:$0xff]  ;;  %v5427_v38 = vld [vmem:[#allocation2 + $0x12b] sm:$0x3f] }
 0x648   : > { %13002 = vmatmul.mubr.bf16.vlgmr.msra.gmra.mrb[88].mxu0 %v16607_v19  ;;  %v5095_v19 = vld [vmem:[#allocation2 + $0x12a] sm:$0x3f] }
 0x649   : > { %13005 = vmatprep.mubr.bf16.mxu0 %v16614_v32  ;;  %13038 = vmatpush3.bf16.msra.mxu0 %v14390_v58  ;;  %v5113_v5 = vpack.c.bf16 %v5095_v19, %v5094_v47  ;;  %v5395_v32 = vld [vmem:[#allocation2 + $0x2b] sm:$0xff]  ;;  %v5404_v58 = vld [vmem:[#allocation2 + $0x73] sm:$0xff]  ;;  %v5426_v47 = vld [vmem:[#allocation2 + $0x123] sm:$0xff] }
 0x64a   : > { %13039 = vmatprep.subr.bf16.mxu0 %v14391_v9  ;;  %v5434_v48 = vpack.c.bf16 %v5405_v16, %v5404_v58  ;;  %v5445_v19 = vpack.c.bf16 %v5427_v38, %v5426_v47  ;;  %v5758_v38 = vld [vmem:[#allocation2 + $0x124] sm:$0xff] }
 0x64b   : > { %v6056_v47 = vld [vmem:[#allocation2 + $0x24] sm:$0xff] }
 0x64d   : > { %13040 = vmatpush3.bf16.msra.mxu0 %v14391_v9  ;;  %v5420_v9 = vld [vmem:[#allocation2 + $0xf3] sm:$0xff] }
 0x64e   : > { %13041 = vmatprep.subr.bf16.mxu0 %v14392_v62 }
 0x650   : > { %13006 = vmatmul.mubr.bf16.gmra.mrb[92].mxu0 %v16619_v28  ;;  %v5429_v28 = vpack.c.bf16 %v5395_v32, %v5394_v10  ;;  %v5726_v32 = vld [vmem:[#allocation2 + $0x24] sm:$0xff]  ;;  %v5728_v10 = vld [vmem:[#allocation2 + $0x34] sm:$0xff] }
 0x651   : > { %13009 = vmatprep.mubr.bf16.mxu0 %v16626_v29  ;;  %13042 = vmatpush3.bf16.msra.mxu0 %v14392_v62  ;;  %v5399_v29 = vld [vmem:[#allocation2 + $0x4b] sm:$0xff]  ;;  %v5442_v62 = vpack.c.bf16 %v5421_v55, %v5420_v9  ;;  %v5761_v50 = vpack.c.bf16 %v5727_v14, %v5726_v32 }
 0x652   : > { %13043 = vmatprep.subr.bf16.mxu0 %v14393_v52  ;;  %v5755_v9 = vld [vmem:[#allocation2 + $0x10c] sm:$0xff] }
 0x653   : > { %v14416_v32 = vld [vmem:[%s17825_s4 + $0x1d0] sm:$0xff]  }
 0x655   : > { %13044 = vmatpush3.bf16.msra.mxu0 %v14393_v52  ;;  %v5423_v52 = vld [vmem:[#allocation2 + $0x10b] sm:$0xff] }
 0x656   : > { %13045 = vmatprep.subr.bf16.mxu0 %v14394_v21 }
 0x658   : > { %13010 = vmatmul.mubr.bf16.gmra.mrb[96].mxu0 %v16631_v33  ;;  %v5431_v33 = vpack.c.bf16 %v5399_v29, %v5398_v60  ;;  %v5730_v29 = vld [vmem:[#allocation2 + $0x44] sm:$0xff]  ;;  %v5732_v60 = vld [vmem:[#allocation2 + $0x54] sm:$0xff] }
 0x659   : > { %13013 = vmatprep.mubr.bf16.mxu0 %v16638_v30  ;;  %13046 = vmatpush3.bf16.msra.mxu0 %v14394_v21  ;;  %v5403_v30 = vld [vmem:[#allocation2 + $0x6b] sm:$0xff]  ;;  %v5425_v21 = vld [vmem:[#allocation2 + $0x11b] sm:$0xff] }
 0x65a   : > { %13047 = vmatprep.subr.bf16.mxu0 %v14395_v23 }
 0x65d   : > { %13048 = vmatpush3.bf16.msra.mxu0 %v14395_v23  ;;  %v5422_v23 = vld [vmem:[#allocation2 + $0x103] sm:$0xff] }
 0x65e   : > { %13049 = vmatprep.subr.bf16.mxu0 %v14396_v40 }
 0x660   : > { %13014 = vmatmul.mubr.bf16.gmra.mrb[100].mxu0 %v16643_v51  ;;  %v5433_v51 = vpack.c.bf16 %v5403_v30, %v5402_v4  ;;  %v5734_v30 = vld [vmem:[#allocation2 + $0x64] sm:$0xff]  ;;  %v5736_v4 = vld [vmem:[#allocation2 + $0x74] sm:$0xff] }
 0x661   : > { %13017 = vmatprep.mubr.bf16.mxu0 %v4773_v8  ;;  %13050 = vmatpush3.bf16.msra.mxu0 %v14396_v40  ;;  %v5407_v8 = vld [vmem:[#allocation2 + $0x8b] sm:$0xff]  ;;  %v5443_v40 = vpack.c.bf16 %v5423_v52, %v5422_v23  ;;  %v5756_v23 = vld [vmem:[#allocation2 + $0x114] sm:$0xff] }
 0x662   : > { %13051 = vmatprep.subr.bf16.mxu0 %v14397_v56  ;;  %v5754_v52 = vld [vmem:[#allocation2 + $0x104] sm:$0xff] }
 0x665   : > { %13052 = vmatpush3.bf16.msra.mxu0 %v14397_v56  ;;  %v5424_v56 = vld [vmem:[#allocation2 + $0x113] sm:$0xff] }
 0x666   : > { %13089 = vmatprep.subr.bf16.mxu0 %v14398_v43 }
 0x668   : > { %13018 = vmatmul.mubr.bf16.gmra.mrb[104].mxu0 %v16650_v17  ;;  %v5406_v17 = vld [vmem:[#allocation2 + $0x83] sm:$0xff] }
 0x669   : > { %13021 = vmatprep.mubr.bf16.mxu0 %v4775_v11  ;;  %v5435_v3 = vpack.c.bf16 %v5407_v8, %v5406_v17  ;;  %v5436_v11 = vpack.c.bf16 %v5409_v53, %v5408_v46  ;;  %v5738_v8 = vld [vmem:[#allocation2 + $0x84] sm:$0xff]  ;;  %v5740_v17 = vld [vmem:[#allocation2 + $0x94] sm:$0xff] }
 0x670   : > { %13022 = vmatmul.mubr.bf16.gmra.mrb[108].mxu0 %v4776_v61  ;;  %v5411_v61 = vld [vmem:[#allocation2 + $0xab] sm:$0xff] }
 0x671   : > { %13025 = vmatprep.mubr.bf16.mxu0 %v4777_v12  ;;  %v5437_v27 = vpack.c.bf16 %v5411_v61, %v5410_v36  ;;  %v5412_v12 = vld [vmem:[#allocation2 + $0xb3] sm:$0xff]  ;;  %v5742_v61 = vld [vmem:[#allocation2 + $0xa4] sm:$0xff] }
 0x672   : > { %v5438_v59 = vpack.c.bf16 %v5413_v2, %v5412_v12  ;;  %v5744_v36 = vld [vmem:[#allocation2 + $0xb4] sm:$0xff]  ;;  %v5747_v12 = vld [vmem:[#allocation2 + $0xcc] sm:$0xff] }
 0x678   : > { %13026 = vmatmul.mubr.bf16.gmra.mrb[112].mxu0 %v4778_v39  ;;  %v5415_v39 = vld [vmem:[#allocation2 + $0xcb] sm:$0xff] }
 0x679   : > { %13029 = vmatprep.mubr.bf16.mxu0 %v4779_v20  ;;  %v5439_v18 = vpack.c.bf16 %v5415_v39, %v5414_v54  ;;  %v5416_v20 = vld [vmem:[#allocation2 + $0xd3] sm:$0xff]  ;;  %v5746_v39 = vld [vmem:[#allocation2 + $0xc4] sm:$0xff] }
 0x67a   : > { %v5440_v7 = vpack.c.bf16 %v5417_v31, %v5416_v20  ;;  %v16758_v31 = vpack.c.bf16 %v5747_v12, %v5746_v39  ;;  %v5748_v54 = vld [vmem:[#allocation2 + $0xd4] sm:$0xff]  ;;  %v5751_v20 = vld [vmem:[#allocation2 + $0xec] sm:$0xff] }
 0x67b   : > { %v14427_v12 = vld [vmem:[%s17825_s4 + $0x228] sm:$0xff]   ;;  %v14428_v39 = vld [vmem:[%s17825_s4 + $0x230] sm:$0xff]  }
 0x680   : > { %13030 = vmatmul.mubr.bf16.gmra.mrb[116].mxu0 %v4780_v26  ;;  %v5419_v26 = vld [vmem:[#allocation2 + $0xeb] sm:$0xff] }
 0x681   : > { %13033 = vmatprep.mubr.bf16.mxu0 %v5112_v49  ;;  %v5441_v25 = vpack.c.bf16 %v5419_v26, %v5418_v45  ;;  %v5725_v49 = vld [vmem:[#allocation2 + $0x1c] sm:$0xff]  ;;  %v5750_v26 = vld [vmem:[#allocation2 + $0xe4] sm:$0xff]  ;;  %v5752_v45 = vld [vmem:[#allocation2 + $0xf4] sm:$0xff] }
 0x682   : > { %v5773_v55 = vpack.c.bf16 %v5751_v20, %v5750_v26  ;;  %v14429_v26 = vld [vmem:[%s17825_s4 + $0x238] sm:$0xff]  }
 0x688   : > { %13034 = vmatmul.mubr.bf16.gmra.mrb[120].mxu0 %v5113_v5  ;;  %v5760_v5 = vpack.c.bf16 %v5725_v49, %v5724_v22  ;;  %v6059_v22 = vld [vmem:[#allocation2 + $0x3c] sm:$0xff] }
 0x689   : > { %13053 = vmatprep.mubr.bf16.mxu0 %v5428_v41  ;;  %v5729_v41 = vld [vmem:[#allocation2 + $0x3c] sm:$0xff] }
 0x68a   : > { %v5762_v13 = vpack.c.bf16 %v5729_v41, %v5728_v10  ;;  %v14415_v41 = vld [vmem:[%s17825_s4 + $0x1c8] sm:$0xff]   ;;  %v14418_v10 = vld [vmem:[%s17825_s4 + $0x1e0] sm:$0xff]  }
 0x690   : > { %13054 = vmatmul.mubr.bf16.vlgmr.msra.gmra.mrb[88].mxu0 %v5429_v28  ;;  %v14407_v28 = vld [vmem:[%s17825_s4 + $0x188] sm:$0xff]  }
 0x691   : > { %13057 = vmatprep.mubr.bf16.mxu0 %v5430_v44  ;;  %13090 = vmatpush3.bf16.msra.mxu0 %v14398_v43  ;;  %v5444_v43 = vpack.c.bf16 %v5425_v21, %v5424_v56  ;;  %v5731_v44 = vld [vmem:[#allocation2 + $0x4c] sm:$0xff]  ;;  %v5775_v21 = vpack.c.bf16 %v5755_v9, %v5754_v52  ;;  %v6406_v9 = vld [vmem:[#allocation2 + $0xb5] sm:$0xff] }
 0x692   : > { %13091 = vmatprep.subr.bf16.mxu0 %v14399_v37  ;;  %v16716_v63 = vpack.c.bf16 %v5731_v44, %v5730_v29  ;;  %v5759_v56 = vld [vmem:[#allocation2 + $0x12c] sm:$0x3f]  ;;  %v14422_v44 = vld [vmem:[%s17825_s4 + $0x200] sm:$0xff]  }
 0x693   : > { %v5777_v49 = vpack.c.bf16 %v5759_v56, %v5758_v38  ;;  %v6408_v52 = vld [vmem:[#allocation2 + $0xc5] sm:$0xff]  ;;  %v6413_v56 = vld [vmem:[#allocation2 + $0xed] sm:$0xff] }
 0x695   : > { %13092 = vmatpush3.bf16.msra.mxu0 %v14399_v37  ;;  %v14408_v37 = vld [vmem:[%s17825_s4 + $0x190] sm:$0xff]  }
 0x696   : > { %13093 = vmatprep.subr.bf16.mxu0 %v14400_v24 }
 0x698   : > { %13058 = vmatmul.mubr.bf16.gmra.mrb[92].mxu0 %v5431_v33  ;;  %v14409_v33 = vld [vmem:[%s17825_s4 + $0x198] sm:$0xff]  }
 0x699   : > { %13061 = vmatprep.mubr.bf16.mxu0 %v5432_v0  ;;  %13094 = vmatpush3.bf16.msra.mxu0 %v14400_v24  ;;  %v5733_v24 = vld [vmem:[#allocation2 + $0x5c] sm:$0xff]  ;;  %v5735_v0 = vld [vmem:[#allocation2 + $0x6c] sm:$0xff] }
 0x69a   : > { %13095 = vmatprep.subr.bf16.mxu0 %v14401_v42  ;;  %v16721_v34 = vpack.c.bf16 %v5733_v24, %v5732_v60  ;;  %v16728_v16 = vpack.c.bf16 %v5735_v0, %v5734_v30  ;;  %v6089_v24 = vld [vmem:[#allocation2 + $0x12c] sm:$0xff] }
 0x69b   : > { %v6108_v29 = vpack.c.bf16 %v6089_v24, %v5758_v38  ;;  %v6389_v60 = vld [vmem:[#allocation2 + $0x2d] sm:$0xff]  ;;  %v6423_v24 = vld [vmem:[#allocation2 + $0x13d] sm:$0x3f] }
 0x69c   : > { %v6393_v30 = vld [vmem:[#allocation2 + $0x4d] sm:$0xff] }
 0x69d   : > { %13096 = vmatpush3.bf16.msra.mxu0 %v14401_v42  ;;  %v14410_v42 = vld [vmem:[%s17825_s4 + $0x1a0] sm:$0xff]  }
 0x69e   : > { %13097 = vmatprep.subr.bf16.mxu0 %v14402_v57 }
 0x6a0   : > { %13062 = vmatmul.mubr.bf16.gmra.mrb[96].mxu0 %v5433_v51  ;;  %v14411_v51 = vld [vmem:[%s17825_s4 + $0x1a8] sm:$0xff]  }
 0x6a1   : > { %13065 = vmatprep.mubr.bf16.mxu0 %v5434_v48  ;;  %13098 = vmatpush3.bf16.msra.mxu0 %v14402_v57  ;;  %v5737_v57 = vld [vmem:[#allocation2 + $0x7c] sm:$0xff]  ;;  %v5739_v48 = vld [vmem:[#allocation2 + $0x8c] sm:$0xff] }
 0x6a2   : > { %13099 = vmatprep.subr.bf16.mxu0 %v14403_v6  ;;  %v16733_v58 = vpack.c.bf16 %v5737_v57, %v5736_v4  ;;  %v16740_v53 = vpack.c.bf16 %v5739_v48, %v5738_v8  ;;  %v6391_v57 = vld [vmem:[#allocation2 + $0x3d] sm:$0xff]  ;;  %v14424_v48 = vld [vmem:[%s17825_s4 + $0x210] sm:$0xff]  }
 0x6a3   : > { %v6397_v8 = vld [vmem:[#allocation2 + $0x6d] sm:$0xff] }
 0x6a5   : > { %13100 = vmatpush3.bf16.msra.mxu0 %v14403_v6  ;;  %v14412_v6 = vld [vmem:[%s17825_s4 + $0x1b0] sm:$0xff]  }
 0x6a6   : > { %13101 = vmatprep.subr.bf16.mxu0 %v14404_v15 }
 0x6a8   : > { %13066 = vmatmul.mubr.bf16.gmra.mrb[100].mxu0 %v5435_v3  ;;  %v14413_v3 = vld [vmem:[%s17825_s4 + $0x1b8] sm:$0xff]  }
 0x6a9   : > { %13069 = vmatprep.mubr.bf16.mxu0 %v5436_v11  ;;  %13102 = vmatpush3.bf16.msra.mxu0 %v14404_v15  ;;  %v5741_v15 = vld [vmem:[#allocation2 + $0x9c] sm:$0xff]  ;;  %v5743_v11 = vld [vmem:[#allocation2 + $0xac] sm:$0xff] }
 0x6aa   : > { %13103 = vmatprep.subr.bf16.mxu0 %v14405_v35  ;;  %v16745_v46 = vpack.c.bf16 %v5741_v15, %v5740_v17  ;;  %v16752_v2 = vpack.c.bf16 %v5743_v11, %v5742_v61  ;;  %v6395_v15 = vld [vmem:[#allocation2 + $0x5d] sm:$0xff]  ;;  %v6401_v61 = vld [vmem:[#allocation2 + $0x8d] sm:$0xff] }
 0x6ab   : > { %v14426_v11 = vld [vmem:[%s17825_s4 + $0x220] sm:$0xff]  }
 0x6ad   : > { %13104 = vmatpush3.bf16.msra.mxu0 %v14405_v35  ;;  %v14414_v35 = vld [vmem:[%s17825_s4 + $0x1c0] sm:$0xff]  }
 0x6ae   : > { %13141 = vmatprep.subr.bf16.mxu0 %v14406_v1 }
 0x6b0   : > { %13070 = vmatmul.mubr.bf16.gmra.mrb[104].mxu0 %v5437_v27 }
 0x6b1   : > { %13073 = vmatprep.mubr.bf16.mxu0 %v5438_v59  ;;  %v5749_v59 = vld [vmem:[#allocation2 + $0xdc] sm:$0xff] }
 0x6b8   : > { %13074 = vmatmul.mubr.bf16.gmra.mrb[108].mxu0 %v5439_v18  ;;  %v16760_v18 = vpack.c.bf16 %v5749_v59, %v5748_v54  ;;  %v6405_v54 = vld [vmem:[#allocation2 + $0xad] sm:$0xff] }
 0x6b9   : > { %13077 = vmatprep.mubr.bf16.mxu0 %v5440_v7  ;;  %v5753_v7 = vld [vmem:[#allocation2 + $0xfc] sm:$0xff] }
 0x6c0   : > { %13078 = vmatmul.mubr.bf16.gmra.mrb[112].mxu0 %v5441_v25  ;;  %v5774_v25 = vpack.c.bf16 %v5753_v7, %v5752_v45  ;;  %v6404_v7 = vld [vmem:[#allocation2 + $0xa5] sm:$0xff]  ;;  %v6407_v45 = vld [vmem:[#allocation2 + $0xbd] sm:$0xff] }
 0x6c1   : > { %13081 = vmatprep.mubr.bf16.mxu0 %v5442_v62  ;;  %v5757_v62 = vld [vmem:[#allocation2 + $0x11c] sm:$0xff] }
 0x6c8   : > { %13082 = vmatmul.mubr.bf16.gmra.mrb[116].mxu0 %v5443_v40  ;;  %v5776_v40 = vpack.c.bf16 %v5757_v62, %v5756_v23  ;;  %v6433_v62 = vpack.c.bf16 %v6407_v45, %v6406_v9 }
 0x6c9   : > { %13085 = vmatprep.mubr.bf16.mxu0 %v5444_v43  ;;  %v6057_v43 = vld [vmem:[#allocation2 + $0x2c] sm:$0xff] }
 0x6d0   : > { %13086 = vmatmul.mubr.bf16.gmra.mrb[120].mxu0 %v5445_v19  ;;  %v6092_v19 = vpack.c.bf16 %v6057_v43, %v6056_v47  ;;  %v6410_v43 = vld [vmem:[#allocation2 + $0xd5] sm:$0xff] }
 0x6d1   : > { %13105 = vmatprep.mubr.bf16.mxu0 %v5760_v5  ;;  %v6058_v5 = vld [vmem:[#allocation2 + $0x34] sm:$0xff] }
 0x6d2   : > { %v6093_v14 = vpack.c.bf16 %v6059_v22, %v6058_v5  ;;  %v6417_v22 = vld [vmem:[#allocation2 + $0x10d] sm:$0xff]  ;;  %v6414_v5 = vld [vmem:[#allocation2 + $0xf5] sm:$0xff] }
 0x6d8   : > { %13106 = vmatmul.mubr.bf16.vlgmr.msra.gmra.mrb[88].mxu0 %v5761_v50  ;;  %v14417_v50 = vld [vmem:[%s17825_s4 + $0x1d8] sm:$0xff]  }
 0x6d9   : > { %13109 = vmatprep.mubr.bf16.mxu0 %v5762_v13  ;;  %13142 = vmatpush3.bf16.msra.mxu0 %v14406_v1  ;;  %v5745_v1 = vld [vmem:[#allocation2 + $0xbc] sm:$0xff]  ;;  %v14420_v13 = vld [vmem:[%s17825_s4 + $0x1f0] sm:$0xff]  }
 0x6da   : > { %13143 = vmatprep.subr.bf16.mxu0 %v14407_v28  ;;  %v16754_v27 = vpack.c.bf16 %v5745_v1, %v5744_v36  ;;  %v6399_v1 = vld [vmem:[#allocation2 + $0x7d] sm:$0xff] }
 0x6dd   : > { %13144 = vmatpush3.bf16.msra.mxu0 %v14407_v28  ;;  %v14419_v28 = vld [vmem:[%s17825_s4 + $0x1e8] sm:$0xff]  }
 0x6de   : > { %13145 = vmatprep.subr.bf16.mxu0 %v14408_v37 }
 0x6e0   : > { %13110 = vmatmul.mubr.bf16.gmra.mrb[92].mxu0 %v16716_v63 }
 0x6e1   : > { %13113 = vmatprep.mubr.bf16.mxu0 %v16721_v34  ;;  %13146 = vmatpush3.bf16.msra.mxu0 %v14408_v37  ;;  %v14421_v37 = vld [vmem:[%s17825_s4 + $0x1f8] sm:$0xff]  }
 0x6e2   : > { %13147 = vmatprep.subr.bf16.mxu0 %v14409_v33 }
 0x6e5   : > { %13148 = vmatpush3.bf16.msra.mxu0 %v14409_v33  ;;  %v6090_v33 = vld [vmem:[#allocation2 + $0x134] sm:$0xff] }
 0x6e6   : > { %13149 = vmatprep.subr.bf16.mxu0 %v14410_v42 }
 0x6e8   : > { %13114 = vmatmul.mubr.bf16.gmra.mrb[96].mxu0 %v16728_v16 }
 0x6e9   : > { %13117 = vmatprep.mubr.bf16.mxu0 %v16733_v58  ;;  %13150 = vmatpush3.bf16.msra.mxu0 %v14410_v42  ;;  %v6388_v42 = vld [vmem:[#allocation2 + $0x25] sm:$0xff] }
 0x6ea   : > { %13151 = vmatprep.subr.bf16.mxu0 %v14411_v51  ;;  %v6424_v0 = vpack.c.bf16 %v6389_v60, %v6388_v42  ;;  %v6723_v42 = vld [vmem:[#allocation2 + $0x3e] sm:$0xff] }
 0x6ed   : > { %13152 = vmatpush3.bf16.msra.mxu0 %v14411_v51  ;;  %v6392_v51 = vld [vmem:[#allocation2 + $0x45] sm:$0xff] }
 0x6ee   : > { %13153 = vmatprep.subr.bf16.mxu0 %v14412_v6 }
 0x6f0   : > { %13118 = vmatmul.mubr.bf16.gmra.mrb[100].mxu0 %v16740_v53 }
 0x6f1   : > { %13121 = vmatprep.mubr.bf16.mxu0 %v16745_v46  ;;  %13154 = vmatpush3.bf16.msra.mxu0 %v14412_v6  ;;  %v6426_v6 = vpack.c.bf16 %v6393_v30, %v6392_v51  ;;  %v6727_v51 = vld [vmem:[#allocation2 + $0x5e] sm:$0xff] }
 0x6f2   : > { %13155 = vmatprep.subr.bf16.mxu0 %v14413_v3 }
 0x6f5   : > { %13156 = vmatpush3.bf16.msra.mxu0 %v14413_v3  ;;  %v6396_v3 = vld [vmem:[#allocation2 + $0x65] sm:$0xff] }
 0x6f6   : > { %13193 = vmatprep.subr.bf16.mxu0 %v14414_v35 }
 0x6f8   : > { %13122 = vmatmul.mubr.bf16.gmra.mrb[104].mxu0 %v16752_v2 }
 0x6f9   : > { %13125 = vmatprep.mubr.bf16.mxu0 %v16754_v27 }
 0x700   : > { %13126 = vmatmul.mubr.bf16.gmra.mrb[108].mxu0 %v16758_v31 }
 0x701   : > { %13129 = vmatprep.mubr.bf16.mxu0 %v16760_v18 }
 0x708   : > { %13130 = vmatmul.mubr.bf16.gmra.mrb[112].mxu0 %v5773_v55 }
 0x709   : > { %13133 = vmatprep.mubr.bf16.mxu0 %v5774_v25 }
 0x710   : > { %13134 = vmatmul.mubr.bf16.gmra.mrb[116].mxu0 %v5775_v21 }
 0x711   : > { %13137 = vmatprep.mubr.bf16.mxu0 %v5776_v40 }
 0x718   : > { %13138 = vmatmul.mubr.bf16.gmra.mrb[120].mxu0 %v5777_v49  ;;  %v6412_v49 = vld [vmem:[#allocation2 + $0xe5] sm:$0xff] }
 0x719   : > { %13157 = vmatprep.mubr.bf16.mxu0 %v6092_v19  ;;  %v6436_v47 = vpack.c.bf16 %v6413_v56, %v6412_v49  ;;  %v6415_v19 = vld [vmem:[#allocation2 + $0xfd] sm:$0xff]  ;;  %v6748_v56 = vld [vmem:[#allocation2 + $0x106] sm:$0xff]  ;;  %v6753_v49 = vld [vmem:[#allocation2 + $0x12e] sm:$0xff] }
 0x720   : > { %13158 = vmatmul.mubr.bf16.vlgmr.msra.gmra.mrb[88].mxu0 %v6093_v14  ;;  %v6437_v14 = vpack.c.bf16 %v6415_v19, %v6414_v5 }
 0x721   : > { %13161 = vmatprep.mubr.bf16.mxu0 %v16716_v63  ;;  %13194 = vmatpush3.bf16.msra.mxu0 %v14414_v35  ;;  %v6091_v63 = vld [vmem:[#allocation2 + $0x13c] sm:$0x3f]  ;;  %v6428_v35 = vpack.c.bf16 %v6397_v8, %v6396_v3 }
 0x722   : > { %13195 = vmatprep.subr.bf16.mxu0 %v14415_v41  ;;  %v6730_v3 = vld [vmem:[#allocation2 + $0x76] sm:$0xff] }
 0x725   : > { %13196 = vmatpush3.bf16.msra.mxu0 %v14415_v41  ;;  %v6416_v41 = vld [vmem:[#allocation2 + $0x105] sm:$0xff] }
 0x726   : > { %13197 = vmatprep.subr.bf16.mxu0 %v14416_v32 }
 0x728   : > { %13162 = vmatmul.mubr.bf16.gmra.mrb[92].mxu0 %v16721_v34  ;;  %v6109_v34 = vpack.c.bf16 %v6091_v63, %v6090_v33  ;;  %v6422_v63 = vld [vmem:[#allocation2 + $0x135] sm:$0xff]  ;;  %v6720_v33 = vld [vmem:[#allocation2 + $0x26] sm:$0xff] }
 0x729   : > { %13165 = vmatprep.mubr.bf16.mxu0 %v16728_v16  ;;  %13198 = vmatpush3.bf16.msra.mxu0 %v14416_v32  ;;  %v6390_v16 = vld [vmem:[#allocation2 + $0x35] sm:$0xff]  ;;  %v6438_v32 = vpack.c.bf16 %v6417_v22, %v6416_v41  ;;  %v6441_v60 = vpack.c.bf16 %v6423_v24, %v6422_v63  ;;  %v6752_v22 = vld [vmem:[#allocation2 + $0x126] sm:$0xff] }
 0x72a   : > { %13199 = vmatprep.subr.bf16.mxu0 %v14417_v50  ;;  %v6425_v4 = vpack.c.bf16 %v6391_v57, %v6390_v16  ;;  %v6722_v57 = vld [vmem:[#allocation2 + $0x36] sm:$0xff]  ;;  %v6724_v16 = vld [vmem:[#allocation2 + $0x46] sm:$0xff]  ;;  %v6772_v5 = vpack.c.bf16 %v6753_v49, %v6752_v22 }
 0x72b   : > { %v6757_v30 = vpack.c.bf16 %v6723_v42, %v6722_v57  ;;  %v6754_v41 = vld [vmem:[#allocation2 + $0x136] sm:$0xff] }
 0x72d   : > { %13200 = vmatpush3.bf16.msra.mxu0 %v14417_v50  ;;  %v6419_v50 = vld [vmem:[#allocation2 + $0x11d] sm:$0xff] }
 0x72e   : > { %13201 = vmatprep.subr.bf16.mxu0 %v14418_v10 }
 0x730   : > { %13166 = vmatmul.mubr.bf16.gmra.mrb[96].mxu0 %v16733_v58  ;;  %v14423_v58 = vld [vmem:[%s17825_s4 + $0x208] sm:$0xff]  }
 0x731   : > { %13169 = vmatprep.mubr.bf16.mxu0 %v16740_v53  ;;  %13202 = vmatpush3.bf16.msra.mxu0 %v14418_v10  ;;  %v6394_v53 = vld [vmem:[#allocation2 + $0x55] sm:$0xff]  ;;  %v6421_v10 = vld [vmem:[#allocation2 + $0x12d] sm:$0xff] }
 0x732   : > { %13203 = vmatprep.subr.bf16.mxu0 %v14419_v28  ;;  %v6427_v17 = vpack.c.bf16 %v6395_v15, %v6394_v53  ;;  %v6728_v15 = vld [vmem:[#allocation2 + $0x66] sm:$0xff]  ;;  %v6731_v53 = vld [vmem:[#allocation2 + $0x7e] sm:$0xff] }
 0x735   : > { %13204 = vmatpush3.bf16.msra.mxu0 %v14419_v28  ;;  %v6418_v28 = vld [vmem:[#allocation2 + $0x115] sm:$0xff] }
 0x736   : > { %13205 = vmatprep.subr.bf16.mxu0 %v14420_v13 }
 0x738   : > { %13170 = vmatmul.mubr.bf16.gmra.mrb[100].mxu0 %v16745_v46  ;;  %v14425_v46 = vld [vmem:[%s17825_s4 + $0x218] sm:$0xff]  }
 0x739   : > { %13173 = vmatprep.mubr.bf16.mxu0 %v16752_v2  ;;  %13206 = vmatpush3.bf16.msra.mxu0 %v14420_v13  ;;  %v6398_v2 = vld [vmem:[#allocation2 + $0x75] sm:$0xff]  ;;  %v6439_v13 = vpack.c.bf16 %v6419_v50, %v6418_v28  ;;  %v14432_v50 = vld [vmem:[%s17827_s6 + $0x4] ss:$12 sps:$4 sm:$0xff]  }
 0x73a   : > { %13207 = vmatprep.subr.bf16.mxu0 %v14421_v37  ;;  %v6429_v36 = vpack.c.bf16 %v6399_v1, %v6398_v2  ;;  %v6735_v1 = vld [vmem:[#allocation2 + $0x9e] sm:$0xff]  ;;  %v6734_v2 = vld [vmem:[#allocation2 + $0x96] sm:$0xff]  ;;  %7332 = vmatprep.mubr.bf16.mxu1 %v14432_v50 }
 0x73d   : > { %13208 = vmatpush3.bf16.msra.mxu0 %v14421_v37  ;;  %v6420_v37 = vld [vmem:[#allocation2 + $0x125] sm:$0xff] }
 0x73e   : > { %13245 = vmatprep.subr.bf16.mxu0 %v14422_v44 }
 0x740   : > { %13174 = vmatmul.mubr.bf16.gmra.mrb[104].mxu0 %v16754_v27  ;;  %v6400_v27 = vld [vmem:[#allocation2 + $0x85] sm:$0xff] }
 0x741   : > { %13177 = vmatprep.mubr.bf16.mxu0 %v16758_v31  ;;  %v6430_v59 = vpack.c.bf16 %v6401_v61, %v6400_v27  ;;  %v6403_v31 = vld [vmem:[#allocation2 + $0x9d] sm:$0xff]  ;;  %v6737_v61 = vld [vmem:[#allocation2 + $0xae] sm:$0xff]  ;;  %v6736_v27 = vld [vmem:[#allocation2 + $0xa6] sm:$0xff] }
 0x748   : > { %13178 = vmatmul.mubr.bf16.gmra.mrb[108].mxu0 %v16760_v18  ;;  %v6402_v18 = vld [vmem:[#allocation2 + $0x95] sm:$0xff] }
 0x749   : > { %13181 = vmatprep.mubr.bf16.mxu0 %v5773_v55  ;;  %v6431_v20 = vpack.c.bf16 %v6403_v31, %v6402_v18  ;;  %v6432_v55 = vpack.c.bf16 %v6405_v54, %v6404_v7  ;;  %v6738_v31 = vld [vmem:[#allocation2 + $0xb6] sm:$0xff]  ;;  %v6740_v18 = vld [vmem:[#allocation2 + $0xc6] sm:$0xff]  ;;  %v6743_v7 = vld [vmem:[#allocation2 + $0xde] sm:$0xff] }
 0x750   : > { %13182 = vmatmul.mubr.bf16.gmra.mrb[112].mxu0 %v5774_v25  ;;  %v6409_v25 = vld [vmem:[#allocation2 + $0xcd] sm:$0xff] }
 0x751   : > { %13185 = vmatprep.mubr.bf16.mxu0 %v5775_v21  ;;  %v17845_v21 = vmov 0.0   ;;  %v6434_v23 = vpack.c.bf16 %v6409_v25, %v6408_v52  ;;  %v6744_v25 = vld [vmem:[#allocation2 + $0xe6] sm:$0xff]  ;;  %v6749_v52 = vld [vmem:[#allocation2 + $0x10e] sm:$0xff] }
 0x758   : > { %13186 = vmatmul.mubr.bf16.gmra.mrb[116].mxu0 %v5776_v40  ;;  %v6411_v40 = vld [vmem:[#allocation2 + $0xdd] sm:$0xff] }
 0x759   : > { %13189 = vmatprep.mubr.bf16.mxu0 %v6108_v29  ;;  %v6435_v38 = vpack.c.bf16 %v6411_v40, %v6410_v43  ;;  %v6721_v29 = vld [vmem:[#allocation2 + $0x2e] sm:$0xff]  ;;  %v6770_v43 = vpack.c.bf16 %v6749_v52, %v6748_v56 }
 0x760   : > { %13190 = vmatmul.mubr.bf16.gmra.mrb[120].mxu0 %v6109_v34  ;;  %v6756_v34 = vpack.c.bf16 %v6721_v29, %v6720_v33 }
 0x761   : > { %13209 = vmatprep.mubr.bf16.mxu0 %v6424_v0  ;;  %v6725_v0 = vld [vmem:[#allocation2 + $0x4e] sm:$0xff] }
 0x768   : > { %13210 = vmatmul.mubr.bf16.vlgmr.msra.gmra.mrb[88].mxu0 %v6425_v4  ;;  %v6758_v4 = vpack.c.bf16 %v6725_v0, %v6724_v16 }
 0x769   : > { %13213 = vmatprep.mubr.bf16.mxu0 %v6426_v6  ;;  %13246 = vmatpush3.bf16.msra.mxu0 %v14422_v44  ;;  %v6440_v44 = vpack.c.bf16 %v6421_v10, %v6420_v37  ;;  %v6726_v6 = vld [vmem:[#allocation2 + $0x56] sm:$0xff]  ;;  %v16828_v10 = vld [vmem:[%s17826_s5] ss:$0 sm:$0xff] }
 0x76a   : > { %13247 = vmatprep.subr.bf16.mxu0 %v14423_v58 }
 0x76d   : > { %13248 = vmatpush3.bf16.msra.mxu0 %v14423_v58  ;;  %v6729_v58 = vld [vmem:[#allocation2 + $0x6e] sm:$0xff] }
 0x76e   : > { %13249 = vmatprep.subr.bf16.mxu0 %v14424_v48  ;;  %v6760_v8 = vpack.c.bf16 %v6729_v58, %v6728_v15 }
 0x770   : > { %13214 = vmatmul.mubr.bf16.gmra.mrb[92].mxu0 %v6427_v17  ;;  %v6733_v17 = vld [vmem:[#allocation2 + $0x8e] sm:$0xff] }
 0x771   : > { %13217 = vmatprep.mubr.bf16.mxu0 %v6428_v35  ;;  %13250 = vmatpush3.bf16.msra.mxu0 %v14424_v48  ;;  %v6759_v48 = vpack.c.bf16 %v6727_v51, %v6726_v6  ;;  %v6732_v35 = vld [vmem:[#allocation2 + $0x86] sm:$0xff] }
 0x772   : > { %13251 = vmatprep.subr.bf16.mxu0 %v14425_v46 }
 0x775   : > { %13252 = vmatpush3.bf16.msra.mxu0 %v14425_v46  ;;  %v6761_v46 = vpack.c.bf16 %v6731_v53, %v6730_v3 }
 0x776   : > { %13253 = vmatprep.subr.bf16.mxu0 %v14426_v11 }
 0x778   : > { %13218 = vmatmul.mubr.bf16.gmra.mrb[96].mxu0 %v6429_v36  ;;  %v6763_v36 = vpack.c.bf16 %v6735_v1, %v6734_v2 }
 0x779   : > { %13221 = vmatprep.mubr.bf16.mxu0 %v6430_v59  ;;  %13254 = vmatpush3.bf16.msra.mxu0 %v14426_v11  ;;  %v6762_v11 = vpack.c.bf16 %v6733_v17, %v6732_v35  ;;  %v6739_v59 = vld [vmem:[#allocation2 + $0xbe] sm:$0xff] }
 0x77a   : > { %13255 = vmatprep.subr.bf16.mxu0 %v14427_v12  ;;  %v6765_v54 = vpack.c.bf16 %v6739_v59, %v6738_v31 }
 0x77d   : > { %13256 = vmatpush3.bf16.msra.mxu0 %v14427_v12  ;;  %v6764_v12 = vpack.c.bf16 %v6737_v61, %v6736_v27 }
 0x77e   : > { %13257 = vmatprep.subr.bf16.mxu0 %v14428_v39 }
 0x780   : > { %13222 = vmatmul.mubr.bf16.gmra.mrb[100].mxu0 %v6431_v20 }
 0x781   : > { %13225 = vmatprep.mubr.bf16.mxu0 %v6432_v55  ;;  %13258 = vmatpush3.bf16.msra.mxu0 %v14428_v39  ;;  %v6741_v39 = vld [vmem:[#allocation2 + $0xce] sm:$0xff]  ;;  %v6742_v55 = vld [vmem:[#allocation2 + $0xd6] sm:$0xff] }
 0x782   : > { %13259 = vmatprep.subr.bf16.mxu0 %v14429_v26  ;;  %v6766_v20 = vpack.c.bf16 %v6741_v39, %v6740_v18  ;;  %v6767_v45 = vpack.c.bf16 %v6743_v7, %v6742_v55 }
 0x785   : > { %13260 = vmatpush3.bf16.msra.mxu0 %v14429_v26  ;;  %v6745_v26 = vld [vmem:[#allocation2 + $0xee] sm:$0xff] }
 0x786   : > { %13653 = vmatprep.subr.bf16.mxu0 %v17845_v21  ;;  %v6768_v9 = vpack.c.bf16 %v6745_v26, %v6744_v25 }
 0x788   : > { %13226 = vmatmul.mubr.bf16.gmra.mrb[104].mxu0 %v6433_v62  ;;  %v6747_v62 = vld [vmem:[#allocation2 + $0xfe] sm:$0xff] }
 0x789   : > { %13229 = vmatprep.mubr.bf16.mxu0 %v6434_v23  ;;  %v6746_v23 = vld [vmem:[#allocation2 + $0xf6] sm:$0xff] }
 0x78a   : > { %v6769_v40 = vpack.c.bf16 %v6747_v62, %v6746_v23 }
 0x790   : > { %13230 = vmatmul.mubr.bf16.gmra.mrb[108].mxu0 %v6435_v38  ;;  %v6751_v38 = vld [vmem:[#allocation2 + $0x11e] sm:$0xff] }
 0x791   : > { %13233 = vmatprep.mubr.bf16.mxu0 %v6436_v47  ;;  %v6750_v47 = vld [vmem:[#allocation2 + $0x116] sm:$0xff] }
 0x792   : > { %v6771_v19 = vpack.c.bf16 %v6751_v38, %v6750_v47 }
 0x798   : > { %13234 = vmatmul.mubr.bf16.gmra.mrb[112].mxu0 %v6437_v14  ;;  %v6755_v14 = vld [vmem:[#allocation2 + $0x13e] sm:$0x3f] }
 0x799   : > { %13237 = vmatprep.mubr.bf16.mxu0 %v6438_v32  ;;  %v6773_v32 = vpack.c.bf16 %v6755_v14, %v6754_v41 }
 0x7a0   : > { %13238 = vmatmul.mubr.bf16.gmra.mrb[116].mxu0 %v6439_v13 }
 0x7a1   : > { %13241 = vmatprep.mubr.bf16.mxu0 %v6440_v44 }
 0x7a8   : > { %13242 = vmatmul.mubr.bf16.gmra.mrb[120].mxu0 %v6441_v60 }
 0x7a9   : > { %13261 = vmatprep.mubr.bf16.mxu0 %v6756_v34 }
 0x7b0   : > { %13262 = vmatmul.mubr.bf16.vlgmr.msra.gmra.mrb[88].mxu0 %v6757_v30 }
 0x7b1   : > { %13265 = vmatprep.mubr.bf16.mxu0 %v6758_v4 }
 0x7b8   : > { %13266 = vmatmul.mubr.bf16.gmra.mrb[92].mxu0 %v6759_v48 }
 0x7b9   : > { %13269 = vmatprep.mubr.bf16.mxu0 %v6760_v8 }
 0x7c0   : > { %13270 = vmatmul.mubr.bf16.gmra.mrb[96].mxu0 %v6761_v46 }
 0x7c1   : > { %13273 = vmatprep.mubr.bf16.mxu0 %v6762_v11 }
 0x7c8   : > { %13274 = vmatmul.mubr.bf16.gmra.mrb[100].mxu0 %v6763_v36 }
 0x7c9   : > { %13277 = vmatprep.mubr.bf16.mxu0 %v6764_v12 }
 0x7d0   : > { %13278 = vmatmul.mubr.bf16.gmra.mrb[104].mxu0 %v6765_v54 }
 0x7d1   : > { %13281 = vmatprep.mubr.bf16.mxu0 %v6766_v20 }
 0x7d8   : > { %13282 = vmatmul.mubr.bf16.gmra.mrb[108].mxu0 %v6767_v45 }
 0x7d9   : > { %13285 = vmatprep.mubr.bf16.mxu0 %v6768_v9 }
 0x7e0   : > { %13286 = vmatmul.mubr.bf16.gmra.mrb[112].mxu0 %v6769_v40 }
 0x7e1   : > { %13289 = vmatprep.mubr.bf16.mxu0 %v6770_v43 }
 0x7e8   : > { %13290 = vmatmul.mubr.bf16.gmra.mrb[116].mxu0 %v6771_v19 }
 0x7e9   : > { %13293 = vmatprep.mubr.bf16.mxu0 %v6772_v5 }
 0x7f0   : > { %13294 = vmatmul.mubr.bf16.gmra.mrb[120].mxu0 %v6773_v32 }
 0x7f1   : > { %13663 = vmatprep.mubr.msk.bf16.mxu0 %vm14681_vm1, %v17845_v21 }
 0x883   : > { %v13263_v28 = vpop.f32.mrb[88].mxu0 }
 0x884   : > { %v7061_v13 = vadd.f32 %v13263_v28, %v16828_v10  ;;  %v6873_v37 = vpop.f32.mrb[89].mxu0 }
 0x885   : > { %v7059_v44 = vadd.f32 %v16828_v10, %v6873_v37  ;;  %v13264_v24 = vpop.f32.mrb[90].mxu0 }
 0x886   : > { %v7062_v29 = vadd.f32 %v13264_v24, %v16828_v10  ;;  %v6876_v63 = vpop.f32.mrb[91].mxu0  ;;  %v7097_v33 = vmax.f32 %v7061_v13, 0.0 }
 0x887   : > { %v7060_v60 = vadd.f32 %v16828_v10, %v6876_v63  ;;  %v7095_v42 = vmax.f32 %v7059_v44, 0.0 }
 0x888   : > { %v7098_v34 = vmax.f32 %v7062_v29, 0.0 }
 0x889   : > { %v7096_v0 = vmax.f32 %v7060_v60, 0.0 }
 0x88a   : > { %v16834_v57 = vpack.c.bf16 %v7098_v34, %v7097_v33 }
 0x88b   : > { %v16836_v30 = vpack.c.bf16 %v7096_v0, %v7095_v42  ;;  %v13267_v16 = vpop.f32.mrb[92].mxu0 }
 0x88c   : > { %v7065_v4 = vadd.f32 %v13267_v16, %v16828_v10  ;;  %v6889_v51 = vpop.f32.mrb[93].mxu0 }
 0x88d   : > { %v7063_v58 = vadd.f32 %v16828_v10, %v6889_v51  ;;  %v13268_v6 = vpop.f32.mrb[94].mxu0 }
 0x88e   : > { %v7066_v48 = vadd.f32 %v13268_v6, %v16828_v10  ;;  %v6892_v15 = vpop.f32.mrb[95].mxu0  ;;  %v7101_v53 = vmax.f32 %v7065_v4, 0.0 }
 0x88f   : > { %v7064_v8 = vadd.f32 %v16828_v10, %v6892_v15  ;;  %v7099_v3 = vmax.f32 %v7063_v58, 0.0 }
 0x890   : > { %v7102_v17 = vmax.f32 %v7066_v48, 0.0 }
 0x891   : > { %v7100_v46 = vmax.f32 %v7064_v8, 0.0 }
 0x892   : > { %v16842_v35 = vpack.c.bf16 %v7102_v17, %v7101_v53 }
 0x893   : > { %v16844_v11 = vpack.c.bf16 %v7100_v46, %v7099_v3  ;;  %v13271_v1 = vpop.f32.mrb[96].mxu0 }
 0x894   : > { %v7069_v61 = vadd.f32 %v13271_v1, %v16828_v10  ;;  %v6905_v2 = vpop.f32.mrb[97].mxu0 }
 0x895   : > { %v7067_v36 = vadd.f32 %v16828_v10, %v6905_v2  ;;  %v13272_v27 = vpop.f32.mrb[98].mxu0 }
 0x896   : > { %v7070_v12 = vadd.f32 %v13272_v27, %v16828_v10  ;;  %v6908_v59 = vpop.f32.mrb[99].mxu0  ;;  %v7105_v31 = vmax.f32 %v7069_v61, 0.0 }
 0x897   : > { %v7068_v39 = vadd.f32 %v16828_v10, %v6908_v59  ;;  %v7103_v18 = vmax.f32 %v7067_v36, 0.0 }
 0x898   : > { %v7106_v54 = vmax.f32 %v7070_v12, 0.0 }
 0x899   : > { %v7104_v20 = vmax.f32 %v7068_v39, 0.0 }
 0x89a   : > { %v16850_v7 = vpack.c.bf16 %v7106_v54, %v7105_v31 }
 0x89b   : > { %v16852_v26 = vpack.c.bf16 %v7104_v20, %v7103_v18  ;;  %v13275_v55 = vpop.f32.mrb[100].mxu0 }
 0x89c   : > { %v7073_v45 = vadd.f32 %v13275_v55, %v16828_v10  ;;  %v6921_v25 = vpop.f32.mrb[101].mxu0 }
 0x89d   : > { %v7071_v9 = vadd.f32 %v16828_v10, %v6921_v25  ;;  %v13276_v62 = vpop.f32.mrb[102].mxu0 }
 0x89e   : > { %v7074_v52 = vadd.f32 %v13276_v62, %v16828_v10  ;;  %v6924_v23 = vpop.f32.mrb[103].mxu0  ;;  %v7109_v56 = vmax.f32 %v7073_v45, 0.0 }
 0x89f   : > { %v7072_v40 = vadd.f32 %v16828_v10, %v6924_v23  ;;  %v7107_v38 = vmax.f32 %v7071_v9, 0.0 }
 0x8a0   : > { %v7110_v43 = vmax.f32 %v7074_v52, 0.0 }
 0x8a1   : > { %v7108_v49 = vmax.f32 %v7072_v40, 0.0 }
 0x8a2   : > { %v16858_v47 = vpack.c.bf16 %v7110_v43, %v7109_v56 }
 0x8a3   : > { %v16860_v19 = vpack.c.bf16 %v7108_v49, %v7107_v38  ;;  %v13279_v22 = vpop.f32.mrb[104].mxu0 }
 0x8a4   : > { %v7077_v5 = vadd.f32 %v13279_v22, %v16828_v10  ;;  %v6937_v14 = vpop.f32.mrb[105].mxu0 }
 0x8a5   : > { %v7075_v41 = vadd.f32 %v16828_v10, %v6937_v14  ;;  %v13280_v32 = vpop.f32.mrb[106].mxu0 }
 0x8a6   : > { %v7078_v50 = vadd.f32 %v13280_v32, %v16828_v10  ;;  %v6940_v28 = vpop.f32.mrb[107].mxu0  ;;  %v7113_v37 = vmax.f32 %v7077_v5, 0.0 }
 0x8a7   : > { %v7076_v13 = vadd.f32 %v16828_v10, %v6940_v28  ;;  %v7111_v24 = vmax.f32 %v7075_v41, 0.0 }
 0x8a8   : > { %v7114_v44 = vmax.f32 %v7078_v50, 0.0 }
 0x8a9   : > { %v7112_v29 = vmax.f32 %v7076_v13, 0.0 }
 0x8aa   : > { %v7166_v63 = vpack.c.bf16 %v7114_v44, %v7113_v37  ;;  %v14430_v37 = vld [vmem:[%s17827_s6] ss:$12 sps:$4 sm:$0xff]  }
 0x8ab   : > { %v7165_v60 = vpack.c.bf16 %v7112_v29, %v7111_v24  ;;  %v13283_v33 = vpop.f32.mrb[108].mxu0  ;;  %v14435_v24 = vld [vmem:[%s17827_s6 + $0x1c] ss:$12 sps:$4 sm:$0xff]  }
 0x8ac   : > { %v7081_v34 = vadd.f32 %v13283_v33, %v16828_v10  ;;  %v6953_v42 = vpop.f32.mrb[109].mxu0  ;;  %v14439_v33 = vld [vmem:[%s17827_s6 + $0x48] ss:$12 sps:$4 sm:$0xff]  }
 0x8ad   : > { %v7079_v0 = vadd.f32 %v16828_v10, %v6953_v42  ;;  %v13284_v16 = vpop.f32.mrb[110].mxu0  ;;  %11831 = vmatprep.subr.bf16.mxu1 %v7165_v60  ;;  %v14441_v60 = vld [vmem:[%s17827_s6 + $0x4c] ss:$12 sps:$4 sm:$0xff]  }
 0x8ae   : > { %v7082_v4 = vadd.f32 %v13284_v16, %v16828_v10  ;;  %v6956_v51 = vpop.f32.mrb[111].mxu0  ;;  %11832 = vmatpush3.bf16.msra.mxu1 %v16836_v30  ;;  %v7117_v6 = vmax.f32 %v7081_v34, 0.0  ;;  %v14444_v34 = vld [vmem:[%s17827_s6 + $0x64] ss:$12 sps:$4 sm:$0xff]   ;;  %v14442_v42 = vld [vmem:[%s17827_s6 + $0x60] ss:$12 sps:$4 sm:$0xff]  }
 0x8af   : > { %v7080_v58 = vadd.f32 %v16828_v10, %v6956_v51  ;;  %11833 = vmatprep.subr.bf16.mxu1 %v7166_v63  ;;  %v7115_v15 = vmax.f32 %v7079_v0, 0.0  ;;  %v14436_v63 = vld [vmem:[%s17827_s6 + $0x30] ss:$12 sps:$4 sm:$0xff]  }
 0x8b0   : > { %v7118_v48 = vmax.f32 %v7082_v4, 0.0  ;;  %v14447_v0 = vld [vmem:[%s17827_s6 + $0x7c] ss:$12 sps:$4 sm:$0xff]   ;;  %v7155_v16 = vld [vmem:[%s17827_s6 + $0x90] sm:$0x33] }
 0x8b1   : > { %v7116_v8 = vmax.f32 %v7080_v58, 0.0  ;;  %v14445_v4 = vld [vmem:[%s17827_s6 + $0x78] ss:$12 sps:$4 sm:$0xff]   ;;  %v10983_v51 = vcombine.high %v7155_v16, %v7155_v16  ;;  %v10982_v58 = vcombine.low %v7155_v16, %v7155_v16 }
 0x8b2   : > { %v7168_v53 = vpack.c.bf16 %v7118_v48, %v7117_v6  ;;  %11834 = vmatpush3.bf16.msra.mxu1 %v16834_v57  ;;  %v14450_v6 = vld [vmem:[%s17827_s6 + $0x8] ss:$12 sps:$4 sm:$0xff]   ;;  %v14451_v48 = vld [vmem:[%s17827_s6 + $0x20] ss:$12 sps:$4 sm:$0xff]  }
 0x8b3   : > { %v7167_v17 = vpack.c.bf16 %v7116_v8, %v7115_v15  ;;  %v13287_v3 = vpop.f32.mrb[112].mxu0  ;;  %v14452_v15 = vld [vmem:[%s17827_s6 + $0x38] ss:$12 sps:$4 sm:$0xff]   ;;  %v14453_v8 = vld [vmem:[%s17827_s6 + $0x50] ss:$12 sps:$4 sm:$0xff]  }
 0x8b4   : > { %v7085_v46 = vadd.f32 %v13287_v3, %v16828_v10  ;;  %v6969_v1 = vpop.f32.mrb[113].mxu0  ;;  %v14456_v3 = vld [vmem:[%s17827_s6 + $0x98] ss:$0 sps:$4 sm:$0x33]  }
 0x8b5   : > { %v7083_v61 = vadd.f32 %v16828_v10, %v6969_v1  ;;  %v13288_v2 = vpop.f32.mrb[114].mxu0  ;;  %11835 = vmatprep.subr.bf16.mxu1 %v7167_v17  ;;  %v14455_v17 = vld [vmem:[%s17827_s6 + $0x80] ss:$12 sps:$4 sm:$0xff]  }
 0x8b6   : > { %v7086_v30 = vadd.f32 %v13288_v2, %v16828_v10  ;;  %v6972_v36 = vpop.f32.mrb[115].mxu0  ;;  %11836 = vmatpush3.bf16.msra.mxu1 %v16844_v11  ;;  %v7121_v12 = vmax.f32 %v7085_v46, 0.0  ;;  %v14457_v46 = vld [vmem:[%s17828_s7 + $0x40] sm:$0xff]   ;;  %v14458_v1 = vld [vmem:[%s17828_s7 + $0x48] sm:$0xff]   ;;  %v14460_v2 = vld [vmem:[%s17828_s7 + $0x58] sm:$0xff]  }
 0x8b7   : > { %v7084_v27 = vadd.f32 %v16828_v10, %v6972_v36  ;;  %11837 = vmatprep.subr.bf16.mxu1 %v7168_v53  ;;  %v7119_v57 = vmax.f32 %v7083_v61, 0.0  ;;  %v14454_v53 = vld [vmem:[%s17827_s6 + $0x68] ss:$12 sps:$4 sm:$0xff]  }
 0x8b8   : > { %v7122_v59 = vmax.f32 %v7086_v30, 0.0  ;;  %v14459_v61 = vld [vmem:[%s17828_s7 + $0x50] sm:$0xff]   ;;  %v14461_v30 = vld [vmem:[%s17828_s7 + $0x60] sm:$0xff]   ;;  %v14462_v36 = vld [vmem:[%s17828_s7 + $0x68] sm:$0xff]  }
 0x8b9   : > { %v7120_v39 = vmax.f32 %v7084_v27, 0.0  ;;  %v14463_v27 = vld [vmem:[%s17828_s7 + $0x70] sm:$0xff]  }
 0x8ba   : > { %v7170_v31 = vpack.c.bf16 %v7122_v59, %v7121_v12  ;;  %11838 = vmatpush3.bf16.msra.mxu1 %v16842_v35  ;;  %v14464_v12 = vld [vmem:[%s17828_s7 + $0x78] sm:$0xff]  }
 0x8bb   : > { %v7169_v54 = vpack.c.bf16 %v7120_v39, %v7119_v57  ;;  %v13291_v18 = vpop.f32.mrb[116].mxu0 }
 0x8bc   : > { %v7089_v20 = vadd.f32 %v13291_v18, %v16828_v10  ;;  %v6985_v55 = vpop.f32.mrb[117].mxu0 }
 0x8bd   : > { %v7087_v45 = vadd.f32 %v16828_v10, %v6985_v55  ;;  %v13292_v25 = vpop.f32.mrb[118].mxu0  ;;  %11839 = vmatprep.subr.bf16.mxu1 %v7169_v54 }
 0x8be   : > { %v7090_v11 = vadd.f32 %v13292_v25, %v16828_v10  ;;  %v6988_v9 = vpop.f32.mrb[119].mxu0  ;;  %11840 = vmatpush3.bf16.msra.mxu1 %v16852_v26  ;;  %v7125_v52 = vmax.f32 %v7089_v20, 0.0 }
 0x8bf   : > { %v7088_v62 = vadd.f32 %v16828_v10, %v6988_v9  ;;  %11841 = vmatprep.subr.bf16.mxu1 %v7170_v31  ;;  %v7123_v35 = vmax.f32 %v7087_v45, 0.0 }
 0x8c0   : > { %v7126_v23 = vmax.f32 %v7090_v11, 0.0 }
 0x8c1   : > { %v7124_v40 = vmax.f32 %v7088_v62, 0.0 }
 0x8c2   : > { %v7172_v56 = vpack.c.bf16 %v7126_v23, %v7125_v52  ;;  %11842 = vmatpush3.bf16.msra.mxu1 %v16850_v7 }
 0x8c3   : > { %v7171_v43 = vpack.c.bf16 %v7124_v40, %v7123_v35  ;;  %v13295_v38 = vpop.f32.mrb[120].mxu0 }
 0x8c4   : > { %v7093_v49 = vadd.f32 %v13295_v38, %v16828_v10  ;;  %v7001_v22 = vpop.f32.mrb[121].mxu0 }
 0x8c5   : > { %v7091_v5 = vadd.f32 %v16828_v10, %v7001_v22  ;;  %v13296_v14 = vpop.f32.mrb[122].mxu0  ;;  %11843 = vmatprep.subr.bf16.mxu1 %v7171_v43 }
 0x8c6   : > { %v7094_v26 = vadd.f32 %v13296_v14, %v16828_v10  ;;  %v7004_v41 = vpop.f32.mrb[123].mxu0  ;;  %11844 = vmatpush3.bf16.msra.mxu1 %v16860_v19  ;;  %v7129_v50 = vmax.f32 %v7093_v49, 0.0  ;;  %v14433_v19 = vld [vmem:[%s17827_s6 + $0x18] ss:$12 sps:$4 sm:$0xff]  }
 0x8c7   : > { %v7092_v32 = vadd.f32 %v16828_v10, %v7004_v41  ;;  %11845 = vmatprep.subr.bf16.mxu1 %v7172_v56  ;;  %v7127_v7 = vmax.f32 %v7091_v5, 0.0 }
 0x8c8   : > { %v7130_v28 = vmax.f32 %v7094_v26, 0.0 }
 0x8c9   : > { %v7128_v13 = vmax.f32 %v7092_v32, 0.0 }
 0x8ca   : > { %v7174_v44 = vpack.c.bf16 %v7130_v28, %v7129_v50  ;;  %11846 = vmatpush3.bf16.msra.mxu1 %v16858_v47  ;;  %v14438_v47 = vld [vmem:[%s17827_s6 + $0x34] ss:$12 sps:$4 sm:$0xff]  }
 0x8cb   : > { %v7173_v29 = vpack.c.bf16 %v7128_v13, %v7127_v7  ;;  %13297 = vmatprep.subr.bf16.mxu1 %v17845_v21 }
 0x8cc   : > { %v7298_v10 = vsel %vm3689_vm3, %v7174_v44, 0 }
 0x8cd   : > { %7333 = vmatmul.mubr.bf16.vlgmr.msra.gmra.mrb[96].mxu1 %v14430_v37 }
 0x8ce   : > { %13298 = vmatpush3.bf16.msra.mxu1 %v7173_v29  ;;  %7340 = vmatprep.mubr.bf16.mxu1 %v14435_v24 }
 0x8cf   : > { %13299 = vmatprep.subr.bf16.mxu1 %v17845_v21 }
 0x8d2   : > { %13300 = vmatpush3.bf16.msra.mxu1 %v7298_v10 }
 0x8d3   : > { %13329 = vmatprep.subr.bf16.mxu1 %v17845_v21 }
 0x8d5   : > { %7341 = vmatmul.mubr.bf16.gmra.mrb[100].mxu1 %v14433_v19 }
 0x8d6   : > { %7348 = vmatprep.mubr.bf16.mxu1 %v14438_v47 }
 0x8dd   : > { %7349 = vmatmul.mubr.bf16.gmra.mrb[104].mxu1 %v14436_v63 }
 0x8de   : > { %7356 = vmatprep.mubr.bf16.mxu1 %v14441_v60 }
 0x8e5   : > { %7357 = vmatmul.mubr.bf16.gmra.mrb[108].mxu1 %v14439_v33 }
 0x8e6   : > { %7364 = vmatprep.mubr.bf16.mxu1 %v14444_v34 }
 0x8ed   : > { %7365 = vmatmul.mubr.bf16.gmra.mrb[112].mxu1 %v14442_v42 }
 0x8ee   : > { %7372 = vmatprep.mubr.bf16.mxu1 %v14447_v0 }
 0x8f5   : > { %7373 = vmatmul.mubr.bf16.gmra.mrb[116].mxu1 %v14445_v4 }
 0x8f6   : > { %7380 = vmatprep.mubr.bf16.mxu1 %v10983_v51 }
 0x8fd   : > { %7381 = vmatmul.mubr.bf16.gmra.mrb[120].mxu1 %v10982_v58 }
 0x8fe   : > { %13301 = vmatprep.mubr.msk.bf16.mxu1 %vm14681_vm1, %v17845_v21 }
 0x905   : > { %13302 = vmatmul.mubr.msk.bf16.vlgmr.msra.gmra.mrb[124].mxu1 %vm7275_vm6, %v14450_v6 }
 0x906   : > { %13305 = vmatprep.mubr.msk.bf16.mxu1 %vm14681_vm1, %v17845_v21  ;;  %13330 = vmatpush3.bf16.msra.mxu1 %v14457_v46 }
 0x907   : > { %13331 = vmatprep.subr.bf16.mxu1 %v17845_v21 }
 0x90a   : > { %13332 = vmatpush3.bf16.msra.mxu1 %v14458_v1 }
 0x90b   : > { %13333 = vmatprep.subr.bf16.mxu1 %v17845_v21 }
 0x90d   : > { %13306 = vmatmul.mubr.msk.bf16.gmra.mrb[128].mxu1 %vm7275_vm6, %v14451_v48 }
 0x90e   : > { %13309 = vmatprep.mubr.msk.bf16.mxu1 %vm14681_vm1, %v17845_v21  ;;  %13334 = vmatpush3.bf16.msra.mxu1 %v14459_v61 }
 0x90f   : > { %13335 = vmatprep.subr.bf16.mxu1 %v17845_v21 }
 0x912   : > { %13336 = vmatpush3.bf16.msra.mxu1 %v14460_v2 }
 0x913   : > { %13337 = vmatprep.subr.bf16.mxu1 %v17845_v21 }
 0x915   : > { %13310 = vmatmul.mubr.msk.bf16.gmra.mrb[132].mxu1 %vm7275_vm6, %v14452_v15 }
 0x916   : > { %13313 = vmatprep.mubr.msk.bf16.mxu1 %vm14681_vm1, %v17845_v21  ;;  %13338 = vmatpush3.bf16.msra.mxu1 %v14461_v30 }
 0x917   : > { %13339 = vmatprep.subr.bf16.mxu1 %v17845_v21 }
 0x91a   : > { %13340 = vmatpush3.bf16.msra.mxu1 %v14462_v36 }
 0x91b   : > { %13341 = vmatprep.subr.bf16.mxu1 %v17845_v21 }
 0x91d   : > { %13314 = vmatmul.mubr.msk.bf16.gmra.mrb[136].mxu1 %vm7275_vm6, %v14453_v8 }
 0x91e   : > { %13317 = vmatprep.mubr.msk.bf16.mxu1 %vm14681_vm1, %v17845_v21  ;;  %13342 = vmatpush3.bf16.msra.mxu1 %v14463_v27  ;;  %v14465_v27 = vld [vmem:[%s17828_s7] sm:$0xff]  }
 0x91f   : > { %13343 = vmatprep.subr.bf16.mxu1 %v17845_v21 }
 0x922   : > { %13344 = vmatpush3.bf16.msra.mxu1 %v14464_v12 }
 0x923   : > { %13365 = vmatprep.subr.bf16.mxu1 %v17845_v21 }
 0x925   : > { %13318 = vmatmul.mubr.msk.bf16.gmra.mrb[140].mxu1 %vm7275_vm6, %v14454_v53 }
 0x926   : > { %13321 = vmatprep.mubr.msk.bf16.mxu1 %vm14681_vm1, %v17845_v21 }
 0x92d   : > { %13322 = vmatmul.mubr.msk.bf16.gmra.mrb[144].mxu1 %vm7275_vm6, %v14455_v17 }
 0x92e   : > { %13325 = vmatprep.mubr.msk.bf16.mxu1 %vm14681_vm1, %v17845_v21 }
 0x935   : > { %13326 = vmatmul.mubr.msk.bf16.gmra.mrb[148].mxu1 %vm7275_vm6, %v14456_v3 }
 0x936   : > { %13345 = vmatprep.mubr.msk.bf16.mxu1 %vm14681_vm1, %v17845_v21 }
 0x9a0   : > { %v11847_v59 = vpop.f32.mrb[96].mxu1 }
 0x9a1   : > { %v11848_v57 = vpop.f32.mrb[97].mxu1 }
 0x9a2   : > { %v11849_v39 = vadd.f32 %v11848_v57, %v11847_v59  ;;  %v11850_v31 = vpop.f32.mrb[98].mxu1 }
 0x9a3   : > { %v11851_v54 = vpop.f32.mrb[99].mxu1 }
 0x9a4   : > { %v11852_v18 = vadd.f32 %v11851_v54, %v11850_v31  ;;  %v14466_v31 = vld [vmem:[%s17828_s7 + $0x8] sm:$0xff]  }
 0x9a8   : > { %v11853_v20 = vpop.f32.mrb[100].mxu1 }
 0x9a9   : > { %v11854_v55 = vpop.f32.mrb[101].mxu1 }
 0x9aa   : > { %v11855_v45 = vadd.f32 %v11854_v55, %v11853_v20  ;;  %v11856_v25 = vpop.f32.mrb[102].mxu1 }
 0x9ab   : > { %v11857_v11 = vpop.f32.mrb[103].mxu1 }
 0x9ac   : > { %v11858_v9 = vadd.f32 %v11857_v11, %v11856_v25 }
 0x9b0   : > { %v11859_v62 = vpop.f32.mrb[104].mxu1 }
 0x9b1   : > { %v11860_v52 = vpop.f32.mrb[105].mxu1 }
 0x9b2   : > { %v11861_v23 = vadd.f32 %v11860_v52, %v11859_v62  ;;  %v11862_v35 = vpop.f32.mrb[106].mxu1  ;;  %v14467_v62 = vld [vmem:[%s17828_s7 + $0x10] sm:$0xff]  }
 0x9b3   : > { %v11863_v40 = vpop.f32.mrb[107].mxu1 }
 0x9b4   : > { %v11864_v56 = vadd.f32 %v11863_v40, %v11862_v35  ;;  %v14468_v35 = vld [vmem:[%s17828_s7 + $0x18] sm:$0xff]  }
 0x9b8   : > { %v11865_v43 = vpop.f32.mrb[108].mxu1 }
 0x9b9   : > { %v11866_v38 = vpop.f32.mrb[109].mxu1 }
 0x9ba   : > { %v11867_v49 = vadd.f32 %v11866_v38, %v11865_v43  ;;  %v11868_v22 = vpop.f32.mrb[110].mxu1 }
 0x9bb   : > { %v11869_v5 = vpop.f32.mrb[111].mxu1 }
 0x9bc   : > { %v11870_v14 = vadd.f32 %v11869_v5, %v11868_v22 }
 0x9c0   : > { %v11871_v26 = vpop.f32.mrb[112].mxu1 }
 0x9c1   : > { %v11872_v41 = vpop.f32.mrb[113].mxu1 }
 0x9c2   : > { %v17006_v32 = vadd.f32 %v11872_v41, %v11871_v26  ;;  %v11874_v50 = vpop.f32.mrb[114].mxu1  ;;  %v14469_v26 = vld [vmem:[%s17828_s7 + $0x20] sm:$0xff]  }
 0x9c3   : > { %v11875_v28 = vpop.f32.mrb[115].mxu1 }
 0x9c4   : > { %v17008_v7 = vadd.f32 %v11875_v28, %v11874_v50 }
 0x9c8   : > { %v11877_v13 = vpop.f32.mrb[116].mxu1 }
 0x9c9   : > { %v11878_v37 = vpop.f32.mrb[117].mxu1 }
 0x9ca   : > { %v17010_v44 = vadd.f32 %v11878_v37, %v11877_v13  ;;  %v11880_v24 = vpop.f32.mrb[118].mxu1 }
 0x9cb   : > { %v11881_v29 = vpop.f32.mrb[119].mxu1 }
 0x9cc   : > { %v17012_v10 = vadd.f32 %v11881_v29, %v11880_v24 }
 0x9d0   : > { %v11883_v19 = vpop.f32.mrb[120].mxu1 }
 0x9d1   : > { %v11884_v47 = vpop.f32.mrb[121].mxu1 }
 0x9d2   : > { %v17014_v63 = vadd.f32 %v11884_v47, %v11883_v19  ;;  %v11886_v60 = vpop.f32.mrb[122].mxu1  ;;  %v14471_v19 = vld [vmem:[%s17828_s7 + $0x30] sm:$0xff]  }
 0x9d3   : > { %v11887_v33 = vpop.f32.mrb[123].mxu1 }
 0x9d8   : > { %v7422_v34 = vpop.f32.mrb[124].mxu1 }
 0x9d9   : > { %v17016_v42 = vadd.f32 %v11849_v39, %v7422_v34  ;;  %v13303_v0 = vpop.f32.mrb[125].mxu1 }
 0x9da   : > { %v7425_v16 = vpop.f32.mrb[126].mxu1 }
 0x9db   : > { %7476 = vst [vmem:[#allocation3] sm:$0xff] %v17016_v42  ;;  %v17019_v4 = vadd.f32 %v11852_v18, %v7425_v16  ;;  %v13304_v51 = vpop.f32.mrb[127].mxu1 }
 0x9dd   : > { %7477 = vst [vmem:[#allocation3 + $0x8] sm:$0xff] %v17019_v4  ;;  %v7499_v58 = vpack.c.bf16 %v17019_v4, %v17016_v42  ;;  %v14476_v42 = vld [vmem:[%s17828_s7 + $0x98] sm:$0xff]   ;;  %v14477_v4 = vld [vmem:[%s17828_s7 + $0xa0] sm:$0xff]  }
 0x9e0   : > { %v7430_v6 = vpop.f32.mrb[128].mxu1 }
 0x9e1   : > { %v17024_v48 = vadd.f32 %v11855_v45, %v7430_v6  ;;  %v13307_v15 = vpop.f32.mrb[129].mxu1 }
 0x9e2   : > { %v7433_v8 = vpop.f32.mrb[130].mxu1 }
 0x9e3   : > { %7478 = vst [vmem:[#allocation3 + $0x10] sm:$0xff] %v17024_v48  ;;  %v17027_v53 = vadd.f32 %v11858_v9, %v7433_v8  ;;  %v13308_v17 = vpop.f32.mrb[131].mxu1  ;;  %v14473_v8 = vld [vmem:[%s17828_s7 + $0x80] sm:$0xff]  }
 0x9e4   : > { %v7520_v2 = vld [vmem:[#allocation3 + $0x1] sm:$0xff] }
 0x9e5   : > { %7479 = vst [vmem:[#allocation3 + $0x18] sm:$0xff] %v17027_v53  ;;  %v7500_v3 = vpack.c.bf16 %v17027_v53, %v17024_v48  ;;  %v14475_v17 = vld [vmem:[%s17828_s7 + $0x90] sm:$0xff]   ;;  %v14480_v53 = vld [vmem:[%s17828_s7 + $0xb8] sm:$0xff]  }
 0x9e6   : > { %v14479_v48 = vld [vmem:[%s17828_s7 + $0xb0] sm:$0xff]  }
 0x9e8   : > { %v7438_v46 = vpop.f32.mrb[132].mxu1 }
 0x9e9   : > { %v17032_v1 = vadd.f32 %v11861_v23, %v7438_v46  ;;  %v13311_v61 = vpop.f32.mrb[133].mxu1 }
 0x9ea   : > { %v7521_v30 = vld [vmem:[#allocation3 + $0x9] sm:$0xff]  ;;  %v7441_v36 = vpop.f32.mrb[134].mxu1 }
 0x9eb   : > { %v7530_v12 = vpack.c.bf16 %v7521_v30, %v7520_v2  ;;  %7480 = vst [vmem:[#allocation3 + $0x20] sm:$0xff] %v17032_v1  ;;  %v17038_v59 = vadd.f32 %v11864_v56, %v7441_v36  ;;  %v13312_v57 = vpop.f32.mrb[135].mxu1  ;;  %v7794_v61 = vld [vmem:[#allocation3 + $0x2] sm:$0xff]  ;;  %v14481_v2 = vld [vmem:[%s17828_s7 + $0xc0] sm:$0xff]  }
 0x9ec   : > { %v7522_v45 = vld [vmem:[#allocation3 + $0x11] sm:$0xff]  ;;  %v14482_v36 = vld [vmem:[%s17828_s7 + $0xc8] sm:$0xff]  }
 0x9ed   : > { %13346 = vmatmul.mubr.bf16.vlgmr.msra.gmra.mrb[152].mxu1 %v7530_v12  ;;  %7481 = vst [vmem:[#allocation3 + $0x28] sm:$0xff] %v17038_v59  ;;  %v7501_v39 = vpack.c.bf16 %v17038_v59, %v17032_v1  ;;  %v7795_v1 = vld [vmem:[#allocation3 + $0xa] sm:$0xff]  ;;  %v7958_v12 = vld [vmem:[#allocation3 + $0x12] sm:$0xff] }
 0x9ee   : > { %13349 = vmatprep.mubr.msk.bf16.mxu1 %vm14681_vm1, %v17845_v21  ;;  %13366 = vmatpush3.bf16.msra.mxu1 %v14465_v27  ;;  %v7804_v30 = vpack.c.bf16 %v7795_v1, %v7794_v61  ;;  %v14483_v59 = vld [vmem:[%s17828_s7 + $0xd0] sm:$0xff]  }
 0x9ef   : > { %13367 = vmatprep.subr.bf16.mxu1 %v17845_v21 }
 0x9f0   : > { %v7446_v54 = vpop.f32.mrb[136].mxu1 }
 0x9f1   : > { %v17049_v18 = vadd.f32 %v11867_v49, %v7446_v54  ;;  %v13315_v20 = vpop.f32.mrb[137].mxu1 }
 0x9f2   : > { %v7449_v55 = vpop.f32.mrb[138].mxu1  ;;  %13368 = vmatpush3.bf16.msra.mxu1 %v14466_v31  ;;  %v7523_v25 = vld [vmem:[#allocation3 + $0x19] sm:$0xff] }
 0x9f3   : > { %7482 = vst [vmem:[#allocation3 + $0x30] sm:$0xff] %v17049_v18  ;;  %v17052_v11 = vadd.f32 %v11870_v14, %v7449_v55  ;;  %v13316_v9 = vpop.f32.mrb[139].mxu1  ;;  %13369 = vmatprep.subr.bf16.mxu1 %v17845_v21  ;;  %v7531_v52 = vpack.c.bf16 %v7523_v25, %v7522_v45  ;;  %v7797_v27 = vld [vmem:[#allocation3 + $0x1a] sm:$0xff] }
 0x9f4   : > { %v7524_v38 = vld [vmem:[#allocation3 + $0x21] sm:$0xff]  ;;  %v7805_v57 = vpack.c.bf16 %v7797_v27, %v7958_v12 }
 0x9f5   : > { %7483 = vst [vmem:[#allocation3 + $0x38] sm:$0xff] %v17052_v11  ;;  %v7502_v23 = vpack.c.bf16 %v17052_v11, %v17049_v18  ;;  %13350 = vmatmul.mubr.bf16.gmra.mrb[156].mxu1 %v7531_v52  ;;  %v7798_v54 = vld [vmem:[#allocation3 + $0x22] sm:$0xff]  ;;  %v14485_v18 = vld [vmem:[%s17828_s7 + $0xe0] sm:$0xff]  }
 0x9f6   : > { %13353 = vmatprep.mubr.msk.bf16.mxu1 %vm14681_vm1, %v17845_v21  ;;  %13370 = vmatpush3.bf16.msra.mxu1 %v14467_v62  ;;  %v14486_v55 = vld [vmem:[%s17828_s7 + $0xe8] sm:$0xff]   ;;  %v14487_v11 = vld [vmem:[%s17828_s7 + $0xf0] sm:$0xff]   ;;  %v14488_v62 = vld [vmem:[%s17828_s7 + $0xf8] sm:$0xff]  }
 0x9f7   : > { %13371 = vmatprep.subr.bf16.mxu1 %v17845_v21 }
 0x9f8   : > { %v7454_v40 = vpop.f32.mrb[140].mxu1 }
 0x9f9   : > { %v17068_v56 = vadd.f32 %v17006_v32, %v7454_v40  ;;  %v13319_v43 = vpop.f32.mrb[141].mxu1  ;;  %v14470_v32 = vld [vmem:[%s17828_s7 + $0x28] sm:$0xff]   ;;  %v14489_v40 = vld [vmem:[%s17828_s7 + $0x100] sm:$0xff]  }
 0x9fa   : > { %v7525_v49 = vld [vmem:[#allocation3 + $0x29] sm:$0xff]  ;;  %v7457_v22 = vpop.f32.mrb[142].mxu1  ;;  %13372 = vmatpush3.bf16.msra.mxu1 %v14468_v35  ;;  %v14490_v43 = vld [vmem:[%s17828_s7 + $0x108] sm:$0xff]  }
 0x9fb   : > { %7484 = vst [vmem:[#allocation3 + $0x40] sm:$0xff] %v17068_v56  ;;  %v7532_v5 = vpack.c.bf16 %v7525_v49, %v7524_v38  ;;  %v7458_v14 = vadd.f32 %v17008_v7, %v7457_v22  ;;  %v13320_v41 = vpop.f32.mrb[143].mxu1  ;;  %13373 = vmatprep.subr.bf16.mxu1 %v17845_v21  ;;  %v7799_v31 = vld [vmem:[#allocation3 + $0x2a] sm:$0xff]  ;;  %v7968_v49 = vpack.c.bf16 %v7798_v54, %v7797_v27 }
 0x9fc   : > { %v7526_v13 = vld [vmem:[#allocation3 + $0x31] sm:$0xff]  ;;  %v7806_v20 = vpack.c.bf16 %v7799_v31, %v7798_v54  ;;  %v14491_v38 = vld [vmem:[%s17828_s7 + $0x110] sm:$0xff]  }
 0x9fd   : > { %7485 = vst [vmem:[#allocation3 + $0x48] sm:$0xff] %v7458_v14  ;;  %13354 = vmatmul.mubr.bf16.gmra.mrb[160].mxu1 %v7532_v5  ;;  %v7800_v25 = vld [vmem:[#allocation3 + $0x32] sm:$0xff]  ;;  %v14495_v41 = vld [vmem:[%s17828_s7 + $0x130] sm:$0xff]  }
 0x9fe   : > { %13357 = vmatprep.mubr.msk.bf16.mxu1 %vm14681_vm1, %v17845_v21  ;;  %13374 = vmatpush3.bf16.msra.mxu1 %v14469_v26  ;;  %v14492_v22 = vld [vmem:[%s17828_s7 + $0x118] sm:$0xff]   ;;  %v14493_v5 = vld [vmem:[%s17828_s7 + $0x120] sm:$0xff]   ;;  %v7969_v14 = vpack.c.bf16 %v7800_v25, %v7799_v31  ;;  %v14494_v26 = vld [vmem:[%s17828_s7 + $0x128] sm:$0xff]  }
 0x9ff   : > { %13375 = vmatprep.subr.bf16.mxu1 %v17845_v21  ;;  %v14507_v27 = vld [vmem:[%s17828_s7 + $0x190] sm:$0xff]  }
 0xa00   : > { %v7462_v50 = vpop.f32.mrb[144].mxu1 }
 0xa01   : > { %v7463_v28 = vadd.f32 %v17010_v44, %v7462_v50  ;;  %v13323_v7 = vpop.f32.mrb[145].mxu1  ;;  %v14472_v44 = vld [vmem:[%s17828_s7 + $0x38] sm:$0xff]  }
 0xa02   : > { %v7527_v37 = vld [vmem:[#allocation3 + $0x39] sm:$0xff]  ;;  %v7465_v24 = vpop.f32.mrb[146].mxu1  ;;  %13376 = vmatpush3.bf16.msra.mxu1 %v14470_v32  ;;  %v14496_v50 = vld [vmem:[%s17828_s7 + $0x138] sm:$0xff]  }
 0xa03   : > { %v7533_v29 = vpack.c.bf16 %v7527_v37, %v7526_v13  ;;  %7486 = vst [vmem:[#allocation3 + $0x50] sm:$0xff] %v7463_v28  ;;  %v7466_v47 = vadd.f32 %v17012_v10, %v7465_v24  ;;  %v13324_v60 = vpop.f32.mrb[147].mxu1  ;;  %13377 = vmatprep.subr.bf16.mxu1 %v17845_v21  ;;  %v7801_v45 = vld [vmem:[#allocation3 + $0x3a] sm:$0xff]  ;;  %v8120_v24 = vld [vmem:[#allocation3 + $0xb] sm:$0xff] }
 0xa04   : > { %v7528_v34 = vld [vmem:[#allocation3 + $0x41] sm:$0xff]  ;;  %v7529_v0 = vld [vmem:[#allocation3 + $0x49] sm:$0x3f]  ;;  %v7807_v9 = vpack.c.bf16 %v7801_v45, %v7800_v25  ;;  %v8121_v37 = vld [vmem:[#allocation3 + $0x13] sm:$0xff] }
 0xa05   : > { %7487 = vst [vmem:[#allocation3 + $0x58] sm:$0xff] %v7466_v47  ;;  %13358 = vmatmul.mubr.bf16.gmra.mrb[164].mxu1 %v7533_v29  ;;  %v7534_v15 = vpack.c.bf16 %v7529_v0, %v7528_v34  ;;  %v7802_v52 = vld [vmem:[#allocation3 + $0x42] sm:$0xff]  ;;  %v14497_v29 = vld [vmem:[%s17828_s7 + $0x140] sm:$0xff]   ;;  %v14500_v0 = vld [vmem:[%s17828_s7 + $0x158] sm:$0xff]  }
 0xa06   : > { %13361 = vmatprep.mubr.msk.bf16.mxu1 %vm14681_vm1, %v17845_v21  ;;  %13378 = vmatpush3.bf16.msra.mxu1 %v14471_v19  ;;  %v7970_v32 = vpack.c.bf16 %v7802_v52, %v7801_v45  ;;  %v8130_v19 = vpack.c.bf16 %v8121_v37, %v8120_v24  ;;  %v14498_v47 = vld [vmem:[%s17828_s7 + $0x148] sm:$0xff]  }
 0xa07   : > { %13379 = vmatprep.subr.bf16.mxu1 %v17845_v21  ;;  %v8123_v60 = vld [vmem:[#allocation3 + $0x23] sm:$0xff] }
 0xa08   : > { %v7470_v33 = vpop.f32.mrb[148].mxu1  ;;  %v14510_v25 = vld [vmem:[%s17828_s7 + $0x1a8] sm:$0xff]  }
 0xa09   : > { %v7471_v10 = vadd.f32 %v17014_v63, %v7470_v33  ;;  %v13327_v16 = vpop.f32.mrb[149].mxu1  ;;  %v14474_v63 = vld [vmem:[%s17828_s7 + $0x88] sm:$0xff]   ;;  %v14499_v33 = vld [vmem:[%s17828_s7 + $0x150] sm:$0xff]  }
 0xa0a   : > { %v7473_v51 = vpop.f32.mrb[150].mxu1  ;;  %13380 = vmatpush3.bf16.msra.mxu1 %v14472_v44  ;;  %v7965_v28 = vld [vmem:[#allocation3 + $0x4a] sm:$0xff]  ;;  %v7966_v7 = vld [vmem:[#allocation3 + $0x52] sm:$0x3f]  ;;  %v8122_v44 = vld [vmem:[#allocation3 + $0x1b] sm:$0xff] }
 0xa0b   : > { %7488 = vst [vmem:[#allocation3 + $0x60] sm:$0xf] %v7471_v10  ;;  %v13328_v6 = vpop.f32.mrb[151].mxu1  ;;  %13401 = vmatprep.subr.bf16.mxu1 %v17845_v21  ;;  %v7971_v13 = vpack.c.bf16 %v7966_v7, %v7965_v28  ;;  %v8131_v34 = vpack.c.bf16 %v8123_v60, %v8122_v44  ;;  %v8125_v10 = vld [vmem:[#allocation3 + $0x33] sm:$0xff]  ;;  %v8124_v16 = vld [vmem:[#allocation3 + $0x2b] sm:$0xff]  ;;  %v14514_v24 = vld [vmem:[%s17828_s7 + $0x1c8] sm:$0xff]  }
 0xa0c   : > { %v14501_v51 = vld [vmem:[%s17828_s7 + $0x160] sm:$0xff]   ;;  %v8132_v6 = vpack.c.bf16 %v8125_v10, %v8124_v16  ;;  %v14515_v60 = vld [vmem:[%s17828_s7 + $0x1d0] sm:$0xff]  }
 0xa0d   : > { %13362 = vmatmul.mubr.bf16.gmra.mrb[168].mxu1 %v7534_v15  ;;  %v14502_v15 = vld [vmem:[%s17828_s7 + $0x168] sm:$0xff]   ;;  %v14513_v7 = vld [vmem:[%s17828_s7 + $0x1c0] sm:$0xff]  }
 0xa0e   : > { %13381 = vmatprep.mubr.msk.bf16.mxu1 %vm14681_vm1, %v17845_v21 }
 0xa15   : > { %13382 = vmatmul.mubr.bf16.vlgmr.msra.gmra.mrb[172].mxu1 %v7499_v58  ;;  %v14478_v58 = vld [vmem:[%s17828_s7 + $0xa8] sm:$0xff]  }
 0xa16   : > { %13385 = vmatprep.mubr.msk.bf16.mxu1 %vm14681_vm1, %v17845_v21  ;;  %13402 = vmatpush3.bf16.msra.mxu1 %v14473_v8  ;;  %v8127_v8 = vld [vmem:[#allocation3 + $0x43] sm:$0xff] }
 0xa17   : > { %13403 = vmatprep.subr.bf16.mxu1 %v17845_v21 }
 0xa1a   : > { %13404 = vmatpush3.bf16.msra.mxu1 %v14474_v63  ;;  %v8126_v63 = vld [vmem:[#allocation3 + $0x3b] sm:$0xff] }
 0xa1b   : > { %13405 = vmatprep.subr.bf16.mxu1 %v17845_v21 }
 0xa1d   : > { %13386 = vmatmul.mubr.bf16.gmra.mrb[176].mxu1 %v7500_v3  ;;  %v7498_v3 = vld [vmem:[#allocation3 + $0x48] sm:$0x3f] }
 0xa1e   : > { %13389 = vmatprep.mubr.msk.bf16.mxu1 %vm14681_vm1, %v17845_v21  ;;  %13406 = vmatpush3.bf16.msra.mxu1 %v14475_v17  ;;  %v7503_v46 = vpack.c.bf16 %v7498_v3, %v17068_v56  ;;  %v7967_v56 = vpack.c.bf16 %v7958_v12, %v7795_v1  ;;  %v14503_v17 = vld [vmem:[%s17828_s7 + $0x170] sm:$0xff]   ;;  %v17279_v3 = vld [vmem:[#allocation3 + $0x14] sm:$0xff] }
 0xa1f   : > { %13407 = vmatprep.subr.bf16.mxu1 %v17845_v21  ;;  %v14505_v1 = vld [vmem:[%s17828_s7 + $0x180] sm:$0xff]  }
 0xa22   : > { %13408 = vmatpush3.bf16.msra.mxu1 %v14476_v42  ;;  %v8133_v42 = vpack.c.bf16 %v8127_v8, %v8126_v63 }
 0xa23   : > { %13409 = vmatprep.subr.bf16.mxu1 %v17845_v21 }
 0xa25   : > { %13390 = vmatmul.mubr.bf16.gmra.mrb[180].mxu1 %v7501_v39  ;;  %v14484_v39 = vld [vmem:[%s17828_s7 + $0xd8] sm:$0xff]  }
 0xa26   : > { %13393 = vmatprep.mubr.msk.bf16.mxu1 %vm14681_vm1, %v17845_v21  ;;  %13410 = vmatpush3.bf16.msra.mxu1 %v14477_v4  ;;  %v14504_v4 = vld [vmem:[%s17828_s7 + $0x178] sm:$0xff]  }
 0xa27   : > { %13411 = vmatprep.subr.bf16.mxu1 %v17845_v21 }
 0xa2a   : > { %13412 = vmatpush3.bf16.msra.mxu1 %v14478_v58  ;;  %v8129_v58 = vld [vmem:[#allocation3 + $0x53] sm:$0x3f] }
 0xa2b   : > { %13413 = vmatprep.subr.bf16.mxu1 %v17845_v21 }
 0xa2d   : > { %13394 = vmatmul.mubr.bf16.gmra.mrb[184].mxu1 %v7502_v23  ;;  %v7803_v23 = vld [vmem:[#allocation3 + $0x4a] sm:$0x3f] }
 0xa2e   : > { %13397 = vmatprep.mubr.msk.bf16.mxu1 %vm14681_vm1, %v17845_v21  ;;  %13414 = vmatpush3.bf16.msra.mxu1 %v14479_v48  ;;  %v7808_v35 = vpack.c.bf16 %v7803_v23, %v7802_v52  ;;  %v8128_v48 = vld [vmem:[#allocation3 + $0x4b] sm:$0xff]  ;;  %v8289_v52 = vld [vmem:[#allocation3 + $0x3c] sm:$0xff] }
 0xa2f   : > { %13415 = vmatprep.subr.bf16.mxu1 %v17845_v21  ;;  %v14511_v23 = vld [vmem:[%s17828_s7 + $0x1b0] sm:$0xff]  }
 0xa32   : > { %13416 = vmatpush3.bf16.msra.mxu1 %v14480_v53  ;;  %v8134_v53 = vpack.c.bf16 %v8129_v58, %v8128_v48 }
 0xa33   : > { %13437 = vmatprep.subr.bf16.mxu1 %v17845_v21 }
 0xa35   : > { %13398 = vmatmul.mubr.bf16.gmra.mrb[188].mxu1 %v7503_v46  ;;  %v8283_v46 = vld [vmem:[#allocation3 + $0xc] sm:$0xff] }
 0xa36   : > { %13417 = vmatprep.mubr.msk.bf16.mxu1 %vm14681_vm1, %v17845_v21  ;;  %v8293_v61 = vpack.c.bf16 %v17279_v3, %v8283_v46 }
 0xa3d   : > { %13418 = vmatmul.mubr.bf16.vlgmr.msra.gmra.mrb[192].mxu1 %v7804_v30  ;;  %v17291_v30 = vld [vmem:[#allocation3 + $0x24] sm:$0xff] }
 0xa3e   : > { %13421 = vmatprep.mubr.msk.bf16.mxu1 %vm14681_vm1, %v17845_v21  ;;  %13438 = vmatpush3.bf16.msra.mxu1 %v14481_v2  ;;  %v14506_v2 = vld [vmem:[%s17828_s7 + $0x188] sm:$0xff]  }
 0xa3f   : > { %13439 = vmatprep.subr.bf16.mxu1 %v17845_v21 }
 0xa42   : > { %13440 = vmatpush3.bf16.msra.mxu1 %v14482_v36  ;;  %v8447_v36 = vld [vmem:[#allocation3 + $0x1c] sm:$0xff] }
 0xa43   : > { %13441 = vmatprep.subr.bf16.mxu1 %v17845_v21  ;;  %v8294_v12 = vpack.c.bf16 %v17291_v30, %v8447_v36 }
 0xa45   : > { %13422 = vmatmul.mubr.bf16.gmra.mrb[196].mxu1 %v7805_v57 }
 0xa46   : > { %13425 = vmatprep.mubr.msk.bf16.mxu1 %vm14681_vm1, %v17845_v21  ;;  %13442 = vmatpush3.bf16.msra.mxu1 %v14483_v59  ;;  %v14508_v59 = vld [vmem:[%s17828_s7 + $0x198] sm:$0xff]  }
 0xa47   : > { %13443 = vmatprep.subr.bf16.mxu1 %v17845_v21 }
 0xa4a   : > { %13444 = vmatpush3.bf16.msra.mxu1 %v14484_v39  ;;  %v17306_v39 = vld [vmem:[#allocation3 + $0x34] sm:$0xff] }
 0xa4b   : > { %13445 = vmatprep.subr.bf16.mxu1 %v17845_v21  ;;  %v8458_v63 = vpack.c.bf16 %v8289_v52, %v17306_v39 }
 0xa4d   : > { %13426 = vmatmul.mubr.bf16.gmra.mrb[200].mxu1 %v7806_v20  ;;  %v14509_v20 = vld [vmem:[%s17828_s7 + $0x1a0] sm:$0xff]  }
 0xa4e   : > { %13429 = vmatprep.mubr.msk.bf16.mxu1 %vm14681_vm1, %v17845_v21  ;;  %13446 = vmatpush3.bf16.msra.mxu1 %v14485_v18  ;;  %v8287_v18 = vld [vmem:[#allocation3 + $0x2c] sm:$0xff] }
 0xa4f   : > { %13447 = vmatprep.subr.bf16.mxu1 %v17845_v21  ;;  %v8295_v45 = vpack.c.bf16 %v17306_v39, %v8287_v18  ;;  %v8457_v44 = vpack.c.bf16 %v8287_v18, %v17291_v30  ;;  %v8455_v30 = vld [vmem:[#allocation3 + $0x5c] sm:$0x3f] }
 0xa52   : > { %13448 = vmatpush3.bf16.msra.mxu1 %v14486_v55 }
 0xa53   : > { %13449 = vmatprep.subr.bf16.mxu1 %v17845_v21 }
 0xa55   : > { %13430 = vmatmul.mubr.bf16.gmra.mrb[204].mxu1 %v7807_v9 }
 0xa56   : > { %13433 = vmatprep.mubr.msk.bf16.mxu1 %vm14681_vm1, %v17845_v21  ;;  %13450 = vmatpush3.bf16.msra.mxu1 %v14487_v11  ;;  %v17321_v11 = vld [vmem:[#allocation3 + $0x44] sm:$0xff] }
 0xa57   : > { %13451 = vmatprep.subr.bf16.mxu1 %v17845_v21 }
 0xa5a   : > { %13452 = vmatpush3.bf16.msra.mxu1 %v14488_v62 }
 0xa5b   : > { %13473 = vmatprep.subr.bf16.mxu1 %v17845_v21 }
 0xa5d   : > { %13434 = vmatmul.mubr.bf16.gmra.mrb[208].mxu1 %v7808_v35 }
 0xa5e   : > { %13453 = vmatprep.mubr.msk.bf16.mxu1 %vm14681_vm1, %v17845_v21 }
 0xa65   : > { %13454 = vmatmul.mubr.bf16.vlgmr.msra.gmra.mrb[212].mxu1 %v7967_v56 }
 0xa66   : > { %13457 = vmatprep.mubr.msk.bf16.mxu1 %vm14681_vm1, %v17845_v21  ;;  %13474 = vmatpush3.bf16.msra.mxu1 %v14489_v40  ;;  %v8296_v40 = vpack.c.bf16 %v17321_v11, %v8289_v52 }
 0xa67   : > { %13475 = vmatprep.subr.bf16.mxu1 %v17845_v21 }
 0xa6a   : > { %13476 = vmatpush3.bf16.msra.mxu1 %v14490_v43  ;;  %v14512_v43 = vld [vmem:[%s17828_s7 + $0x1b8] sm:$0xff]  }
 0xa6b   : > { %13477 = vmatprep.subr.bf16.mxu1 %v17845_v21 }
 0xa6d   : > { %13458 = vmatmul.mubr.bf16.gmra.mrb[216].mxu1 %v7968_v49 }
 0xa6e   : > { %13461 = vmatprep.mubr.msk.bf16.mxu1 %vm14681_vm1, %v17845_v21  ;;  %13478 = vmatpush3.bf16.msra.mxu1 %v14491_v38  ;;  %v8292_v38 = vld [vmem:[#allocation3 + $0x54] sm:$0x3f] }
 0xa6f   : > { %13479 = vmatprep.subr.bf16.mxu1 %v17845_v21 }
 0xa72   : > { %13480 = vmatpush3.bf16.msra.mxu1 %v14492_v22 }
 0xa73   : > { %13481 = vmatprep.subr.bf16.mxu1 %v17845_v21 }
 0xa75   : > { %13462 = vmatmul.mubr.bf16.gmra.mrb[220].mxu1 %v7969_v14 }
 0xa76   : > { %13465 = vmatprep.mubr.msk.bf16.mxu1 %vm14681_vm1, %v17845_v21  ;;  %13482 = vmatpush3.bf16.msra.mxu1 %v14493_v5  ;;  %v8291_v5 = vld [vmem:[#allocation3 + $0x4c] sm:$0xff] }
 0xa77   : > { %13483 = vmatprep.subr.bf16.mxu1 %v17845_v21 }
 0xa7a   : > { %13484 = vmatpush3.bf16.msra.mxu1 %v14494_v26  ;;  %v8297_v26 = vpack.c.bf16 %v8292_v38, %v8291_v5 }
 0xa7b   : > { %13485 = vmatprep.subr.bf16.mxu1 %v17845_v21 }
 0xa7d   : > { %13466 = vmatmul.mubr.bf16.gmra.mrb[224].mxu1 %v7970_v32 }
 0xa7e   : > { %13469 = vmatprep.mubr.msk.bf16.mxu1 %vm14681_vm1, %v17845_v21  ;;  %13486 = vmatpush3.bf16.msra.mxu1 %v14495_v41 }
 0xa7f   : > { %13487 = vmatprep.subr.bf16.mxu1 %v17845_v21 }
 0xa82   : > { %13488 = vmatpush3.bf16.msra.mxu1 %v14496_v50 }
 0xa83   : > { %13509 = vmatprep.subr.bf16.mxu1 %v17845_v21 }
 0xa85   : > { %13470 = vmatmul.mubr.bf16.gmra.mrb[228].mxu1 %v7971_v13  ;;  %v8456_v13 = vpack.c.bf16 %v8447_v36, %v17279_v3 }
 0xa86   : > { %13489 = vmatprep.mubr.msk.bf16.mxu1 %vm14681_vm1, %v17845_v21 }
 0xa8d   : > { %13490 = vmatmul.mubr.bf16.vlgmr.msra.gmra.mrb[232].mxu1 %v8130_v19 }
 0xa8e   : > { %13493 = vmatprep.mubr.msk.bf16.mxu1 %vm14681_vm1, %v17845_v21  ;;  %13510 = vmatpush3.bf16.msra.mxu1 %v14497_v29 }
 0xa8f   : > { %13511 = vmatprep.subr.bf16.mxu1 %v17845_v21 }
 0xa92   : > { %13512 = vmatpush3.bf16.msra.mxu1 %v14498_v47 }
 0xa93   : > { %13513 = vmatprep.subr.bf16.mxu1 %v17845_v21 }
 0xa95   : > { %13494 = vmatmul.mubr.bf16.gmra.mrb[236].mxu1 %v8131_v34  ;;  %v14516_v34 = vld [vmem:[%s17828_s7 + $0x1d8] sm:$0xff]  }
 0xa96   : > { %13497 = vmatprep.mubr.msk.bf16.mxu1 %vm14681_vm1, %v17845_v21  ;;  %13514 = vmatpush3.bf16.msra.mxu1 %v14499_v33 }
 0xa97   : > { %13515 = vmatprep.subr.bf16.mxu1 %v17845_v21 }
 0xa9a   : > { %13516 = vmatpush3.bf16.msra.mxu1 %v14500_v0 }
 0xa9b   : > { %13517 = vmatprep.subr.bf16.mxu1 %v17845_v21 }
 0xa9d   : > { %13498 = vmatmul.mubr.bf16.gmra.mrb[240].mxu1 %v8132_v6  ;;  %v14517_v6 = vld [vmem:[%s17828_s7 + $0x1e0] sm:$0xff]  }
 0xa9e   : > { %13501 = vmatprep.mubr.msk.bf16.mxu1 %vm14681_vm1, %v17845_v21  ;;  %13518 = vmatpush3.bf16.msra.mxu1 %v14501_v51 }
 0xa9f   : > { %13519 = vmatprep.subr.bf16.mxu1 %v17845_v21 }
 0xaa2   : > { %13520 = vmatpush3.bf16.msra.mxu1 %v14502_v15 }
 0xaa3   : > { %13521 = vmatprep.subr.bf16.mxu1 %v17845_v21 }
 0xaa5   : > { %13502 = vmatmul.mubr.bf16.gmra.mrb[244].mxu1 %v8133_v42 }
 0xaa6   : > { %13505 = vmatprep.mubr.msk.bf16.mxu1 %vm14681_vm1, %v17845_v21  ;;  %13522 = vmatpush3.bf16.msra.mxu1 %v14503_v17  ;;  %v14518_v17 = vld [vmem:[%s17828_s7 + $0x1e8] sm:$0xff]  }
 0xaa7   : > { %13523 = vmatprep.subr.bf16.mxu1 %v17845_v21 }
 0xaaa   : > { %13524 = vmatpush3.bf16.msra.mxu1 %v14504_v4 }
 0xaab   : > { %13545 = vmatprep.subr.bf16.mxu1 %v17845_v21 }
 0xaad   : > { %13506 = vmatmul.mubr.bf16.gmra.mrb[248].mxu1 %v8134_v53  ;;  %v14519_v53 = vld [vmem:[%s17828_s7 + $0x1f0] sm:$0xff]  }
 0xaae   : > { %13525 = vmatprep.mubr.msk.bf16.mxu1 %vm14681_vm1, %v17845_v21 }
 0xab5   : > { %13526 = vmatmul.mubr.bf16.vlgmr.msra.gmra.mrb[252].mxu1 %v8293_v61  ;;  %v14520_v61 = vld [vmem:[%s17828_s7 + $0x1f8] sm:$0xff]  }
 0xab6   : > { %13529 = vmatprep.mubr.msk.bf16.mxu1 %vm14681_vm1, %v17845_v21  ;;  %13546 = vmatpush3.bf16.msra.mxu1 %v14505_v1  ;;  %v8459_v1 = vpack.c.bf16 %v8291_v5, %v17321_v11  ;;  %v14521_v11 = vld [vmem:[%s17828_s7 + $0x200] sm:$0xff]  }
 0xab7   : > { %13547 = vmatprep.subr.bf16.mxu1 %v17845_v21 }
 0xaba   : > { %13548 = vmatpush3.bf16.msra.mxu1 %v14506_v2 }
 0xabb   : > { %13549 = vmatprep.subr.bf16.mxu1 %v17845_v21 }
 0xabd   : > { %13530 = vmatmul.mubr.bf16.gmra.mrb[0].mxu1 %v8294_v12 }
 0xabe   : > { %13533 = vmatprep.mubr.msk.bf16.mxu1 %vm14681_vm1, %v17845_v21  ;;  %13550 = vmatpush3.bf16.msra.mxu1 %v14507_v27 }
 0xabf   : > { %13551 = vmatprep.subr.bf16.mxu1 %v17845_v21 }
 0xac0   : > { %v17304_v57 = vpop.f32.mrb[152].mxu1 }
 0xac1   : > { %v13347_v31 = vpop.f32.mrb[153].mxu1 }
 0xac2   : > { %v17308_v54 = vpop.f32.mrb[154].mxu1  ;;  %13552 = vmatpush3.bf16.msra.mxu1 %v14508_v59  ;;  %v8454_v59 = vld [vmem:[#allocation3 + $0x54] sm:$0xff] }
 0xac3   : > { %v13348_v55 = vpop.f32.mrb[155].mxu1  ;;  %13553 = vmatprep.subr.bf16.mxu1 %v17845_v21  ;;  %v8460_v31 = vpack.c.bf16 %v8455_v30, %v8454_v59 }
 0xac5   : > { %13534 = vmatmul.mubr.bf16.gmra.mrb[4].mxu1 %v8295_v45  ;;  %v8609_v45 = vld [vmem:[#allocation3 + $0x15] sm:$0xff] }
 0xac6   : > { %13537 = vmatprep.mubr.msk.bf16.mxu1 %vm14681_vm1, %v17845_v21  ;;  %13554 = vmatpush3.bf16.msra.mxu1 %v14509_v20 }
 0xac7   : > { %13555 = vmatprep.subr.bf16.mxu1 %v17845_v21 }
 0xac8   : > { %v17323_v9 = vpop.f32.mrb[156].mxu1 }
 0xac9   : > { %v13351_v62 = vpop.f32.mrb[157].mxu1 }
 0xaca   : > { %13556 = vmatpush3.bf16.msra.mxu1 %v14510_v25  ;;  %v17328_v35 = vpop.f32.mrb[158].mxu1 }
 0xacb   : > { %13557 = vmatprep.subr.bf16.mxu1 %v17845_v21  ;;  %v13352_v56 = vpop.f32.mrb[159].mxu1 }
 0xacd   : > { %13538 = vmatmul.mubr.bf16.gmra.mrb[8].mxu1 %v8296_v40  ;;  %v8612_v40 = vld [vmem:[#allocation3 + $0x2d] sm:$0xff] }
 0xace   : > { %13541 = vmatprep.mubr.msk.bf16.mxu1 %vm14681_vm1, %v17845_v21  ;;  %13558 = vmatpush3.bf16.msra.mxu1 %v14511_v23  ;;  %v14522_v23 = vld [vmem:[%s17828_s7 + $0x208] sm:$0xff]  }
 0xacf   : > { %13559 = vmatprep.subr.bf16.mxu1 %v17845_v21 }
 0xad0   : > { %v17338_v49 = vpop.f32.mrb[160].mxu1 }
 0xad1   : > { %v13355_v22 = vpop.f32.mrb[161].mxu1 }
 0xad2   : > { %13560 = vmatpush3.bf16.msra.mxu1 %v14512_v43  ;;  %v17340_v14 = vpop.f32.mrb[162].mxu1  ;;  %v14523_v22 = vld [vmem:[%s17828_s7 + $0x210] sm:$0xff]  }
 0xad3   : > { %v13356_v41 = vpop.f32.mrb[163].mxu1  ;;  %13581 = vmatprep.subr.bf16.mxu1 %v17845_v21 }
 0xad4   : > { %v14524_v41 = vld [vmem:[%s17828_s7 + $0x218] sm:$0xff]  }
 0xad5   : > { %13542 = vmatmul.mubr.bf16.gmra.mrb[12].mxu1 %v8297_v26 }
 0xad6   : > { %13561 = vmatprep.mubr.msk.bf16.mxu1 %vm14681_vm1, %v17845_v21 }
 0xad8   : > { %v17345_v32 = vpop.f32.mrb[164].mxu1 }
 0xad9   : > { %v13359_v50 = vpop.f32.mrb[165].mxu1 }
 0xada   : > { %v17347_v28 = vpop.f32.mrb[166].mxu1  ;;  %v8614_v50 = vld [vmem:[#allocation3 + $0x3d] sm:$0xff] }
 0xadb   : > { %v13360_v37 = vpop.f32.mrb[167].mxu1 }
 0xadc   : > { %v8613_v37 = vld [vmem:[#allocation3 + $0x35] sm:$0xff] }
 0xadd   : > { %13562 = vmatmul.mubr.bf16.vlgmr.msra.gmra.mrb[16].mxu1 %v8456_v13 }
 0xade   : > { %13565 = vmatprep.mubr.msk.bf16.mxu1 %vm14681_vm1, %v17845_v21  ;;  %13582 = vmatpush3.bf16.msra.mxu1 %v14513_v7 }
 0xadf   : > { %13583 = vmatprep.subr.bf16.mxu1 %v17845_v21 }
 0xae0   : > { %v17359_v29 = vpop.f32.mrb[168].mxu1 }
 0xae1   : > { %v13363_v19 = vpop.f32.mrb[169].mxu1 }
 0xae2   : > { %v17361_v47 = vpop.f32.mrb[170].mxu1  ;;  %13584 = vmatpush3.bf16.msra.mxu1 %v14514_v24  ;;  %v14525_v24 = vld [vmem:[%s17828_s7 + $0x220] sm:$0xff]  }
 0xae3   : > { %v13364_v33 = vpop.f32.mrb[171].mxu1  ;;  %13585 = vmatprep.subr.bf16.mxu1 %v17845_v21 }
 0xae4   : > { %v8616_v33 = vld [vmem:[#allocation3 + $0x4d] sm:$0xff] }
 0xae5   : > { %13566 = vmatmul.mubr.bf16.gmra.mrb[20].mxu1 %v8457_v44 }
 0xae6   : > { %13569 = vmatprep.mubr.msk.bf16.mxu1 %vm14681_vm1, %v17845_v21  ;;  %13586 = vmatpush3.bf16.msra.mxu1 %v14515_v60  ;;  %v14526_v60 = vld [vmem:[%s17828_s7 + $0x228] sm:$0xff]  }
 0xae7   : > { %13587 = vmatprep.subr.bf16.mxu1 %v17845_v21 }
 0xae8   : > { %v7755_v0 = vpop.f32.mrb[172].mxu1 }
 0xae9   : > { %v17375_v10 = vadd.f32 %v7755_v0, %v17304_v57  ;;  %v13383_v16 = vpop.f32.mrb[173].mxu1 }
 0xaea   : > { %v7758_v51 = vpop.f32.mrb[174].mxu1  ;;  %13588 = vmatpush3.bf16.msra.mxu1 %v14516_v34  ;;  %v8615_v16 = vld [vmem:[#allocation3 + $0x45] sm:$0xff] }
 0xaeb   : > { %v17381_v15 = vadd.f32 %v7758_v51, %v17308_v54  ;;  %v13384_v8 = vpop.f32.mrb[175].mxu1  ;;  %13589 = vmatprep.subr.bf16.mxu1 %v17845_v21  ;;  %v8610_v54 = vld [vmem:[#allocation3 + $0x1d] sm:$0xff]  ;;  %v14527_v51 = vld [vmem:[%s17828_s7 + $0x230] sm:$0xff]  }
 0xaec   : > { %v8622_v8 = vpack.c.bf16 %v8616_v33, %v8615_v16 }
 0xaed   : > { %13570 = vmatmul.mubr.bf16.gmra.mrb[24].mxu1 %v8458_v63  ;;  %v14528_v63 = vld [vmem:[%s17828_s7 + $0x238] sm:$0xff]  }
 0xaee   : > { %13573 = vmatprep.mubr.msk.bf16.mxu1 %vm14681_vm1, %v17845_v21  ;;  %13590 = vmatpush3.bf16.msra.mxu1 %v14517_v6 }
 0xaef   : > { %13591 = vmatprep.subr.bf16.mxu1 %v17845_v21 }
 0xaf0   : > { %v7763_v42 = vpop.f32.mrb[176].mxu1 }
 0xaf1   : > { %v17392_v4 = vadd.f32 %v7763_v42, %v17323_v9  ;;  %v13387_v58 = vpop.f32.mrb[177].mxu1  ;;  %v8619_v9 = vpack.c.bf16 %v8610_v54, %v8609_v45  ;;  %v8618_v42 = vld [vmem:[#allocation3 + $0x5d] sm:$0x3f]  ;;  %v8775_v54 = vld [vmem:[#allocation3 + $0x2e] sm:$0xff] }
 0xaf2   : > { %v7766_v48 = vpop.f32.mrb[178].mxu1  ;;  %13592 = vmatpush3.bf16.msra.mxu1 %v14518_v17 }
 0xaf3   : > { %v17398_v3 = vadd.f32 %v7766_v48, %v17328_v35  ;;  %v13388_v46 = vpop.f32.mrb[179].mxu1  ;;  %13593 = vmatprep.subr.bf16.mxu1 %v17845_v21 }
 0xaf5   : > { %13574 = vmatmul.mubr.bf16.gmra.mrb[28].mxu1 %v8459_v1 }
 0xaf6   : > { %13577 = vmatprep.mubr.msk.bf16.mxu1 %vm14681_vm1, %v17845_v21  ;;  %13594 = vmatpush3.bf16.msra.mxu1 %v14519_v53  ;;  %v8617_v53 = vld [vmem:[#allocation3 + $0x55] sm:$0xff] }
 0xaf7   : > { %13595 = vmatprep.subr.bf16.mxu1 %v17845_v21  ;;  %v8623_v1 = vpack.c.bf16 %v8618_v42, %v8617_v53 }
 0xaf8   : > { %v7771_v2 = vpop.f32.mrb[180].mxu1 }
 0xaf9   : > { %v17409_v36 = vadd.f32 %v7771_v2, %v17338_v49  ;;  %v13391_v27 = vpop.f32.mrb[181].mxu1  ;;  %v8611_v49 = vld [vmem:[#allocation3 + $0x25] sm:$0xff] }
 0xafa   : > { %v7774_v12 = vpop.f32.mrb[182].mxu1  ;;  %13596 = vmatpush3.bf16.msra.mxu1 %v14520_v61  ;;  %v8620_v26 = vpack.c.bf16 %v8612_v40, %v8611_v49  ;;  %v8773_v61 = vld [vmem:[#allocation3 + $0x1e] sm:$0xff] }
 0xafb   : > { %v17412_v57 = vadd.f32 %v7774_v12, %v17340_v14  ;;  %v13392_v39 = vpop.f32.mrb[183].mxu1  ;;  %13617 = vmatprep.subr.bf16.mxu1 %v17845_v21  ;;  %v8772_v12 = vld [vmem:[#allocation3 + $0x16] sm:$0xff] }
 0xafd   : > { %13578 = vmatmul.mubr.bf16.gmra.mrb[32].mxu1 %v8460_v31 }
 0xafe   : > { %13597 = vmatprep.mubr.msk.bf16.mxu1 %vm14681_vm1, %v17845_v21 }
 0xb00   : > { %v7779_v18 = vpop.f32.mrb[184].mxu1 }
 0xb01   : > { %v17418_v20 = vadd.f32 %v7779_v18, %v17345_v32  ;;  %v13395_v55 = vpop.f32.mrb[185].mxu1 }
 0xb02   : > { %v7782_v25 = vpop.f32.mrb[186].mxu1 }
 0xb03   : > { %v17424_v62 = vadd.f32 %v7782_v25, %v17347_v28  ;;  %v13396_v52 = vpop.f32.mrb[187].mxu1  ;;  %v8774_v25 = vld [vmem:[#allocation3 + $0x26] sm:$0xff] }
 0xb04   : > { %v8777_v52 = vld [vmem:[#allocation3 + $0x3e] sm:$0xff] }
 0xb05   : > { %13598 = vmatmul.mubr.bf16.vlgmr.msra.gmra.mrb[36].mxu1 %v8619_v9  ;;  %v8783_v9 = vpack.c.bf16 %v8775_v54, %v8774_v25 }
 0xb06   : > { %13601 = vmatprep.mubr.msk.bf16.mxu1 %vm14681_vm1, %v17845_v21  ;;  %13618 = vmatpush3.bf16.msra.mxu1 %v14521_v11 }
 0xb07   : > { %13619 = vmatprep.subr.bf16.mxu1 %v17845_v21 }
 0xb08   : > { %v7787_v35 = vpop.f32.mrb[188].mxu1 }
 0xb09   : > { %v17433_v56 = vadd.f32 %v7787_v35, %v17359_v29  ;;  %v13399_v43 = vpop.f32.mrb[189].mxu1 }
 0xb0a   : > { %v7790_v38 = vpop.f32.mrb[190].mxu1  ;;  %13620 = vmatpush3.bf16.msra.mxu1 %v14522_v23  ;;  %v8776_v43 = vld [vmem:[#allocation3 + $0x36] sm:$0xff] }
 0xb0b   : > { %v17439_v5 = vadd.f32 %v7790_v38, %v17361_v47  ;;  %v13400_v14 = vpop.f32.mrb[191].mxu1  ;;  %13621 = vmatprep.subr.bf16.mxu1 %v17845_v21  ;;  %v8621_v47 = vpack.c.bf16 %v8614_v50, %v8613_v37  ;;  %v8784_v49 = vpack.c.bf16 %v8777_v52, %v8776_v43  ;;  %v8781_v37 = vld [vmem:[#allocation3 + $0x5e] sm:$0x3f] }
 0xb0d   : > { %13602 = vmatmul.mubr.bf16.gmra.mrb[40].mxu1 %v8620_v26 }
 0xb0e   : > { %13605 = vmatprep.mubr.msk.bf16.mxu1 %vm14681_vm1, %v17845_v21  ;;  %13622 = vmatpush3.bf16.msra.mxu1 %v14523_v22 }
 0xb0f   : > { %13623 = vmatprep.subr.bf16.mxu1 %v17845_v21 }
 0xb10   : > { %v7908_v32 = vpop.f32.mrb[192].mxu1 }
 0xb11   : > { %v17449_v28 = vadd.f32 %v7908_v32, %v17375_v10  ;;  %v13419_v7 = vpop.f32.mrb[193].mxu1  ;;  %v8778_v32 = vld [vmem:[#allocation3 + $0x46] sm:$0xff] }
 0xb12   : > { %v7911_v13 = vpop.f32.mrb[194].mxu1  ;;  %13624 = vmatpush3.bf16.msra.mxu1 %v14524_v41 }
 0xb13   : > { %v17455_v29 = vadd.f32 %v7911_v13, %v17381_v15  ;;  %v13420_v19 = vpop.f32.mrb[195].mxu1  ;;  %13625 = vmatprep.subr.bf16.mxu1 %v17845_v21 }
 0xb15   : > { %13606 = vmatmul.mubr.bf16.gmra.mrb[44].mxu1 %v8621_v47  ;;  %v8780_v47 = vld [vmem:[#allocation3 + $0x56] sm:$0xff] }
 0xb16   : > { %13609 = vmatprep.mubr.msk.bf16.mxu1 %vm14681_vm1, %v17845_v21  ;;  %13626 = vmatpush3.bf16.msra.mxu1 %v14525_v24  ;;  %v8786_v33 = vpack.c.bf16 %v8781_v37, %v8780_v47 }
 0xb17   : > { %13627 = vmatprep.subr.bf16.mxu1 %v17845_v21 }
 0xb18   : > { %v7916_v44 = vpop.f32.mrb[196].mxu1 }
 0xb19   : > { %v7949_v34 = vadd.f32 %v7916_v44, %v17392_v4  ;;  %v13423_v0 = vpop.f32.mrb[197].mxu1 }
 0xb1a   : > { %v7919_v10 = vpop.f32.mrb[198].mxu1  ;;  %13628 = vmatpush3.bf16.msra.mxu1 %v14526_v60 }
 0xb1b   : > { %v7950_v6 = vadd.f32 %v7919_v10, %v17398_v3  ;;  %v13424_v15 = vpop.f32.mrb[199].mxu1  ;;  %13629 = vmatprep.subr.bf16.mxu1 %v17845_v21 }
 0xb1d   : > { %13610 = vmatmul.mubr.bf16.gmra.mrb[48].mxu1 %v8622_v8 }
 0xb1e   : > { %13613 = vmatprep.mubr.msk.bf16.mxu1 %vm14681_vm1, %v17845_v21  ;;  %13630 = vmatpush3.bf16.msra.mxu1 %v14527_v51 }
 0xb1f   : > { %13631 = vmatprep.subr.bf16.mxu1 %v17845_v21 }
 0xb20   : > { %v7924_v17 = vpop.f32.mrb[200].mxu1 }
 0xb21   : > { %v7951_v4 = vadd.f32 %v7924_v17, %v17409_v36  ;;  %v13427_v58 = vpop.f32.mrb[201].mxu1  ;;  %v8782_v36 = vpack.c.bf16 %v8773_v61, %v8772_v12 }
 0xb22   : > { %v7927_v48 = vpop.f32.mrb[202].mxu1  ;;  %13632 = vmatpush3.bf16.msra.mxu1 %v14528_v63 }
 0xb23   : > { %v7952_v3 = vadd.f32 %v7927_v48, %v17412_v57  ;;  %v13428_v46 = vpop.f32.mrb[203].mxu1 }
 0xb25   : > { %13614 = vmatmul.mubr.bf16.gmra.mrb[52].mxu1 %v8623_v1 }
 0xb26   : > { %13633 = vmatprep.mubr.msk.bf16.mxu1 %vm14681_vm1, %v17845_v21 }
 0xb28   : > { %v7932_v2 = vpop.f32.mrb[204].mxu1 }
 0xb29   : > { %v7953_v30 = vadd.f32 %v7932_v2, %v17418_v20  ;;  %v13431_v27 = vpop.f32.mrb[205].mxu1 }
 0xb2a   : > { %v7935_v59 = vpop.f32.mrb[206].mxu1 }
 0xb2b   : > { %v7954_v39 = vadd.f32 %v7935_v59, %v17424_v62  ;;  %v13432_v31 = vpop.f32.mrb[207].mxu1 }
 0xb2d   : > { %13634 = vmatmul.mubr.bf16.vlgmr.msra.gmra.mrb[56].mxu1 %v8782_v36 }
 0xb2e   : > { %13637 = vmatprep.mubr.msk.bf16.mxu1 %vm14681_vm1, %v17845_v21 }
 0xb30   : > { %v7940_v57 = vpop.f32.mrb[208].mxu1 }
 0xb31   : > { %v7955_v18 = vadd.f32 %v7940_v57, %v17433_v56  ;;  %v13435_v55 = vpop.f32.mrb[209].mxu1 }
 0xb32   : > { %v7943_v45 = vpop.f32.mrb[210].mxu1 }
 0xb33   : > { %v7956_v20 = vadd.f32 %v7943_v45, %v17439_v5  ;;  %v13436_v11 = vpop.f32.mrb[211].mxu1  ;;  %v8779_v5 = vld [vmem:[#allocation3 + $0x4e] sm:$0xff] }
 0xb35   : > { %13638 = vmatmul.mubr.bf16.gmra.mrb[60].mxu1 %v8783_v9 }
 0xb36   : > { %13641 = vmatprep.mubr.msk.bf16.mxu1 %vm14681_vm1, %v17845_v21 }
 0xb38   : > { %v8071_v62 = vpop.f32.mrb[212].mxu1 }
 0xb39   : > { %v8110_v23 = vadd.f32 %v8071_v62, %v17449_v28  ;;  %v13455_v35 = vpop.f32.mrb[213].mxu1  ;;  %v8785_v28 = vpack.c.bf16 %v8779_v5, %v8778_v32 }
 0xb3a   : > { %v8074_v40 = vpop.f32.mrb[214].mxu1 }
 0xb3b   : > { %v8111_v56 = vadd.f32 %v8074_v40, %v17455_v29  ;;  %v13456_v38 = vpop.f32.mrb[215].mxu1 }
 0xb3d   : > { %13642 = vmatmul.mubr.bf16.gmra.mrb[64].mxu1 %v8784_v49 }
 0xb3e   : > { %13645 = vmatprep.mubr.msk.bf16.mxu1 %vm14681_vm1, %v17845_v21 }
 0xb40   : > { %v8079_v22 = vpop.f32.mrb[216].mxu1 }
 0xb41   : > { %v8112_v14 = vadd.f32 %v8079_v22, %v7949_v34  ;;  %v13459_v26 = vpop.f32.mrb[217].mxu1 }
 0xb42   : > { %v8082_v41 = vpop.f32.mrb[218].mxu1 }
 0xb43   : > { %v8113_v50 = vadd.f32 %v8082_v41, %v7950_v6  ;;  %v13460_v7 = vpop.f32.mrb[219].mxu1 }
 0xb45   : > { %13646 = vmatmul.mubr.bf16.gmra.mrb[68].mxu1 %v8785_v28 }
 0xb46   : > { %13649 = vmatprep.mubr.msk.bf16.mxu1 %vm14681_vm1, %v17845_v21 }
 0xb48   : > { %v8087_v13 = vpop.f32.mrb[220].mxu1 }
 0xb49   : > { %v8114_v24 = vadd.f32 %v8087_v13, %v7951_v4  ;;  %v13463_v29 = vpop.f32.mrb[221].mxu1 }
 0xb4a   : > { %v8090_v19 = vpop.f32.mrb[222].mxu1 }
 0xb4b   : > { %v8115_v60 = vadd.f32 %v8090_v19, %v7952_v3  ;;  %v13464_v44 = vpop.f32.mrb[223].mxu1 }
 0xb4d   : > { %13650 = vmatmul.mubr.bf16.gmra.mrb[72].mxu1 %v8786_v33 }
 0xb50   : > { %v8095_v34 = vpop.f32.mrb[224].mxu1 }
 0xb51   : > { %v8116_v0 = vadd.f32 %v8095_v34, %v7953_v30  ;;  %v13467_v10 = vpop.f32.mrb[225].mxu1 }
 0xb52   : > { %v8098_v16 = vpop.f32.mrb[226].mxu1 }
 0xb53   : > { %v8117_v51 = vadd.f32 %v8098_v16, %v7954_v39  ;;  %v13468_v6 = vpop.f32.mrb[227].mxu1 }
 0xb58   : > { %v8103_v15 = vpop.f32.mrb[228].mxu1 }
 0xb59   : > { %v8118_v8 = vadd.f32 %v8103_v15, %v7955_v18  ;;  %v13471_v63 = vpop.f32.mrb[229].mxu1 }
 0xb5a   : > { %v8106_v17 = vpop.f32.mrb[230].mxu1 }
 0xb5b   : > { %v8119_v42 = vadd.f32 %v8106_v17, %v7956_v20  ;;  %v13472_v58 = vpop.f32.mrb[231].mxu1 }
 0xb60   : > { %v8234_v4 = vpop.f32.mrb[232].mxu1 }
 0xb61   : > { %v8273_v48 = vadd.f32 %v8234_v4, %v8110_v23  ;;  %v13491_v53 = vpop.f32.mrb[233].mxu1 }
 0xb62   : > { %v8237_v46 = vpop.f32.mrb[234].mxu1 }
 0xb63   : > { %v8274_v3 = vadd.f32 %v8237_v46, %v8111_v56  ;;  %v13492_v1 = vpop.f32.mrb[235].mxu1 }
 0xb68   : > { %v8242_v61 = vpop.f32.mrb[236].mxu1 }
 0xb69   : > { %v8275_v2 = vadd.f32 %v8242_v61, %v8112_v14  ;;  %v13495_v27 = vpop.f32.mrb[237].mxu1 }
 0xb6a   : > { %v8245_v30 = vpop.f32.mrb[238].mxu1 }
 0xb6b   : > { %v8276_v12 = vadd.f32 %v8245_v30, %v8113_v50  ;;  %v13496_v59 = vpop.f32.mrb[239].mxu1 }
 0xb6c   : > { %v14533_v59 = vld [vmem:[%s17831_s10 + $0x48] sm:$0xff]  }
 0xb70   : > { %v8250_v36 = vpop.f32.mrb[240].mxu1 }
 0xb71   : > { %v8277_v39 = vadd.f32 %v8250_v36, %v8114_v24  ;;  %v13499_v31 = vpop.f32.mrb[241].mxu1 }
 0xb72   : > { %v8253_v57 = vpop.f32.mrb[242].mxu1 }
 0xb73   : > { %v8278_v54 = vadd.f32 %v8253_v57, %v8115_v60  ;;  %v13500_v18 = vpop.f32.mrb[243].mxu1 }
 0xb74   : > { %v14534_v18 = vld [vmem:[%s17831_s10 + $0x50] sm:$0xff]  }
 0xb78   : > { %v8258_v55 = vpop.f32.mrb[244].mxu1 }
 0xb79   : > { %v8279_v45 = vadd.f32 %v8258_v55, %v8116_v0  ;;  %v13503_v25 = vpop.f32.mrb[245].mxu1 }
 0xb7a   : > { %v8261_v20 = vpop.f32.mrb[246].mxu1 }
 0xb7b   : > { %v8280_v11 = vadd.f32 %v8261_v20, %v8117_v51  ;;  %v13504_v9 = vpop.f32.mrb[247].mxu1 }
 0xb80   : > { %v8266_v62 = vpop.f32.mrb[248].mxu1 }
 0xb81   : > { %v8281_v52 = vadd.f32 %v8266_v62, %v8118_v8  ;;  %v13507_v23 = vpop.f32.mrb[249].mxu1 }
 0xb82   : > { %v8269_v35 = vpop.f32.mrb[250].mxu1 }
 0xb83   : > { %v8282_v40 = vadd.f32 %v8269_v35, %v8119_v42  ;;  %v13508_v43 = vpop.f32.mrb[251].mxu1 }
 0xb88   : > { %v8397_v56 = vpop.f32.mrb[252].mxu1 }
 0xb89   : > { %v8436_v38 = vadd.f32 %v8397_v56, %v8273_v48  ;;  %v13527_v49 = vpop.f32.mrb[253].mxu1 }
 0xb8a   : > { %v8400_v22 = vpop.f32.mrb[254].mxu1 }
 0xb8b   : > { %v8437_v5 = vadd.f32 %v8400_v22, %v8274_v3  ;;  %v13528_v14 = vpop.f32.mrb[255].mxu1 }
 0xb90   : > { %v8405_v26 = vpop.f32.mrb[0].mxu1 }
 0xb91   : > { %v8438_v41 = vadd.f32 %v8405_v26, %v8275_v2  ;;  %v13531_v32 = vpop.f32.mrb[1].mxu1 }
 0xb92   : > { %v8408_v50 = vpop.f32.mrb[2].mxu1 }
 0xb93   : > { %v8439_v7 = vadd.f32 %v8408_v50, %v8276_v12  ;;  %v13532_v28 = vpop.f32.mrb[3].mxu1  ;;  %v14532_v12 = vld [vmem:[%s17831_s10 + $0x40] sm:$0xff]  }
 0xb94   : > { %13675 = vmatprep.subr.bf16.mxu1 %v14532_v12 }
 0xb95   : > { %13676 = vmatpush3.bf16.msra.mxu1 %v14532_v12 }
 0xb96   : > { %13677 = vmatprep.subr.bf16.mxu1 %v14533_v59 }
 0xb98   : > { %v8413_v13 = vpop.f32.mrb[4].mxu1 }
 0xb99   : > { %v8440_v37 = vadd.f32 %v8413_v13, %v8277_v39  ;;  %v13535_v24 = vpop.f32.mrb[5].mxu1  ;;  %13678 = vmatpush3.bf16.msra.mxu1 %v14533_v59 }
 0xb9a   : > { %v8416_v29 = vpop.f32.mrb[6].mxu1  ;;  %13679 = vmatprep.subr.bf16.mxu1 %v14534_v18 }
 0xb9b   : > { %v8441_v19 = vadd.f32 %v8416_v29, %v8278_v54  ;;  %v13536_v47 = vpop.f32.mrb[7].mxu1 }
 0xb9d   : > { %13680 = vmatpush3.bf16.msra.mxu1 %v14534_v18 }
 0xba0   : > { %v8421_v60 = vpop.f32.mrb[8].mxu1 }
 0xba1   : > { %v8442_v44 = vadd.f32 %v8421_v60, %v8279_v45  ;;  %v13539_v33 = vpop.f32.mrb[9].mxu1  ;;  %v14535_v45 = vld [vmem:[%s17831_s10 + $0x58] sm:$0xff]  }
 0xba2   : > { %v8424_v34 = vpop.f32.mrb[10].mxu1  ;;  %13681 = vmatprep.subr.bf16.mxu1 %v14535_v45 }
 0xba3   : > { %v8443_v0 = vadd.f32 %v8424_v34, %v8280_v11  ;;  %v13540_v10 = vpop.f32.mrb[11].mxu1  ;;  %13682 = vmatpush3.bf16.msra.mxu1 %v14535_v45 }
 0xba8   : > { %v8429_v16 = vpop.f32.mrb[12].mxu1 }
 0xba9   : > { %v8444_v51 = vadd.f32 %v8429_v16, %v8281_v52  ;;  %v13543_v6 = vpop.f32.mrb[13].mxu1  ;;  %v14536_v52 = vld [vmem:[%s17831_s10 + $0x60] sm:$0xff]  }
 0xbaa   : > { %v8432_v15 = vpop.f32.mrb[14].mxu1  ;;  %13683 = vmatprep.subr.bf16.mxu1 %v14536_v52 }
 0xbab   : > { %v8445_v8 = vadd.f32 %v8432_v15, %v8282_v40  ;;  %v13544_v63 = vpop.f32.mrb[15].mxu1  ;;  %13684 = vmatpush3.bf16.msra.mxu1 %v14536_v52 }
 0xbb0   : > { %v8560_v17 = vpop.f32.mrb[16].mxu1 }
 0xbb1   : > { %v8599_v42 = vadd.f32 %v8560_v17, %v8436_v38  ;;  %v13563_v58 = vpop.f32.mrb[17].mxu1 }
 0xbb2   : > { %v8563_v4 = vpop.f32.mrb[18].mxu1 }
 0xbb3   : > { %v8600_v48 = vadd.f32 %v8563_v4, %v8437_v5  ;;  %v13564_v53 = vpop.f32.mrb[19].mxu1  ;;  %v17518_v4 = vld [vmem:[%s17829_s8] ss:$0 sm:$0xff] }
 0xbb8   : > { %v8568_v46 = vpop.f32.mrb[20].mxu1 }
 0xbb9   : > { %v8601_v3 = vadd.f32 %v8568_v46, %v8438_v41  ;;  %v13567_v1 = vpop.f32.mrb[21].mxu1 }
 0xbba   : > { %v8571_v61 = vpop.f32.mrb[22].mxu1 }
 0xbbb   : > { %v8602_v2 = vadd.f32 %v8571_v61, %v8439_v7  ;;  %v13568_v27 = vpop.f32.mrb[23].mxu1 }
 0xbc0   : > { %v8576_v30 = vpop.f32.mrb[24].mxu1 }
 0xbc1   : > { %v8603_v36 = vadd.f32 %v8576_v30, %v8440_v37  ;;  %v13571_v39 = vpop.f32.mrb[25].mxu1 }
 0xbc2   : > { %v8579_v31 = vpop.f32.mrb[26].mxu1 }
 0xbc3   : > { %v8604_v57 = vadd.f32 %v8579_v31, %v8441_v19  ;;  %v13572_v54 = vpop.f32.mrb[27].mxu1 }
 0xbc8   : > { %v8584_v55 = vpop.f32.mrb[28].mxu1 }
 0xbc9   : > { %v8605_v25 = vadd.f32 %v8584_v55, %v8442_v44  ;;  %v13575_v20 = vpop.f32.mrb[29].mxu1 }
 0xbca   : > { %v8587_v11 = vpop.f32.mrb[30].mxu1 }
 0xbcb   : > { %v8606_v9 = vadd.f32 %v8587_v11, %v8443_v0  ;;  %v13576_v62 = vpop.f32.mrb[31].mxu1 }
 0xbd0   : > { %v8592_v23 = vpop.f32.mrb[32].mxu1 }
 0xbd1   : > { %v8607_v35 = vadd.f32 %v8592_v23, %v8444_v51  ;;  %v13579_v40 = vpop.f32.mrb[33].mxu1 }
 0xbd2   : > { %v8595_v43 = vpop.f32.mrb[34].mxu1 }
 0xbd3   : > { %v8608_v56 = vadd.f32 %v8595_v43, %v8445_v8  ;;  %v13580_v38 = vpop.f32.mrb[35].mxu1 }
 0xbd8   : > { %v8723_v49 = vpop.f32.mrb[36].mxu1 }
 0xbd9   : > { %v8762_v22 = vadd.f32 %v8723_v49, %v8599_v42  ;;  %v13599_v5 = vpop.f32.mrb[37].mxu1 }
 0xbda   : > { %v8726_v14 = vpop.f32.mrb[38].mxu1 }
 0xbdb   : > { %v8763_v26 = vadd.f32 %v8726_v14, %v8600_v48  ;;  %v13600_v41 = vpop.f32.mrb[39].mxu1 }
 0xbe0   : > { %v8731_v32 = vpop.f32.mrb[40].mxu1 }
 0xbe1   : > { %v8764_v50 = vadd.f32 %v8731_v32, %v8601_v3  ;;  %v13603_v7 = vpop.f32.mrb[41].mxu1 }
 0xbe2   : > { %v8734_v28 = vpop.f32.mrb[42].mxu1 }
 0xbe3   : > { %v8765_v13 = vadd.f32 %v8734_v28, %v8602_v2  ;;  %v13604_v37 = vpop.f32.mrb[43].mxu1 }
 0xbe8   : > { %v8739_v24 = vpop.f32.mrb[44].mxu1 }
 0xbe9   : > { %v8766_v29 = vadd.f32 %v8739_v24, %v8603_v36  ;;  %v13607_v19 = vpop.f32.mrb[45].mxu1 }
 0xbea   : > { %v8742_v47 = vpop.f32.mrb[46].mxu1 }
 0xbeb   : > { %v8767_v60 = vadd.f32 %v8742_v47, %v8604_v57  ;;  %v13608_v44 = vpop.f32.mrb[47].mxu1 }
 0xbf0   : > { %v8747_v33 = vpop.f32.mrb[48].mxu1 }
 0xbf1   : > { %v8768_v34 = vadd.f32 %v8747_v33, %v8605_v25  ;;  %v13611_v0 = vpop.f32.mrb[49].mxu1 }
 0xbf2   : > { %v8750_v10 = vpop.f32.mrb[50].mxu1 }
 0xbf3   : > { %v17509_v16 = vadd.f32 %v8750_v10, %v8606_v9  ;;  %v13612_v51 = vpop.f32.mrb[51].mxu1 }
 0xbf8   : > { %v8755_v6 = vpop.f32.mrb[52].mxu1 }
 0xbf9   : > { %v17511_v15 = vadd.f32 %v8755_v6, %v8607_v35  ;;  %v13615_v8 = vpop.f32.mrb[53].mxu1 }
 0xbfa   : > { %v8758_v63 = vpop.f32.mrb[54].mxu1 }
 0xbfb   : > { %v17513_v17 = vadd.f32 %v8758_v63, %v8608_v56  ;;  %v13616_v42 = vpop.f32.mrb[55].mxu1 }
 0xc00   : > { %v8886_v58 = vpop.f32.mrb[56].mxu1 }
 0xc01   : > { %v8925_v48 = vadd.f32 %v8886_v58, %v8762_v22  ;;  %v13635_v53 = vpop.f32.mrb[57].mxu1 }
 0xc02   : > { %v8889_v46 = vpop.f32.mrb[58].mxu1 }
 0xc03   : > { %v8942_v3 = vadd.f32 %v17518_v4, %v8925_v48  ;;  %v8926_v1 = vadd.f32 %v8889_v46, %v8763_v26  ;;  %v13636_v61 = vpop.f32.mrb[59].mxu1 }
 0xc04   : > { %v14540_v61 = vld [vmem:[%s17831_s10] sm:$0xff]  }
 0xc05   : > { %v8962_v2 = vmul.f32 0.1, %v8942_v3  ;;  %v8943_v27 = vadd.f32 %v17518_v4, %v8926_v1  ;;  %vm8952_vm7 = vcmp.gt.f32.partialorder %v8942_v3, 0.0  ;;  %v14529_v1 = vld [vmem:[%s17830_s9] sm:$0xff]  }
 0xc07   : > { %vm8953_vm8 = vcmp.gt.f32.partialorder %v8943_v27, 0.0  ;;  %v8963_v30 = vmul.f32 0.1, %v8943_v27  ;;  %v8972_v59 = vsel %vm8952_vm7, %v8942_v3, %v8962_v2  ;;  %v14542_v2 = vld [vmem:[%s17831_s10 + $0x8] sm:$0xff]  }
 0xc08   : > { %v8894_v12 = vpop.f32.mrb[60].mxu1 }
 0xc09   : > { %v8973_v36 = vsel %vm8953_vm8, %v8943_v27, %v8963_v30  ;;  %v8927_v39 = vadd.f32 %v8894_v12, %v8764_v50  ;;  %v13639_v31 = vpop.f32.mrb[61].mxu1  ;;  %v14546_v27 = vld [vmem:[%s17831_s10 + $0x18] sm:$0xff]   ;;  %v14537_v30 = vld [vmem:[%s17831_s10 + $0x68] sm:$0xff]   ;;  %v14548_v12 = vld [vmem:[%s17831_s10 + $0x20] sm:$0xff]  }
 0xc0a   : > { %v8897_v57 = vpop.f32.mrb[62].mxu1  ;;  %v8987_v54 = vpack.c.bf16 %v8973_v36, %v8972_v59  ;;  %13685 = vmatprep.subr.bf16.mxu1 %v14537_v30  ;;  %v14550_v59 = vld [vmem:[%s17831_s10 + $0x28] sm:$0xff]   ;;  %v14552_v36 = vld [vmem:[%s17831_s10 + $0x30] sm:$0xff]   ;;  %v14554_v31 = vld [vmem:[%s17831_s10 + $0x38] sm:$0xff]  }
 0xc0b   : > { %v8944_v18 = vadd.f32 %v17518_v4, %v8927_v39  ;;  %v8928_v55 = vadd.f32 %v8897_v57, %v8765_v13  ;;  %v13640_v45 = vpop.f32.mrb[63].mxu1  ;;  %13686 = vmatpush3.bf16.msra.mxu1 %v14537_v30  ;;  %v14538_v39 = vld [vmem:[%s17831_s10 + $0x70] sm:$0xff]   ;;  %v14539_v57 = vld [vmem:[%s17831_s10 + $0x78] sm:$0xff]  }
 0xc0c   : > { %13654 = vmatpush3.bf16.msra.mxu0 %v8987_v54  ;;  %13687 = vmatprep.subr.bf16.mxu1 %v14538_v39  ;;  %v14541_v54 = vld [vmem:[%s17831_s10 + $0x80] sm:$0xff]   ;;  %v14563_v30 = vld [vmem:[%s17831_s10 + $0x118] sm:$0xff]  }
 0xc0d   : > { %v8964_v25 = vmul.f32 0.1, %v8944_v18  ;;  %v8945_v20 = vadd.f32 %v17518_v4, %v8928_v55  ;;  %13655 = vmatprep.subr.bf16.mxu0 %v17845_v21  ;;  %vm8954_vm9 = vcmp.gt.f32.partialorder %v8944_v18, 0.0 }
 0xc0f   : > { %vm8955_vm10 = vcmp.gt.f32.partialorder %v8945_v20, 0.0  ;;  %v8965_v11 = vmul.f32 0.1, %v8945_v20  ;;  %v8974_v62 = vsel %vm8954_vm9, %v8944_v18, %v8964_v25  ;;  %13688 = vmatpush3.bf16.msra.mxu1 %v14538_v39  ;;  %v14556_v18 = vld [vmem:[%s17831_s10 + $0xc0] sm:$0xff]   ;;  %v14567_v39 = vld [vmem:[%s17831_s10 + $0x128] sm:$0xff]  }
 0xc10   : > { %v8902_v9 = vpop.f32.mrb[64].mxu1  ;;  %13689 = vmatprep.subr.bf16.mxu1 %v14539_v57 }
 0xc11   : > { %v8975_v52 = vsel %vm8955_vm10, %v8945_v20, %v8965_v11  ;;  %v8929_v23 = vadd.f32 %v8902_v9, %v8766_v29  ;;  %v13643_v35 = vpop.f32.mrb[65].mxu1 }
 0xc12   : > { %v8905_v40 = vpop.f32.mrb[66].mxu1  ;;  %v8988_v43 = vpack.c.bf16 %v8975_v52, %v8974_v62 }
 0xc13   : > { %v8946_v56 = vadd.f32 %v17518_v4, %v8929_v23  ;;  %v8930_v38 = vadd.f32 %v8905_v40, %v8767_v60  ;;  %v13644_v49 = vpop.f32.mrb[67].mxu1  ;;  %13690 = vmatpush3.bf16.msra.mxu1 %v14539_v57  ;;  %v14569_v57 = vld [vmem:[%s17831_s10 + $0x130] sm:$0xff]  }
 0xc14   : > { %13656 = vmatpush3.bf16.msra.mxu0 %v8988_v43  ;;  %13715 = vmatprep.subr.bf16.mxu1 %v14541_v54 }
 0xc15   : > { %v8966_v22 = vmul.f32 0.1, %v8946_v56  ;;  %v8947_v5 = vadd.f32 %v17518_v4, %v8930_v38  ;;  %13657 = vmatprep.subr.bf16.mxu0 %v17845_v21  ;;  %vm8956_vm11 = vcmp.gt.f32.partialorder %v8946_v56, 0.0 }
 0xc17   : > { %vm8957_vm12 = vcmp.gt.f32.partialorder %v8947_v5, 0.0  ;;  %v8967_v14 = vmul.f32 0.1, %v8947_v5  ;;  %v8976_v41 = vsel %vm8956_vm11, %v8946_v56, %v8966_v22 }
 0xc18   : > { %v8910_v26 = vpop.f32.mrb[68].mxu1 }
 0xc19   : > { %v8977_v32 = vsel %vm8957_vm12, %v8947_v5, %v8967_v14  ;;  %v8931_v50 = vadd.f32 %v8910_v26, %v8768_v34  ;;  %v13647_v7 = vpop.f32.mrb[69].mxu1  ;;  %v14543_v26 = vld [vmem:[%s17831_s10 + $0x88] sm:$0xff]  }
 0xc1a   : > { %v8913_v28 = vpop.f32.mrb[70].mxu1  ;;  %v8989_v13 = vpack.c.bf16 %v8977_v32, %v8976_v41 }
 0xc1b   : > { %v8948_v37 = vadd.f32 %v17518_v4, %v8931_v50  ;;  %v8932_v24 = vadd.f32 %v8913_v28, %v17509_v16  ;;  %v13648_v29 = vpop.f32.mrb[71].mxu1  ;;  %v14558_v28 = vld [vmem:[%s17831_s10 + $0xc8] sm:$0xff]  }
 0xc1c   : > { %13658 = vmatpush3.bf16.msra.mxu0 %v8989_v13 }
 0xc1d   : > { %v8968_v19 = vmul.f32 0.1, %v8948_v37  ;;  %v8949_v47 = vadd.f32 %v17518_v4, %v8932_v24  ;;  %13659 = vmatprep.subr.bf16.mxu0 %v17845_v21  ;;  %vm8958_vm13 = vcmp.gt.f32.partialorder %v8948_v37, 0.0 }
 0xc1f   : > { %vm8959_vm14 = vcmp.gt.f32.partialorder %v8949_v47, 0.0  ;;  %v8969_v60 = vmul.f32 0.1, %v8949_v47  ;;  %v8978_v33 = vsel %vm8958_vm13, %v8948_v37, %v8968_v19 }
 0xc20   : > { %v8918_v44 = vpop.f32.mrb[72].mxu1 }
 0xc21   : > { %v8979_v34 = vsel %vm8959_vm14, %v8949_v47, %v8969_v60  ;;  %v8933_v0 = vadd.f32 %v8918_v44, %v17511_v15  ;;  %v13651_v10 = vpop.f32.mrb[73].mxu1  ;;  %v14560_v47 = vld [vmem:[%s17831_s10 + $0xd0] sm:$0xff]   ;;  %v14562_v44 = vld [vmem:[%s17831_s10 + $0xd8] sm:$0xff]  }
 0xc22   : > { %v8921_v51 = vpop.f32.mrb[74].mxu1  ;;  %v8990_v6 = vpack.c.bf16 %v8979_v34, %v8978_v33  ;;  %v14545_v60 = vld [vmem:[%s17831_s10 + $0x90] sm:$0xff]   ;;  %v14547_v33 = vld [vmem:[%s17831_s10 + $0x98] sm:$0xff]   ;;  %v14564_v34 = vld [vmem:[%s17831_s10 + $0xe0] sm:$0xff]  }
 0xc23   : > { %v8950_v16 = vadd.f32 %v17518_v4, %v8933_v0  ;;  %v8934_v8 = vadd.f32 %v8921_v51, %v17513_v17  ;;  %v13652_v63 = vpop.f32.mrb[75].mxu1  ;;  %v14530_v17 = vld [vmem:[%s17830_s9 + $0x8] sm:$0xff]   ;;  %v14549_v0 = vld [vmem:[%s17831_s10 + $0xa0] sm:$0xff]  }
 0xc24   : > { %13660 = vmatpush3.bf16.msra.mxu0 %v8990_v6  ;;  %v14566_v10 = vld [vmem:[%s17831_s10 + $0xe8] sm:$0xff]   ;;  %v14568_v6 = vld [vmem:[%s17831_s10 + $0xf0] sm:$0xff]   ;;  %v14555_v63 = vld [vmem:[%s17831_s10 + $0xb8] sm:$0xff]  }
 0xc25   : > { %v8970_v42 = vmul.f32 0.1, %v8950_v16  ;;  %v8951_v58 = vadd.f32 %v17518_v4, %v8934_v8  ;;  %13661 = vmatprep.subr.bf16.mxu0 %v17845_v21  ;;  %vm8960_vm15 = vcmp.gt.f32.partialorder %v8950_v16, 0.0  ;;  %v14531_v4 = vld [vmem:[%s17830_s9 + $0x10] ss:$0 sps:$4 sm:$0x33]  }
 0xc26   : > { %v14551_v51 = vld [vmem:[%s17831_s10 + $0xa8] sm:$0xff]   ;;  %v14570_v8 = vld [vmem:[%s17831_s10 + $0xf8] sm:$0xff]  }
 0xc27   : > { %vm8961_vm0 = vcmp.gt.f32.partialorder %v8951_v58, 0.0  ;;  %v8971_v48 = vmul.f32 0.1, %v8951_v58  ;;  %v8980_v53 = vsel %vm8960_vm15, %v8950_v16, %v8970_v42  ;;  %v14553_v16 = vld [vmem:[%s17831_s10 + $0xb0] sm:$0xff]   ;;  %v14572_v42 = vld [vmem:[%s17831_s10 + $0x140] sm:$0xff]  }
 0xc29   : > { %v8981_v46 = vsel %vm8961_vm0, %v8951_v58, %v8971_v48  ;;  %v14557_v58 = vld [vmem:[%s17831_s10 + $0x100] sm:$0xff]  }
 0xc2a   : > { %v8991_v15 = vpack.c.bf16 %v8981_v46, %v8980_v53 }
 0xc2c   : > { %v9016_v3 = vsel %vm3689_vm3, %v8991_v15, 0 }
 0xc2d   : > { %13662 = vmatpush3.bf16.msra.mxu0 %v9016_v3 }
 0xc2e   : > { %13695 = vmatprep.subr.bf16.mxu0 %v14540_v61 }
 0xc30   : > { %13664 = vmatmul.mubr.msk.bf16.vlgmr.msra.gmra.mrb[124].mxu0 %vm9005_vm2, %v14529_v1  ;;  %v14559_v1 = vld [vmem:[%s17831_s10 + $0x108] sm:$0xff]  }
 0xc31   : > { %13667 = vmatprep.mubr.msk.bf16.mxu0 %vm14681_vm1, %v17845_v21  ;;  %13696 = vmatpush3.bf16.msra.mxu0 %v14540_v61 }
 0xc32   : > { %13697 = vmatprep.subr.bf16.mxu0 %v14542_v2 }
 0xc35   : > { %13698 = vmatpush3.bf16.msra.mxu0 %v14542_v2  ;;  %v14576_v2 = vld [vmem:[%s17831_s10 + $0x150] sm:$0xff]  }
 0xc38   : > { %13668 = vmatmul.mubr.msk.bf16.gmra.mrb[128].mxu0 %vm9005_vm2, %v14530_v17 }
 0xc39   : > { %13671 = vmatprep.mubr.msk.bf16.mxu0 %vm14681_vm1, %v17845_v21  ;;  %v14544_v21 = vld [vmem:[%s17831_s10 + $0x10] sm:$0xff]  }
 0xc3a   : > { %13699 = vmatprep.subr.bf16.mxu0 %v14544_v21 }
 0xc3b   : > { %13700 = vmatpush3.bf16.msra.mxu0 %v14544_v21  ;;  %v14561_v21 = vld [vmem:[%s17831_s10 + $0x110] sm:$0xff]  }
 0xc3c   : > { %13701 = vmatprep.subr.bf16.mxu0 %v14546_v27 }
 0xc3f   : > { %13702 = vmatpush3.bf16.msra.mxu0 %v14546_v27  ;;  %v14578_v27 = vld [vmem:[%s17831_s10 + $0x158] sm:$0xff]  }
 0xc40   : > { %13672 = vmatmul.mubr.msk.bf16.gmra.mrb[132].mxu0 %vm9005_vm2, %v14531_v4  ;;  %13703 = vmatprep.subr.bf16.mxu0 %v14548_v12  ;;  %v14574_v4 = vld [vmem:[%s17831_s10 + $0x148] sm:$0xff]  }
 0xc43   : > { %13704 = vmatpush3.bf16.msra.mxu0 %v14548_v12  ;;  %v14580_v12 = vld [vmem:[%s17831_s10 + $0x160] sm:$0xff]  }
 0xc44   : > { %13705 = vmatprep.subr.bf16.mxu0 %v14550_v59 }
 0xc47   : > { %13706 = vmatpush3.bf16.msra.mxu0 %v14550_v59  ;;  %v14565_v59 = vld [vmem:[%s17831_s10 + $0x120] sm:$0xff]  }
 0xc48   : > { %13707 = vmatprep.subr.bf16.mxu0 %v14552_v36 }
 0xc4b   : > { %13708 = vmatpush3.bf16.msra.mxu0 %v14552_v36  ;;  %v14582_v36 = vld [vmem:[%s17831_s10 + $0x168] sm:$0xff]  }
 0xc4c   : > { %13709 = vmatprep.subr.bf16.mxu0 %v14554_v31 }
 0xc4f   : > { %13710 = vmatpush3.bf16.msra.mxu0 %v14554_v31  ;;  %v14584_v31 = vld [vmem:[%s17831_s10 + $0x170] sm:$0xff]  }
 0xc50   : > { %13735 = vmatprep.subr.bf16.mxu0 %v14556_v18 }
 0xd03   : > { %v9052_v55 = vpop.f32.mrb[124].mxu0 }
 0xd04   : > { %9074 = vst [vmem:[#allocation4] sm:$0xff] %v9052_v55  ;;  %v13665_v45 = vpop.f32.mrb[125].mxu0 }
 0xd05   : > { %v17590_v25 = vpop.f32.mrb[126].mxu0  ;;  %v14573_v45 = vld [vmem:[%s17831_s10 + $0x180] sm:$0xff]  }
 0xd06   : > { %9075 = vst [vmem:[#allocation4 + $0x8] sm:$0xff] %v17590_v25  ;;  %v13666_v20 = vpop.f32.mrb[127].mxu0  ;;  %v9082_v11 = vpack.c.bf16 %v17590_v25, %v9052_v55  ;;  %v14588_v55 = vld [vmem:[%s17831_s10 + $0x1c0] sm:$0xff]  }
 0xd08   : > { %13711 = vmatprep.mubr.bf16.mxu0 %v9082_v11 }
 0xd0b   : > { %v17594_v9 = vpop.f32.mrb[128].mxu0 }
 0xd0c   : > { %9076 = vst [vmem:[#allocation4 + $0x10] sm:$0xff] %v17594_v9  ;;  %v13669_v62 = vpop.f32.mrb[129].mxu0  ;;  %v9680_v52 = vpack.c.bf16 %v17594_v9, %v17590_v25  ;;  %v14575_v9 = vld [vmem:[%s17831_s10 + $0x188] sm:$0xff]  }
 0xd0d   : > { %v9063_v23 = vpop.f32.mrb[130].mxu0  ;;  %v9100_v40 = vld [vmem:[#allocation4 + $0x1] sm:$0xff] }
 0xd0e   : > { %9077 = vst [vmem:[#allocation4 + $0x18] sm:$0xff] %v9063_v23  ;;  %v13670_v35 = vpop.f32.mrb[131].mxu0  ;;  %v9314_v7 = vld [vmem:[#allocation4 + $0x2] sm:$0xff] }
 0xd0f   : > { %v9435_v13 = vld [vmem:[#allocation4 + $0x6] sm:$0xff]  ;;  %v14590_v35 = vld [vmem:[%s17831_s10 + $0x1c8] sm:$0xff]  }
 0xd10   : > { %v9556_v17 = vld [vmem:[#allocation4 + $0x7] sm:$0xff] }
 0xd13   : > { %v9081_v43 = vld [vmem:[#allocation4 + $0x10] sm:$0x3f]  ;;  %v9068_v49 = vpop.f32.mrb[132].mxu0 }
 0xd14   : > { %v9102_v56 = vld [vmem:[#allocation4 + $0x11] sm:$0x3f]  ;;  %v9101_v38 = vld [vmem:[#allocation4 + $0x9] sm:$0xff]  ;;  %v9083_v22 = vpack.c.bf16 %v9081_v43, %v9081_v43  ;;  %9078 = vst [vmem:[#allocation4 + $0x20] sm:$0xf] %v9068_v49  ;;  %v13673_v50 = vpop.f32.mrb[133].mxu0 }
 0xd15   : > { %v9104_v5 = vpack.c.bf16 %v9102_v56, %v9102_v56  ;;  %v9103_v14 = vpack.c.bf16 %v9101_v38, %v9100_v40  ;;  %v9315_v41 = vld [vmem:[#allocation4 + $0xa] sm:$0xff]  ;;  %v9071_v37 = vpop.f32.mrb[134].mxu0  ;;  %v9437_v48 = vld [vmem:[#allocation4 + $0x16] sm:$0x3f]  ;;  %v14592_v38 = vld [vmem:[%s17831_s10 + $0x1d0] sm:$0xff]  }
 0xd16   : > { %v17602_v32 = vld [vmem:[#allocation4 + $0xe] sm:$0xff]  ;;  %13712 = vmatmul.mubr.bf16.vlgmr.msra.gmra.mrb[136].mxu0 %v9083_v22  ;;  %v9317_v24 = vpack.c.bf16 %v9315_v41, %v9314_v7  ;;  %v13674_v19 = vpop.f32.mrb[135].mxu0  ;;  %v9439_v15 = vpack.c.bf16 %v9437_v48, %v9437_v48  ;;  %v9679_v25 = vld [vmem:[#allocation4 + $0x18] sm:$0x3f]  ;;  %v14577_v22 = vld [vmem:[%s17831_s10 + $0x190] sm:$0xff]  }
 0xd17   : > { %13691 = vmatprep.mubr.bf16.mxu1 %v9103_v14  ;;  %v9438_v29 = vpack.c.bf16 %v17602_v32, %v9435_v13  ;;  %13736 = vmatpush3.bf16.msra.mxu0 %v14556_v18  ;;  %v9316_v53 = vld [vmem:[#allocation4 + $0x12] sm:$0x3f]  ;;  %v14571_v18 = vld [vmem:[%s17831_s10 + $0x138] sm:$0xff]   ;;  %v9681_v62 = vpack.c.bf16 %v9679_v25, %v9679_v25  ;;  %v14598_v50 = vld [vmem:[%s17831_s10 + $0x1e8] sm:$0xff]  }
 0xd18   : > { %13692 = vmatmul.mubr.bf16.vlgmr.msra.gmra.mrb[76].mxu1 %v9104_v5  ;;  %13737 = vmatprep.subr.bf16.mxu0 %v14558_v28  ;;  %v9557_v46 = vld [vmem:[#allocation4 + $0xf] sm:$0xff]  ;;  %v9318_v3 = vpack.c.bf16 %v9316_v53, %v9316_v53  ;;  %v9558_v20 = vld [vmem:[#allocation4 + $0x17] sm:$0x3f]  ;;  %v14585_v13 = vld [vmem:[%s17831_s10 + $0x1b0] sm:$0xff]  }
 0xd19   : > { %13716 = vmatpush3.bf16.msra.mxu1 %v14541_v54  ;;  %13731 = vmatprep.mubr.bf16.mxu1 %v9317_v24  ;;  %v9559_v61 = vpack.c.bf16 %v9557_v46, %v9556_v17  ;;  %v14586_v54 = vld [vmem:[%s17831_s10 + $0x178] sm:$0xff]   ;;  %v9799_v11 = vld [vmem:[#allocation4 + $0x14] sm:$0xff] }
 0xd1a   : > { %13717 = vmatprep.subr.bf16.mxu1 %v14543_v26  ;;  %13751 = vmatprep.mubr.bf16.mxu0 %v9438_v29  ;;  %v9798_v23 = vld [vmem:[#allocation4 + $0xc] sm:$0xff]  ;;  %v9920_v40 = vld [vmem:[#allocation4 + $0x15] sm:$0xff] }
 0xd1b   : > { %13738 = vmatpush3.bf16.msra.mxu0 %v14558_v28  ;;  %v9801_v43 = vpack.c.bf16 %v9799_v11, %v9798_v23  ;;  %v9919_v56 = vld [vmem:[#allocation4 + $0xd] sm:$0xff]  ;;  %v14583_v7 = vld [vmem:[%s17831_s10 + $0x1a8] sm:$0xff]   ;;  %v14600_v28 = vld [vmem:[%s17831_s10 + $0x1f0] sm:$0xff]  }
 0xd1c   : > { %13739 = vmatprep.subr.bf16.mxu0 %v14560_v47  ;;  %v9922_v49 = vpack.c.bf16 %v9920_v40, %v9919_v56  ;;  %v14594_v5 = vld [vmem:[%s17831_s10 + $0x1d8] sm:$0xff]   ;;  %v14581_v41 = vld [vmem:[%s17831_s10 + $0x1a0] sm:$0xff]   ;;  %v9921_v19 = vld [vmem:[#allocation4 + $0x1d] sm:$0x3f] }
 0xd1d   : > { %13718 = vmatpush3.bf16.msra.mxu1 %v14543_v26  ;;  %v14579_v14 = vld [vmem:[%s17831_s10 + $0x198] sm:$0xff]   ;;  %v14596_v26 = vld [vmem:[%s17831_s10 + $0x1e0] sm:$0xff]  }
 0xd1e   : > { %13719 = vmatprep.subr.bf16.mxu1 %v14545_v60  ;;  %v14602_v37 = vld [vmem:[%s17831_s10 + $0x1f8] sm:$0xff]   ;;  %v14589_v29 = vld [vmem:[%s17831_s10 + $0x200] sm:$0xff]  }
 0xd1f   : > { %13740 = vmatpush3.bf16.msra.mxu0 %v14560_v47  ;;  %v14587_v24 = vld [vmem:[%s17831_s10 + $0x1b8] sm:$0xff]   ;;  %v9800_v47 = vld [vmem:[#allocation4 + $0x1c] sm:$0x3f] }
 0xd20   : > { %13741 = vmatprep.subr.bf16.mxu0 %v14562_v44 }
 0xd21   : > { %13720 = vmatpush3.bf16.msra.mxu1 %v14545_v60  ;;  %v10041_v60 = vld [vmem:[#allocation4 + $0x16] sm:$0xff] }
 0xd22   : > { %13721 = vmatprep.subr.bf16.mxu1 %v14547_v33 }
 0xd23   : > { %13742 = vmatpush3.bf16.msra.mxu0 %v14562_v44  ;;  %v9923_v44 = vpack.c.bf16 %v9921_v19, %v9921_v19 }
 0xd24   : > { %13743 = vmatprep.subr.bf16.mxu0 %v14564_v34 }
 0xd25   : > { %13722 = vmatpush3.bf16.msra.mxu1 %v14547_v33  ;;  %v9802_v33 = vpack.c.bf16 %v9800_v47, %v9800_v47 }
 0xd26   : > { %13723 = vmatprep.subr.bf16.mxu1 %v14549_v0 }
 0xd27   : > { %13744 = vmatpush3.bf16.msra.mxu0 %v14564_v34  ;;  %v14591_v34 = vld [vmem:[%s17831_s10 + $0x208] sm:$0xff]  }
 0xd28   : > { %13745 = vmatprep.subr.bf16.mxu0 %v14566_v10 }
 0xd29   : > { %13724 = vmatpush3.bf16.msra.mxu1 %v14549_v0  ;;  %v10043_v0 = vpack.c.bf16 %v10041_v60, %v17602_v32  ;;  %v14597_v32 = vld [vmem:[%s17831_s10 + $0x220] sm:$0xff]  }
 0xd2a   : > { %13725 = vmatprep.subr.bf16.mxu1 %v14551_v51 }
 0xd2b   : > { %13746 = vmatpush3.bf16.msra.mxu0 %v14566_v10  ;;  %v14593_v10 = vld [vmem:[%s17831_s10 + $0x210] sm:$0xff]  }
 0xd2c   : > { %13747 = vmatprep.subr.bf16.mxu0 %v14568_v6 }
 0xd2d   : > { %13726 = vmatpush3.bf16.msra.mxu1 %v14551_v51  ;;  %v14595_v51 = vld [vmem:[%s17831_s10 + $0x218] sm:$0xff]  }
 0xd2e   : > { %13727 = vmatprep.subr.bf16.mxu1 %v14553_v16 }
 0xd2f   : > { %13748 = vmatpush3.bf16.msra.mxu0 %v14568_v6  ;;  %v14599_v6 = vld [vmem:[%s17831_s10 + $0x228] sm:$0xff]  }
 0xd30   : > { %13749 = vmatprep.subr.bf16.mxu0 %v14570_v8 }
 0xd31   : > { %13728 = vmatpush3.bf16.msra.mxu1 %v14553_v16  ;;  %v14601_v16 = vld [vmem:[%s17831_s10 + $0x230] sm:$0xff]  }
 0xd32   : > { %13729 = vmatprep.subr.bf16.mxu1 %v14555_v63 }
 0xd33   : > { %13750 = vmatpush3.bf16.msra.mxu0 %v14570_v8  ;;  %v14603_v8 = vld [vmem:[%s17831_s10 + $0x238] sm:$0xff]  }
 0xd34   : > { %13775 = vmatprep.subr.bf16.mxu0 %v14572_v42 }
 0xd35   : > { %13730 = vmatpush3.bf16.msra.mxu1 %v14555_v63  ;;  %v10042_v63 = vld [vmem:[#allocation4 + $0x1e] sm:$0x3f] }
 0xd36   : > { %13755 = vmatprep.subr.bf16.mxu1 %v14557_v58  ;;  %13752 = vmatmul.mubr.bf16.vlgmr.msra.gmra.mrb[140].mxu0 %v9439_v15 }
 0xd37   : > { %13776 = vmatpush3.bf16.msra.mxu0 %v14572_v42  ;;  %13791 = vmatprep.mubr.bf16.mxu0 %v9680_v52  ;;  %v9560_v52 = vpack.c.bf16 %v9558_v20, %v9558_v20  ;;  %v10044_v42 = vpack.c.bf16 %v10042_v63, %v10042_v63 }
 0xd38   : > { %13732 = vmatmul.mubr.bf16.vlgmr.msra.gmra.mrb[80].mxu1 %v9318_v3  ;;  %13777 = vmatprep.subr.bf16.mxu0 %v14574_v4 }
 0xd39   : > { %13756 = vmatpush3.bf16.msra.mxu1 %v14557_v58  ;;  %13771 = vmatprep.mubr.bf16.mxu1 %v9559_v61 }
 0xd3a   : > { %13757 = vmatprep.subr.bf16.mxu1 %v14559_v1 }
 0xd3b   : > { %13778 = vmatpush3.bf16.msra.mxu0 %v14574_v4 }
 0xd3c   : > { %13779 = vmatprep.subr.bf16.mxu0 %v14576_v2 }
 0xd3d   : > { %13758 = vmatpush3.bf16.msra.mxu1 %v14559_v1 }
 0xd3e   : > { %13759 = vmatprep.subr.bf16.mxu1 %v14561_v21 }
 0xd3f   : > { %13780 = vmatpush3.bf16.msra.mxu0 %v14576_v2 }
 0xd40   : > { %13781 = vmatprep.subr.bf16.mxu0 %v14578_v27 }
 0xd41   : > { %13760 = vmatpush3.bf16.msra.mxu1 %v14561_v21 }
 0xd42   : > { %13761 = vmatprep.subr.bf16.mxu1 %v14563_v30 }
 0xd43   : > { %13782 = vmatpush3.bf16.msra.mxu0 %v14578_v27 }
 0xd44   : > { %13783 = vmatprep.subr.bf16.mxu0 %v14580_v12 }
 0xd45   : > { %13762 = vmatpush3.bf16.msra.mxu1 %v14563_v30 }
 0xd46   : > { %13763 = vmatprep.subr.bf16.mxu1 %v14565_v59 }
 0xd47   : > { %13784 = vmatpush3.bf16.msra.mxu0 %v14580_v12 }
 0xd48   : > { %13785 = vmatprep.subr.bf16.mxu0 %v14582_v36 }
 0xd49   : > { %13764 = vmatpush3.bf16.msra.mxu1 %v14565_v59 }
 0xd4a   : > { %13765 = vmatprep.subr.bf16.mxu1 %v14567_v39 }
 0xd4b   : > { %13786 = vmatpush3.bf16.msra.mxu0 %v14582_v36 }
 0xd4c   : > { %13787 = vmatprep.subr.bf16.mxu0 %v14584_v31 }
 0xd4d   : > { %13766 = vmatpush3.bf16.msra.mxu1 %v14567_v39 }
 0xd4e   : > { %13767 = vmatprep.subr.bf16.mxu1 %v14569_v57 }
 0xd4f   : > { %13788 = vmatpush3.bf16.msra.mxu0 %v14584_v31 }
 0xd50   : > { %13789 = vmatprep.subr.bf16.mxu0 %v14586_v54 }
 0xd51   : > { %13768 = vmatpush3.bf16.msra.mxu1 %v14569_v57 }
 0xd52   : > { %13769 = vmatprep.subr.bf16.mxu1 %v14571_v18 }
 0xd53   : > { %13790 = vmatpush3.bf16.msra.mxu0 %v14586_v54 }
 0xd54   : > { %13815 = vmatprep.subr.bf16.mxu0 %v14588_v55 }
 0xd55   : > { %13770 = vmatpush3.bf16.msra.mxu1 %v14571_v18 }
 0xd56   : > { %13795 = vmatprep.subr.bf16.mxu1 %v14573_v45  ;;  %13792 = vmatmul.mubr.bf16.vlgmr.msra.gmra.mrb[144].mxu0 %v9681_v62 }
 0xd57   : > { %13816 = vmatpush3.bf16.msra.mxu0 %v14588_v55  ;;  %13831 = vmatprep.mubr.bf16.mxu0 %v9922_v49 }
 0xd58   : > { %13772 = vmatmul.mubr.bf16.vlgmr.msra.gmra.mrb[84].mxu1 %v9560_v52  ;;  %13817 = vmatprep.subr.bf16.mxu0 %v14590_v35 }
 0xd59   : > { %13796 = vmatpush3.bf16.msra.mxu1 %v14573_v45  ;;  %13811 = vmatprep.mubr.bf16.mxu1 %v9801_v43 }
 0xd5a   : > { %13797 = vmatprep.subr.bf16.mxu1 %v14575_v9 }
 0xd5b   : > { %13818 = vmatpush3.bf16.msra.mxu0 %v14590_v35 }
 0xd5c   : > { %13819 = vmatprep.subr.bf16.mxu0 %v14592_v38 }
 0xd5d   : > { %13798 = vmatpush3.bf16.msra.mxu1 %v14575_v9 }
 0xd5e   : > { %13799 = vmatprep.subr.bf16.mxu1 %v14577_v22 }
 0xd5f   : > { %13820 = vmatpush3.bf16.msra.mxu0 %v14592_v38 }
 0xd60   : > { %13821 = vmatprep.subr.bf16.mxu0 %v14594_v5 }
 0xd61   : > { %13800 = vmatpush3.bf16.msra.mxu1 %v14577_v22 }
 0xd62   : > { %13801 = vmatprep.subr.bf16.mxu1 %v14579_v14 }
 0xd63   : > { %13822 = vmatpush3.bf16.msra.mxu0 %v14594_v5 }
 0xd64   : > { %13823 = vmatprep.subr.bf16.mxu0 %v14596_v26 }
 0xd65   : > { %13802 = vmatpush3.bf16.msra.mxu1 %v14579_v14 }
 0xd66   : > { %13803 = vmatprep.subr.bf16.mxu1 %v14581_v41 }
 0xd67   : > { %13824 = vmatpush3.bf16.msra.mxu0 %v14596_v26 }
 0xd68   : > { %13825 = vmatprep.subr.bf16.mxu0 %v14598_v50 }
 0xd69   : > { %13804 = vmatpush3.bf16.msra.mxu1 %v14581_v41 }
 0xd6a   : > { %13805 = vmatprep.subr.bf16.mxu1 %v14583_v7 }
 0xd6b   : > { %13826 = vmatpush3.bf16.msra.mxu0 %v14598_v50 }
 0xd6c   : > { %13827 = vmatprep.subr.bf16.mxu0 %v14600_v28 }
 0xd6d   : > { %13806 = vmatpush3.bf16.msra.mxu1 %v14583_v7 }
 0xd6e   : > { %13807 = vmatprep.subr.bf16.mxu1 %v14585_v13 }
 0xd6f   : > { %13828 = vmatpush3.bf16.msra.mxu0 %v14600_v28 }
 0xd70   : > { %13829 = vmatprep.subr.bf16.mxu0 %v14602_v37 }
 0xd71   : > { %13808 = vmatpush3.bf16.msra.mxu1 %v14585_v13 }
 0xd72   : > { %13809 = vmatprep.subr.bf16.mxu1 %v14587_v24 }
 0xd73   : > { %13830 = vmatpush3.bf16.msra.mxu0 %v14602_v37 }
 0xd75   : > { %13810 = vmatpush3.bf16.msra.mxu1 %v14587_v24 }
 0xd76   : > { %13835 = vmatprep.subr.bf16.mxu1 %v14589_v29  ;;  %13832 = vmatmul.mubr.bf16.vlgmr.msra.gmra.mrb[148].mxu0 %v9923_v44 }
 0xd78   : > { %13812 = vmatmul.mubr.bf16.vlgmr.msra.gmra.mrb[88].mxu1 %v9802_v33 }
 0xd79   : > { %13836 = vmatpush3.bf16.msra.mxu1 %v14589_v29  ;;  %13851 = vmatprep.mubr.bf16.mxu1 %v10043_v0 }
 0xd7a   : > { %13837 = vmatprep.subr.bf16.mxu1 %v14591_v34 }
 0xd7d   : > { %13838 = vmatpush3.bf16.msra.mxu1 %v14591_v34  ;;  %v11399_v34 = vld [vmem:[%s17832_s11] ss:$0 sm:$0xff] }
 0xd7e   : > { %13839 = vmatprep.subr.bf16.mxu1 %v14593_v10 }
 0xd81   : > { %13840 = vmatpush3.bf16.msra.mxu1 %v14593_v10 }
 0xd82   : > { %13841 = vmatprep.subr.bf16.mxu1 %v14595_v51 }
 0xd85   : > { %13842 = vmatpush3.bf16.msra.mxu1 %v14595_v51 }
 0xd86   : > { %13843 = vmatprep.subr.bf16.mxu1 %v14597_v32 }
 0xd89   : > { %13844 = vmatpush3.bf16.msra.mxu1 %v14597_v32 }
 0xd8a   : > { %13845 = vmatprep.subr.bf16.mxu1 %v14599_v6 }
 0xd8d   : > { %13846 = vmatpush3.bf16.msra.mxu1 %v14599_v6 }
 0xd8e   : > { %13847 = vmatprep.subr.bf16.mxu1 %v14601_v16 }
 0xd91   : > { %13848 = vmatpush3.bf16.msra.mxu1 %v14601_v16 }
 0xd92   : > { %13849 = vmatprep.subr.bf16.mxu1 %v14603_v8 }
 0xd95   : > { %13850 = vmatpush3.bf16.msra.mxu1 %v14603_v8 }
 0xd98   : > { %13852 = vmatmul.mubr.bf16.vlgmr.msra.gmra.mrb[92].mxu1 %v10044_v42 }
 0xde9   : > { %v13713_v58 = vpop.f32.mrb[136].mxu0 }
 0xdea   : > { %v9300_v53 = vpop.f32.mrb[137].mxu0 }
 0xdeb   : > { %v13693_v48 = vpop.f32.mrb[76].mxu1  ;;  %v13714_v3 = vpop.f32.mrb[138].mxu0 }
 0xdec   : > { %v9204_v46 = vpop.f32.mrb[77].mxu1  ;;  %v9309_v15 = vadd.f32 %v13713_v58, %v13693_v48  ;;  %v9303_v4 = vpop.f32.mrb[139].mxu0 }
 0xded   : > { %v13694_v1 = vpop.f32.mrb[78].mxu1  ;;  %v9301_v17 = vadd.f32 %v9300_v53, %v9204_v46 }
 0xdee   : > { %v9207_v61 = vpop.f32.mrb[79].mxu1 }
 0xdef   : > { %v9304_v2 = vadd.f32 %v9303_v4, %v9207_v61 }
 0xe09   : > { %v13753_v21 = vpop.f32.mrb[140].mxu0 }
 0xe0a   : > { %v9539_v30 = vpop.f32.mrb[141].mxu0 }
 0xe0b   : > { %v13733_v27 = vpop.f32.mrb[80].mxu1  ;;  %v13754_v36 = vpop.f32.mrb[142].mxu0 }
 0xe0c   : > { %v9434_v12 = vadd.f32 %v13733_v27, %v9309_v15  ;;  %v9418_v59 = vpop.f32.mrb[81].mxu1  ;;  %v9542_v57 = vpop.f32.mrb[143].mxu0 }
 0xe0d   : > { %v9432_v39 = vadd.f32 %v9418_v59, %v9301_v17  ;;  %v13734_v31 = vpop.f32.mrb[82].mxu1 }
 0xe0e   : > { %v9555_v54 = vadd.f32 %v13753_v21, %v9434_v12  ;;  %v9421_v18 = vpop.f32.mrb[83].mxu1 }
 0xe0f   : > { %v9433_v55 = vadd.f32 %v9421_v18, %v9304_v2  ;;  %v9553_v45 = vadd.f32 %v9539_v30, %v9432_v39 }
 0xe11   : > { %v9554_v25 = vadd.f32 %v9542_v57, %v9433_v55 }
 0xe29   : > { %v13793_v20 = vpop.f32.mrb[144].mxu0 }
 0xe2a   : > { %v9781_v9 = vpop.f32.mrb[145].mxu0 }
 0xe2b   : > { %v13773_v11 = vpop.f32.mrb[84].mxu1  ;;  %v13794_v23 = vpop.f32.mrb[146].mxu0 }
 0xe2c   : > { %v9676_v62 = vadd.f32 %v13773_v11, %v9555_v54  ;;  %v9660_v52 = vpop.f32.mrb[85].mxu1  ;;  %v9784_v43 = vpop.f32.mrb[147].mxu0 }
 0xe2d   : > { %v9674_v35 = vadd.f32 %v9660_v52, %v9553_v45  ;;  %v13774_v40 = vpop.f32.mrb[86].mxu1 }
 0xe2e   : > { %v9797_v56 = vadd.f32 %v13793_v20, %v9676_v62  ;;  %v9663_v38 = vpop.f32.mrb[87].mxu1 }
 0xe2f   : > { %v9675_v49 = vadd.f32 %v9663_v38, %v9554_v25  ;;  %v9795_v22 = vadd.f32 %v9781_v9, %v9674_v35 }
 0xe31   : > { %v9796_v5 = vadd.f32 %v9784_v43, %v9675_v49 }
 0xe49   : > { %v13833_v14 = vpop.f32.mrb[148].mxu0 }
 0xe4a   : > { %v10023_v41 = vpop.f32.mrb[149].mxu0 }
 0xe4b   : > { %v13813_v26 = vpop.f32.mrb[88].mxu1  ;;  %v13834_v28 = vpop.f32.mrb[150].mxu0 }
 0xe4c   : > { %v9918_v50 = vadd.f32 %v13813_v26, %v9797_v56  ;;  %v9902_v7 = vpop.f32.mrb[89].mxu1  ;;  %v10026_v24 = vpop.f32.mrb[151].mxu0 }
 0xe4d   : > { %v9916_v13 = vadd.f32 %v9902_v7, %v9795_v22  ;;  %v13814_v37 = vpop.f32.mrb[90].mxu1 }
 0xe4e   : > { %v10039_v29 = vadd.f32 %v13833_v14, %v9918_v50  ;;  %v9905_v19 = vpop.f32.mrb[91].mxu1 }
 0xe4f   : > { %v9917_v47 = vadd.f32 %v9905_v19, %v9796_v5  ;;  %v10037_v60 = vadd.f32 %v10023_v41, %v9916_v13 }
 0xe51   : > { %v10038_v44 = vadd.f32 %v10026_v24, %v9917_v47 }
 0xe6b   : > { %v13853_v33 = vpop.f32.mrb[92].mxu1 }
 0xe6c   : > { %v10160_v0 = vadd.f32 %v13853_v33, %v10039_v29  ;;  %v10144_v10 = vpop.f32.mrb[93].mxu1 }
 0xe6d   : > { %v10158_v51 = vadd.f32 %v10144_v10, %v10037_v60  ;;  %v13854_v32 = vpop.f32.mrb[94].mxu1 }
 0xe6e   : > { %v10170_v6 = vadd.f32 %v11399_v34, %v10160_v0  ;;  %v10147_v16 = vpop.f32.mrb[95].mxu1 }
 0xe6f   : > { %v10168_v8 = vadd.f32 %v11399_v34, %v10158_v51  ;;  %v10159_v63 = vadd.f32 %v10147_v16, %v10038_v44 }
 0xe70   : > { %v11402_v42 = vmul.f32 -1.442695, %v10170_v6 }
 0xe71   : > { %v11400_v58 = vmul.f32 -1.442695, %v10168_v8  ;;  %v10169_v48 = vadd.f32 %v11399_v34, %v10159_v63 }
 0xe72   : > { %14604 = vpow2.f32 %v11402_v42 }
 0xe73   : > { %14606 = vpow2.f32 %v11400_v58  ;;  %v11401_v53 = vmul.f32 -1.442695, %v10169_v48 }
 0xe75   : > { %14608 = vpow2.f32 %v11401_v53 }
 0xe7c   : > { %v14605_v46 = vpop.eup %14604 }
 0xe7d   : > { %v14607_v15 = vpop.eup %14606  ;;  %v10182_v3 = vadd.f32 1.0, %v14605_v46 }
 0xe7e   : > { %v10180_v1 = vadd.f32 1.0, %v14607_v15 }
 0xe7f   : > { %v14609_v17 = vpop.eup %14608  ;;  %14610 = vrcp.f32 %v10182_v3 }
 0xe80   : > { %14612 = vrcp.f32 %v10180_v1  ;;  %v10181_v4 = vadd.f32 1.0, %v14609_v17 }
 0xe82   : > { %14614 = vrcp.f32 %v10181_v4 }
 0xe89   : > { %v14611_v61 = vpop.eup %14610 }
 0xe8a   : > { %v14613_v2 = vpop.eup %14612  ;;  %11406 = vst [vmem:[%s406_s16 + $0xa] sm:$0x3c] %v14611_v61 }
 0xe8b   : > { %10189 = vst [vmem:[%s406_s16] sm:$0xf] %v14613_v2  ;;  %11403 = vst [vmem:[%s406_s16 - $0x2] sm:$0xc0] %v14613_v2 }
 0xe8c   : > { %v14615_v21 = vpop.eup %14614 }
 0xe8d   : > { %11404 = vst [vmem:[%s406_s16 + $0x6] sm:$0x3] %v14615_v21  ;;  %11405 = vst [vmem:[%s406_s16 + $0x4] sm:$0xf0] %v14615_v21 }
 0xe8e   : > { %14629 = shalt.err (!%p14626_p3)
}
 0xe8f   : > { %s14630_s0 = scalar_lea.hbm %s17776_s20, 256  ;;  %s14634_s19 = scalar_lea.hbm %s17833_s12, 512 }
 0xe90   : > { %p14631_p4 = scmp.ne.s32.totalorder %s17776_s20, %s14630_s0  ;;  %p14635_p9 = scmp.lt.u32.totalorder %s17776_s20, %s17833_s12 }
 0xe91   : > { %p14636_p10 = scmp.lt.u32.totalorder %s14634_s19, %s14630_s0  ;;  %p14638_p12 = scmp.lt.u32.totalorder %s14630_s0, %s17776_s20 }
 0xe92   : > { %p14632_p7 = pnand %p14631_p4, %p14790_p5 }
 0xe93   : > { %p14637_p11 = por %p14636_p10, %p14635_p9 }
 0xe94   : > { %p14633_p8 = pneg %p14632_p7 }
 0xe95   : > { %p14639_p13 = por %p14638_p12, %p14637_p11 }
 0xe97   : > { %p14640_p0 = pnand %p14639_p13, %p14633_p8 }
 0xe99   : > { %14643 = shalt.err (!%p14640_p0)
}
 0xe9a   : > { %s14685_s29 = smov 64   ;;  %s14686_s15 = smov 4  }
 0xe9b   : > { %14230 = dma.vmem_to_hbm [thread:$0]  (%p14790_p5), %s17778_s17, 256, %s17776_s20, %s17780_s25, %s14685_s29, %s14685_s29, %s14686_s15  }
 0xe9c PF: > { %p14236_p1 = scmp.ge.s32.totalorder %s14678_s24, 2  ;;  %s10226_s16 = sand.u32 1, %s14666_s21  }
 0xe9d   : > { %s10227_s0 = scalar_lea.sflag [#allocation6], %s10226_s16 }
 0xe9e   : > { %p14233_p2 = pnand %p14236_p1, %p14794_p6 }
 0xea0   : > { %14661 = dma.done.wait (!%p14233_p2), %s10227_s0, 256  }
 0xea1   : > { %14663 = vsyncadd (!%p14233_p2), %s10227_s0, 4294967040  ;;  %p22_p3 = scmp.ge.s32.totalorder %s14777_s27, 4   ;;  %s17846_s21 = smov %s14670_s22 }
 0xea2   : > { %s17847_s22 = smov %s14674_s23  ;;  %s17848_s23 = smov %s14788_s30 }
 0xea3   : > { %s17849_s24 = smov %s14777_s27  ;;  %24 = sbr.rel (!%p22_p3) target bundleno = 5 (0x5), region = 143 }
 0xeaa   :  { %10232 = vsyncpa [#allocation6], 1 }
 0xeab   :  { %10234 = vsyncpa [#allocation6 + $0x1], 1 }

</bundles_post_ra>
